<compile_context>
chip_gen: v7x
topology: tpu7x:2x2x1
jax: 0.10.0
libtpu: 0.0.40
codegen_flags: <defaults>
</compile_context>

<pallas_src>
import functools

import jax
import jax.numpy as jnp
import numpy as np
from jax.experimental import pallas as pl
from jax.experimental.pallas import tpu as pltpu

EMB_SIZE = 10000          # vocabulary size
EMB_DIM  = 1000           # Embedding dim / LSTM input dim (PyTorch)
HIDDEN   = 64             # LSTM hidden size
GATES    = 4 * HIDDEN     # i | f | g | o (PyTorch gate order)
PROJ     = 32             # per-branch Linear output
NUM_BRANCHES = 2          # text, question


def _packed_rows(batch):
    """Both branches packed into the sublane (row) dim, padded to >= 8 rows."""
    return max(8, ((NUM_BRANCHES * batch + 7) // 8) * 8)


def lstm_packed_kernel(ids_ref, gt_hbm, whh_ref, wlin_ref, blin_ref, out_ref,
                       gx_buf, h_scr, c_scr, hs_scr, dma_sem,
                       *, batch, s_chunk, bp):
    """One sequence-chunk grid step; both branches packed into the row dim.

    ids_ref : SMEM (S*bp,) int32   scalar-prefetched token ids (question ids
                                   pre-offset by EMB_SIZE; pad rows are 0)
    gt_hbm  : HBM  (2V, 4H) f32    folded table  emb @ W_ih^T + b_ih + b_hh
    whh_ref : VMEM (H, 8H)  bf16   [W_hh_text | W_hh_question], pre-transposed
    wlin_ref: VMEM (H, 2P)  f32    [W_lin_text | W_lin_question]
    blin_ref: VMEM (1, 2P)  f32
    out_ref : VMEM (s_chunk*bp, 2P) f32
    gx_buf  : VMEM (2, bp, 4H) f32 double-buffered gathered gate pre-activations
    h_scr/c_scr : VMEM (bp, H) f32 recurrent state, carried across seq chunks
    hs_scr  : VMEM (s_chunk*bp, H) f32 hidden states for the bulk projection
    dma_sem : DMA semaphores (2, bp)
    """
    chunk = pl.program_id(0)
    H = HIDDEN

    def fetch_step(row_idx, slot):
        flat = row_idx * bp
        for r in range(bp):
            tok = ids_ref[flat + r]
            pltpu.make_async_copy(gt_hbm.at[tok], gx_buf.at[slot, r],
                                  dma_sem.at[slot, r]).start()

    def wait_step(slot):
        for r in range(bp):
            pltpu.make_async_copy(gt_hbm.at[0], gx_buf.at[slot, r],
                                  dma_sem.at[slot, r]).wait()

    # Reset the recurrent state at the start of the sequence.
    @pl.when(chunk == 0)
    def _():
        h_scr[...] = jnp.zeros_like(h_scr)
        c_scr[...] = jnp.zeros_like(c_scr)

    base = chunk * s_chunk
    fetch_step(base, 0)                      # prime the first timestep's gather

    # Recurrent state lives in vregs for the whole chunk.
    h = h_scr[...]
    c = c_scr[...]

    # rows [0, batch) = text branch, rows [batch, 2*batch) = question branch.
    is_text = jax.lax.broadcasted_iota(jnp.int32, (bp, 1), 0) < batch

    for t in range(s_chunk):                 # fully unrolled serial recurrence
        slot = t & 1
        wait_step(slot)
        gx = gx_buf[slot]                    # (bp, 4H) gathered pre-activations
        if t + 1 < s_chunk:                  # prefetch next timestep's rows
            fetch_step(base + t + 1, 1 - slot)

        # One small MXU matmul covers both branches; per-row select picks the
        # right branch's hidden->gate contribution.
        full = jnp.dot(h.astype(jnp.bfloat16), whh_ref[...],
                       preferred_element_type=jnp.float32)           # (bp, 8H)
        gates = gx + jnp.where(is_text, full[:, :GATES], full[:, GATES:])

        i_g = jax.nn.sigmoid(gates[:, 0 * H:1 * H])
        f_g = jax.nn.sigmoid(gates[:, 1 * H:2 * H])
        g_g = jnp.tanh(gates[:, 2 * H:3 * H])        # tanh only on the g slice
        o_g = jax.nn.sigmoid(gates[:, 3 * H:4 * H])
        c = f_g * c + i_g * g_g
        h = o_g * jnp.tanh(c)
        hs_scr[t * bp:(t + 1) * bp, :] = h

    h_scr[...] = h                           # write the carry back once per chunk
    c_scr[...] = c

    # Bulk output projection for both branches at once (one matmul per chunk).
    out_ref[...] = (jnp.dot(hs_scr[...], wlin_ref[...],
                            preferred_element_type=jnp.float32)
                    + blin_ref[...]).astype(out_ref.dtype)


def run_packed_lstm(ids, gates_tbl, whh_both, wlin_both, blin_both, *,
                    seq_len, batch, s_chunk):
    bp = _packed_rows(batch)
    if seq_len % s_chunk != 0:
        s_chunk = seq_len                    # fall back to one chunk per sequence
    n_chunks = seq_len // s_chunk
    rows = s_chunk * bp

    kernel = functools.partial(lstm_packed_kernel,
                               batch=batch, s_chunk=s_chunk, bp=bp)

    grid_spec = pltpu.PrefetchScalarGridSpec(
        num_scalar_prefetch=1,               # token ids -> SMEM
        grid=(n_chunks,),
        in_specs=[
            pl.BlockSpec(memory_space=pl.ANY),                          # folded table stays in HBM
            pl.BlockSpec((HIDDEN, 2 * GATES), lambda c, ids: (0, 0)),   # whh  (resident)
            pl.BlockSpec((HIDDEN, 2 * PROJ), lambda c, ids: (0, 0)),    # wlin (resident)
            pl.BlockSpec((1, 2 * PROJ), lambda c, ids: (0, 0)),         # blin (resident)
        ],
        out_specs=pl.BlockSpec((rows, 2 * PROJ), lambda c, ids: (c, 0)),
        scratch_shapes=[
            pltpu.VMEM((2, bp, GATES), jnp.float32),     # gather double buffer
            pltpu.VMEM((bp, HIDDEN), jnp.float32),       # h carry
            pltpu.VMEM((bp, HIDDEN), jnp.float32),       # c carry
            pltpu.VMEM((rows, HIDDEN), jnp.float32),     # chunk hidden states
            pltpu.SemaphoreType.DMA((2, bp)),
        ],
    )

    return pl.pallas_call(
        kernel,
        out_shape=jax.ShapeDtypeStruct((seq_len * bp, 2 * PROJ), jnp.float32),
        grid_spec=grid_spec,
        compiler_params=pltpu.CompilerParams(
            dimension_semantics=("arbitrary",)),     # h/c carried across seq chunks
    )(ids, gates_tbl, whh_both, wlin_both, blin_both)


def init_params(key):
    """Returns (kernel_params, raw_per_branch_params).

    kernel_params hold the offline-folded, branch-concatenated tensors the
    Pallas kernel consumes; raw params feed the pure-JAX reference only.
    Folding W_ih / biases into the embedding table is exact for inference
    (frozen Embedding + W_ih); whh is stored bf16 (f32 accumulation in-kernel)."""
    s = 1.0 / float(np.sqrt(HIDDEN))

    def branch(k):
        kk = jax.random.split(k, 7)
        emb = jax.random.normal(kk[0], (EMB_SIZE, EMB_DIM), jnp.float32)  # nn.Embedding ~ N(0,1)
        w_ih = jax.random.uniform(kk[1], (GATES, EMB_DIM), jnp.float32, -s, s)
        w_hh = jax.random.uniform(kk[2], (GATES, HIDDEN), jnp.float32, -s, s)
        b_ih = jax.random.uniform(kk[3], (GATES,), jnp.float32, -s, s)
        b_hh = jax.random.uniform(kk[4], (GATES,), jnp.float32, -s, s)
        w_lin = jax.random.uniform(kk[5], (PROJ, HIDDEN), jnp.float32, -s, s)
        b_lin = jax.random.uniform(kk[6], (PROJ,), jnp.float32, -s, s)
        # Offline fold: per-token input contribution to the gates, incl. both biases.
        gates_tbl = (jnp.dot(emb, w_ih.T, precision=jax.lax.Precision.HIGHEST)
                     + b_ih + b_hh)                                     # (V, 4H) f32
        raw = dict(emb=emb, w_ih=w_ih, w_hh=w_hh, b_ih=b_ih, b_hh=b_hh,
                   w_lin=w_lin, b_lin=b_lin)
        packed = dict(gates_tbl=gates_tbl,
                      whh=w_hh.T.astype(jnp.bfloat16),    # (H, 4H) bf16
                      wlin=w_lin.T,                       # (H, P) f32
                      blin=b_lin.reshape(1, PROJ))
        return packed, raw

    k_text, k_q = jax.random.split(key)
    (pt, rt), (pq, rq) = branch(k_text), branch(k_q)
    kernel_params = dict(
        gates_tbl=jnp.concatenate([pt["gates_tbl"], pq["gates_tbl"]], axis=0),  # (2V, 4H)
        whh=jnp.concatenate([pt["whh"], pq["whh"]], axis=1),                    # (H, 8H)
        wlin=jnp.concatenate([pt["wlin"], pq["wlin"]], axis=1),                 # (H, 2P)
        blin=jnp.concatenate([pt["blin"], pq["blin"]], axis=1),                 # (1, 2P)
    )
    return kernel_params, (rt, rq)


def net1_forward(params, x, y, s_chunk=None):
    """x, y: (S, B) int32 token ids (time-major). Returns feature_all (S, B, 64)."""
    S, B = x.shape
    bp = _packed_rows(B)
    if s_chunk is None:
        s_chunk = S                          # one chunk per sequence for small S
    # Pack both branches into the padded row dim; question ids address the
    # second half of the combined folded table. Flattened ids keep SMEM small.
    pad = jnp.zeros((S, bp - NUM_BRANCHES * B), jnp.int32)
    ids = jnp.concatenate([x, y + EMB_SIZE, pad], axis=1).astype(jnp.int32).reshape(-1)

    out2d = run_packed_lstm(ids, params["gates_tbl"], params["whh"],
                            params["wlin"], params["blin"],
                            seq_len=S, batch=B, s_chunk=s_chunk)      # (S*bp, 2P)
    out = out2d.reshape(S, bp, NUM_BRANCHES * PROJ)
    # Text rows carry their result in the first PROJ lanes, question rows in
    # the last PROJ lanes; assemble feature_all = cat([text, question], dim=-1).
    feature_all = jnp.concatenate(
        [out[:, 0:B, :PROJ], out[:, B:NUM_BRANCHES * B, PROJ:]], axis=-1)
    # TODO(synk): the original module's `self.result` head (Linear(32->64)+Softmax)
    # is shape-inconsistent with feature_all (last dim 64, not 32) and its output
    # is not returned by forward(); it is therefore omitted here.
    return feature_all


def _reference_forward(raw_params, x, y):
    """Pure-JAX (unfolded) reference of the intended PyTorch forward pass."""
    hi = jax.lax.Precision.HIGHEST

    def branch(p, ids):
        e = p["emb"][ids]                                             # (S, B, D)
        gx = (jnp.einsum("sbd,gd->sbg", e, p["w_ih"], precision=hi)
              + p["b_ih"] + p["b_hh"])

        def step(carry, gx_t):
            h, c = carry
            g = gx_t + jnp.dot(h, p["w_hh"].T, precision=hi)
            i = jax.nn.sigmoid(g[:, 0 * HIDDEN:1 * HIDDEN])
            f = jax.nn.sigmoid(g[:, 1 * HIDDEN:2 * HIDDEN])
            gg = jnp.tanh(g[:, 2 * HIDDEN:3 * HIDDEN])
            o = jax.nn.sigmoid(g[:, 3 * HIDDEN:4 * HIDDEN])
            c = f * c + i * gg
            h = o * jnp.tanh(c)
            return (h, c), h

        Bb = ids.shape[1]
        init = (jnp.zeros((Bb, HIDDEN), jnp.float32),
                jnp.zeros((Bb, HIDDEN), jnp.float32))
        _, hs = jax.lax.scan(step, init, gx)                          # (S, B, H)
        return jnp.einsum("sbh,ph->sbp", hs, p["w_lin"], precision=hi) + p["b_lin"]

    return jnp.concatenate([branch(raw_params[0], x), branch(raw_params[1], y)],
                           axis=-1)


if __name__ == "__main__":
    S, B = 8, 2   # small shapes: seq=8, batch=2
    key = jax.random.PRNGKey(0)
    k_params, k_x, k_y = jax.random.split(key, 3)

    params, raw = init_params(k_params)
    x = jax.random.randint(k_x, (S, B), 0, EMB_SIZE, dtype=jnp.int32)
    y = jax.random.randint(k_y, (S, B), 0, EMB_SIZE, dtype=jnp.int32)

    fwd = jax.jit(net1_forward)
    feature_all = jax.block_until_ready(fwd(params, x, y))

    assert feature_all.shape == (S, B, NUM_BRANCHES * PROJ)
    assert feature_all.dtype == jnp.float32

    # Correctness vs the unfolded pure-JAX reference (bf16 whh -> loose tolerance).
    ref = _reference_forward(raw, x, y)
    np.testing.assert_allclose(np.asarray(feature_all), np.asarray(ref),
                               rtol=2e-2, atol=2e-2)
    print("KERNEL_OK")
</pallas_src>

<mosaic_0001>
module attributes {stable_mosaic.version = 11 : i64} {
  func.func @lstm_packed_kernel(%arg0: i32, %arg1: memref<64xi32, #tpu.memory_space<smem>>, %arg2: memref<20000x256xf32, #tpu.memory_space<any>>, %arg3: memref<64x512xbf16, #tpu.memory_space<vmem>>, %arg4: memref<64x64xf32, #tpu.memory_space<vmem>>, %arg5: memref<1x64xf32, #tpu.memory_space<vmem>>, %arg6: memref<64x64xf32, #tpu.memory_space<vmem>>, %arg7: memref<2x8x256xf32, #tpu.memory_space<vmem>>, %arg8: memref<8x64xf32, #tpu.memory_space<vmem>>, %arg9: memref<8x64xf32, #tpu.memory_space<vmem>>, %arg10: memref<64x64xf32, #tpu.memory_space<vmem>>, %arg11: memref<2x8x!tpu.dma_semaphore, #tpu.memory_space<semaphore_mem>>) attributes {dimension_semantics = [#tpu.dimension_semantics<arbitrary>], iteration_bounds = array<i64: 1>, scalar_prefetch = 1 : i64, scratch_operands = 5 : i64, tpu.core_type = #tpu.core_type<tc>, window_params = [{}, {pipeline_mode = #tpu.pipeline_mode<synchronous>, transform_indices = @transform_1, window_bounds = array<i64: 64, 512>}, {pipeline_mode = #tpu.pipeline_mode<synchronous>, transform_indices = @transform_2, window_bounds = array<i64: 64, 64>}, {pipeline_mode = #tpu.pipeline_mode<synchronous>, transform_indices = @transform_3, window_bounds = array<i64: 1, 64>}, {transform_indices = @transform_4, window_bounds = array<i64: 64, 64>}]} {
    %c0_i32 = arith.constant 0 : i32
    %0 = arith.cmpi eq, %arg0, %c0_i32 : i32
    %1 = arith.extui %0 : i1 to i32
    %c0_i32_0 = arith.constant 0 : i32
    %2 = arith.cmpi ne, %1, %c0_i32_0 : i32
    scf.if %2 {
      %cst_1008 = arith.constant 0.000000e+00 : f32
      %1296 = vector.broadcast %cst_1008 : f32 to vector<8x64xf32>
      %c0_1009 = arith.constant 0 : index
      %c0_1010 = arith.constant 0 : index
      %1297 = vector.load %arg8[%c0_1009, %c0_1010] : memref<8x64xf32, #tpu.memory_space<vmem>>, vector<8x64xf32>
      tpu.vector_store %arg8[%c0_1009, %c0_1010], %1296 {strides = array<i32>} : memref<8x64xf32, #tpu.memory_space<vmem>>, vector<8x64xf32>,
      %cst_1011 = arith.constant 0.000000e+00 : f32
      %1298 = vector.broadcast %cst_1011 : f32 to vector<8x64xf32>
      %c0_1012 = arith.constant 0 : index
      %c0_1013 = arith.constant 0 : index
      %1299 = vector.load %arg9[%c0_1012, %c0_1013] : memref<8x64xf32, #tpu.memory_space<vmem>>, vector<8x64xf32>
      tpu.vector_store %arg9[%c0_1012, %c0_1013], %1298 {strides = array<i32>} : memref<8x64xf32, #tpu.memory_space<vmem>>, vector<8x64xf32>,
    } else {
    }
    %c8_i32 = arith.constant 8 : i32
    %3 = arith.muli %arg0, %c8_i32 : i32
    %c8_i32_1 = arith.constant 8 : i32
    %4 = arith.muli %3, %c8_i32_1 : i32
    %c0_i32_2 = arith.constant 0 : i32
    %5 = arith.addi %4, %c0_i32_2 : i32
    %6 = arith.index_cast %5 : i32 to index
    %7 = memref.load %arg1[%6] : memref<64xi32, #tpu.memory_space<smem>>
    %c0_i32_3 = arith.constant 0 : i32
    %c0_i32_4 = arith.constant 0 : i32
    %c0_i32_5 = arith.constant 0 : i32
    %c0_i32_6 = arith.constant 0 : i32
    %c0_i32_7 = arith.constant 0 : i32
    %8 = tpu.memref_slice %arg2[%7, %c0_i32_7] : memref<20000x256xf32, #tpu.memory_space<any>> -> memref<1x256xf32, #tpu.memory_space<any>>
    %9 = tpu.memref_squeeze %8 : memref<1x256xf32, #tpu.memory_space<any>> -> memref<256xf32, #tpu.memory_space<any>>
    %c0_i32_8 = arith.constant 0 : i32
    %10 = tpu.memref_slice %arg7[%c0_i32_3, %c0_i32_4, %c0_i32_8] : memref<2x8x256xf32, #tpu.memory_space<vmem>> -> memref<1x1x256xf32, #tpu.memory_space<vmem>>
    %11 = tpu.memref_squeeze %10 : memref<1x1x256xf32, #tpu.memory_space<vmem>> -> memref<256xf32, #tpu.memory_space<vmem>>
    %12 = tpu.memref_slice %arg11[%c0_i32_5, %c0_i32_6] : memref<2x8x!tpu.dma_semaphore, #tpu.memory_space<semaphore_mem>> -> memref<1x1x!tpu.dma_semaphore, #tpu.memory_space<semaphore_mem>>
    %13 = tpu.memref_squeeze %12 : memref<1x1x!tpu.dma_semaphore, #tpu.memory_space<semaphore_mem>> -> memref<!tpu.dma_semaphore, #tpu.memory_space<semaphore_mem>>
    tpu.enqueue_dma source(%9 : memref<256xf32, #tpu.memory_space<any>>) target(%11 : memref<256xf32, #tpu.memory_space<vmem>>) target_semaphore(%13 : memref<!tpu.dma_semaphore, #tpu.memory_space<semaphore_mem>>)
    %c1_i32 = arith.constant 1 : i32
    %14 = arith.addi %4, %c1_i32 : i32
    %15 = arith.index_cast %14 : i32 to index
    %16 = memref.load %arg1[%15] : memref<64xi32, #tpu.memory_space<smem>>
    %c0_i32_9 = arith.constant 0 : i32
    %c1_i32_10 = arith.constant 1 : i32
    %c0_i32_11 = arith.constant 0 : i32
    %c1_i32_12 = arith.constant 1 : i32
    %c0_i32_13 = arith.constant 0 : i32
    %17 = tpu.memref_slice %arg2[%16, %c0_i32_13] : memref<20000x256xf32, #tpu.memory_space<any>> -> memref<1x256xf32, #tpu.memory_space<any>>
    %18 = tpu.memref_squeeze %17 : memref<1x256xf32, #tpu.memory_space<any>> -> memref<256xf32, #tpu.memory_space<any>>
    %c0_i32_14 = arith.constant 0 : i32
    %19 = tpu.memref_slice %arg7[%c0_i32_9, %c1_i32_10, %c0_i32_14] : memref<2x8x256xf32, #tpu.memory_space<vmem>> -> memref<1x1x256xf32, #tpu.memory_space<vmem>>
    %20 = tpu.memref_squeeze %19 : memref<1x1x256xf32, #tpu.memory_space<vmem>> -> memref<256xf32, #tpu.memory_space<vmem>>
    %21 = tpu.memref_slice %arg11[%c0_i32_11, %c1_i32_12] : memref<2x8x!tpu.dma_semaphore, #tpu.memory_space<semaphore_mem>> -> memref<1x1x!tpu.dma_semaphore, #tpu.memory_space<semaphore_mem>>
    %22 = tpu.memref_squeeze %21 : memref<1x1x!tpu.dma_semaphore, #tpu.memory_space<semaphore_mem>> -> memref<!tpu.dma_semaphore, #tpu.memory_space<semaphore_mem>>
    tpu.enqueue_dma source(%18 : memref<256xf32, #tpu.memory_space<any>>) target(%20 : memref<256xf32, #tpu.memory_space<vmem>>) target_semaphore(%22 : memref<!tpu.dma_semaphore, #tpu.memory_space<semaphore_mem>>)
    %c2_i32 = arith.constant 2 : i32
    %23 = arith.addi %4, %c2_i32 : i32
    %24 = arith.index_cast %23 : i32 to index
    %25 = memref.load %arg1[%24] : memref<64xi32, #tpu.memory_space<smem>>
    %c0_i32_15 = arith.constant 0 : i32
    %c2_i32_16 = arith.constant 2 : i32
    %c0_i32_17 = arith.constant 0 : i32
    %c2_i32_18 = arith.constant 2 : i32
    %c0_i32_19 = arith.constant 0 : i32
    %26 = tpu.memref_slice %arg2[%25, %c0_i32_19] : memref<20000x256xf32, #tpu.memory_space<any>> -> memref<1x256xf32, #tpu.memory_space<any>>
    %27 = tpu.memref_squeeze %26 : memref<1x256xf32, #tpu.memory_space<any>> -> memref<256xf32, #tpu.memory_space<any>>
    %c0_i32_20 = arith.constant 0 : i32
    %28 = tpu.memref_slice %arg7[%c0_i32_15, %c2_i32_16, %c0_i32_20] : memref<2x8x256xf32, #tpu.memory_space<vmem>> -> memref<1x1x256xf32, #tpu.memory_space<vmem>>
    %29 = tpu.memref_squeeze %28 : memref<1x1x256xf32, #tpu.memory_space<vmem>> -> memref<256xf32, #tpu.memory_space<vmem>>
    %30 = tpu.memref_slice %arg11[%c0_i32_17, %c2_i32_18] : memref<2x8x!tpu.dma_semaphore, #tpu.memory_space<semaphore_mem>> -> memref<1x1x!tpu.dma_semaphore, #tpu.memory_space<semaphore_mem>>
    %31 = tpu.memref_squeeze %30 : memref<1x1x!tpu.dma_semaphore, #tpu.memory_space<semaphore_mem>> -> memref<!tpu.dma_semaphore, #tpu.memory_space<semaphore_mem>>
    tpu.enqueue_dma source(%27 : memref<256xf32, #tpu.memory_space<any>>) target(%29 : memref<256xf32, #tpu.memory_space<vmem>>) target_semaphore(%31 : memref<!tpu.dma_semaphore, #tpu.memory_space<semaphore_mem>>)
    %c3_i32 = arith.constant 3 : i32
    %32 = arith.addi %4, %c3_i32 : i32
    %33 = arith.index_cast %32 : i32 to index
    %34 = memref.load %arg1[%33] : memref<64xi32, #tpu.memory_space<smem>>
    %c0_i32_21 = arith.constant 0 : i32
    %c3_i32_22 = arith.constant 3 : i32
    %c0_i32_23 = arith.constant 0 : i32
    %c3_i32_24 = arith.constant 3 : i32
    %c0_i32_25 = arith.constant 0 : i32
    %35 = tpu.memref_slice %arg2[%34, %c0_i32_25] : memref<20000x256xf32, #tpu.memory_space<any>> -> memref<1x256xf32, #tpu.memory_space<any>>
    %36 = tpu.memref_squeeze %35 : memref<1x256xf32, #tpu.memory_space<any>> -> memref<256xf32, #tpu.memory_space<any>>
    %c0_i32_26 = arith.constant 0 : i32
    %37 = tpu.memref_slice %arg7[%c0_i32_21, %c3_i32_22, %c0_i32_26] : memref<2x8x256xf32, #tpu.memory_space<vmem>> -> memref<1x1x256xf32, #tpu.memory_space<vmem>>
    %38 = tpu.memref_squeeze %37 : memref<1x1x256xf32, #tpu.memory_space<vmem>> -> memref<256xf32, #tpu.memory_space<vmem>>
    %39 = tpu.memref_slice %arg11[%c0_i32_23, %c3_i32_24] : memref<2x8x!tpu.dma_semaphore, #tpu.memory_space<semaphore_mem>> -> memref<1x1x!tpu.dma_semaphore, #tpu.memory_space<semaphore_mem>>
    %40 = tpu.memref_squeeze %39 : memref<1x1x!tpu.dma_semaphore, #tpu.memory_space<semaphore_mem>> -> memref<!tpu.dma_semaphore, #tpu.memory_space<semaphore_mem>>
    tpu.enqueue_dma source(%36 : memref<256xf32, #tpu.memory_space<any>>) target(%38 : memref<256xf32, #tpu.memory_space<vmem>>) target_semaphore(%40 : memref<!tpu.dma_semaphore, #tpu.memory_space<semaphore_mem>>)
    %c4_i32 = arith.constant 4 : i32
    %41 = arith.addi %4, %c4_i32 : i32
    %42 = arith.index_cast %41 : i32 to index
    %43 = memref.load %arg1[%42] : memref<64xi32, #tpu.memory_space<smem>>
    %c0_i32_27 = arith.constant 0 : i32
    %c4_i32_28 = arith.constant 4 : i32
    %c0_i32_29 = arith.constant 0 : i32
    %c4_i32_30 = arith.constant 4 : i32
    %c0_i32_31 = arith.constant 0 : i32
    %44 = tpu.memref_slice %arg2[%43, %c0_i32_31] : memref<20000x256xf32, #tpu.memory_space<any>> -> memref<1x256xf32, #tpu.memory_space<any>>
    %45 = tpu.memref_squeeze %44 : memref<1x256xf32, #tpu.memory_space<any>> -> memref<256xf32, #tpu.memory_space<any>>
    %c0_i32_32 = arith.constant 0 : i32
    %46 = tpu.memref_slice %arg7[%c0_i32_27, %c4_i32_28, %c0_i32_32] : memref<2x8x256xf32, #tpu.memory_space<vmem>> -> memref<1x1x256xf32, #tpu.memory_space<vmem>>
    %47 = tpu.memref_squeeze %46 : memref<1x1x256xf32, #tpu.memory_space<vmem>> -> memref<256xf32, #tpu.memory_space<vmem>>
    %48 = tpu.memref_slice %arg11[%c0_i32_29, %c4_i32_30] : memref<2x8x!tpu.dma_semaphore, #tpu.memory_space<semaphore_mem>> -> memref<1x1x!tpu.dma_semaphore, #tpu.memory_space<semaphore_mem>>
    %49 = tpu.memref_squeeze %48 : memref<1x1x!tpu.dma_semaphore, #tpu.memory_space<semaphore_mem>> -> memref<!tpu.dma_semaphore, #tpu.memory_space<semaphore_mem>>
    tpu.enqueue_dma source(%45 : memref<256xf32, #tpu.memory_space<any>>) target(%47 : memref<256xf32, #tpu.memory_space<vmem>>) target_semaphore(%49 : memref<!tpu.dma_semaphore, #tpu.memory_space<semaphore_mem>>)
    %c5_i32 = arith.constant 5 : i32
    %50 = arith.addi %4, %c5_i32 : i32
    %51 = arith.index_cast %50 : i32 to index
    %52 = memref.load %arg1[%51] : memref<64xi32, #tpu.memory_space<smem>>
    %c0_i32_33 = arith.constant 0 : i32
    %c5_i32_34 = arith.constant 5 : i32
    %c0_i32_35 = arith.constant 0 : i32
    %c5_i32_36 = arith.constant 5 : i32
    %c0_i32_37 = arith.constant 0 : i32
    %53 = tpu.memref_slice %arg2[%52, %c0_i32_37] : memref<20000x256xf32, #tpu.memory_space<any>> -> memref<1x256xf32, #tpu.memory_space<any>>
    %54 = tpu.memref_squeeze %53 : memref<1x256xf32, #tpu.memory_space<any>> -> memref<256xf32, #tpu.memory_space<any>>
    %c0_i32_38 = arith.constant 0 : i32
    %55 = tpu.memref_slice %arg7[%c0_i32_33, %c5_i32_34, %c0_i32_38] : memref<2x8x256xf32, #tpu.memory_space<vmem>> -> memref<1x1x256xf32, #tpu.memory_space<vmem>>
    %56 = tpu.memref_squeeze %55 : memref<1x1x256xf32, #tpu.memory_space<vmem>> -> memref<256xf32, #tpu.memory_space<vmem>>
    %57 = tpu.memref_slice %arg11[%c0_i32_35, %c5_i32_36] : memref<2x8x!tpu.dma_semaphore, #tpu.memory_space<semaphore_mem>> -> memref<1x1x!tpu.dma_semaphore, #tpu.memory_space<semaphore_mem>>
    %58 = tpu.memref_squeeze %57 : memref<1x1x!tpu.dma_semaphore, #tpu.memory_space<semaphore_mem>> -> memref<!tpu.dma_semaphore, #tpu.memory_space<semaphore_mem>>
    tpu.enqueue_dma source(%54 : memref<256xf32, #tpu.memory_space<any>>) target(%56 : memref<256xf32, #tpu.memory_space<vmem>>) target_semaphore(%58 : memref<!tpu.dma_semaphore, #tpu.memory_space<semaphore_mem>>)
    %c6_i32 = arith.constant 6 : i32
    %59 = arith.addi %4, %c6_i32 : i32
    %60 = arith.index_cast %59 : i32 to index
    %61 = memref.load %arg1[%60] : memref<64xi32, #tpu.memory_space<smem>>
    %c0_i32_39 = arith.constant 0 : i32
    %c6_i32_40 = arith.constant 6 : i32
    %c0_i32_41 = arith.constant 0 : i32
    %c6_i32_42 = arith.constant 6 : i32
    %c0_i32_43 = arith.constant 0 : i32
    %62 = tpu.memref_slice %arg2[%61, %c0_i32_43] : memref<20000x256xf32, #tpu.memory_space<any>> -> memref<1x256xf32, #tpu.memory_space<any>>
    %63 = tpu.memref_squeeze %62 : memref<1x256xf32, #tpu.memory_space<any>> -> memref<256xf32, #tpu.memory_space<any>>
    %c0_i32_44 = arith.constant 0 : i32
    %64 = tpu.memref_slice %arg7[%c0_i32_39, %c6_i32_40, %c0_i32_44] : memref<2x8x256xf32, #tpu.memory_space<vmem>> -> memref<1x1x256xf32, #tpu.memory_space<vmem>>
    %65 = tpu.memref_squeeze %64 : memref<1x1x256xf32, #tpu.memory_space<vmem>> -> memref<256xf32, #tpu.memory_space<vmem>>
    %66 = tpu.memref_slice %arg11[%c0_i32_41, %c6_i32_42] : memref<2x8x!tpu.dma_semaphore, #tpu.memory_space<semaphore_mem>> -> memref<1x1x!tpu.dma_semaphore, #tpu.memory_space<semaphore_mem>>
    %67 = tpu.memref_squeeze %66 : memref<1x1x!tpu.dma_semaphore, #tpu.memory_space<semaphore_mem>> -> memref<!tpu.dma_semaphore, #tpu.memory_space<semaphore_mem>>
    tpu.enqueue_dma source(%63 : memref<256xf32, #tpu.memory_space<any>>) target(%65 : memref<256xf32, #tpu.memory_space<vmem>>) target_semaphore(%67 : memref<!tpu.dma_semaphore, #tpu.memory_space<semaphore_mem>>)
    %c7_i32 = arith.constant 7 : i32
    %68 = arith.addi %4, %c7_i32 : i32
    %69 = arith.index_cast %68 : i32 to index
    %70 = memref.load %arg1[%69] : memref<64xi32, #tpu.memory_space<smem>>
    %c0_i32_45 = arith.constant 0 : i32
    %c7_i32_46 = arith.constant 7 : i32
    %c0_i32_47 = arith.constant 0 : i32
    %c7_i32_48 = arith.constant 7 : i32
    %c0_i32_49 = arith.constant 0 : i32
    %71 = tpu.memref_slice %arg2[%70, %c0_i32_49] : memref<20000x256xf32, #tpu.memory_space<any>> -> memref<1x256xf32, #tpu.memory_space<any>>
    %72 = tpu.memref_squeeze %71 : memref<1x256xf32, #tpu.memory_space<any>> -> memref<256xf32, #tpu.memory_space<any>>
    %c0_i32_50 = arith.constant 0 : i32
    %73 = tpu.memref_slice %arg7[%c0_i32_45, %c7_i32_46, %c0_i32_50] : memref<2x8x256xf32, #tpu.memory_space<vmem>> -> memref<1x1x256xf32, #tpu.memory_space<vmem>>
    %74 = tpu.memref_squeeze %73 : memref<1x1x256xf32, #tpu.memory_space<vmem>> -> memref<256xf32, #tpu.memory_space<vmem>>
    %75 = tpu.memref_slice %arg11[%c0_i32_47, %c7_i32_48] : memref<2x8x!tpu.dma_semaphore, #tpu.memory_space<semaphore_mem>> -> memref<1x1x!tpu.dma_semaphore, #tpu.memory_space<semaphore_mem>>
    %76 = tpu.memref_squeeze %75 : memref<1x1x!tpu.dma_semaphore, #tpu.memory_space<semaphore_mem>> -> memref<!tpu.dma_semaphore, #tpu.memory_space<semaphore_mem>>
    tpu.enqueue_dma source(%72 : memref<256xf32, #tpu.memory_space<any>>) target(%74 : memref<256xf32, #tpu.memory_space<vmem>>) target_semaphore(%76 : memref<!tpu.dma_semaphore, #tpu.memory_space<semaphore_mem>>)
    %c0 = arith.constant 0 : index
    %c0_51 = arith.constant 0 : index
    %77 = vector.load %arg8[%c0, %c0_51] : memref<8x64xf32, #tpu.memory_space<vmem>>, vector<8x64xf32>
    %c0_52 = arith.constant 0 : index
    %c0_53 = arith.constant 0 : index
    %78 = vector.load %arg9[%c0_52, %c0_53] : memref<8x64xf32, #tpu.memory_space<vmem>>, vector<8x64xf32>
    %79 = tpu.iota {dimensions = array<i32: 0>} : vector<8x1xi32>
    %c2_i32_54 = arith.constant 2 : i32
    %80 = vector.broadcast %c2_i32_54 : i32 to vector<8x1xi32>
    %81 = arith.cmpi slt, %79, %80 : vector<8x1xi32>
    %c0_i32_55 = arith.constant 0 : i32
    %c0_i32_56 = arith.constant 0 : i32
    %c0_i32_57 = arith.constant 0 : i32
    %c0_i32_58 = arith.constant 0 : i32
    %c0_i32_59 = arith.constant 0 : i32
    %c0_i32_60 = arith.constant 0 : i32
    %82 = tpu.memref_slice %arg2[%c0_i32_55, %c0_i32_60] : memref<20000x256xf32, #tpu.memory_space<any>> -> memref<1x256xf32, #tpu.memory_space<any>>
    %83 = tpu.memref_squeeze %82 : memref<1x256xf32, #tpu.memory_space<any>> -> memref<256xf32, #tpu.memory_space<any>>
    %c0_i32_61 = arith.constant 0 : i32
    %84 = tpu.memref_slice %arg7[%c0_i32_56, %c0_i32_57, %c0_i32_61] : memref<2x8x256xf32, #tpu.memory_space<vmem>> -> memref<1x1x256xf32, #tpu.memory_space<vmem>>
    %85 = tpu.memref_squeeze %84 : memref<1x1x256xf32, #tpu.memory_space<vmem>> -> memref<256xf32, #tpu.memory_space<vmem>>
    %86 = tpu.memref_slice %arg11[%c0_i32_58, %c0_i32_59] : memref<2x8x!tpu.dma_semaphore, #tpu.memory_space<semaphore_mem>> -> memref<1x1x!tpu.dma_semaphore, #tpu.memory_space<semaphore_mem>>
    %87 = tpu.memref_squeeze %86 : memref<1x1x!tpu.dma_semaphore, #tpu.memory_space<semaphore_mem>> -> memref<!tpu.dma_semaphore, #tpu.memory_space<semaphore_mem>>
    tpu.wait_dma2 semaphore(%87 : memref<!tpu.dma_semaphore, #tpu.memory_space<semaphore_mem>>) src(%83 : memref<256xf32, #tpu.memory_space<any>>) dst(%85 : memref<256xf32, #tpu.memory_space<vmem>>)
    %c0_i32_62 = arith.constant 0 : i32
    %c0_i32_63 = arith.constant 0 : i32
    %c1_i32_64 = arith.constant 1 : i32
    %c0_i32_65 = arith.constant 0 : i32
    %c1_i32_66 = arith.constant 1 : i32
    %c0_i32_67 = arith.constant 0 : i32
    %88 = tpu.memref_slice %arg2[%c0_i32_62, %c0_i32_67] : memref<20000x256xf32, #tpu.memory_space<any>> -> memref<1x256xf32, #tpu.memory_space<any>>
    %89 = tpu.memref_squeeze %88 : memref<1x256xf32, #tpu.memory_space<any>> -> memref<256xf32, #tpu.memory_space<any>>
    %c0_i32_68 = arith.constant 0 : i32
    %90 = tpu.memref_slice %arg7[%c0_i32_63, %c1_i32_64, %c0_i32_68] : memref<2x8x256xf32, #tpu.memory_space<vmem>> -> memref<1x1x256xf32, #tpu.memory_space<vmem>>
    %91 = tpu.memref_squeeze %90 : memref<1x1x256xf32, #tpu.memory_space<vmem>> -> memref<256xf32, #tpu.memory_space<vmem>>
    %92 = tpu.memref_slice %arg11[%c0_i32_65, %c1_i32_66] : memref<2x8x!tpu.dma_semaphore, #tpu.memory_space<semaphore_mem>> -> memref<1x1x!tpu.dma_semaphore, #tpu.memory_space<semaphore_mem>>
    %93 = tpu.memref_squeeze %92 : memref<1x1x!tpu.dma_semaphore, #tpu.memory_space<semaphore_mem>> -> memref<!tpu.dma_semaphore, #tpu.memory_space<semaphore_mem>>
    tpu.wait_dma2 semaphore(%93 : memref<!tpu.dma_semaphore, #tpu.memory_space<semaphore_mem>>) src(%89 : memref<256xf32, #tpu.memory_space<any>>) dst(%91 : memref<256xf32, #tpu.memory_space<vmem>>)
    %c0_i32_69 = arith.constant 0 : i32
    %c0_i32_70 = arith.constant 0 : i32
    %c2_i32_71 = arith.constant 2 : i32
    %c0_i32_72 = arith.constant 0 : i32
    %c2_i32_73 = arith.constant 2 : i32
    %c0_i32_74 = arith.constant 0 : i32
    %94 = tpu.memref_slice %arg2[%c0_i32_69, %c0_i32_74] : memref<20000x256xf32, #tpu.memory_space<any>> -> memref<1x256xf32, #tpu.memory_space<any>>
    %95 = tpu.memref_squeeze %94 : memref<1x256xf32, #tpu.memory_space<any>> -> memref<256xf32, #tpu.memory_space<any>>
    %c0_i32_75 = arith.constant 0 : i32
    %96 = tpu.memref_slice %arg7[%c0_i32_70, %c2_i32_71, %c0_i32_75] : memref<2x8x256xf32, #tpu.memory_space<vmem>> -> memref<1x1x256xf32, #tpu.memory_space<vmem>>
    %97 = tpu.memref_squeeze %96 : memref<1x1x256xf32, #tpu.memory_space<vmem>> -> memref<256xf32, #tpu.memory_space<vmem>>
    %98 = tpu.memref_slice %arg11[%c0_i32_72, %c2_i32_73] : memref<2x8x!tpu.dma_semaphore, #tpu.memory_space<semaphore_mem>> -> memref<1x1x!tpu.dma_semaphore, #tpu.memory_space<semaphore_mem>>
    %99 = tpu.memref_squeeze %98 : memref<1x1x!tpu.dma_semaphore, #tpu.memory_space<semaphore_mem>> -> memref<!tpu.dma_semaphore, #tpu.memory_space<semaphore_mem>>
    tpu.wait_dma2 semaphore(%99 : memref<!tpu.dma_semaphore, #tpu.memory_space<semaphore_mem>>) src(%95 : memref<256xf32, #tpu.memory_space<any>>) dst(%97 : memref<256xf32, #tpu.memory_space<vmem>>)
    %c0_i32_76 = arith.constant 0 : i32
    %c0_i32_77 = arith.constant 0 : i32
    %c3_i32_78 = arith.constant 3 : i32
    %c0_i32_79 = arith.constant 0 : i32
    %c3_i32_80 = arith.constant 3 : i32
    %c0_i32_81 = arith.constant 0 : i32
    %100 = tpu.memref_slice %arg2[%c0_i32_76, %c0_i32_81] : memref<20000x256xf32, #tpu.memory_space<any>> -> memref<1x256xf32, #tpu.memory_space<any>>
    %101 = tpu.memref_squeeze %100 : memref<1x256xf32, #tpu.memory_space<any>> -> memref<256xf32, #tpu.memory_space<any>>
    %c0_i32_82 = arith.constant 0 : i32
    %102 = tpu.memref_slice %arg7[%c0_i32_77, %c3_i32_78, %c0_i32_82] : memref<2x8x256xf32, #tpu.memory_space<vmem>> -> memref<1x1x256xf32, #tpu.memory_space<vmem>>
    %103 = tpu.memref_squeeze %102 : memref<1x1x256xf32, #tpu.memory_space<vmem>> -> memref<256xf32, #tpu.memory_space<vmem>>
    %104 = tpu.memref_slice %arg11[%c0_i32_79, %c3_i32_80] : memref<2x8x!tpu.dma_semaphore, #tpu.memory_space<semaphore_mem>> -> memref<1x1x!tpu.dma_semaphore, #tpu.memory_space<semaphore_mem>>
    %105 = tpu.memref_squeeze %104 : memref<1x1x!tpu.dma_semaphore, #tpu.memory_space<semaphore_mem>> -> memref<!tpu.dma_semaphore, #tpu.memory_space<semaphore_mem>>
    tpu.wait_dma2 semaphore(%105 : memref<!tpu.dma_semaphore, #tpu.memory_space<semaphore_mem>>) src(%101 : memref<256xf32, #tpu.memory_space<any>>) dst(%103 : memref<256xf32, #tpu.memory_space<vmem>>)
    %c0_i32_83 = arith.constant 0 : i32
    %c0_i32_84 = arith.constant 0 : i32
    %c4_i32_85 = arith.constant 4 : i32
    %c0_i32_86 = arith.constant 0 : i32
    %c4_i32_87 = arith.constant 4 : i32
    %c0_i32_88 = arith.constant 0 : i32
    %106 = tpu.memref_slice %arg2[%c0_i32_83, %c0_i32_88] : memref<20000x256xf32, #tpu.memory_space<any>> -> memref<1x256xf32, #tpu.memory_space<any>>
    %107 = tpu.memref_squeeze %106 : memref<1x256xf32, #tpu.memory_space<any>> -> memref<256xf32, #tpu.memory_space<any>>
    %c0_i32_89 = arith.constant 0 : i32
    %108 = tpu.memref_slice %arg7[%c0_i32_84, %c4_i32_85, %c0_i32_89] : memref<2x8x256xf32, #tpu.memory_space<vmem>> -> memref<1x1x256xf32, #tpu.memory_space<vmem>>
    %109 = tpu.memref_squeeze %108 : memref<1x1x256xf32, #tpu.memory_space<vmem>> -> memref<256xf32, #tpu.memory_space<vmem>>
    %110 = tpu.memref_slice %arg11[%c0_i32_86, %c4_i32_87] : memref<2x8x!tpu.dma_semaphore, #tpu.memory_space<semaphore_mem>> -> memref<1x1x!tpu.dma_semaphore, #tpu.memory_space<semaphore_mem>>
    %111 = tpu.memref_squeeze %110 : memref<1x1x!tpu.dma_semaphore, #tpu.memory_space<semaphore_mem>> -> memref<!tpu.dma_semaphore, #tpu.memory_space<semaphore_mem>>
    tpu.wait_dma2 semaphore(%111 : memref<!tpu.dma_semaphore, #tpu.memory_space<semaphore_mem>>) src(%107 : memref<256xf32, #tpu.memory_space<any>>) dst(%109 : memref<256xf32, #tpu.memory_space<vmem>>)
    %c0_i32_90 = arith.constant 0 : i32
    %c0_i32_91 = arith.constant 0 : i32
    %c5_i32_92 = arith.constant 5 : i32
    %c0_i32_93 = arith.constant 0 : i32
    %c5_i32_94 = arith.constant 5 : i32
    %c0_i32_95 = arith.constant 0 : i32
    %112 = tpu.memref_slice %arg2[%c0_i32_90, %c0_i32_95] : memref<20000x256xf32, #tpu.memory_space<any>> -> memref<1x256xf32, #tpu.memory_space<any>>
    %113 = tpu.memref_squeeze %112 : memref<1x256xf32, #tpu.memory_space<any>> -> memref<256xf32, #tpu.memory_space<any>>
    %c0_i32_96 = arith.constant 0 : i32
    %114 = tpu.memref_slice %arg7[%c0_i32_91, %c5_i32_92, %c0_i32_96] : memref<2x8x256xf32, #tpu.memory_space<vmem>> -> memref<1x1x256xf32, #tpu.memory_space<vmem>>
    %115 = tpu.memref_squeeze %114 : memref<1x1x256xf32, #tpu.memory_space<vmem>> -> memref<256xf32, #tpu.memory_space<vmem>>
    %116 = tpu.memref_slice %arg11[%c0_i32_93, %c5_i32_94] : memref<2x8x!tpu.dma_semaphore, #tpu.memory_space<semaphore_mem>> -> memref<1x1x!tpu.dma_semaphore, #tpu.memory_space<semaphore_mem>>
    %117 = tpu.memref_squeeze %116 : memref<1x1x!tpu.dma_semaphore, #tpu.memory_space<semaphore_mem>> -> memref<!tpu.dma_semaphore, #tpu.memory_space<semaphore_mem>>
    tpu.wait_dma2 semaphore(%117 : memref<!tpu.dma_semaphore, #tpu.memory_space<semaphore_mem>>) src(%113 : memref<256xf32, #tpu.memory_space<any>>) dst(%115 : memref<256xf32, #tpu.memory_space<vmem>>)
    %c0_i32_97 = arith.constant 0 : i32
    %c0_i32_98 = arith.constant 0 : i32
    %c6_i32_99 = arith.constant 6 : i32
    %c0_i32_100 = arith.constant 0 : i32
    %c6_i32_101 = arith.constant 6 : i32
    %c0_i32_102 = arith.constant 0 : i32
    %118 = tpu.memref_slice %arg2[%c0_i32_97, %c0_i32_102] : memref<20000x256xf32, #tpu.memory_space<any>> -> memref<1x256xf32, #tpu.memory_space<any>>
    %119 = tpu.memref_squeeze %118 : memref<1x256xf32, #tpu.memory_space<any>> -> memref<256xf32, #tpu.memory_space<any>>
    %c0_i32_103 = arith.constant 0 : i32
    %120 = tpu.memref_slice %arg7[%c0_i32_98, %c6_i32_99, %c0_i32_103] : memref<2x8x256xf32, #tpu.memory_space<vmem>> -> memref<1x1x256xf32, #tpu.memory_space<vmem>>
    %121 = tpu.memref_squeeze %120 : memref<1x1x256xf32, #tpu.memory_space<vmem>> -> memref<256xf32, #tpu.memory_space<vmem>>
    %122 = tpu.memref_slice %arg11[%c0_i32_100, %c6_i32_101] : memref<2x8x!tpu.dma_semaphore, #tpu.memory_space<semaphore_mem>> -> memref<1x1x!tpu.dma_semaphore, #tpu.memory_space<semaphore_mem>>
    %123 = tpu.memref_squeeze %122 : memref<1x1x!tpu.dma_semaphore, #tpu.memory_space<semaphore_mem>> -> memref<!tpu.dma_semaphore, #tpu.memory_space<semaphore_mem>>
    tpu.wait_dma2 semaphore(%123 : memref<!tpu.dma_semaphore, #tpu.memory_space<semaphore_mem>>) src(%119 : memref<256xf32, #tpu.memory_space<any>>) dst(%121 : memref<256xf32, #tpu.memory_space<vmem>>)
    %c0_i32_104 = arith.constant 0 : i32
    %c0_i32_105 = arith.constant 0 : i32
    %c7_i32_106 = arith.constant 7 : i32
    %c0_i32_107 = arith.constant 0 : i32
    %c7_i32_108 = arith.constant 7 : i32
    %c0_i32_109 = arith.constant 0 : i32
    %124 = tpu.memref_slice %arg2[%c0_i32_104, %c0_i32_109] : memref<20000x256xf32, #tpu.memory_space<any>> -> memref<1x256xf32, #tpu.memory_space<any>>
    %125 = tpu.memref_squeeze %124 : memref<1x256xf32, #tpu.memory_space<any>> -> memref<256xf32, #tpu.memory_space<any>>
    %c0_i32_110 = arith.constant 0 : i32
    %126 = tpu.memref_slice %arg7[%c0_i32_105, %c7_i32_106, %c0_i32_110] : memref<2x8x256xf32, #tpu.memory_space<vmem>> -> memref<1x1x256xf32, #tpu.memory_space<vmem>>
    %127 = tpu.memref_squeeze %126 : memref<1x1x256xf32, #tpu.memory_space<vmem>> -> memref<256xf32, #tpu.memory_space<vmem>>
    %128 = tpu.memref_slice %arg11[%c0_i32_107, %c7_i32_108] : memref<2x8x!tpu.dma_semaphore, #tpu.memory_space<semaphore_mem>> -> memref<1x1x!tpu.dma_semaphore, #tpu.memory_space<semaphore_mem>>
    %129 = tpu.memref_squeeze %128 : memref<1x1x!tpu.dma_semaphore, #tpu.memory_space<semaphore_mem>> -> memref<!tpu.dma_semaphore, #tpu.memory_space<semaphore_mem>>
    tpu.wait_dma2 semaphore(%129 : memref<!tpu.dma_semaphore, #tpu.memory_space<semaphore_mem>>) src(%125 : memref<256xf32, #tpu.memory_space<any>>) dst(%127 : memref<256xf32, #tpu.memory_space<vmem>>)
    %c0_111 = arith.constant 0 : index
    %c0_112 = arith.constant 0 : index
    %c0_113 = arith.constant 0 : index
    %130 = vector.load %arg7[%c0_111, %c0_112, %c0_113] : memref<2x8x256xf32, #tpu.memory_space<vmem>>, vector<1x8x256xf32>
    %131 = vector.shape_cast %130 : vector<1x8x256xf32> to vector<8x256xf32>
    %c0_i32_114 = arith.constant 0 : i32
    %132 = arith.addi %3, %c0_i32_114 : i32
    %c1_i32_115 = arith.constant 1 : i32
    %133 = arith.addi %132, %c1_i32_115 : i32
    %c8_i32_116 = arith.constant 8 : i32
    %134 = arith.muli %133, %c8_i32_116 : i32
    %c0_i32_117 = arith.constant 0 : i32
    %135 = arith.addi %134, %c0_i32_117 : i32
    %136 = arith.index_cast %135 : i32 to index
    %137 = memref.load %arg1[%136] : memref<64xi32, #tpu.memory_space<smem>>
    %c1_i32_118 = arith.constant 1 : i32
    %c0_i32_119 = arith.constant 0 : i32
    %c1_i32_120 = arith.constant 1 : i32
    %c0_i32_121 = arith.constant 0 : i32
    %c0_i32_122 = arith.constant 0 : i32
    %138 = tpu.memref_slice %arg2[%137, %c0_i32_122] : memref<20000x256xf32, #tpu.memory_space<any>> -> memref<1x256xf32, #tpu.memory_space<any>>
    %139 = tpu.memref_squeeze %138 : memref<1x256xf32, #tpu.memory_space<any>> -> memref<256xf32, #tpu.memory_space<any>>
    %c0_i32_123 = arith.constant 0 : i32
    %140 = tpu.memref_slice %arg7[%c1_i32_118, %c0_i32_119, %c0_i32_123] : memref<2x8x256xf32, #tpu.memory_space<vmem>> -> memref<1x1x256xf32, #tpu.memory_space<vmem>>
    %141 = tpu.memref_squeeze %140 : memref<1x1x256xf32, #tpu.memory_space<vmem>> -> memref<256xf32, #tpu.memory_space<vmem>>
    %142 = tpu.memref_slice %arg11[%c1_i32_120, %c0_i32_121] : memref<2x8x!tpu.dma_semaphore, #tpu.memory_space<semaphore_mem>> -> memref<1x1x!tpu.dma_semaphore, #tpu.memory_space<semaphore_mem>>
    %143 = tpu.memref_squeeze %142 : memref<1x1x!tpu.dma_semaphore, #tpu.memory_space<semaphore_mem>> -> memref<!tpu.dma_semaphore, #tpu.memory_space<semaphore_mem>>
    tpu.enqueue_dma source(%139 : memref<256xf32, #tpu.memory_space<any>>) target(%141 : memref<256xf32, #tpu.memory_space<vmem>>) target_semaphore(%143 : memref<!tpu.dma_semaphore, #tpu.memory_space<semaphore_mem>>)
    %c1_i32_124 = arith.constant 1 : i32
    %144 = arith.addi %134, %c1_i32_124 : i32
    %145 = arith.index_cast %144 : i32 to index
    %146 = memref.load %arg1[%145] : memref<64xi32, #tpu.memory_space<smem>>
    %c1_i32_125 = arith.constant 1 : i32
    %c1_i32_126 = arith.constant 1 : i32
    %c1_i32_127 = arith.constant 1 : i32
    %c1_i32_128 = arith.constant 1 : i32
    %c0_i32_129 = arith.constant 0 : i32
    %147 = tpu.memref_slice %arg2[%146, %c0_i32_129] : memref<20000x256xf32, #tpu.memory_space<any>> -> memref<1x256xf32, #tpu.memory_space<any>>
    %148 = tpu.memref_squeeze %147 : memref<1x256xf32, #tpu.memory_space<any>> -> memref<256xf32, #tpu.memory_space<any>>
    %c0_i32_130 = arith.constant 0 : i32
    %149 = tpu.memref_slice %arg7[%c1_i32_125, %c1_i32_126, %c0_i32_130] : memref<2x8x256xf32, #tpu.memory_space<vmem>> -> memref<1x1x256xf32, #tpu.memory_space<vmem>>
    %150 = tpu.memref_squeeze %149 : memref<1x1x256xf32, #tpu.memory_space<vmem>> -> memref<256xf32, #tpu.memory_space<vmem>>
    %151 = tpu.memref_slice %arg11[%c1_i32_127, %c1_i32_128] : memref<2x8x!tpu.dma_semaphore, #tpu.memory_space<semaphore_mem>> -> memref<1x1x!tpu.dma_semaphore, #tpu.memory_space<semaphore_mem>>
    %152 = tpu.memref_squeeze %151 : memref<1x1x!tpu.dma_semaphore, #tpu.memory_space<semaphore_mem>> -> memref<!tpu.dma_semaphore, #tpu.memory_space<semaphore_mem>>
    tpu.enqueue_dma source(%148 : memref<256xf32, #tpu.memory_space<any>>) target(%150 : memref<256xf32, #tpu.memory_space<vmem>>) target_semaphore(%152 : memref<!tpu.dma_semaphore, #tpu.memory_space<semaphore_mem>>)
    %c2_i32_131 = arith.constant 2 : i32
    %153 = arith.addi %134, %c2_i32_131 : i32
    %154 = arith.index_cast %153 : i32 to index
    %155 = memref.load %arg1[%154] : memref<64xi32, #tpu.memory_space<smem>>
    %c1_i32_132 = arith.constant 1 : i32
    %c2_i32_133 = arith.constant 2 : i32
    %c1_i32_134 = arith.constant 1 : i32
    %c2_i32_135 = arith.constant 2 : i32
    %c0_i32_136 = arith.constant 0 : i32
    %156 = tpu.memref_slice %arg2[%155, %c0_i32_136] : memref<20000x256xf32, #tpu.memory_space<any>> -> memref<1x256xf32, #tpu.memory_space<any>>
    %157 = tpu.memref_squeeze %156 : memref<1x256xf32, #tpu.memory_space<any>> -> memref<256xf32, #tpu.memory_space<any>>
    %c0_i32_137 = arith.constant 0 : i32
    %158 = tpu.memref_slice %arg7[%c1_i32_132, %c2_i32_133, %c0_i32_137] : memref<2x8x256xf32, #tpu.memory_space<vmem>> -> memref<1x1x256xf32, #tpu.memory_space<vmem>>
    %159 = tpu.memref_squeeze %158 : memref<1x1x256xf32, #tpu.memory_space<vmem>> -> memref<256xf32, #tpu.memory_space<vmem>>
    %160 = tpu.memref_slice %arg11[%c1_i32_134, %c2_i32_135] : memref<2x8x!tpu.dma_semaphore, #tpu.memory_space<semaphore_mem>> -> memref<1x1x!tpu.dma_semaphore, #tpu.memory_space<semaphore_mem>>
    %161 = tpu.memref_squeeze %160 : memref<1x1x!tpu.dma_semaphore, #tpu.memory_space<semaphore_mem>> -> memref<!tpu.dma_semaphore, #tpu.memory_space<semaphore_mem>>
    tpu.enqueue_dma source(%157 : memref<256xf32, #tpu.memory_space<any>>) target(%159 : memref<256xf32, #tpu.memory_space<vmem>>) target_semaphore(%161 : memref<!tpu.dma_semaphore, #tpu.memory_space<semaphore_mem>>)
    %c3_i32_138 = arith.constant 3 : i32
    %162 = arith.addi %134, %c3_i32_138 : i32
    %163 = arith.index_cast %162 : i32 to index
    %164 = memref.load %arg1[%163] : memref<64xi32, #tpu.memory_space<smem>>
    %c1_i32_139 = arith.constant 1 : i32
    %c3_i32_140 = arith.constant 3 : i32
    %c1_i32_141 = arith.constant 1 : i32
    %c3_i32_142 = arith.constant 3 : i32
    %c0_i32_143 = arith.constant 0 : i32
    %165 = tpu.memref_slice %arg2[%164, %c0_i32_143] : memref<20000x256xf32, #tpu.memory_space<any>> -> memref<1x256xf32, #tpu.memory_space<any>>
    %166 = tpu.memref_squeeze %165 : memref<1x256xf32, #tpu.memory_space<any>> -> memref<256xf32, #tpu.memory_space<any>>
    %c0_i32_144 = arith.constant 0 : i32
    %167 = tpu.memref_slice %arg7[%c1_i32_139, %c3_i32_140, %c0_i32_144] : memref<2x8x256xf32, #tpu.memory_space<vmem>> -> memref<1x1x256xf32, #tpu.memory_space<vmem>>
    %168 = tpu.memref_squeeze %167 : memref<1x1x256xf32, #tpu.memory_space<vmem>> -> memref<256xf32, #tpu.memory_space<vmem>>
    %169 = tpu.memref_slice %arg11[%c1_i32_141, %c3_i32_142] : memref<2x8x!tpu.dma_semaphore, #tpu.memory_space<semaphore_mem>> -> memref<1x1x!tpu.dma_semaphore, #tpu.memory_space<semaphore_mem>>
    %170 = tpu.memref_squeeze %169 : memref<1x1x!tpu.dma_semaphore, #tpu.memory_space<semaphore_mem>> -> memref<!tpu.dma_semaphore, #tpu.memory_space<semaphore_mem>>
    tpu.enqueue_dma source(%166 : memref<256xf32, #tpu.memory_space<any>>) target(%168 : memref<256xf32, #tpu.memory_space<vmem>>) target_semaphore(%170 : memref<!tpu.dma_semaphore, #tpu.memory_space<semaphore_mem>>)
    %c4_i32_145 = arith.constant 4 : i32
    %171 = arith.addi %134, %c4_i32_145 : i32
    %172 = arith.index_cast %171 : i32 to index
    %173 = memref.load %arg1[%172] : memref<64xi32, #tpu.memory_space<smem>>
    %c1_i32_146 = arith.constant 1 : i32
    %c4_i32_147 = arith.constant 4 : i32
    %c1_i32_148 = arith.constant 1 : i32
    %c4_i32_149 = arith.constant 4 : i32
    %c0_i32_150 = arith.constant 0 : i32
    %174 = tpu.memref_slice %arg2[%173, %c0_i32_150] : memref<20000x256xf32, #tpu.memory_space<any>> -> memref<1x256xf32, #tpu.memory_space<any>>
    %175 = tpu.memref_squeeze %174 : memref<1x256xf32, #tpu.memory_space<any>> -> memref<256xf32, #tpu.memory_space<any>>
    %c0_i32_151 = arith.constant 0 : i32
    %176 = tpu.memref_slice %arg7[%c1_i32_146, %c4_i32_147, %c0_i32_151] : memref<2x8x256xf32, #tpu.memory_space<vmem>> -> memref<1x1x256xf32, #tpu.memory_space<vmem>>
    %177 = tpu.memref_squeeze %176 : memref<1x1x256xf32, #tpu.memory_space<vmem>> -> memref<256xf32, #tpu.memory_space<vmem>>
    %178 = tpu.memref_slice %arg11[%c1_i32_148, %c4_i32_149] : memref<2x8x!tpu.dma_semaphore, #tpu.memory_space<semaphore_mem>> -> memref<1x1x!tpu.dma_semaphore, #tpu.memory_space<semaphore_mem>>
    %179 = tpu.memref_squeeze %178 : memref<1x1x!tpu.dma_semaphore, #tpu.memory_space<semaphore_mem>> -> memref<!tpu.dma_semaphore, #tpu.memory_space<semaphore_mem>>
    tpu.enqueue_dma source(%175 : memref<256xf32, #tpu.memory_space<any>>) target(%177 : memref<256xf32, #tpu.memory_space<vmem>>) target_semaphore(%179 : memref<!tpu.dma_semaphore, #tpu.memory_space<semaphore_mem>>)
    %c5_i32_152 = arith.constant 5 : i32
    %180 = arith.addi %134, %c5_i32_152 : i32
    %181 = arith.index_cast %180 : i32 to index
    %182 = memref.load %arg1[%181] : memref<64xi32, #tpu.memory_space<smem>>
    %c1_i32_153 = arith.constant 1 : i32
    %c5_i32_154 = arith.constant 5 : i32
    %c1_i32_155 = arith.constant 1 : i32
    %c5_i32_156 = arith.constant 5 : i32
    %c0_i32_157 = arith.constant 0 : i32
    %183 = tpu.memref_slice %arg2[%182, %c0_i32_157] : memref<20000x256xf32, #tpu.memory_space<any>> -> memref<1x256xf32, #tpu.memory_space<any>>
    %184 = tpu.memref_squeeze %183 : memref<1x256xf32, #tpu.memory_space<any>> -> memref<256xf32, #tpu.memory_space<any>>
    %c0_i32_158 = arith.constant 0 : i32
    %185 = tpu.memref_slice %arg7[%c1_i32_153, %c5_i32_154, %c0_i32_158] : memref<2x8x256xf32, #tpu.memory_space<vmem>> -> memref<1x1x256xf32, #tpu.memory_space<vmem>>
    %186 = tpu.memref_squeeze %185 : memref<1x1x256xf32, #tpu.memory_space<vmem>> -> memref<256xf32, #tpu.memory_space<vmem>>
    %187 = tpu.memref_slice %arg11[%c1_i32_155, %c5_i32_156] : memref<2x8x!tpu.dma_semaphore, #tpu.memory_space<semaphore_mem>> -> memref<1x1x!tpu.dma_semaphore, #tpu.memory_space<semaphore_mem>>
    %188 = tpu.memref_squeeze %187 : memref<1x1x!tpu.dma_semaphore, #tpu.memory_space<semaphore_mem>> -> memref<!tpu.dma_semaphore, #tpu.memory_space<semaphore_mem>>
    tpu.enqueue_dma source(%184 : memref<256xf32, #tpu.memory_space<any>>) target(%186 : memref<256xf32, #tpu.memory_space<vmem>>) target_semaphore(%188 : memref<!tpu.dma_semaphore, #tpu.memory_space<semaphore_mem>>)
    %c6_i32_159 = arith.constant 6 : i32
    %189 = arith.addi %134, %c6_i32_159 : i32
    %190 = arith.index_cast %189 : i32 to index
    %191 = memref.load %arg1[%190] : memref<64xi32, #tpu.memory_space<smem>>
    %c1_i32_160 = arith.constant 1 : i32
    %c6_i32_161 = arith.constant 6 : i32
    %c1_i32_162 = arith.constant 1 : i32
    %c6_i32_163 = arith.constant 6 : i32
    %c0_i32_164 = arith.constant 0 : i32
    %192 = tpu.memref_slice %arg2[%191, %c0_i32_164] : memref<20000x256xf32, #tpu.memory_space<any>> -> memref<1x256xf32, #tpu.memory_space<any>>
    %193 = tpu.memref_squeeze %192 : memref<1x256xf32, #tpu.memory_space<any>> -> memref<256xf32, #tpu.memory_space<any>>
    %c0_i32_165 = arith.constant 0 : i32
    %194 = tpu.memref_slice %arg7[%c1_i32_160, %c6_i32_161, %c0_i32_165] : memref<2x8x256xf32, #tpu.memory_space<vmem>> -> memref<1x1x256xf32, #tpu.memory_space<vmem>>
    %195 = tpu.memref_squeeze %194 : memref<1x1x256xf32, #tpu.memory_space<vmem>> -> memref<256xf32, #tpu.memory_space<vmem>>
    %196 = tpu.memref_slice %arg11[%c1_i32_162, %c6_i32_163] : memref<2x8x!tpu.dma_semaphore, #tpu.memory_space<semaphore_mem>> -> memref<1x1x!tpu.dma_semaphore, #tpu.memory_space<semaphore_mem>>
    %197 = tpu.memref_squeeze %196 : memref<1x1x!tpu.dma_semaphore, #tpu.memory_space<semaphore_mem>> -> memref<!tpu.dma_semaphore, #tpu.memory_space<semaphore_mem>>
    tpu.enqueue_dma source(%193 : memref<256xf32, #tpu.memory_space<any>>) target(%195 : memref<256xf32, #tpu.memory_space<vmem>>) target_semaphore(%197 : memref<!tpu.dma_semaphore, #tpu.memory_space<semaphore_mem>>)
    %c7_i32_166 = arith.constant 7 : i32
    %198 = arith.addi %134, %c7_i32_166 : i32
    %199 = arith.index_cast %198 : i32 to index
    %200 = memref.load %arg1[%199] : memref<64xi32, #tpu.memory_space<smem>>
    %c1_i32_167 = arith.constant 1 : i32
    %c7_i32_168 = arith.constant 7 : i32
    %c1_i32_169 = arith.constant 1 : i32
    %c7_i32_170 = arith.constant 7 : i32
    %c0_i32_171 = arith.constant 0 : i32
    %201 = tpu.memref_slice %arg2[%200, %c0_i32_171] : memref<20000x256xf32, #tpu.memory_space<any>> -> memref<1x256xf32, #tpu.memory_space<any>>
    %202 = tpu.memref_squeeze %201 : memref<1x256xf32, #tpu.memory_space<any>> -> memref<256xf32, #tpu.memory_space<any>>
    %c0_i32_172 = arith.constant 0 : i32
    %203 = tpu.memref_slice %arg7[%c1_i32_167, %c7_i32_168, %c0_i32_172] : memref<2x8x256xf32, #tpu.memory_space<vmem>> -> memref<1x1x256xf32, #tpu.memory_space<vmem>>
    %204 = tpu.memref_squeeze %203 : memref<1x1x256xf32, #tpu.memory_space<vmem>> -> memref<256xf32, #tpu.memory_space<vmem>>
    %205 = tpu.memref_slice %arg11[%c1_i32_169, %c7_i32_170] : memref<2x8x!tpu.dma_semaphore, #tpu.memory_space<semaphore_mem>> -> memref<1x1x!tpu.dma_semaphore, #tpu.memory_space<semaphore_mem>>
    %206 = tpu.memref_squeeze %205 : memref<1x1x!tpu.dma_semaphore, #tpu.memory_space<semaphore_mem>> -> memref<!tpu.dma_semaphore, #tpu.memory_space<semaphore_mem>>
    tpu.enqueue_dma source(%202 : memref<256xf32, #tpu.memory_space<any>>) target(%204 : memref<256xf32, #tpu.memory_space<vmem>>) target_semaphore(%206 : memref<!tpu.dma_semaphore, #tpu.memory_space<semaphore_mem>>)
    %207 = arith.truncf %77 : vector<8x64xf32> to vector<8x64xbf16>
    %c0_173 = arith.constant 0 : index
    %c0_174 = arith.constant 0 : index
    %208 = vector.load %arg3[%c0_173, %c0_174] : memref<64x512xbf16, #tpu.memory_space<vmem>>, vector<64x512xbf16>
    %cst = arith.constant dense<0.000000e+00> : vector<8x512xf32>
    %209 = tpu.matmul %207, %208, %cst {dimension_numbers = #tpu.dot_dimension_numbers<[1], [0], [0], [1], [0, 0, 1, 1], [], []>} : vector<8x64xbf16>, vector<64x512xbf16>, vector<8x512xf32> -> vector<8x512xf32>
    %210 = vector.extract_strided_slice %209 {offsets = [0, 0], sizes = [8, 256], strides = [1, 1]} : vector<8x512xf32> to vector<8x256xf32>
    %211 = vector.extract_strided_slice %209 {offsets = [0, 256], sizes = [8, 256], strides = [1, 1]} : vector<8x512xf32> to vector<8x256xf32>
    %212 = vector.shape_cast %81 : vector<8x1xi1> to vector<8x1xi1>
    %213 = vector.broadcast %212 : vector<8x1xi1> to vector<8x256xi1>
    %214 = arith.select %213, %210, %211 : vector<8x256xi1>, vector<8x256xf32>
    %215 = arith.addf %131, %214 : vector<8x256xf32>
    %216 = vector.extract_strided_slice %215 {offsets = [0, 0], sizes = [8, 64], strides = [1, 1]} : vector<8x256xf32> to vector<8x64xf32>
    %217 = arith.negf %216 : vector<8x64xf32>
    %218 = math.exp %217 : vector<8x64xf32>
    %cst_175 = arith.constant 1.000000e+00 : f32
    %219 = vector.broadcast %cst_175 : f32 to vector<8x64xf32>
    %220 = arith.addf %219, %218 : vector<8x64xf32>
    %221 = arith.divf %219, %220 : vector<8x64xf32>
    %222 = vector.extract_strided_slice %215 {offsets = [0, 64], sizes = [8, 64], strides = [1, 1]} : vector<8x256xf32> to vector<8x64xf32>
    %223 = arith.negf %222 : vector<8x64xf32>
    %224 = math.exp %223 : vector<8x64xf32>
    %cst_176 = arith.constant 1.000000e+00 : f32
    %225 = vector.broadcast %cst_176 : f32 to vector<8x64xf32>
    %226 = arith.addf %225, %224 : vector<8x64xf32>
    %227 = arith.divf %225, %226 : vector<8x64xf32>
    %228 = vector.extract_strided_slice %215 {offsets = [0, 128], sizes = [8, 64], strides = [1, 1]} : vector<8x256xf32> to vector<8x64xf32>
    %229 = math.tanh %228 : vector<8x64xf32>
    %230 = vector.extract_strided_slice %215 {offsets = [0, 192], sizes = [8, 64], strides = [1, 1]} : vector<8x256xf32> to vector<8x64xf32>
    %231 = arith.negf %230 : vector<8x64xf32>
    %232 = math.exp %231 : vector<8x64xf32>
    %cst_177 = arith.constant 1.000000e+00 : f32
    %233 = vector.broadcast %cst_177 : f32 to vector<8x64xf32>
    %234 = arith.addf %233, %232 : vector<8x64xf32>
    %235 = arith.divf %233, %234 : vector<8x64xf32>
    %236 = arith.mulf %227, %78 : vector<8x64xf32>
    %237 = arith.mulf %221, %229 : vector<8x64xf32>
    %238 = arith.addf %236, %237 : vector<8x64xf32>
    %239 = math.tanh %238 : vector<8x64xf32>
    %240 = arith.mulf %235, %239 : vector<8x64xf32>
    %c0_178 = arith.constant 0 : index
    %c0_179 = arith.constant 0 : index
    %241 = vector.load %arg10[%c0_178, %c0_179] : memref<64x64xf32, #tpu.memory_space<vmem>>, vector<8x64xf32>
    tpu.vector_store %arg10[%c0_178, %c0_179], %240 {strides = array<i32>} : memref<64x64xf32, #tpu.memory_space<vmem>>, vector<8x64xf32>,
    %c0_i32_180 = arith.constant 0 : i32
    %c1_i32_181 = arith.constant 1 : i32
    %c0_i32_182 = arith.constant 0 : i32
    %c1_i32_183 = arith.constant 1 : i32
    %c0_i32_184 = arith.constant 0 : i32
    %c0_i32_185 = arith.constant 0 : i32
    %242 = tpu.memref_slice %arg2[%c0_i32_180, %c0_i32_185] : memref<20000x256xf32, #tpu.memory_space<any>> -> memref<1x256xf32, #tpu.memory_space<any>>
    %243 = tpu.memref_squeeze %242 : memref<1x256xf32, #tpu.memory_space<any>> -> memref<256xf32, #tpu.memory_space<any>>
    %c0_i32_186 = arith.constant 0 : i32
    %244 = tpu.memref_slice %arg7[%c1_i32_181, %c0_i32_182, %c0_i32_186] : memref<2x8x256xf32, #tpu.memory_space<vmem>> -> memref<1x1x256xf32, #tpu.memory_space<vmem>>
    %245 = tpu.memref_squeeze %244 : memref<1x1x256xf32, #tpu.memory_space<vmem>> -> memref<256xf32, #tpu.memory_space<vmem>>
    %246 = tpu.memref_slice %arg11[%c1_i32_183, %c0_i32_184] : memref<2x8x!tpu.dma_semaphore, #tpu.memory_space<semaphore_mem>> -> memref<1x1x!tpu.dma_semaphore, #tpu.memory_space<semaphore_mem>>
    %247 = tpu.memref_squeeze %246 : memref<1x1x!tpu.dma_semaphore, #tpu.memory_space<semaphore_mem>> -> memref<!tpu.dma_semaphore, #tpu.memory_space<semaphore_mem>>
    tpu.wait_dma2 semaphore(%247 : memref<!tpu.dma_semaphore, #tpu.memory_space<semaphore_mem>>) src(%243 : memref<256xf32, #tpu.memory_space<any>>) dst(%245 : memref<256xf32, #tpu.memory_space<vmem>>)
    %c0_i32_187 = arith.constant 0 : i32
    %c1_i32_188 = arith.constant 1 : i32
    %c1_i32_189 = arith.constant 1 : i32
    %c1_i32_190 = arith.constant 1 : i32
    %c1_i32_191 = arith.constant 1 : i32
    %c0_i32_192 = arith.constant 0 : i32
    %248 = tpu.memref_slice %arg2[%c0_i32_187, %c0_i32_192] : memref<20000x256xf32, #tpu.memory_space<any>> -> memref<1x256xf32, #tpu.memory_space<any>>
    %249 = tpu.memref_squeeze %248 : memref<1x256xf32, #tpu.memory_space<any>> -> memref<256xf32, #tpu.memory_space<any>>
    %c0_i32_193 = arith.constant 0 : i32
    %250 = tpu.memref_slice %arg7[%c1_i32_188, %c1_i32_189, %c0_i32_193] : memref<2x8x256xf32, #tpu.memory_space<vmem>> -> memref<1x1x256xf32, #tpu.memory_space<vmem>>
    %251 = tpu.memref_squeeze %250 : memref<1x1x256xf32, #tpu.memory_space<vmem>> -> memref<256xf32, #tpu.memory_space<vmem>>
    %252 = tpu.memref_slice %arg11[%c1_i32_190, %c1_i32_191] : memref<2x8x!tpu.dma_semaphore, #tpu.memory_space<semaphore_mem>> -> memref<1x1x!tpu.dma_semaphore, #tpu.memory_space<semaphore_mem>>
    %253 = tpu.memref_squeeze %252 : memref<1x1x!tpu.dma_semaphore, #tpu.memory_space<semaphore_mem>> -> memref<!tpu.dma_semaphore, #tpu.memory_space<semaphore_mem>>
    tpu.wait_dma2 semaphore(%253 : memref<!tpu.dma_semaphore, #tpu.memory_space<semaphore_mem>>) src(%249 : memref<256xf32, #tpu.memory_space<any>>) dst(%251 : memref<256xf32, #tpu.memory_space<vmem>>)
    %c0_i32_194 = arith.constant 0 : i32
    %c1_i32_195 = arith.constant 1 : i32
    %c2_i32_196 = arith.constant 2 : i32
    %c1_i32_197 = arith.constant 1 : i32
    %c2_i32_198 = arith.constant 2 : i32
    %c0_i32_199 = arith.constant 0 : i32
    %254 = tpu.memref_slice %arg2[%c0_i32_194, %c0_i32_199] : memref<20000x256xf32, #tpu.memory_space<any>> -> memref<1x256xf32, #tpu.memory_space<any>>
    %255 = tpu.memref_squeeze %254 : memref<1x256xf32, #tpu.memory_space<any>> -> memref<256xf32, #tpu.memory_space<any>>
    %c0_i32_200 = arith.constant 0 : i32
    %256 = tpu.memref_slice %arg7[%c1_i32_195, %c2_i32_196, %c0_i32_200] : memref<2x8x256xf32, #tpu.memory_space<vmem>> -> memref<1x1x256xf32, #tpu.memory_space<vmem>>
    %257 = tpu.memref_squeeze %256 : memref<1x1x256xf32, #tpu.memory_space<vmem>> -> memref<256xf32, #tpu.memory_space<vmem>>
    %258 = tpu.memref_slice %arg11[%c1_i32_197, %c2_i32_198] : memref<2x8x!tpu.dma_semaphore, #tpu.memory_space<semaphore_mem>> -> memref<1x1x!tpu.dma_semaphore, #tpu.memory_space<semaphore_mem>>
    %259 = tpu.memref_squeeze %258 : memref<1x1x!tpu.dma_semaphore, #tpu.memory_space<semaphore_mem>> -> memref<!tpu.dma_semaphore, #tpu.memory_space<semaphore_mem>>
    tpu.wait_dma2 semaphore(%259 : memref<!tpu.dma_semaphore, #tpu.memory_space<semaphore_mem>>) src(%255 : memref<256xf32, #tpu.memory_space<any>>) dst(%257 : memref<256xf32, #tpu.memory_space<vmem>>)
    %c0_i32_201 = arith.constant 0 : i32
    %c1_i32_202 = arith.constant 1 : i32
    %c3_i32_203 = arith.constant 3 : i32
    %c1_i32_204 = arith.constant 1 : i32
    %c3_i32_205 = arith.constant 3 : i32
    %c0_i32_206 = arith.constant 0 : i32
    %260 = tpu.memref_slice %arg2[%c0_i32_201, %c0_i32_206] : memref<20000x256xf32, #tpu.memory_space<any>> -> memref<1x256xf32, #tpu.memory_space<any>>
    %261 = tpu.memref_squeeze %260 : memref<1x256xf32, #tpu.memory_space<any>> -> memref<256xf32, #tpu.memory_space<any>>
    %c0_i32_207 = arith.constant 0 : i32
    %262 = tpu.memref_slice %arg7[%c1_i32_202, %c3_i32_203, %c0_i32_207] : memref<2x8x256xf32, #tpu.memory_space<vmem>> -> memref<1x1x256xf32, #tpu.memory_space<vmem>>
    %263 = tpu.memref_squeeze %262 : memref<1x1x256xf32, #tpu.memory_space<vmem>> -> memref<256xf32, #tpu.memory_space<vmem>>
    %264 = tpu.memref_slice %arg11[%c1_i32_204, %c3_i32_205] : memref<2x8x!tpu.dma_semaphore, #tpu.memory_space<semaphore_mem>> -> memref<1x1x!tpu.dma_semaphore, #tpu.memory_space<semaphore_mem>>
    %265 = tpu.memref_squeeze %264 : memref<1x1x!tpu.dma_semaphore, #tpu.memory_space<semaphore_mem>> -> memref<!tpu.dma_semaphore, #tpu.memory_space<semaphore_mem>>
    tpu.wait_dma2 semaphore(%265 : memref<!tpu.dma_semaphore, #tpu.memory_space<semaphore_mem>>) src(%261 : memref<256xf32, #tpu.memory_space<any>>) dst(%263 : memref<256xf32, #tpu.memory_space<vmem>>)
    %c0_i32_208 = arith.constant 0 : i32
    %c1_i32_209 = arith.constant 1 : i32
    %c4_i32_210 = arith.constant 4 : i32
    %c1_i32_211 = arith.constant 1 : i32
    %c4_i32_212 = arith.constant 4 : i32
    %c0_i32_213 = arith.constant 0 : i32
    %266 = tpu.memref_slice %arg2[%c0_i32_208, %c0_i32_213] : memref<20000x256xf32, #tpu.memory_space<any>> -> memref<1x256xf32, #tpu.memory_space<any>>
    %267 = tpu.memref_squeeze %266 : memref<1x256xf32, #tpu.memory_space<any>> -> memref<256xf32, #tpu.memory_space<any>>
    %c0_i32_214 = arith.constant 0 : i32
    %268 = tpu.memref_slice %arg7[%c1_i32_209, %c4_i32_210, %c0_i32_214] : memref<2x8x256xf32, #tpu.memory_space<vmem>> -> memref<1x1x256xf32, #tpu.memory_space<vmem>>
    %269 = tpu.memref_squeeze %268 : memref<1x1x256xf32, #tpu.memory_space<vmem>> -> memref<256xf32, #tpu.memory_space<vmem>>
    %270 = tpu.memref_slice %arg11[%c1_i32_211, %c4_i32_212] : memref<2x8x!tpu.dma_semaphore, #tpu.memory_space<semaphore_mem>> -> memref<1x1x!tpu.dma_semaphore, #tpu.memory_space<semaphore_mem>>
    %271 = tpu.memref_squeeze %270 : memref<1x1x!tpu.dma_semaphore, #tpu.memory_space<semaphore_mem>> -> memref<!tpu.dma_semaphore, #tpu.memory_space<semaphore_mem>>
    tpu.wait_dma2 semaphore(%271 : memref<!tpu.dma_semaphore, #tpu.memory_space<semaphore_mem>>) src(%267 : memref<256xf32, #tpu.memory_space<any>>) dst(%269 : memref<256xf32, #tpu.memory_space<vmem>>)
    %c0_i32_215 = arith.constant 0 : i32
    %c1_i32_216 = arith.constant 1 : i32
    %c5_i32_217 = arith.constant 5 : i32
    %c1_i32_218 = arith.constant 1 : i32
    %c5_i32_219 = arith.constant 5 : i32
    %c0_i32_220 = arith.constant 0 : i32
    %272 = tpu.memref_slice %arg2[%c0_i32_215, %c0_i32_220] : memref<20000x256xf32, #tpu.memory_space<any>> -> memref<1x256xf32, #tpu.memory_space<any>>
    %273 = tpu.memref_squeeze %272 : memref<1x256xf32, #tpu.memory_space<any>> -> memref<256xf32, #tpu.memory_space<any>>
    %c0_i32_221 = arith.constant 0 : i32
    %274 = tpu.memref_slice %arg7[%c1_i32_216, %c5_i32_217, %c0_i32_221] : memref<2x8x256xf32, #tpu.memory_space<vmem>> -> memref<1x1x256xf32, #tpu.memory_space<vmem>>
    %275 = tpu.memref_squeeze %274 : memref<1x1x256xf32, #tpu.memory_space<vmem>> -> memref<256xf32, #tpu.memory_space<vmem>>
    %276 = tpu.memref_slice %arg11[%c1_i32_218, %c5_i32_219] : memref<2x8x!tpu.dma_semaphore, #tpu.memory_space<semaphore_mem>> -> memref<1x1x!tpu.dma_semaphore, #tpu.memory_space<semaphore_mem>>
    %277 = tpu.memref_squeeze %276 : memref<1x1x!tpu.dma_semaphore, #tpu.memory_space<semaphore_mem>> -> memref<!tpu.dma_semaphore, #tpu.memory_space<semaphore_mem>>
    tpu.wait_dma2 semaphore(%277 : memref<!tpu.dma_semaphore, #tpu.memory_space<semaphore_mem>>) src(%273 : memref<256xf32, #tpu.memory_space<any>>) dst(%275 : memref<256xf32, #tpu.memory_space<vmem>>)
    %c0_i32_222 = arith.constant 0 : i32
    %c1_i32_223 = arith.constant 1 : i32
    %c6_i32_224 = arith.constant 6 : i32
    %c1_i32_225 = arith.constant 1 : i32
    %c6_i32_226 = arith.constant 6 : i32
    %c0_i32_227 = arith.constant 0 : i32
    %278 = tpu.memref_slice %arg2[%c0_i32_222, %c0_i32_227] : memref<20000x256xf32, #tpu.memory_space<any>> -> memref<1x256xf32, #tpu.memory_space<any>>
    %279 = tpu.memref_squeeze %278 : memref<1x256xf32, #tpu.memory_space<any>> -> memref<256xf32, #tpu.memory_space<any>>
    %c0_i32_228 = arith.constant 0 : i32
    %280 = tpu.memref_slice %arg7[%c1_i32_223, %c6_i32_224, %c0_i32_228] : memref<2x8x256xf32, #tpu.memory_space<vmem>> -> memref<1x1x256xf32, #tpu.memory_space<vmem>>
    %281 = tpu.memref_squeeze %280 : memref<1x1x256xf32, #tpu.memory_space<vmem>> -> memref<256xf32, #tpu.memory_space<vmem>>
    %282 = tpu.memref_slice %arg11[%c1_i32_225, %c6_i32_226] : memref<2x8x!tpu.dma_semaphore, #tpu.memory_space<semaphore_mem>> -> memref<1x1x!tpu.dma_semaphore, #tpu.memory_space<semaphore_mem>>
    %283 = tpu.memref_squeeze %282 : memref<1x1x!tpu.dma_semaphore, #tpu.memory_space<semaphore_mem>> -> memref<!tpu.dma_semaphore, #tpu.memory_space<semaphore_mem>>
    tpu.wait_dma2 semaphore(%283 : memref<!tpu.dma_semaphore, #tpu.memory_space<semaphore_mem>>) src(%279 : memref<256xf32, #tpu.memory_space<any>>) dst(%281 : memref<256xf32, #tpu.memory_space<vmem>>)
    %c0_i32_229 = arith.constant 0 : i32
    %c1_i32_230 = arith.constant 1 : i32
    %c7_i32_231 = arith.constant 7 : i32
    %c1_i32_232 = arith.constant 1 : i32
    %c7_i32_233 = arith.constant 7 : i32
    %c0_i32_234 = arith.constant 0 : i32
    %284 = tpu.memref_slice %arg2[%c0_i32_229, %c0_i32_234] : memref<20000x256xf32, #tpu.memory_space<any>> -> memref<1x256xf32, #tpu.memory_space<any>>
    %285 = tpu.memref_squeeze %284 : memref<1x256xf32, #tpu.memory_space<any>> -> memref<256xf32, #tpu.memory_space<any>>
    %c0_i32_235 = arith.constant 0 : i32
    %286 = tpu.memref_slice %arg7[%c1_i32_230, %c7_i32_231, %c0_i32_235] : memref<2x8x256xf32, #tpu.memory_space<vmem>> -> memref<1x1x256xf32, #tpu.memory_space<vmem>>
    %287 = tpu.memref_squeeze %286 : memref<1x1x256xf32, #tpu.memory_space<vmem>> -> memref<256xf32, #tpu.memory_space<vmem>>
    %288 = tpu.memref_slice %arg11[%c1_i32_232, %c7_i32_233] : memref<2x8x!tpu.dma_semaphore, #tpu.memory_space<semaphore_mem>> -> memref<1x1x!tpu.dma_semaphore, #tpu.memory_space<semaphore_mem>>
    %289 = tpu.memref_squeeze %288 : memref<1x1x!tpu.dma_semaphore, #tpu.memory_space<semaphore_mem>> -> memref<!tpu.dma_semaphore, #tpu.memory_space<semaphore_mem>>
    tpu.wait_dma2 semaphore(%289 : memref<!tpu.dma_semaphore, #tpu.memory_space<semaphore_mem>>) src(%285 : memref<256xf32, #tpu.memory_space<any>>) dst(%287 : memref<256xf32, #tpu.memory_space<vmem>>)
    %c1 = arith.constant 1 : index
    %c0_236 = arith.constant 0 : index
    %c0_237 = arith.constant 0 : index
    %290 = vector.load %arg7[%c1, %c0_236, %c0_237] : memref<2x8x256xf32, #tpu.memory_space<vmem>>, vector<1x8x256xf32>
    %291 = vector.shape_cast %290 : vector<1x8x256xf32> to vector<8x256xf32>
    %c1_i32_238 = arith.constant 1 : i32
    %292 = arith.addi %3, %c1_i32_238 : i32
    %c1_i32_239 = arith.constant 1 : i32
    %293 = arith.addi %292, %c1_i32_239 : i32
    %c8_i32_240 = arith.constant 8 : i32
    %294 = arith.muli %293, %c8_i32_240 : i32
    %c0_i32_241 = arith.constant 0 : i32
    %295 = arith.addi %294, %c0_i32_241 : i32
    %296 = arith.index_cast %295 : i32 to index
    %297 = memref.load %arg1[%296] : memref<64xi32, #tpu.memory_space<smem>>
    %c0_i32_242 = arith.constant 0 : i32
    %c0_i32_243 = arith.constant 0 : i32
    %c0_i32_244 = arith.constant 0 : i32
    %c0_i32_245 = arith.constant 0 : i32
    %c0_i32_246 = arith.constant 0 : i32
    %298 = tpu.memref_slice %arg2[%297, %c0_i32_246] : memref<20000x256xf32, #tpu.memory_space<any>> -> memref<1x256xf32, #tpu.memory_space<any>>
    %299 = tpu.memref_squeeze %298 : memref<1x256xf32, #tpu.memory_space<any>> -> memref<256xf32, #tpu.memory_space<any>>
    %c0_i32_247 = arith.constant 0 : i32
    %300 = tpu.memref_slice %arg7[%c0_i32_242, %c0_i32_243, %c0_i32_247] : memref<2x8x256xf32, #tpu.memory_space<vmem>> -> memref<1x1x256xf32, #tpu.memory_space<vmem>>
    %301 = tpu.memref_squeeze %300 : memref<1x1x256xf32, #tpu.memory_space<vmem>> -> memref<256xf32, #tpu.memory_space<vmem>>
    %302 = tpu.memref_slice %arg11[%c0_i32_244, %c0_i32_245] : memref<2x8x!tpu.dma_semaphore, #tpu.memory_space<semaphore_mem>> -> memref<1x1x!tpu.dma_semaphore, #tpu.memory_space<semaphore_mem>>
    %303 = tpu.memref_squeeze %302 : memref<1x1x!tpu.dma_semaphore, #tpu.memory_space<semaphore_mem>> -> memref<!tpu.dma_semaphore, #tpu.memory_space<semaphore_mem>>
    tpu.enqueue_dma source(%299 : memref<256xf32, #tpu.memory_space<any>>) target(%301 : memref<256xf32, #tpu.memory_space<vmem>>) target_semaphore(%303 : memref<!tpu.dma_semaphore, #tpu.memory_space<semaphore_mem>>)
    %c1_i32_248 = arith.constant 1 : i32
    %304 = arith.addi %294, %c1_i32_248 : i32
    %305 = arith.index_cast %304 : i32 to index
    %306 = memref.load %arg1[%305] : memref<64xi32, #tpu.memory_space<smem>>
    %c0_i32_249 = arith.constant 0 : i32
    %c1_i32_250 = arith.constant 1 : i32
    %c0_i32_251 = arith.constant 0 : i32
    %c1_i32_252 = arith.constant 1 : i32
    %c0_i32_253 = arith.constant 0 : i32
    %307 = tpu.memref_slice %arg2[%306, %c0_i32_253] : memref<20000x256xf32, #tpu.memory_space<any>> -> memref<1x256xf32, #tpu.memory_space<any>>
    %308 = tpu.memref_squeeze %307 : memref<1x256xf32, #tpu.memory_space<any>> -> memref<256xf32, #tpu.memory_space<any>>
    %c0_i32_254 = arith.constant 0 : i32
    %309 = tpu.memref_slice %arg7[%c0_i32_249, %c1_i32_250, %c0_i32_254] : memref<2x8x256xf32, #tpu.memory_space<vmem>> -> memref<1x1x256xf32, #tpu.memory_space<vmem>>
    %310 = tpu.memref_squeeze %309 : memref<1x1x256xf32, #tpu.memory_space<vmem>> -> memref<256xf32, #tpu.memory_space<vmem>>
    %311 = tpu.memref_slice %arg11[%c0_i32_251, %c1_i32_252] : memref<2x8x!tpu.dma_semaphore, #tpu.memory_space<semaphore_mem>> -> memref<1x1x!tpu.dma_semaphore, #tpu.memory_space<semaphore_mem>>
    %312 = tpu.memref_squeeze %311 : memref<1x1x!tpu.dma_semaphore, #tpu.memory_space<semaphore_mem>> -> memref<!tpu.dma_semaphore, #tpu.memory_space<semaphore_mem>>
    tpu.enqueue_dma source(%308 : memref<256xf32, #tpu.memory_space<any>>) target(%310 : memref<256xf32, #tpu.memory_space<vmem>>) target_semaphore(%312 : memref<!tpu.dma_semaphore, #tpu.memory_space<semaphore_mem>>)
    %c2_i32_255 = arith.constant 2 : i32
    %313 = arith.addi %294, %c2_i32_255 : i32
    %314 = arith.index_cast %313 : i32 to index
    %315 = memref.load %arg1[%314] : memref<64xi32, #tpu.memory_space<smem>>
    %c0_i32_256 = arith.constant 0 : i32
    %c2_i32_257 = arith.constant 2 : i32
    %c0_i32_258 = arith.constant 0 : i32
    %c2_i32_259 = arith.constant 2 : i32
    %c0_i32_260 = arith.constant 0 : i32
    %316 = tpu.memref_slice %arg2[%315, %c0_i32_260] : memref<20000x256xf32, #tpu.memory_space<any>> -> memref<1x256xf32, #tpu.memory_space<any>>
    %317 = tpu.memref_squeeze %316 : memref<1x256xf32, #tpu.memory_space<any>> -> memref<256xf32, #tpu.memory_space<any>>
    %c0_i32_261 = arith.constant 0 : i32
    %318 = tpu.memref_slice %arg7[%c0_i32_256, %c2_i32_257, %c0_i32_261] : memref<2x8x256xf32, #tpu.memory_space<vmem>> -> memref<1x1x256xf32, #tpu.memory_space<vmem>>
    %319 = tpu.memref_squeeze %318 : memref<1x1x256xf32, #tpu.memory_space<vmem>> -> memref<256xf32, #tpu.memory_space<vmem>>
    %320 = tpu.memref_slice %arg11[%c0_i32_258, %c2_i32_259] : memref<2x8x!tpu.dma_semaphore, #tpu.memory_space<semaphore_mem>> -> memref<1x1x!tpu.dma_semaphore, #tpu.memory_space<semaphore_mem>>
    %321 = tpu.memref_squeeze %320 : memref<1x1x!tpu.dma_semaphore, #tpu.memory_space<semaphore_mem>> -> memref<!tpu.dma_semaphore, #tpu.memory_space<semaphore_mem>>
    tpu.enqueue_dma source(%317 : memref<256xf32, #tpu.memory_space<any>>) target(%319 : memref<256xf32, #tpu.memory_space<vmem>>) target_semaphore(%321 : memref<!tpu.dma_semaphore, #tpu.memory_space<semaphore_mem>>)
    %c3_i32_262 = arith.constant 3 : i32
    %322 = arith.addi %294, %c3_i32_262 : i32
    %323 = arith.index_cast %322 : i32 to index
    %324 = memref.load %arg1[%323] : memref<64xi32, #tpu.memory_space<smem>>
    %c0_i32_263 = arith.constant 0 : i32
    %c3_i32_264 = arith.constant 3 : i32
    %c0_i32_265 = arith.constant 0 : i32
    %c3_i32_266 = arith.constant 3 : i32
    %c0_i32_267 = arith.constant 0 : i32
    %325 = tpu.memref_slice %arg2[%324, %c0_i32_267] : memref<20000x256xf32, #tpu.memory_space<any>> -> memref<1x256xf32, #tpu.memory_space<any>>
    %326 = tpu.memref_squeeze %325 : memref<1x256xf32, #tpu.memory_space<any>> -> memref<256xf32, #tpu.memory_space<any>>
    %c0_i32_268 = arith.constant 0 : i32
    %327 = tpu.memref_slice %arg7[%c0_i32_263, %c3_i32_264, %c0_i32_268] : memref<2x8x256xf32, #tpu.memory_space<vmem>> -> memref<1x1x256xf32, #tpu.memory_space<vmem>>
    %328 = tpu.memref_squeeze %327 : memref<1x1x256xf32, #tpu.memory_space<vmem>> -> memref<256xf32, #tpu.memory_space<vmem>>
    %329 = tpu.memref_slice %arg11[%c0_i32_265, %c3_i32_266] : memref<2x8x!tpu.dma_semaphore, #tpu.memory_space<semaphore_mem>> -> memref<1x1x!tpu.dma_semaphore, #tpu.memory_space<semaphore_mem>>
    %330 = tpu.memref_squeeze %329 : memref<1x1x!tpu.dma_semaphore, #tpu.memory_space<semaphore_mem>> -> memref<!tpu.dma_semaphore, #tpu.memory_space<semaphore_mem>>
    tpu.enqueue_dma source(%326 : memref<256xf32, #tpu.memory_space<any>>) target(%328 : memref<256xf32, #tpu.memory_space<vmem>>) target_semaphore(%330 : memref<!tpu.dma_semaphore, #tpu.memory_space<semaphore_mem>>)
    %c4_i32_269 = arith.constant 4 : i32
    %331 = arith.addi %294, %c4_i32_269 : i32
    %332 = arith.index_cast %331 : i32 to index
    %333 = memref.load %arg1[%332] : memref<64xi32, #tpu.memory_space<smem>>
    %c0_i32_270 = arith.constant 0 : i32
    %c4_i32_271 = arith.constant 4 : i32
    %c0_i32_272 = arith.constant 0 : i32
    %c4_i32_273 = arith.constant 4 : i32
    %c0_i32_274 = arith.constant 0 : i32
    %334 = tpu.memref_slice %arg2[%333, %c0_i32_274] : memref<20000x256xf32, #tpu.memory_space<any>> -> memref<1x256xf32, #tpu.memory_space<any>>
    %335 = tpu.memref_squeeze %334 : memref<1x256xf32, #tpu.memory_space<any>> -> memref<256xf32, #tpu.memory_space<any>>
    %c0_i32_275 = arith.constant 0 : i32
    %336 = tpu.memref_slice %arg7[%c0_i32_270, %c4_i32_271, %c0_i32_275] : memref<2x8x256xf32, #tpu.memory_space<vmem>> -> memref<1x1x256xf32, #tpu.memory_space<vmem>>
    %337 = tpu.memref_squeeze %336 : memref<1x1x256xf32, #tpu.memory_space<vmem>> -> memref<256xf32, #tpu.memory_space<vmem>>
    %338 = tpu.memref_slice %arg11[%c0_i32_272, %c4_i32_273] : memref<2x8x!tpu.dma_semaphore, #tpu.memory_space<semaphore_mem>> -> memref<1x1x!tpu.dma_semaphore, #tpu.memory_space<semaphore_mem>>
    %339 = tpu.memref_squeeze %338 : memref<1x1x!tpu.dma_semaphore, #tpu.memory_space<semaphore_mem>> -> memref<!tpu.dma_semaphore, #tpu.memory_space<semaphore_mem>>
    tpu.enqueue_dma source(%335 : memref<256xf32, #tpu.memory_space<any>>) target(%337 : memref<256xf32, #tpu.memory_space<vmem>>) target_semaphore(%339 : memref<!tpu.dma_semaphore, #tpu.memory_space<semaphore_mem>>)
    %c5_i32_276 = arith.constant 5 : i32
    %340 = arith.addi %294, %c5_i32_276 : i32
    %341 = arith.index_cast %340 : i32 to index
    %342 = memref.load %arg1[%341] : memref<64xi32, #tpu.memory_space<smem>>
    %c0_i32_277 = arith.constant 0 : i32
    %c5_i32_278 = arith.constant 5 : i32
    %c0_i32_279 = arith.constant 0 : i32
    %c5_i32_280 = arith.constant 5 : i32
    %c0_i32_281 = arith.constant 0 : i32
    %343 = tpu.memref_slice %arg2[%342, %c0_i32_281] : memref<20000x256xf32, #tpu.memory_space<any>> -> memref<1x256xf32, #tpu.memory_space<any>>
    %344 = tpu.memref_squeeze %343 : memref<1x256xf32, #tpu.memory_space<any>> -> memref<256xf32, #tpu.memory_space<any>>
    %c0_i32_282 = arith.constant 0 : i32
    %345 = tpu.memref_slice %arg7[%c0_i32_277, %c5_i32_278, %c0_i32_282] : memref<2x8x256xf32, #tpu.memory_space<vmem>> -> memref<1x1x256xf32, #tpu.memory_space<vmem>>
    %346 = tpu.memref_squeeze %345 : memref<1x1x256xf32, #tpu.memory_space<vmem>> -> memref<256xf32, #tpu.memory_space<vmem>>
    %347 = tpu.memref_slice %arg11[%c0_i32_279, %c5_i32_280] : memref<2x8x!tpu.dma_semaphore, #tpu.memory_space<semaphore_mem>> -> memref<1x1x!tpu.dma_semaphore, #tpu.memory_space<semaphore_mem>>
    %348 = tpu.memref_squeeze %347 : memref<1x1x!tpu.dma_semaphore, #tpu.memory_space<semaphore_mem>> -> memref<!tpu.dma_semaphore, #tpu.memory_space<semaphore_mem>>
    tpu.enqueue_dma source(%344 : memref<256xf32, #tpu.memory_space<any>>) target(%346 : memref<256xf32, #tpu.memory_space<vmem>>) target_semaphore(%348 : memref<!tpu.dma_semaphore, #tpu.memory_space<semaphore_mem>>)
    %c6_i32_283 = arith.constant 6 : i32
    %349 = arith.addi %294, %c6_i32_283 : i32
    %350 = arith.index_cast %349 : i32 to index
    %351 = memref.load %arg1[%350] : memref<64xi32, #tpu.memory_space<smem>>
    %c0_i32_284 = arith.constant 0 : i32
    %c6_i32_285 = arith.constant 6 : i32
    %c0_i32_286 = arith.constant 0 : i32
    %c6_i32_287 = arith.constant 6 : i32
    %c0_i32_288 = arith.constant 0 : i32
    %352 = tpu.memref_slice %arg2[%351, %c0_i32_288] : memref<20000x256xf32, #tpu.memory_space<any>> -> memref<1x256xf32, #tpu.memory_space<any>>
    %353 = tpu.memref_squeeze %352 : memref<1x256xf32, #tpu.memory_space<any>> -> memref<256xf32, #tpu.memory_space<any>>
    %c0_i32_289 = arith.constant 0 : i32
    %354 = tpu.memref_slice %arg7[%c0_i32_284, %c6_i32_285, %c0_i32_289] : memref<2x8x256xf32, #tpu.memory_space<vmem>> -> memref<1x1x256xf32, #tpu.memory_space<vmem>>
    %355 = tpu.memref_squeeze %354 : memref<1x1x256xf32, #tpu.memory_space<vmem>> -> memref<256xf32, #tpu.memory_space<vmem>>
    %356 = tpu.memref_slice %arg11[%c0_i32_286, %c6_i32_287] : memref<2x8x!tpu.dma_semaphore, #tpu.memory_space<semaphore_mem>> -> memref<1x1x!tpu.dma_semaphore, #tpu.memory_space<semaphore_mem>>
    %357 = tpu.memref_squeeze %356 : memref<1x1x!tpu.dma_semaphore, #tpu.memory_space<semaphore_mem>> -> memref<!tpu.dma_semaphore, #tpu.memory_space<semaphore_mem>>
    tpu.enqueue_dma source(%353 : memref<256xf32, #tpu.memory_space<any>>) target(%355 : memref<256xf32, #tpu.memory_space<vmem>>) target_semaphore(%357 : memref<!tpu.dma_semaphore, #tpu.memory_space<semaphore_mem>>)
    %c7_i32_290 = arith.constant 7 : i32
    %358 = arith.addi %294, %c7_i32_290 : i32
    %359 = arith.index_cast %358 : i32 to index
    %360 = memref.load %arg1[%359] : memref<64xi32, #tpu.memory_space<smem>>
    %c0_i32_291 = arith.constant 0 : i32
    %c7_i32_292 = arith.constant 7 : i32
    %c0_i32_293 = arith.constant 0 : i32
    %c7_i32_294 = arith.constant 7 : i32
    %c0_i32_295 = arith.constant 0 : i32
    %361 = tpu.memref_slice %arg2[%360, %c0_i32_295] : memref<20000x256xf32, #tpu.memory_space<any>> -> memref<1x256xf32, #tpu.memory_space<any>>
    %362 = tpu.memref_squeeze %361 : memref<1x256xf32, #tpu.memory_space<any>> -> memref<256xf32, #tpu.memory_space<any>>
    %c0_i32_296 = arith.constant 0 : i32
    %363 = tpu.memref_slice %arg7[%c0_i32_291, %c7_i32_292, %c0_i32_296] : memref<2x8x256xf32, #tpu.memory_space<vmem>> -> memref<1x1x256xf32, #tpu.memory_space<vmem>>
    %364 = tpu.memref_squeeze %363 : memref<1x1x256xf32, #tpu.memory_space<vmem>> -> memref<256xf32, #tpu.memory_space<vmem>>
    %365 = tpu.memref_slice %arg11[%c0_i32_293, %c7_i32_294] : memref<2x8x!tpu.dma_semaphore, #tpu.memory_space<semaphore_mem>> -> memref<1x1x!tpu.dma_semaphore, #tpu.memory_space<semaphore_mem>>
    %366 = tpu.memref_squeeze %365 : memref<1x1x!tpu.dma_semaphore, #tpu.memory_space<semaphore_mem>> -> memref<!tpu.dma_semaphore, #tpu.memory_space<semaphore_mem>>
    tpu.enqueue_dma source(%362 : memref<256xf32, #tpu.memory_space<any>>) target(%364 : memref<256xf32, #tpu.memory_space<vmem>>) target_semaphore(%366 : memref<!tpu.dma_semaphore, #tpu.memory_space<semaphore_mem>>)
    %367 = arith.truncf %240 : vector<8x64xf32> to vector<8x64xbf16>
    %c0_297 = arith.constant 0 : index
    %c0_298 = arith.constant 0 : index
    %368 = vector.load %arg3[%c0_297, %c0_298] : memref<64x512xbf16, #tpu.memory_space<vmem>>, vector<64x512xbf16>
    %cst_299 = arith.constant dense<0.000000e+00> : vector<8x512xf32>
    %369 = tpu.matmul %367, %368, %cst_299 {dimension_numbers = #tpu.dot_dimension_numbers<[1], [0], [0], [1], [0, 0, 1, 1], [], []>} : vector<8x64xbf16>, vector<64x512xbf16>, vector<8x512xf32> -> vector<8x512xf32>
    %370 = vector.extract_strided_slice %369 {offsets = [0, 0], sizes = [8, 256], strides = [1, 1]} : vector<8x512xf32> to vector<8x256xf32>
    %371 = vector.extract_strided_slice %369 {offsets = [0, 256], sizes = [8, 256], strides = [1, 1]} : vector<8x512xf32> to vector<8x256xf32>
    %372 = vector.shape_cast %81 : vector<8x1xi1> to vector<8x1xi1>
    %373 = vector.broadcast %372 : vector<8x1xi1> to vector<8x256xi1>
    %374 = arith.select %373, %370, %371 : vector<8x256xi1>, vector<8x256xf32>
    %375 = arith.addf %291, %374 : vector<8x256xf32>
    %376 = vector.extract_strided_slice %375 {offsets = [0, 0], sizes = [8, 64], strides = [1, 1]} : vector<8x256xf32> to vector<8x64xf32>
    %377 = arith.negf %376 : vector<8x64xf32>
    %378 = math.exp %377 : vector<8x64xf32>
    %cst_300 = arith.constant 1.000000e+00 : f32
    %379 = vector.broadcast %cst_300 : f32 to vector<8x64xf32>
    %380 = arith.addf %379, %378 : vector<8x64xf32>
    %381 = arith.divf %379, %380 : vector<8x64xf32>
    %382 = vector.extract_strided_slice %375 {offsets = [0, 64], sizes = [8, 64], strides = [1, 1]} : vector<8x256xf32> to vector<8x64xf32>
    %383 = arith.negf %382 : vector<8x64xf32>
    %384 = math.exp %383 : vector<8x64xf32>
    %cst_301 = arith.constant 1.000000e+00 : f32
    %385 = vector.broadcast %cst_301 : f32 to vector<8x64xf32>
    %386 = arith.addf %385, %384 : vector<8x64xf32>
    %387 = arith.divf %385, %386 : vector<8x64xf32>
    %388 = vector.extract_strided_slice %375 {offsets = [0, 128], sizes = [8, 64], strides = [1, 1]} : vector<8x256xf32> to vector<8x64xf32>
    %389 = math.tanh %388 : vector<8x64xf32>
    %390 = vector.extract_strided_slice %375 {offsets = [0, 192], sizes = [8, 64], strides = [1, 1]} : vector<8x256xf32> to vector<8x64xf32>
    %391 = arith.negf %390 : vector<8x64xf32>
    %392 = math.exp %391 : vector<8x64xf32>
    %cst_302 = arith.constant 1.000000e+00 : f32
    %393 = vector.broadcast %cst_302 : f32 to vector<8x64xf32>
    %394 = arith.addf %393, %392 : vector<8x64xf32>
    %395 = arith.divf %393, %394 : vector<8x64xf32>
    %396 = arith.mulf %387, %238 : vector<8x64xf32>
    %397 = arith.mulf %381, %389 : vector<8x64xf32>
    %398 = arith.addf %396, %397 : vector<8x64xf32>
    %399 = math.tanh %398 : vector<8x64xf32>
    %400 = arith.mulf %395, %399 : vector<8x64xf32>
    %c8 = arith.constant 8 : index
    %c0_303 = arith.constant 0 : index
    %401 = vector.load %arg10[%c8, %c0_303] : memref<64x64xf32, #tpu.memory_space<vmem>>, vector<8x64xf32>
    tpu.vector_store %arg10[%c8, %c0_303], %400 {strides = array<i32>} : memref<64x64xf32, #tpu.memory_space<vmem>>, vector<8x64xf32>,
    %c0_i32_304 = arith.constant 0 : i32
    %c0_i32_305 = arith.constant 0 : i32
    %c0_i32_306 = arith.constant 0 : i32
    %c0_i32_307 = arith.constant 0 : i32
    %c0_i32_308 = arith.constant 0 : i32
    %c0_i32_309 = arith.constant 0 : i32
    %402 = tpu.memref_slice %arg2[%c0_i32_304, %c0_i32_309] : memref<20000x256xf32, #tpu.memory_space<any>> -> memref<1x256xf32, #tpu.memory_space<any>>
    %403 = tpu.memref_squeeze %402 : memref<1x256xf32, #tpu.memory_space<any>> -> memref<256xf32, #tpu.memory_space<any>>
    %c0_i32_310 = arith.constant 0 : i32
    %404 = tpu.memref_slice %arg7[%c0_i32_305, %c0_i32_306, %c0_i32_310] : memref<2x8x256xf32, #tpu.memory_space<vmem>> -> memref<1x1x256xf32, #tpu.memory_space<vmem>>
    %405 = tpu.memref_squeeze %404 : memref<1x1x256xf32, #tpu.memory_space<vmem>> -> memref<256xf32, #tpu.memory_space<vmem>>
    %406 = tpu.memref_slice %arg11[%c0_i32_307, %c0_i32_308] : memref<2x8x!tpu.dma_semaphore, #tpu.memory_space<semaphore_mem>> -> memref<1x1x!tpu.dma_semaphore, #tpu.memory_space<semaphore_mem>>
    %407 = tpu.memref_squeeze %406 : memref<1x1x!tpu.dma_semaphore, #tpu.memory_space<semaphore_mem>> -> memref<!tpu.dma_semaphore, #tpu.memory_space<semaphore_mem>>
    tpu.wait_dma2 semaphore(%407 : memref<!tpu.dma_semaphore, #tpu.memory_space<semaphore_mem>>) src(%403 : memref<256xf32, #tpu.memory_space<any>>) dst(%405 : memref<256xf32, #tpu.memory_space<vmem>>)
    %c0_i32_311 = arith.constant 0 : i32
    %c0_i32_312 = arith.constant 0 : i32
    %c1_i32_313 = arith.constant 1 : i32
    %c0_i32_314 = arith.constant 0 : i32
    %c1_i32_315 = arith.constant 1 : i32
    %c0_i32_316 = arith.constant 0 : i32
    %408 = tpu.memref_slice %arg2[%c0_i32_311, %c0_i32_316] : memref<20000x256xf32, #tpu.memory_space<any>> -> memref<1x256xf32, #tpu.memory_space<any>>
    %409 = tpu.memref_squeeze %408 : memref<1x256xf32, #tpu.memory_space<any>> -> memref<256xf32, #tpu.memory_space<any>>
    %c0_i32_317 = arith.constant 0 : i32
    %410 = tpu.memref_slice %arg7[%c0_i32_312, %c1_i32_313, %c0_i32_317] : memref<2x8x256xf32, #tpu.memory_space<vmem>> -> memref<1x1x256xf32, #tpu.memory_space<vmem>>
    %411 = tpu.memref_squeeze %410 : memref<1x1x256xf32, #tpu.memory_space<vmem>> -> memref<256xf32, #tpu.memory_space<vmem>>
    %412 = tpu.memref_slice %arg11[%c0_i32_314, %c1_i32_315] : memref<2x8x!tpu.dma_semaphore, #tpu.memory_space<semaphore_mem>> -> memref<1x1x!tpu.dma_semaphore, #tpu.memory_space<semaphore_mem>>
    %413 = tpu.memref_squeeze %412 : memref<1x1x!tpu.dma_semaphore, #tpu.memory_space<semaphore_mem>> -> memref<!tpu.dma_semaphore, #tpu.memory_space<semaphore_mem>>
    tpu.wait_dma2 semaphore(%413 : memref<!tpu.dma_semaphore, #tpu.memory_space<semaphore_mem>>) src(%409 : memref<256xf32, #tpu.memory_space<any>>) dst(%411 : memref<256xf32, #tpu.memory_space<vmem>>)
    %c0_i32_318 = arith.constant 0 : i32
    %c0_i32_319 = arith.constant 0 : i32
    %c2_i32_320 = arith.constant 2 : i32
    %c0_i32_321 = arith.constant 0 : i32
    %c2_i32_322 = arith.constant 2 : i32
    %c0_i32_323 = arith.constant 0 : i32
    %414 = tpu.memref_slice %arg2[%c0_i32_318, %c0_i32_323] : memref<20000x256xf32, #tpu.memory_space<any>> -> memref<1x256xf32, #tpu.memory_space<any>>
    %415 = tpu.memref_squeeze %414 : memref<1x256xf32, #tpu.memory_space<any>> -> memref<256xf32, #tpu.memory_space<any>>
    %c0_i32_324 = arith.constant 0 : i32
    %416 = tpu.memref_slice %arg7[%c0_i32_319, %c2_i32_320, %c0_i32_324] : memref<2x8x256xf32, #tpu.memory_space<vmem>> -> memref<1x1x256xf32, #tpu.memory_space<vmem>>
    %417 = tpu.memref_squeeze %416 : memref<1x1x256xf32, #tpu.memory_space<vmem>> -> memref<256xf32, #tpu.memory_space<vmem>>
    %418 = tpu.memref_slice %arg11[%c0_i32_321, %c2_i32_322] : memref<2x8x!tpu.dma_semaphore, #tpu.memory_space<semaphore_mem>> -> memref<1x1x!tpu.dma_semaphore, #tpu.memory_space<semaphore_mem>>
    %419 = tpu.memref_squeeze %418 : memref<1x1x!tpu.dma_semaphore, #tpu.memory_space<semaphore_mem>> -> memref<!tpu.dma_semaphore, #tpu.memory_space<semaphore_mem>>
    tpu.wait_dma2 semaphore(%419 : memref<!tpu.dma_semaphore, #tpu.memory_space<semaphore_mem>>) src(%415 : memref<256xf32, #tpu.memory_space<any>>) dst(%417 : memref<256xf32, #tpu.memory_space<vmem>>)
    %c0_i32_325 = arith.constant 0 : i32
    %c0_i32_326 = arith.constant 0 : i32
    %c3_i32_327 = arith.constant 3 : i32
    %c0_i32_328 = arith.constant 0 : i32
    %c3_i32_329 = arith.constant 3 : i32
    %c0_i32_330 = arith.constant 0 : i32
    %420 = tpu.memref_slice %arg2[%c0_i32_325, %c0_i32_330] : memref<20000x256xf32, #tpu.memory_space<any>> -> memref<1x256xf32, #tpu.memory_space<any>>
    %421 = tpu.memref_squeeze %420 : memref<1x256xf32, #tpu.memory_space<any>> -> memref<256xf32, #tpu.memory_space<any>>
    %c0_i32_331 = arith.constant 0 : i32
    %422 = tpu.memref_slice %arg7[%c0_i32_326, %c3_i32_327, %c0_i32_331] : memref<2x8x256xf32, #tpu.memory_space<vmem>> -> memref<1x1x256xf32, #tpu.memory_space<vmem>>
    %423 = tpu.memref_squeeze %422 : memref<1x1x256xf32, #tpu.memory_space<vmem>> -> memref<256xf32, #tpu.memory_space<vmem>>
    %424 = tpu.memref_slice %arg11[%c0_i32_328, %c3_i32_329] : memref<2x8x!tpu.dma_semaphore, #tpu.memory_space<semaphore_mem>> -> memref<1x1x!tpu.dma_semaphore, #tpu.memory_space<semaphore_mem>>
    %425 = tpu.memref_squeeze %424 : memref<1x1x!tpu.dma_semaphore, #tpu.memory_space<semaphore_mem>> -> memref<!tpu.dma_semaphore, #tpu.memory_space<semaphore_mem>>
    tpu.wait_dma2 semaphore(%425 : memref<!tpu.dma_semaphore, #tpu.memory_space<semaphore_mem>>) src(%421 : memref<256xf32, #tpu.memory_space<any>>) dst(%423 : memref<256xf32, #tpu.memory_space<vmem>>)
    %c0_i32_332 = arith.constant 0 : i32
    %c0_i32_333 = arith.constant 0 : i32
    %c4_i32_334 = arith.constant 4 : i32
    %c0_i32_335 = arith.constant 0 : i32
    %c4_i32_336 = arith.constant 4 : i32
    %c0_i32_337 = arith.constant 0 : i32
    %426 = tpu.memref_slice %arg2[%c0_i32_332, %c0_i32_337] : memref<20000x256xf32, #tpu.memory_space<any>> -> memref<1x256xf32, #tpu.memory_space<any>>
    %427 = tpu.memref_squeeze %426 : memref<1x256xf32, #tpu.memory_space<any>> -> memref<256xf32, #tpu.memory_space<any>>
    %c0_i32_338 = arith.constant 0 : i32
    %428 = tpu.memref_slice %arg7[%c0_i32_333, %c4_i32_334, %c0_i32_338] : memref<2x8x256xf32, #tpu.memory_space<vmem>> -> memref<1x1x256xf32, #tpu.memory_space<vmem>>
    %429 = tpu.memref_squeeze %428 : memref<1x1x256xf32, #tpu.memory_space<vmem>> -> memref<256xf32, #tpu.memory_space<vmem>>
    %430 = tpu.memref_slice %arg11[%c0_i32_335, %c4_i32_336] : memref<2x8x!tpu.dma_semaphore, #tpu.memory_space<semaphore_mem>> -> memref<1x1x!tpu.dma_semaphore, #tpu.memory_space<semaphore_mem>>
    %431 = tpu.memref_squeeze %430 : memref<1x1x!tpu.dma_semaphore, #tpu.memory_space<semaphore_mem>> -> memref<!tpu.dma_semaphore, #tpu.memory_space<semaphore_mem>>
    tpu.wait_dma2 semaphore(%431 : memref<!tpu.dma_semaphore, #tpu.memory_space<semaphore_mem>>) src(%427 : memref<256xf32, #tpu.memory_space<any>>) dst(%429 : memref<256xf32, #tpu.memory_space<vmem>>)
    %c0_i32_339 = arith.constant 0 : i32
    %c0_i32_340 = arith.constant 0 : i32
    %c5_i32_341 = arith.constant 5 : i32
    %c0_i32_342 = arith.constant 0 : i32
    %c5_i32_343 = arith.constant 5 : i32
    %c0_i32_344 = arith.constant 0 : i32
    %432 = tpu.memref_slice %arg2[%c0_i32_339, %c0_i32_344] : memref<20000x256xf32, #tpu.memory_space<any>> -> memref<1x256xf32, #tpu.memory_space<any>>
    %433 = tpu.memref_squeeze %432 : memref<1x256xf32, #tpu.memory_space<any>> -> memref<256xf32, #tpu.memory_space<any>>
    %c0_i32_345 = arith.constant 0 : i32
    %434 = tpu.memref_slice %arg7[%c0_i32_340, %c5_i32_341, %c0_i32_345] : memref<2x8x256xf32, #tpu.memory_space<vmem>> -> memref<1x1x256xf32, #tpu.memory_space<vmem>>
    %435 = tpu.memref_squeeze %434 : memref<1x1x256xf32, #tpu.memory_space<vmem>> -> memref<256xf32, #tpu.memory_space<vmem>>
    %436 = tpu.memref_slice %arg11[%c0_i32_342, %c5_i32_343] : memref<2x8x!tpu.dma_semaphore, #tpu.memory_space<semaphore_mem>> -> memref<1x1x!tpu.dma_semaphore, #tpu.memory_space<semaphore_mem>>
    %437 = tpu.memref_squeeze %436 : memref<1x1x!tpu.dma_semaphore, #tpu.memory_space<semaphore_mem>> -> memref<!tpu.dma_semaphore, #tpu.memory_space<semaphore_mem>>
    tpu.wait_dma2 semaphore(%437 : memref<!tpu.dma_semaphore, #tpu.memory_space<semaphore_mem>>) src(%433 : memref<256xf32, #tpu.memory_space<any>>) dst(%435 : memref<256xf32, #tpu.memory_space<vmem>>)
    %c0_i32_346 = arith.constant 0 : i32
    %c0_i32_347 = arith.constant 0 : i32
    %c6_i32_348 = arith.constant 6 : i32
    %c0_i32_349 = arith.constant 0 : i32
    %c6_i32_350 = arith.constant 6 : i32
    %c0_i32_351 = arith.constant 0 : i32
    %438 = tpu.memref_slice %arg2[%c0_i32_346, %c0_i32_351] : memref<20000x256xf32, #tpu.memory_space<any>> -> memref<1x256xf32, #tpu.memory_space<any>>
    %439 = tpu.memref_squeeze %438 : memref<1x256xf32, #tpu.memory_space<any>> -> memref<256xf32, #tpu.memory_space<any>>
    %c0_i32_352 = arith.constant 0 : i32
    %440 = tpu.memref_slice %arg7[%c0_i32_347, %c6_i32_348, %c0_i32_352] : memref<2x8x256xf32, #tpu.memory_space<vmem>> -> memref<1x1x256xf32, #tpu.memory_space<vmem>>
    %441 = tpu.memref_squeeze %440 : memref<1x1x256xf32, #tpu.memory_space<vmem>> -> memref<256xf32, #tpu.memory_space<vmem>>
    %442 = tpu.memref_slice %arg11[%c0_i32_349, %c6_i32_350] : memref<2x8x!tpu.dma_semaphore, #tpu.memory_space<semaphore_mem>> -> memref<1x1x!tpu.dma_semaphore, #tpu.memory_space<semaphore_mem>>
    %443 = tpu.memref_squeeze %442 : memref<1x1x!tpu.dma_semaphore, #tpu.memory_space<semaphore_mem>> -> memref<!tpu.dma_semaphore, #tpu.memory_space<semaphore_mem>>
    tpu.wait_dma2 semaphore(%443 : memref<!tpu.dma_semaphore, #tpu.memory_space<semaphore_mem>>) src(%439 : memref<256xf32, #tpu.memory_space<any>>) dst(%441 : memref<256xf32, #tpu.memory_space<vmem>>)
    %c0_i32_353 = arith.constant 0 : i32
    %c0_i32_354 = arith.constant 0 : i32
    %c7_i32_355 = arith.constant 7 : i32
    %c0_i32_356 = arith.constant 0 : i32
    %c7_i32_357 = arith.constant 7 : i32
    %c0_i32_358 = arith.constant 0 : i32
    %444 = tpu.memref_slice %arg2[%c0_i32_353, %c0_i32_358] : memref<20000x256xf32, #tpu.memory_space<any>> -> memref<1x256xf32, #tpu.memory_space<any>>
    %445 = tpu.memref_squeeze %444 : memref<1x256xf32, #tpu.memory_space<any>> -> memref<256xf32, #tpu.memory_space<any>>
    %c0_i32_359 = arith.constant 0 : i32
    %446 = tpu.memref_slice %arg7[%c0_i32_354, %c7_i32_355, %c0_i32_359] : memref<2x8x256xf32, #tpu.memory_space<vmem>> -> memref<1x1x256xf32, #tpu.memory_space<vmem>>
    %447 = tpu.memref_squeeze %446 : memref<1x1x256xf32, #tpu.memory_space<vmem>> -> memref<256xf32, #tpu.memory_space<vmem>>
    %448 = tpu.memref_slice %arg11[%c0_i32_356, %c7_i32_357] : memref<2x8x!tpu.dma_semaphore, #tpu.memory_space<semaphore_mem>> -> memref<1x1x!tpu.dma_semaphore, #tpu.memory_space<semaphore_mem>>
    %449 = tpu.memref_squeeze %448 : memref<1x1x!tpu.dma_semaphore, #tpu.memory_space<semaphore_mem>> -> memref<!tpu.dma_semaphore, #tpu.memory_space<semaphore_mem>>
    tpu.wait_dma2 semaphore(%449 : memref<!tpu.dma_semaphore, #tpu.memory_space<semaphore_mem>>) src(%445 : memref<256xf32, #tpu.memory_space<any>>) dst(%447 : memref<256xf32, #tpu.memory_space<vmem>>)
    %c0_360 = arith.constant 0 : index
    %c0_361 = arith.constant 0 : index
    %c0_362 = arith.constant 0 : index
    %450 = vector.load %arg7[%c0_360, %c0_361, %c0_362] : memref<2x8x256xf32, #tpu.memory_space<vmem>>, vector<1x8x256xf32>
    %451 = vector.shape_cast %450 : vector<1x8x256xf32> to vector<8x256xf32>
    %c2_i32_363 = arith.constant 2 : i32
    %452 = arith.addi %3, %c2_i32_363 : i32
    %c1_i32_364 = arith.constant 1 : i32
    %453 = arith.addi %452, %c1_i32_364 : i32
    %c8_i32_365 = arith.constant 8 : i32
    %454 = arith.muli %453, %c8_i32_365 : i32
    %c0_i32_366 = arith.constant 0 : i32
    %455 = arith.addi %454, %c0_i32_366 : i32
    %456 = arith.index_cast %455 : i32 to index
    %457 = memref.load %arg1[%456] : memref<64xi32, #tpu.memory_space<smem>>
    %c1_i32_367 = arith.constant 1 : i32
    %c0_i32_368 = arith.constant 0 : i32
    %c1_i32_369 = arith.constant 1 : i32
    %c0_i32_370 = arith.constant 0 : i32
    %c0_i32_371 = arith.constant 0 : i32
    %458 = tpu.memref_slice %arg2[%457, %c0_i32_371] : memref<20000x256xf32, #tpu.memory_space<any>> -> memref<1x256xf32, #tpu.memory_space<any>>
    %459 = tpu.memref_squeeze %458 : memref<1x256xf32, #tpu.memory_space<any>> -> memref<256xf32, #tpu.memory_space<any>>
    %c0_i32_372 = arith.constant 0 : i32
    %460 = tpu.memref_slice %arg7[%c1_i32_367, %c0_i32_368, %c0_i32_372] : memref<2x8x256xf32, #tpu.memory_space<vmem>> -> memref<1x1x256xf32, #tpu.memory_space<vmem>>
    %461 = tpu.memref_squeeze %460 : memref<1x1x256xf32, #tpu.memory_space<vmem>> -> memref<256xf32, #tpu.memory_space<vmem>>
    %462 = tpu.memref_slice %arg11[%c1_i32_369, %c0_i32_370] : memref<2x8x!tpu.dma_semaphore, #tpu.memory_space<semaphore_mem>> -> memref<1x1x!tpu.dma_semaphore, #tpu.memory_space<semaphore_mem>>
    %463 = tpu.memref_squeeze %462 : memref<1x1x!tpu.dma_semaphore, #tpu.memory_space<semaphore_mem>> -> memref<!tpu.dma_semaphore, #tpu.memory_space<semaphore_mem>>
    tpu.enqueue_dma source(%459 : memref<256xf32, #tpu.memory_space<any>>) target(%461 : memref<256xf32, #tpu.memory_space<vmem>>) target_semaphore(%463 : memref<!tpu.dma_semaphore, #tpu.memory_space<semaphore_mem>>)
    %c1_i32_373 = arith.constant 1 : i32
    %464 = arith.addi %454, %c1_i32_373 : i32
    %465 = arith.index_cast %464 : i32 to index
    %466 = memref.load %arg1[%465] : memref<64xi32, #tpu.memory_space<smem>>
    %c1_i32_374 = arith.constant 1 : i32
    %c1_i32_375 = arith.constant 1 : i32
    %c1_i32_376 = arith.constant 1 : i32
    %c1_i32_377 = arith.constant 1 : i32
    %c0_i32_378 = arith.constant 0 : i32
    %467 = tpu.memref_slice %arg2[%466, %c0_i32_378] : memref<20000x256xf32, #tpu.memory_space<any>> -> memref<1x256xf32, #tpu.memory_space<any>>
    %468 = tpu.memref_squeeze %467 : memref<1x256xf32, #tpu.memory_space<any>> -> memref<256xf32, #tpu.memory_space<any>>
    %c0_i32_379 = arith.constant 0 : i32
    %469 = tpu.memref_slice %arg7[%c1_i32_374, %c1_i32_375, %c0_i32_379] : memref<2x8x256xf32, #tpu.memory_space<vmem>> -> memref<1x1x256xf32, #tpu.memory_space<vmem>>
    %470 = tpu.memref_squeeze %469 : memref<1x1x256xf32, #tpu.memory_space<vmem>> -> memref<256xf32, #tpu.memory_space<vmem>>
    %471 = tpu.memref_slice %arg11[%c1_i32_376, %c1_i32_377] : memref<2x8x!tpu.dma_semaphore, #tpu.memory_space<semaphore_mem>> -> memref<1x1x!tpu.dma_semaphore, #tpu.memory_space<semaphore_mem>>
    %472 = tpu.memref_squeeze %471 : memref<1x1x!tpu.dma_semaphore, #tpu.memory_space<semaphore_mem>> -> memref<!tpu.dma_semaphore, #tpu.memory_space<semaphore_mem>>
    tpu.enqueue_dma source(%468 : memref<256xf32, #tpu.memory_space<any>>) target(%470 : memref<256xf32, #tpu.memory_space<vmem>>) target_semaphore(%472 : memref<!tpu.dma_semaphore, #tpu.memory_space<semaphore_mem>>)
    %c2_i32_380 = arith.constant 2 : i32
    %473 = arith.addi %454, %c2_i32_380 : i32
    %474 = arith.index_cast %473 : i32 to index
    %475 = memref.load %arg1[%474] : memref<64xi32, #tpu.memory_space<smem>>
    %c1_i32_381 = arith.constant 1 : i32
    %c2_i32_382 = arith.constant 2 : i32
    %c1_i32_383 = arith.constant 1 : i32
    %c2_i32_384 = arith.constant 2 : i32
    %c0_i32_385 = arith.constant 0 : i32
    %476 = tpu.memref_slice %arg2[%475, %c0_i32_385] : memref<20000x256xf32, #tpu.memory_space<any>> -> memref<1x256xf32, #tpu.memory_space<any>>
    %477 = tpu.memref_squeeze %476 : memref<1x256xf32, #tpu.memory_space<any>> -> memref<256xf32, #tpu.memory_space<any>>
    %c0_i32_386 = arith.constant 0 : i32
    %478 = tpu.memref_slice %arg7[%c1_i32_381, %c2_i32_382, %c0_i32_386] : memref<2x8x256xf32, #tpu.memory_space<vmem>> -> memref<1x1x256xf32, #tpu.memory_space<vmem>>
    %479 = tpu.memref_squeeze %478 : memref<1x1x256xf32, #tpu.memory_space<vmem>> -> memref<256xf32, #tpu.memory_space<vmem>>
    %480 = tpu.memref_slice %arg11[%c1_i32_383, %c2_i32_384] : memref<2x8x!tpu.dma_semaphore, #tpu.memory_space<semaphore_mem>> -> memref<1x1x!tpu.dma_semaphore, #tpu.memory_space<semaphore_mem>>
    %481 = tpu.memref_squeeze %480 : memref<1x1x!tpu.dma_semaphore, #tpu.memory_space<semaphore_mem>> -> memref<!tpu.dma_semaphore, #tpu.memory_space<semaphore_mem>>
    tpu.enqueue_dma source(%477 : memref<256xf32, #tpu.memory_space<any>>) target(%479 : memref<256xf32, #tpu.memory_space<vmem>>) target_semaphore(%481 : memref<!tpu.dma_semaphore, #tpu.memory_space<semaphore_mem>>)
    %c3_i32_387 = arith.constant 3 : i32
    %482 = arith.addi %454, %c3_i32_387 : i32
    %483 = arith.index_cast %482 : i32 to index
    %484 = memref.load %arg1[%483] : memref<64xi32, #tpu.memory_space<smem>>
    %c1_i32_388 = arith.constant 1 : i32
    %c3_i32_389 = arith.constant 3 : i32
    %c1_i32_390 = arith.constant 1 : i32
    %c3_i32_391 = arith.constant 3 : i32
    %c0_i32_392 = arith.constant 0 : i32
    %485 = tpu.memref_slice %arg2[%484, %c0_i32_392] : memref<20000x256xf32, #tpu.memory_space<any>> -> memref<1x256xf32, #tpu.memory_space<any>>
    %486 = tpu.memref_squeeze %485 : memref<1x256xf32, #tpu.memory_space<any>> -> memref<256xf32, #tpu.memory_space<any>>
    %c0_i32_393 = arith.constant 0 : i32
    %487 = tpu.memref_slice %arg7[%c1_i32_388, %c3_i32_389, %c0_i32_393] : memref<2x8x256xf32, #tpu.memory_space<vmem>> -> memref<1x1x256xf32, #tpu.memory_space<vmem>>
    %488 = tpu.memref_squeeze %487 : memref<1x1x256xf32, #tpu.memory_space<vmem>> -> memref<256xf32, #tpu.memory_space<vmem>>
    %489 = tpu.memref_slice %arg11[%c1_i32_390, %c3_i32_391] : memref<2x8x!tpu.dma_semaphore, #tpu.memory_space<semaphore_mem>> -> memref<1x1x!tpu.dma_semaphore, #tpu.memory_space<semaphore_mem>>
    %490 = tpu.memref_squeeze %489 : memref<1x1x!tpu.dma_semaphore, #tpu.memory_space<semaphore_mem>> -> memref<!tpu.dma_semaphore, #tpu.memory_space<semaphore_mem>>
    tpu.enqueue_dma source(%486 : memref<256xf32, #tpu.memory_space<any>>) target(%488 : memref<256xf32, #tpu.memory_space<vmem>>) target_semaphore(%490 : memref<!tpu.dma_semaphore, #tpu.memory_space<semaphore_mem>>)
    %c4_i32_394 = arith.constant 4 : i32
    %491 = arith.addi %454, %c4_i32_394 : i32
    %492 = arith.index_cast %491 : i32 to index
    %493 = memref.load %arg1[%492] : memref<64xi32, #tpu.memory_space<smem>>
    %c1_i32_395 = arith.constant 1 : i32
    %c4_i32_396 = arith.constant 4 : i32
    %c1_i32_397 = arith.constant 1 : i32
    %c4_i32_398 = arith.constant 4 : i32
    %c0_i32_399 = arith.constant 0 : i32
    %494 = tpu.memref_slice %arg2[%493, %c0_i32_399] : memref<20000x256xf32, #tpu.memory_space<any>> -> memref<1x256xf32, #tpu.memory_space<any>>
    %495 = tpu.memref_squeeze %494 : memref<1x256xf32, #tpu.memory_space<any>> -> memref<256xf32, #tpu.memory_space<any>>
    %c0_i32_400 = arith.constant 0 : i32
    %496 = tpu.memref_slice %arg7[%c1_i32_395, %c4_i32_396, %c0_i32_400] : memref<2x8x256xf32, #tpu.memory_space<vmem>> -> memref<1x1x256xf32, #tpu.memory_space<vmem>>
    %497 = tpu.memref_squeeze %496 : memref<1x1x256xf32, #tpu.memory_space<vmem>> -> memref<256xf32, #tpu.memory_space<vmem>>
    %498 = tpu.memref_slice %arg11[%c1_i32_397, %c4_i32_398] : memref<2x8x!tpu.dma_semaphore, #tpu.memory_space<semaphore_mem>> -> memref<1x1x!tpu.dma_semaphore, #tpu.memory_space<semaphore_mem>>
    %499 = tpu.memref_squeeze %498 : memref<1x1x!tpu.dma_semaphore, #tpu.memory_space<semaphore_mem>> -> memref<!tpu.dma_semaphore, #tpu.memory_space<semaphore_mem>>
    tpu.enqueue_dma source(%495 : memref<256xf32, #tpu.memory_space<any>>) target(%497 : memref<256xf32, #tpu.memory_space<vmem>>) target_semaphore(%499 : memref<!tpu.dma_semaphore, #tpu.memory_space<semaphore_mem>>)
    %c5_i32_401 = arith.constant 5 : i32
    %500 = arith.addi %454, %c5_i32_401 : i32
    %501 = arith.index_cast %500 : i32 to index
    %502 = memref.load %arg1[%501] : memref<64xi32, #tpu.memory_space<smem>>
    %c1_i32_402 = arith.constant 1 : i32
    %c5_i32_403 = arith.constant 5 : i32
    %c1_i32_404 = arith.constant 1 : i32
    %c5_i32_405 = arith.constant 5 : i32
    %c0_i32_406 = arith.constant 0 : i32
    %503 = tpu.memref_slice %arg2[%502, %c0_i32_406] : memref<20000x256xf32, #tpu.memory_space<any>> -> memref<1x256xf32, #tpu.memory_space<any>>
    %504 = tpu.memref_squeeze %503 : memref<1x256xf32, #tpu.memory_space<any>> -> memref<256xf32, #tpu.memory_space<any>>
    %c0_i32_407 = arith.constant 0 : i32
    %505 = tpu.memref_slice %arg7[%c1_i32_402, %c5_i32_403, %c0_i32_407] : memref<2x8x256xf32, #tpu.memory_space<vmem>> -> memref<1x1x256xf32, #tpu.memory_space<vmem>>
    %506 = tpu.memref_squeeze %505 : memref<1x1x256xf32, #tpu.memory_space<vmem>> -> memref<256xf32, #tpu.memory_space<vmem>>
    %507 = tpu.memref_slice %arg11[%c1_i32_404, %c5_i32_405] : memref<2x8x!tpu.dma_semaphore, #tpu.memory_space<semaphore_mem>> -> memref<1x1x!tpu.dma_semaphore, #tpu.memory_space<semaphore_mem>>
    %508 = tpu.memref_squeeze %507 : memref<1x1x!tpu.dma_semaphore, #tpu.memory_space<semaphore_mem>> -> memref<!tpu.dma_semaphore, #tpu.memory_space<semaphore_mem>>
    tpu.enqueue_dma source(%504 : memref<256xf32, #tpu.memory_space<any>>) target(%506 : memref<256xf32, #tpu.memory_space<vmem>>) target_semaphore(%508 : memref<!tpu.dma_semaphore, #tpu.memory_space<semaphore_mem>>)
    %c6_i32_408 = arith.constant 6 : i32
    %509 = arith.addi %454, %c6_i32_408 : i32
    %510 = arith.index_cast %509 : i32 to index
    %511 = memref.load %arg1[%510] : memref<64xi32, #tpu.memory_space<smem>>
    %c1_i32_409 = arith.constant 1 : i32
    %c6_i32_410 = arith.constant 6 : i32
    %c1_i32_411 = arith.constant 1 : i32
    %c6_i32_412 = arith.constant 6 : i32
    %c0_i32_413 = arith.constant 0 : i32
    %512 = tpu.memref_slice %arg2[%511, %c0_i32_413] : memref<20000x256xf32, #tpu.memory_space<any>> -> memref<1x256xf32, #tpu.memory_space<any>>
    %513 = tpu.memref_squeeze %512 : memref<1x256xf32, #tpu.memory_space<any>> -> memref<256xf32, #tpu.memory_space<any>>
    %c0_i32_414 = arith.constant 0 : i32
    %514 = tpu.memref_slice %arg7[%c1_i32_409, %c6_i32_410, %c0_i32_414] : memref<2x8x256xf32, #tpu.memory_space<vmem>> -> memref<1x1x256xf32, #tpu.memory_space<vmem>>
    %515 = tpu.memref_squeeze %514 : memref<1x1x256xf32, #tpu.memory_space<vmem>> -> memref<256xf32, #tpu.memory_space<vmem>>
    %516 = tpu.memref_slice %arg11[%c1_i32_411, %c6_i32_412] : memref<2x8x!tpu.dma_semaphore, #tpu.memory_space<semaphore_mem>> -> memref<1x1x!tpu.dma_semaphore, #tpu.memory_space<semaphore_mem>>
    %517 = tpu.memref_squeeze %516 : memref<1x1x!tpu.dma_semaphore, #tpu.memory_space<semaphore_mem>> -> memref<!tpu.dma_semaphore, #tpu.memory_space<semaphore_mem>>
    tpu.enqueue_dma source(%513 : memref<256xf32, #tpu.memory_space<any>>) target(%515 : memref<256xf32, #tpu.memory_space<vmem>>) target_semaphore(%517 : memref<!tpu.dma_semaphore, #tpu.memory_space<semaphore_mem>>)
    %c7_i32_415 = arith.constant 7 : i32
    %518 = arith.addi %454, %c7_i32_415 : i32
    %519 = arith.index_cast %518 : i32 to index
    %520 = memref.load %arg1[%519] : memref<64xi32, #tpu.memory_space<smem>>
    %c1_i32_416 = arith.constant 1 : i32
    %c7_i32_417 = arith.constant 7 : i32
    %c1_i32_418 = arith.constant 1 : i32
    %c7_i32_419 = arith.constant 7 : i32
    %c0_i32_420 = arith.constant 0 : i32
    %521 = tpu.memref_slice %arg2[%520, %c0_i32_420] : memref<20000x256xf32, #tpu.memory_space<any>> -> memref<1x256xf32, #tpu.memory_space<any>>
    %522 = tpu.memref_squeeze %521 : memref<1x256xf32, #tpu.memory_space<any>> -> memref<256xf32, #tpu.memory_space<any>>
    %c0_i32_421 = arith.constant 0 : i32
    %523 = tpu.memref_slice %arg7[%c1_i32_416, %c7_i32_417, %c0_i32_421] : memref<2x8x256xf32, #tpu.memory_space<vmem>> -> memref<1x1x256xf32, #tpu.memory_space<vmem>>
    %524 = tpu.memref_squeeze %523 : memref<1x1x256xf32, #tpu.memory_space<vmem>> -> memref<256xf32, #tpu.memory_space<vmem>>
    %525 = tpu.memref_slice %arg11[%c1_i32_418, %c7_i32_419] : memref<2x8x!tpu.dma_semaphore, #tpu.memory_space<semaphore_mem>> -> memref<1x1x!tpu.dma_semaphore, #tpu.memory_space<semaphore_mem>>
    %526 = tpu.memref_squeeze %525 : memref<1x1x!tpu.dma_semaphore, #tpu.memory_space<semaphore_mem>> -> memref<!tpu.dma_semaphore, #tpu.memory_space<semaphore_mem>>
    tpu.enqueue_dma source(%522 : memref<256xf32, #tpu.memory_space<any>>) target(%524 : memref<256xf32, #tpu.memory_space<vmem>>) target_semaphore(%526 : memref<!tpu.dma_semaphore, #tpu.memory_space<semaphore_mem>>)
    %527 = arith.truncf %400 : vector<8x64xf32> to vector<8x64xbf16>
    %c0_422 = arith.constant 0 : index
    %c0_423 = arith.constant 0 : index
    %528 = vector.load %arg3[%c0_422, %c0_423] : memref<64x512xbf16, #tpu.memory_space<vmem>>, vector<64x512xbf16>
    %cst_424 = arith.constant dense<0.000000e+00> : vector<8x512xf32>
    %529 = tpu.matmul %527, %528, %cst_424 {dimension_numbers = #tpu.dot_dimension_numbers<[1], [0], [0], [1], [0, 0, 1, 1], [], []>} : vector<8x64xbf16>, vector<64x512xbf16>, vector<8x512xf32> -> vector<8x512xf32>
    %530 = vector.extract_strided_slice %529 {offsets = [0, 0], sizes = [8, 256], strides = [1, 1]} : vector<8x512xf32> to vector<8x256xf32>
    %531 = vector.extract_strided_slice %529 {offsets = [0, 256], sizes = [8, 256], strides = [1, 1]} : vector<8x512xf32> to vector<8x256xf32>
    %532 = vector.shape_cast %81 : vector<8x1xi1> to vector<8x1xi1>
    %533 = vector.broadcast %532 : vector<8x1xi1> to vector<8x256xi1>
    %534 = arith.select %533, %530, %531 : vector<8x256xi1>, vector<8x256xf32>
    %535 = arith.addf %451, %534 : vector<8x256xf32>
    %536 = vector.extract_strided_slice %535 {offsets = [0, 0], sizes = [8, 64], strides = [1, 1]} : vector<8x256xf32> to vector<8x64xf32>
    %537 = arith.negf %536 : vector<8x64xf32>
    %538 = math.exp %537 : vector<8x64xf32>
    %cst_425 = arith.constant 1.000000e+00 : f32
    %539 = vector.broadcast %cst_425 : f32 to vector<8x64xf32>
    %540 = arith.addf %539, %538 : vector<8x64xf32>
    %541 = arith.divf %539, %540 : vector<8x64xf32>
    %542 = vector.extract_strided_slice %535 {offsets = [0, 64], sizes = [8, 64], strides = [1, 1]} : vector<8x256xf32> to vector<8x64xf32>
    %543 = arith.negf %542 : vector<8x64xf32>
    %544 = math.exp %543 : vector<8x64xf32>
    %cst_426 = arith.constant 1.000000e+00 : f32
    %545 = vector.broadcast %cst_426 : f32 to vector<8x64xf32>
    %546 = arith.addf %545, %544 : vector<8x64xf32>
    %547 = arith.divf %545, %546 : vector<8x64xf32>
    %548 = vector.extract_strided_slice %535 {offsets = [0, 128], sizes = [8, 64], strides = [1, 1]} : vector<8x256xf32> to vector<8x64xf32>
    %549 = math.tanh %548 : vector<8x64xf32>
    %550 = vector.extract_strided_slice %535 {offsets = [0, 192], sizes = [8, 64], strides = [1, 1]} : vector<8x256xf32> to vector<8x64xf32>
    %551 = arith.negf %550 : vector<8x64xf32>
    %552 = math.exp %551 : vector<8x64xf32>
    %cst_427 = arith.constant 1.000000e+00 : f32
    %553 = vector.broadcast %cst_427 : f32 to vector<8x64xf32>
    %554 = arith.addf %553, %552 : vector<8x64xf32>
    %555 = arith.divf %553, %554 : vector<8x64xf32>
    %556 = arith.mulf %547, %398 : vector<8x64xf32>
    %557 = arith.mulf %541, %549 : vector<8x64xf32>
    %558 = arith.addf %556, %557 : vector<8x64xf32>
    %559 = math.tanh %558 : vector<8x64xf32>
    %560 = arith.mulf %555, %559 : vector<8x64xf32>
    %c16 = arith.constant 16 : index
    %c0_428 = arith.constant 0 : index
    %561 = vector.load %arg10[%c16, %c0_428] : memref<64x64xf32, #tpu.memory_space<vmem>>, vector<8x64xf32>
    tpu.vector_store %arg10[%c16, %c0_428], %560 {strides = array<i32>} : memref<64x64xf32, #tpu.memory_space<vmem>>, vector<8x64xf32>,
    %c0_i32_429 = arith.constant 0 : i32
    %c1_i32_430 = arith.constant 1 : i32
    %c0_i32_431 = arith.constant 0 : i32
    %c1_i32_432 = arith.constant 1 : i32
    %c0_i32_433 = arith.constant 0 : i32
    %c0_i32_434 = arith.constant 0 : i32
    %562 = tpu.memref_slice %arg2[%c0_i32_429, %c0_i32_434] : memref<20000x256xf32, #tpu.memory_space<any>> -> memref<1x256xf32, #tpu.memory_space<any>>
    %563 = tpu.memref_squeeze %562 : memref<1x256xf32, #tpu.memory_space<any>> -> memref<256xf32, #tpu.memory_space<any>>
    %c0_i32_435 = arith.constant 0 : i32
    %564 = tpu.memref_slice %arg7[%c1_i32_430, %c0_i32_431, %c0_i32_435] : memref<2x8x256xf32, #tpu.memory_space<vmem>> -> memref<1x1x256xf32, #tpu.memory_space<vmem>>
    %565 = tpu.memref_squeeze %564 : memref<1x1x256xf32, #tpu.memory_space<vmem>> -> memref<256xf32, #tpu.memory_space<vmem>>
    %566 = tpu.memref_slice %arg11[%c1_i32_432, %c0_i32_433] : memref<2x8x!tpu.dma_semaphore, #tpu.memory_space<semaphore_mem>> -> memref<1x1x!tpu.dma_semaphore, #tpu.memory_space<semaphore_mem>>
    %567 = tpu.memref_squeeze %566 : memref<1x1x!tpu.dma_semaphore, #tpu.memory_space<semaphore_mem>> -> memref<!tpu.dma_semaphore, #tpu.memory_space<semaphore_mem>>
    tpu.wait_dma2 semaphore(%567 : memref<!tpu.dma_semaphore, #tpu.memory_space<semaphore_mem>>) src(%563 : memref<256xf32, #tpu.memory_space<any>>) dst(%565 : memref<256xf32, #tpu.memory_space<vmem>>)
    %c0_i32_436 = arith.constant 0 : i32
    %c1_i32_437 = arith.constant 1 : i32
    %c1_i32_438 = arith.constant 1 : i32
    %c1_i32_439 = arith.constant 1 : i32
    %c1_i32_440 = arith.constant 1 : i32
    %c0_i32_441 = arith.constant 0 : i32
    %568 = tpu.memref_slice %arg2[%c0_i32_436, %c0_i32_441] : memref<20000x256xf32, #tpu.memory_space<any>> -> memref<1x256xf32, #tpu.memory_space<any>>
    %569 = tpu.memref_squeeze %568 : memref<1x256xf32, #tpu.memory_space<any>> -> memref<256xf32, #tpu.memory_space<any>>
    %c0_i32_442 = arith.constant 0 : i32
    %570 = tpu.memref_slice %arg7[%c1_i32_437, %c1_i32_438, %c0_i32_442] : memref<2x8x256xf32, #tpu.memory_space<vmem>> -> memref<1x1x256xf32, #tpu.memory_space<vmem>>
    %571 = tpu.memref_squeeze %570 : memref<1x1x256xf32, #tpu.memory_space<vmem>> -> memref<256xf32, #tpu.memory_space<vmem>>
    %572 = tpu.memref_slice %arg11[%c1_i32_439, %c1_i32_440] : memref<2x8x!tpu.dma_semaphore, #tpu.memory_space<semaphore_mem>> -> memref<1x1x!tpu.dma_semaphore, #tpu.memory_space<semaphore_mem>>
    %573 = tpu.memref_squeeze %572 : memref<1x1x!tpu.dma_semaphore, #tpu.memory_space<semaphore_mem>> -> memref<!tpu.dma_semaphore, #tpu.memory_space<semaphore_mem>>
    tpu.wait_dma2 semaphore(%573 : memref<!tpu.dma_semaphore, #tpu.memory_space<semaphore_mem>>) src(%569 : memref<256xf32, #tpu.memory_space<any>>) dst(%571 : memref<256xf32, #tpu.memory_space<vmem>>)
    %c0_i32_443 = arith.constant 0 : i32
    %c1_i32_444 = arith.constant 1 : i32
    %c2_i32_445 = arith.constant 2 : i32
    %c1_i32_446 = arith.constant 1 : i32
    %c2_i32_447 = arith.constant 2 : i32
    %c0_i32_448 = arith.constant 0 : i32
    %574 = tpu.memref_slice %arg2[%c0_i32_443, %c0_i32_448] : memref<20000x256xf32, #tpu.memory_space<any>> -> memref<1x256xf32, #tpu.memory_space<any>>
    %575 = tpu.memref_squeeze %574 : memref<1x256xf32, #tpu.memory_space<any>> -> memref<256xf32, #tpu.memory_space<any>>
    %c0_i32_449 = arith.constant 0 : i32
    %576 = tpu.memref_slice %arg7[%c1_i32_444, %c2_i32_445, %c0_i32_449] : memref<2x8x256xf32, #tpu.memory_space<vmem>> -> memref<1x1x256xf32, #tpu.memory_space<vmem>>
    %577 = tpu.memref_squeeze %576 : memref<1x1x256xf32, #tpu.memory_space<vmem>> -> memref<256xf32, #tpu.memory_space<vmem>>
    %578 = tpu.memref_slice %arg11[%c1_i32_446, %c2_i32_447] : memref<2x8x!tpu.dma_semaphore, #tpu.memory_space<semaphore_mem>> -> memref<1x1x!tpu.dma_semaphore, #tpu.memory_space<semaphore_mem>>
    %579 = tpu.memref_squeeze %578 : memref<1x1x!tpu.dma_semaphore, #tpu.memory_space<semaphore_mem>> -> memref<!tpu.dma_semaphore, #tpu.memory_space<semaphore_mem>>
    tpu.wait_dma2 semaphore(%579 : memref<!tpu.dma_semaphore, #tpu.memory_space<semaphore_mem>>) src(%575 : memref<256xf32, #tpu.memory_space<any>>) dst(%577 : memref<256xf32, #tpu.memory_space<vmem>>)
    %c0_i32_450 = arith.constant 0 : i32
    %c1_i32_451 = arith.constant 1 : i32
    %c3_i32_452 = arith.constant 3 : i32
    %c1_i32_453 = arith.constant 1 : i32
    %c3_i32_454 = arith.constant 3 : i32
    %c0_i32_455 = arith.constant 0 : i32
    %580 = tpu.memref_slice %arg2[%c0_i32_450, %c0_i32_455] : memref<20000x256xf32, #tpu.memory_space<any>> -> memref<1x256xf32, #tpu.memory_space<any>>
    %581 = tpu.memref_squeeze %580 : memref<1x256xf32, #tpu.memory_space<any>> -> memref<256xf32, #tpu.memory_space<any>>
    %c0_i32_456 = arith.constant 0 : i32
    %582 = tpu.memref_slice %arg7[%c1_i32_451, %c3_i32_452, %c0_i32_456] : memref<2x8x256xf32, #tpu.memory_space<vmem>> -> memref<1x1x256xf32, #tpu.memory_space<vmem>>
    %583 = tpu.memref_squeeze %582 : memref<1x1x256xf32, #tpu.memory_space<vmem>> -> memref<256xf32, #tpu.memory_space<vmem>>
    %584 = tpu.memref_slice %arg11[%c1_i32_453, %c3_i32_454] : memref<2x8x!tpu.dma_semaphore, #tpu.memory_space<semaphore_mem>> -> memref<1x1x!tpu.dma_semaphore, #tpu.memory_space<semaphore_mem>>
    %585 = tpu.memref_squeeze %584 : memref<1x1x!tpu.dma_semaphore, #tpu.memory_space<semaphore_mem>> -> memref<!tpu.dma_semaphore, #tpu.memory_space<semaphore_mem>>
    tpu.wait_dma2 semaphore(%585 : memref<!tpu.dma_semaphore, #tpu.memory_space<semaphore_mem>>) src(%581 : memref<256xf32, #tpu.memory_space<any>>) dst(%583 : memref<256xf32, #tpu.memory_space<vmem>>)
    %c0_i32_457 = arith.constant 0 : i32
    %c1_i32_458 = arith.constant 1 : i32
    %c4_i32_459 = arith.constant 4 : i32
    %c1_i32_460 = arith.constant 1 : i32
    %c4_i32_461 = arith.constant 4 : i32
    %c0_i32_462 = arith.constant 0 : i32
    %586 = tpu.memref_slice %arg2[%c0_i32_457, %c0_i32_462] : memref<20000x256xf32, #tpu.memory_space<any>> -> memref<1x256xf32, #tpu.memory_space<any>>
    %587 = tpu.memref_squeeze %586 : memref<1x256xf32, #tpu.memory_space<any>> -> memref<256xf32, #tpu.memory_space<any>>
    %c0_i32_463 = arith.constant 0 : i32
    %588 = tpu.memref_slice %arg7[%c1_i32_458, %c4_i32_459, %c0_i32_463] : memref<2x8x256xf32, #tpu.memory_space<vmem>> -> memref<1x1x256xf32, #tpu.memory_space<vmem>>
    %589 = tpu.memref_squeeze %588 : memref<1x1x256xf32, #tpu.memory_space<vmem>> -> memref<256xf32, #tpu.memory_space<vmem>>
    %590 = tpu.memref_slice %arg11[%c1_i32_460, %c4_i32_461] : memref<2x8x!tpu.dma_semaphore, #tpu.memory_space<semaphore_mem>> -> memref<1x1x!tpu.dma_semaphore, #tpu.memory_space<semaphore_mem>>
    %591 = tpu.memref_squeeze %590 : memref<1x1x!tpu.dma_semaphore, #tpu.memory_space<semaphore_mem>> -> memref<!tpu.dma_semaphore, #tpu.memory_space<semaphore_mem>>
    tpu.wait_dma2 semaphore(%591 : memref<!tpu.dma_semaphore, #tpu.memory_space<semaphore_mem>>) src(%587 : memref<256xf32, #tpu.memory_space<any>>) dst(%589 : memref<256xf32, #tpu.memory_space<vmem>>)
    %c0_i32_464 = arith.constant 0 : i32
    %c1_i32_465 = arith.constant 1 : i32
    %c5_i32_466 = arith.constant 5 : i32
    %c1_i32_467 = arith.constant 1 : i32
    %c5_i32_468 = arith.constant 5 : i32
    %c0_i32_469 = arith.constant 0 : i32
    %592 = tpu.memref_slice %arg2[%c0_i32_464, %c0_i32_469] : memref<20000x256xf32, #tpu.memory_space<any>> -> memref<1x256xf32, #tpu.memory_space<any>>
    %593 = tpu.memref_squeeze %592 : memref<1x256xf32, #tpu.memory_space<any>> -> memref<256xf32, #tpu.memory_space<any>>
    %c0_i32_470 = arith.constant 0 : i32
    %594 = tpu.memref_slice %arg7[%c1_i32_465, %c5_i32_466, %c0_i32_470] : memref<2x8x256xf32, #tpu.memory_space<vmem>> -> memref<1x1x256xf32, #tpu.memory_space<vmem>>
    %595 = tpu.memref_squeeze %594 : memref<1x1x256xf32, #tpu.memory_space<vmem>> -> memref<256xf32, #tpu.memory_space<vmem>>
    %596 = tpu.memref_slice %arg11[%c1_i32_467, %c5_i32_468] : memref<2x8x!tpu.dma_semaphore, #tpu.memory_space<semaphore_mem>> -> memref<1x1x!tpu.dma_semaphore, #tpu.memory_space<semaphore_mem>>
    %597 = tpu.memref_squeeze %596 : memref<1x1x!tpu.dma_semaphore, #tpu.memory_space<semaphore_mem>> -> memref<!tpu.dma_semaphore, #tpu.memory_space<semaphore_mem>>
    tpu.wait_dma2 semaphore(%597 : memref<!tpu.dma_semaphore, #tpu.memory_space<semaphore_mem>>) src(%593 : memref<256xf32, #tpu.memory_space<any>>) dst(%595 : memref<256xf32, #tpu.memory_space<vmem>>)
    %c0_i32_471 = arith.constant 0 : i32
    %c1_i32_472 = arith.constant 1 : i32
    %c6_i32_473 = arith.constant 6 : i32
    %c1_i32_474 = arith.constant 1 : i32
    %c6_i32_475 = arith.constant 6 : i32
    %c0_i32_476 = arith.constant 0 : i32
    %598 = tpu.memref_slice %arg2[%c0_i32_471, %c0_i32_476] : memref<20000x256xf32, #tpu.memory_space<any>> -> memref<1x256xf32, #tpu.memory_space<any>>
    %599 = tpu.memref_squeeze %598 : memref<1x256xf32, #tpu.memory_space<any>> -> memref<256xf32, #tpu.memory_space<any>>
    %c0_i32_477 = arith.constant 0 : i32
    %600 = tpu.memref_slice %arg7[%c1_i32_472, %c6_i32_473, %c0_i32_477] : memref<2x8x256xf32, #tpu.memory_space<vmem>> -> memref<1x1x256xf32, #tpu.memory_space<vmem>>
    %601 = tpu.memref_squeeze %600 : memref<1x1x256xf32, #tpu.memory_space<vmem>> -> memref<256xf32, #tpu.memory_space<vmem>>
    %602 = tpu.memref_slice %arg11[%c1_i32_474, %c6_i32_475] : memref<2x8x!tpu.dma_semaphore, #tpu.memory_space<semaphore_mem>> -> memref<1x1x!tpu.dma_semaphore, #tpu.memory_space<semaphore_mem>>
    %603 = tpu.memref_squeeze %602 : memref<1x1x!tpu.dma_semaphore, #tpu.memory_space<semaphore_mem>> -> memref<!tpu.dma_semaphore, #tpu.memory_space<semaphore_mem>>
    tpu.wait_dma2 semaphore(%603 : memref<!tpu.dma_semaphore, #tpu.memory_space<semaphore_mem>>) src(%599 : memref<256xf32, #tpu.memory_space<any>>) dst(%601 : memref<256xf32, #tpu.memory_space<vmem>>)
    %c0_i32_478 = arith.constant 0 : i32
    %c1_i32_479 = arith.constant 1 : i32
    %c7_i32_480 = arith.constant 7 : i32
    %c1_i32_481 = arith.constant 1 : i32
    %c7_i32_482 = arith.constant 7 : i32
    %c0_i32_483 = arith.constant 0 : i32
    %604 = tpu.memref_slice %arg2[%c0_i32_478, %c0_i32_483] : memref<20000x256xf32, #tpu.memory_space<any>> -> memref<1x256xf32, #tpu.memory_space<any>>
    %605 = tpu.memref_squeeze %604 : memref<1x256xf32, #tpu.memory_space<any>> -> memref<256xf32, #tpu.memory_space<any>>
    %c0_i32_484 = arith.constant 0 : i32
    %606 = tpu.memref_slice %arg7[%c1_i32_479, %c7_i32_480, %c0_i32_484] : memref<2x8x256xf32, #tpu.memory_space<vmem>> -> memref<1x1x256xf32, #tpu.memory_space<vmem>>
    %607 = tpu.memref_squeeze %606 : memref<1x1x256xf32, #tpu.memory_space<vmem>> -> memref<256xf32, #tpu.memory_space<vmem>>
    %608 = tpu.memref_slice %arg11[%c1_i32_481, %c7_i32_482] : memref<2x8x!tpu.dma_semaphore, #tpu.memory_space<semaphore_mem>> -> memref<1x1x!tpu.dma_semaphore, #tpu.memory_space<semaphore_mem>>
    %609 = tpu.memref_squeeze %608 : memref<1x1x!tpu.dma_semaphore, #tpu.memory_space<semaphore_mem>> -> memref<!tpu.dma_semaphore, #tpu.memory_space<semaphore_mem>>
    tpu.wait_dma2 semaphore(%609 : memref<!tpu.dma_semaphore, #tpu.memory_space<semaphore_mem>>) src(%605 : memref<256xf32, #tpu.memory_space<any>>) dst(%607 : memref<256xf32, #tpu.memory_space<vmem>>)
    %c1_485 = arith.constant 1 : index
    %c0_486 = arith.constant 0 : index
    %c0_487 = arith.constant 0 : index
    %610 = vector.load %arg7[%c1_485, %c0_486, %c0_487] : memref<2x8x256xf32, #tpu.memory_space<vmem>>, vector<1x8x256xf32>
    %611 = vector.shape_cast %610 : vector<1x8x256xf32> to vector<8x256xf32>
    %c3_i32_488 = arith.constant 3 : i32
    %612 = arith.addi %3, %c3_i32_488 : i32
    %c1_i32_489 = arith.constant 1 : i32
    %613 = arith.addi %612, %c1_i32_489 : i32
    %c8_i32_490 = arith.constant 8 : i32
    %614 = arith.muli %613, %c8_i32_490 : i32
    %c0_i32_491 = arith.constant 0 : i32
    %615 = arith.addi %614, %c0_i32_491 : i32
    %616 = arith.index_cast %615 : i32 to index
    %617 = memref.load %arg1[%616] : memref<64xi32, #tpu.memory_space<smem>>
    %c0_i32_492 = arith.constant 0 : i32
    %c0_i32_493 = arith.constant 0 : i32
    %c0_i32_494 = arith.constant 0 : i32
    %c0_i32_495 = arith.constant 0 : i32
    %c0_i32_496 = arith.constant 0 : i32
    %618 = tpu.memref_slice %arg2[%617, %c0_i32_496] : memref<20000x256xf32, #tpu.memory_space<any>> -> memref<1x256xf32, #tpu.memory_space<any>>
    %619 = tpu.memref_squeeze %618 : memref<1x256xf32, #tpu.memory_space<any>> -> memref<256xf32, #tpu.memory_space<any>>
    %c0_i32_497 = arith.constant 0 : i32
    %620 = tpu.memref_slice %arg7[%c0_i32_492, %c0_i32_493, %c0_i32_497] : memref<2x8x256xf32, #tpu.memory_space<vmem>> -> memref<1x1x256xf32, #tpu.memory_space<vmem>>
    %621 = tpu.memref_squeeze %620 : memref<1x1x256xf32, #tpu.memory_space<vmem>> -> memref<256xf32, #tpu.memory_space<vmem>>
    %622 = tpu.memref_slice %arg11[%c0_i32_494, %c0_i32_495] : memref<2x8x!tpu.dma_semaphore, #tpu.memory_space<semaphore_mem>> -> memref<1x1x!tpu.dma_semaphore, #tpu.memory_space<semaphore_mem>>
    %623 = tpu.memref_squeeze %622 : memref<1x1x!tpu.dma_semaphore, #tpu.memory_space<semaphore_mem>> -> memref<!tpu.dma_semaphore, #tpu.memory_space<semaphore_mem>>
    tpu.enqueue_dma source(%619 : memref<256xf32, #tpu.memory_space<any>>) target(%621 : memref<256xf32, #tpu.memory_space<vmem>>) target_semaphore(%623 : memref<!tpu.dma_semaphore, #tpu.memory_space<semaphore_mem>>)
    %c1_i32_498 = arith.constant 1 : i32
    %624 = arith.addi %614, %c1_i32_498 : i32
    %625 = arith.index_cast %624 : i32 to index
    %626 = memref.load %arg1[%625] : memref<64xi32, #tpu.memory_space<smem>>
    %c0_i32_499 = arith.constant 0 : i32
    %c1_i32_500 = arith.constant 1 : i32
    %c0_i32_501 = arith.constant 0 : i32
    %c1_i32_502 = arith.constant 1 : i32
    %c0_i32_503 = arith.constant 0 : i32
    %627 = tpu.memref_slice %arg2[%626, %c0_i32_503] : memref<20000x256xf32, #tpu.memory_space<any>> -> memref<1x256xf32, #tpu.memory_space<any>>
    %628 = tpu.memref_squeeze %627 : memref<1x256xf32, #tpu.memory_space<any>> -> memref<256xf32, #tpu.memory_space<any>>
    %c0_i32_504 = arith.constant 0 : i32
    %629 = tpu.memref_slice %arg7[%c0_i32_499, %c1_i32_500, %c0_i32_504] : memref<2x8x256xf32, #tpu.memory_space<vmem>> -> memref<1x1x256xf32, #tpu.memory_space<vmem>>
    %630 = tpu.memref_squeeze %629 : memref<1x1x256xf32, #tpu.memory_space<vmem>> -> memref<256xf32, #tpu.memory_space<vmem>>
    %631 = tpu.memref_slice %arg11[%c0_i32_501, %c1_i32_502] : memref<2x8x!tpu.dma_semaphore, #tpu.memory_space<semaphore_mem>> -> memref<1x1x!tpu.dma_semaphore, #tpu.memory_space<semaphore_mem>>
    %632 = tpu.memref_squeeze %631 : memref<1x1x!tpu.dma_semaphore, #tpu.memory_space<semaphore_mem>> -> memref<!tpu.dma_semaphore, #tpu.memory_space<semaphore_mem>>
    tpu.enqueue_dma source(%628 : memref<256xf32, #tpu.memory_space<any>>) target(%630 : memref<256xf32, #tpu.memory_space<vmem>>) target_semaphore(%632 : memref<!tpu.dma_semaphore, #tpu.memory_space<semaphore_mem>>)
    %c2_i32_505 = arith.constant 2 : i32
    %633 = arith.addi %614, %c2_i32_505 : i32
    %634 = arith.index_cast %633 : i32 to index
    %635 = memref.load %arg1[%634] : memref<64xi32, #tpu.memory_space<smem>>
    %c0_i32_506 = arith.constant 0 : i32
    %c2_i32_507 = arith.constant 2 : i32
    %c0_i32_508 = arith.constant 0 : i32
    %c2_i32_509 = arith.constant 2 : i32
    %c0_i32_510 = arith.constant 0 : i32
    %636 = tpu.memref_slice %arg2[%635, %c0_i32_510] : memref<20000x256xf32, #tpu.memory_space<any>> -> memref<1x256xf32, #tpu.memory_space<any>>
    %637 = tpu.memref_squeeze %636 : memref<1x256xf32, #tpu.memory_space<any>> -> memref<256xf32, #tpu.memory_space<any>>
    %c0_i32_511 = arith.constant 0 : i32
    %638 = tpu.memref_slice %arg7[%c0_i32_506, %c2_i32_507, %c0_i32_511] : memref<2x8x256xf32, #tpu.memory_space<vmem>> -> memref<1x1x256xf32, #tpu.memory_space<vmem>>
    %639 = tpu.memref_squeeze %638 : memref<1x1x256xf32, #tpu.memory_space<vmem>> -> memref<256xf32, #tpu.memory_space<vmem>>
    %640 = tpu.memref_slice %arg11[%c0_i32_508, %c2_i32_509] : memref<2x8x!tpu.dma_semaphore, #tpu.memory_space<semaphore_mem>> -> memref<1x1x!tpu.dma_semaphore, #tpu.memory_space<semaphore_mem>>
    %641 = tpu.memref_squeeze %640 : memref<1x1x!tpu.dma_semaphore, #tpu.memory_space<semaphore_mem>> -> memref<!tpu.dma_semaphore, #tpu.memory_space<semaphore_mem>>
    tpu.enqueue_dma source(%637 : memref<256xf32, #tpu.memory_space<any>>) target(%639 : memref<256xf32, #tpu.memory_space<vmem>>) target_semaphore(%641 : memref<!tpu.dma_semaphore, #tpu.memory_space<semaphore_mem>>)
    %c3_i32_512 = arith.constant 3 : i32
    %642 = arith.addi %614, %c3_i32_512 : i32
    %643 = arith.index_cast %642 : i32 to index
    %644 = memref.load %arg1[%643] : memref<64xi32, #tpu.memory_space<smem>>
    %c0_i32_513 = arith.constant 0 : i32
    %c3_i32_514 = arith.constant 3 : i32
    %c0_i32_515 = arith.constant 0 : i32
    %c3_i32_516 = arith.constant 3 : i32
    %c0_i32_517 = arith.constant 0 : i32
    %645 = tpu.memref_slice %arg2[%644, %c0_i32_517] : memref<20000x256xf32, #tpu.memory_space<any>> -> memref<1x256xf32, #tpu.memory_space<any>>
    %646 = tpu.memref_squeeze %645 : memref<1x256xf32, #tpu.memory_space<any>> -> memref<256xf32, #tpu.memory_space<any>>
    %c0_i32_518 = arith.constant 0 : i32
    %647 = tpu.memref_slice %arg7[%c0_i32_513, %c3_i32_514, %c0_i32_518] : memref<2x8x256xf32, #tpu.memory_space<vmem>> -> memref<1x1x256xf32, #tpu.memory_space<vmem>>
    %648 = tpu.memref_squeeze %647 : memref<1x1x256xf32, #tpu.memory_space<vmem>> -> memref<256xf32, #tpu.memory_space<vmem>>
    %649 = tpu.memref_slice %arg11[%c0_i32_515, %c3_i32_516] : memref<2x8x!tpu.dma_semaphore, #tpu.memory_space<semaphore_mem>> -> memref<1x1x!tpu.dma_semaphore, #tpu.memory_space<semaphore_mem>>
    %650 = tpu.memref_squeeze %649 : memref<1x1x!tpu.dma_semaphore, #tpu.memory_space<semaphore_mem>> -> memref<!tpu.dma_semaphore, #tpu.memory_space<semaphore_mem>>
    tpu.enqueue_dma source(%646 : memref<256xf32, #tpu.memory_space<any>>) target(%648 : memref<256xf32, #tpu.memory_space<vmem>>) target_semaphore(%650 : memref<!tpu.dma_semaphore, #tpu.memory_space<semaphore_mem>>)
    %c4_i32_519 = arith.constant 4 : i32
    %651 = arith.addi %614, %c4_i32_519 : i32
    %652 = arith.index_cast %651 : i32 to index
    %653 = memref.load %arg1[%652] : memref<64xi32, #tpu.memory_space<smem>>
    %c0_i32_520 = arith.constant 0 : i32
    %c4_i32_521 = arith.constant 4 : i32
    %c0_i32_522 = arith.constant 0 : i32
    %c4_i32_523 = arith.constant 4 : i32
    %c0_i32_524 = arith.constant 0 : i32
    %654 = tpu.memref_slice %arg2[%653, %c0_i32_524] : memref<20000x256xf32, #tpu.memory_space<any>> -> memref<1x256xf32, #tpu.memory_space<any>>
    %655 = tpu.memref_squeeze %654 : memref<1x256xf32, #tpu.memory_space<any>> -> memref<256xf32, #tpu.memory_space<any>>
    %c0_i32_525 = arith.constant 0 : i32
    %656 = tpu.memref_slice %arg7[%c0_i32_520, %c4_i32_521, %c0_i32_525] : memref<2x8x256xf32, #tpu.memory_space<vmem>> -> memref<1x1x256xf32, #tpu.memory_space<vmem>>
    %657 = tpu.memref_squeeze %656 : memref<1x1x256xf32, #tpu.memory_space<vmem>> -> memref<256xf32, #tpu.memory_space<vmem>>
    %658 = tpu.memref_slice %arg11[%c0_i32_522, %c4_i32_523] : memref<2x8x!tpu.dma_semaphore, #tpu.memory_space<semaphore_mem>> -> memref<1x1x!tpu.dma_semaphore, #tpu.memory_space<semaphore_mem>>
    %659 = tpu.memref_squeeze %658 : memref<1x1x!tpu.dma_semaphore, #tpu.memory_space<semaphore_mem>> -> memref<!tpu.dma_semaphore, #tpu.memory_space<semaphore_mem>>
    tpu.enqueue_dma source(%655 : memref<256xf32, #tpu.memory_space<any>>) target(%657 : memref<256xf32, #tpu.memory_space<vmem>>) target_semaphore(%659 : memref<!tpu.dma_semaphore, #tpu.memory_space<semaphore_mem>>)
    %c5_i32_526 = arith.constant 5 : i32
    %660 = arith.addi %614, %c5_i32_526 : i32
    %661 = arith.index_cast %660 : i32 to index
    %662 = memref.load %arg1[%661] : memref<64xi32, #tpu.memory_space<smem>>
    %c0_i32_527 = arith.constant 0 : i32
    %c5_i32_528 = arith.constant 5 : i32
    %c0_i32_529 = arith.constant 0 : i32
    %c5_i32_530 = arith.constant 5 : i32
    %c0_i32_531 = arith.constant 0 : i32
    %663 = tpu.memref_slice %arg2[%662, %c0_i32_531] : memref<20000x256xf32, #tpu.memory_space<any>> -> memref<1x256xf32, #tpu.memory_space<any>>
    %664 = tpu.memref_squeeze %663 : memref<1x256xf32, #tpu.memory_space<any>> -> memref<256xf32, #tpu.memory_space<any>>
    %c0_i32_532 = arith.constant 0 : i32
    %665 = tpu.memref_slice %arg7[%c0_i32_527, %c5_i32_528, %c0_i32_532] : memref<2x8x256xf32, #tpu.memory_space<vmem>> -> memref<1x1x256xf32, #tpu.memory_space<vmem>>
    %666 = tpu.memref_squeeze %665 : memref<1x1x256xf32, #tpu.memory_space<vmem>> -> memref<256xf32, #tpu.memory_space<vmem>>
    %667 = tpu.memref_slice %arg11[%c0_i32_529, %c5_i32_530] : memref<2x8x!tpu.dma_semaphore, #tpu.memory_space<semaphore_mem>> -> memref<1x1x!tpu.dma_semaphore, #tpu.memory_space<semaphore_mem>>
    %668 = tpu.memref_squeeze %667 : memref<1x1x!tpu.dma_semaphore, #tpu.memory_space<semaphore_mem>> -> memref<!tpu.dma_semaphore, #tpu.memory_space<semaphore_mem>>
    tpu.enqueue_dma source(%664 : memref<256xf32, #tpu.memory_space<any>>) target(%666 : memref<256xf32, #tpu.memory_space<vmem>>) target_semaphore(%668 : memref<!tpu.dma_semaphore, #tpu.memory_space<semaphore_mem>>)
    %c6_i32_533 = arith.constant 6 : i32
    %669 = arith.addi %614, %c6_i32_533 : i32
    %670 = arith.index_cast %669 : i32 to index
    %671 = memref.load %arg1[%670] : memref<64xi32, #tpu.memory_space<smem>>
    %c0_i32_534 = arith.constant 0 : i32
    %c6_i32_535 = arith.constant 6 : i32
    %c0_i32_536 = arith.constant 0 : i32
    %c6_i32_537 = arith.constant 6 : i32
    %c0_i32_538 = arith.constant 0 : i32
    %672 = tpu.memref_slice %arg2[%671, %c0_i32_538] : memref<20000x256xf32, #tpu.memory_space<any>> -> memref<1x256xf32, #tpu.memory_space<any>>
    %673 = tpu.memref_squeeze %672 : memref<1x256xf32, #tpu.memory_space<any>> -> memref<256xf32, #tpu.memory_space<any>>
    %c0_i32_539 = arith.constant 0 : i32
    %674 = tpu.memref_slice %arg7[%c0_i32_534, %c6_i32_535, %c0_i32_539] : memref<2x8x256xf32, #tpu.memory_space<vmem>> -> memref<1x1x256xf32, #tpu.memory_space<vmem>>
    %675 = tpu.memref_squeeze %674 : memref<1x1x256xf32, #tpu.memory_space<vmem>> -> memref<256xf32, #tpu.memory_space<vmem>>
    %676 = tpu.memref_slice %arg11[%c0_i32_536, %c6_i32_537] : memref<2x8x!tpu.dma_semaphore, #tpu.memory_space<semaphore_mem>> -> memref<1x1x!tpu.dma_semaphore, #tpu.memory_space<semaphore_mem>>
    %677 = tpu.memref_squeeze %676 : memref<1x1x!tpu.dma_semaphore, #tpu.memory_space<semaphore_mem>> -> memref<!tpu.dma_semaphore, #tpu.memory_space<semaphore_mem>>
    tpu.enqueue_dma source(%673 : memref<256xf32, #tpu.memory_space<any>>) target(%675 : memref<256xf32, #tpu.memory_space<vmem>>) target_semaphore(%677 : memref<!tpu.dma_semaphore, #tpu.memory_space<semaphore_mem>>)
    %c7_i32_540 = arith.constant 7 : i32
    %678 = arith.addi %614, %c7_i32_540 : i32
    %679 = arith.index_cast %678 : i32 to index
    %680 = memref.load %arg1[%679] : memref<64xi32, #tpu.memory_space<smem>>
    %c0_i32_541 = arith.constant 0 : i32
    %c7_i32_542 = arith.constant 7 : i32
    %c0_i32_543 = arith.constant 0 : i32
    %c7_i32_544 = arith.constant 7 : i32
    %c0_i32_545 = arith.constant 0 : i32
    %681 = tpu.memref_slice %arg2[%680, %c0_i32_545] : memref<20000x256xf32, #tpu.memory_space<any>> -> memref<1x256xf32, #tpu.memory_space<any>>
    %682 = tpu.memref_squeeze %681 : memref<1x256xf32, #tpu.memory_space<any>> -> memref<256xf32, #tpu.memory_space<any>>
    %c0_i32_546 = arith.constant 0 : i32
    %683 = tpu.memref_slice %arg7[%c0_i32_541, %c7_i32_542, %c0_i32_546] : memref<2x8x256xf32, #tpu.memory_space<vmem>> -> memref<1x1x256xf32, #tpu.memory_space<vmem>>
    %684 = tpu.memref_squeeze %683 : memref<1x1x256xf32, #tpu.memory_space<vmem>> -> memref<256xf32, #tpu.memory_space<vmem>>
    %685 = tpu.memref_slice %arg11[%c0_i32_543, %c7_i32_544] : memref<2x8x!tpu.dma_semaphore, #tpu.memory_space<semaphore_mem>> -> memref<1x1x!tpu.dma_semaphore, #tpu.memory_space<semaphore_mem>>
    %686 = tpu.memref_squeeze %685 : memref<1x1x!tpu.dma_semaphore, #tpu.memory_space<semaphore_mem>> -> memref<!tpu.dma_semaphore, #tpu.memory_space<semaphore_mem>>
    tpu.enqueue_dma source(%682 : memref<256xf32, #tpu.memory_space<any>>) target(%684 : memref<256xf32, #tpu.memory_space<vmem>>) target_semaphore(%686 : memref<!tpu.dma_semaphore, #tpu.memory_space<semaphore_mem>>)
    %687 = arith.truncf %560 : vector<8x64xf32> to vector<8x64xbf16>
    %c0_547 = arith.constant 0 : index
    %c0_548 = arith.constant 0 : index
    %688 = vector.load %arg3[%c0_547, %c0_548] : memref<64x512xbf16, #tpu.memory_space<vmem>>, vector<64x512xbf16>
    %cst_549 = arith.constant dense<0.000000e+00> : vector<8x512xf32>
    %689 = tpu.matmul %687, %688, %cst_549 {dimension_numbers = #tpu.dot_dimension_numbers<[1], [0], [0], [1], [0, 0, 1, 1], [], []>} : vector<8x64xbf16>, vector<64x512xbf16>, vector<8x512xf32> -> vector<8x512xf32>
    %690 = vector.extract_strided_slice %689 {offsets = [0, 0], sizes = [8, 256], strides = [1, 1]} : vector<8x512xf32> to vector<8x256xf32>
    %691 = vector.extract_strided_slice %689 {offsets = [0, 256], sizes = [8, 256], strides = [1, 1]} : vector<8x512xf32> to vector<8x256xf32>
    %692 = vector.shape_cast %81 : vector<8x1xi1> to vector<8x1xi1>
    %693 = vector.broadcast %692 : vector<8x1xi1> to vector<8x256xi1>
    %694 = arith.select %693, %690, %691 : vector<8x256xi1>, vector<8x256xf32>
    %695 = arith.addf %611, %694 : vector<8x256xf32>
    %696 = vector.extract_strided_slice %695 {offsets = [0, 0], sizes = [8, 64], strides = [1, 1]} : vector<8x256xf32> to vector<8x64xf32>
    %697 = arith.negf %696 : vector<8x64xf32>
    %698 = math.exp %697 : vector<8x64xf32>
    %cst_550 = arith.constant 1.000000e+00 : f32
    %699 = vector.broadcast %cst_550 : f32 to vector<8x64xf32>
    %700 = arith.addf %699, %698 : vector<8x64xf32>
    %701 = arith.divf %699, %700 : vector<8x64xf32>
    %702 = vector.extract_strided_slice %695 {offsets = [0, 64], sizes = [8, 64], strides = [1, 1]} : vector<8x256xf32> to vector<8x64xf32>
    %703 = arith.negf %702 : vector<8x64xf32>
    %704 = math.exp %703 : vector<8x64xf32>
    %cst_551 = arith.constant 1.000000e+00 : f32
    %705 = vector.broadcast %cst_551 : f32 to vector<8x64xf32>
    %706 = arith.addf %705, %704 : vector<8x64xf32>
    %707 = arith.divf %705, %706 : vector<8x64xf32>
    %708 = vector.extract_strided_slice %695 {offsets = [0, 128], sizes = [8, 64], strides = [1, 1]} : vector<8x256xf32> to vector<8x64xf32>
    %709 = math.tanh %708 : vector<8x64xf32>
    %710 = vector.extract_strided_slice %695 {offsets = [0, 192], sizes = [8, 64], strides = [1, 1]} : vector<8x256xf32> to vector<8x64xf32>
    %711 = arith.negf %710 : vector<8x64xf32>
    %712 = math.exp %711 : vector<8x64xf32>
    %cst_552 = arith.constant 1.000000e+00 : f32
    %713 = vector.broadcast %cst_552 : f32 to vector<8x64xf32>
    %714 = arith.addf %713, %712 : vector<8x64xf32>
    %715 = arith.divf %713, %714 : vector<8x64xf32>
    %716 = arith.mulf %707, %558 : vector<8x64xf32>
    %717 = arith.mulf %701, %709 : vector<8x64xf32>
    %718 = arith.addf %716, %717 : vector<8x64xf32>
    %719 = math.tanh %718 : vector<8x64xf32>
    %720 = arith.mulf %715, %719 : vector<8x64xf32>
    %c24 = arith.constant 24 : index
    %c0_553 = arith.constant 0 : index
    %721 = vector.load %arg10[%c24, %c0_553] : memref<64x64xf32, #tpu.memory_space<vmem>>, vector<8x64xf32>
    tpu.vector_store %arg10[%c24, %c0_553], %720 {strides = array<i32>} : memref<64x64xf32, #tpu.memory_space<vmem>>, vector<8x64xf32>,
    %c0_i32_554 = arith.constant 0 : i32
    %c0_i32_555 = arith.constant 0 : i32
    %c0_i32_556 = arith.constant 0 : i32
    %c0_i32_557 = arith.constant 0 : i32
    %c0_i32_558 = arith.constant 0 : i32
    %c0_i32_559 = arith.constant 0 : i32
    %722 = tpu.memref_slice %arg2[%c0_i32_554, %c0_i32_559] : memref<20000x256xf32, #tpu.memory_space<any>> -> memref<1x256xf32, #tpu.memory_space<any>>
    %723 = tpu.memref_squeeze %722 : memref<1x256xf32, #tpu.memory_space<any>> -> memref<256xf32, #tpu.memory_space<any>>
    %c0_i32_560 = arith.constant 0 : i32
    %724 = tpu.memref_slice %arg7[%c0_i32_555, %c0_i32_556, %c0_i32_560] : memref<2x8x256xf32, #tpu.memory_space<vmem>> -> memref<1x1x256xf32, #tpu.memory_space<vmem>>
    %725 = tpu.memref_squeeze %724 : memref<1x1x256xf32, #tpu.memory_space<vmem>> -> memref<256xf32, #tpu.memory_space<vmem>>
    %726 = tpu.memref_slice %arg11[%c0_i32_557, %c0_i32_558] : memref<2x8x!tpu.dma_semaphore, #tpu.memory_space<semaphore_mem>> -> memref<1x1x!tpu.dma_semaphore, #tpu.memory_space<semaphore_mem>>
    %727 = tpu.memref_squeeze %726 : memref<1x1x!tpu.dma_semaphore, #tpu.memory_space<semaphore_mem>> -> memref<!tpu.dma_semaphore, #tpu.memory_space<semaphore_mem>>
    tpu.wait_dma2 semaphore(%727 : memref<!tpu.dma_semaphore, #tpu.memory_space<semaphore_mem>>) src(%723 : memref<256xf32, #tpu.memory_space<any>>) dst(%725 : memref<256xf32, #tpu.memory_space<vmem>>)
    %c0_i32_561 = arith.constant 0 : i32
    %c0_i32_562 = arith.constant 0 : i32
    %c1_i32_563 = arith.constant 1 : i32
    %c0_i32_564 = arith.constant 0 : i32
    %c1_i32_565 = arith.constant 1 : i32
    %c0_i32_566 = arith.constant 0 : i32
    %728 = tpu.memref_slice %arg2[%c0_i32_561, %c0_i32_566] : memref<20000x256xf32, #tpu.memory_space<any>> -> memref<1x256xf32, #tpu.memory_space<any>>
    %729 = tpu.memref_squeeze %728 : memref<1x256xf32, #tpu.memory_space<any>> -> memref<256xf32, #tpu.memory_space<any>>
    %c0_i32_567 = arith.constant 0 : i32
    %730 = tpu.memref_slice %arg7[%c0_i32_562, %c1_i32_563, %c0_i32_567] : memref<2x8x256xf32, #tpu.memory_space<vmem>> -> memref<1x1x256xf32, #tpu.memory_space<vmem>>
    %731 = tpu.memref_squeeze %730 : memref<1x1x256xf32, #tpu.memory_space<vmem>> -> memref<256xf32, #tpu.memory_space<vmem>>
    %732 = tpu.memref_slice %arg11[%c0_i32_564, %c1_i32_565] : memref<2x8x!tpu.dma_semaphore, #tpu.memory_space<semaphore_mem>> -> memref<1x1x!tpu.dma_semaphore, #tpu.memory_space<semaphore_mem>>
    %733 = tpu.memref_squeeze %732 : memref<1x1x!tpu.dma_semaphore, #tpu.memory_space<semaphore_mem>> -> memref<!tpu.dma_semaphore, #tpu.memory_space<semaphore_mem>>
    tpu.wait_dma2 semaphore(%733 : memref<!tpu.dma_semaphore, #tpu.memory_space<semaphore_mem>>) src(%729 : memref<256xf32, #tpu.memory_space<any>>) dst(%731 : memref<256xf32, #tpu.memory_space<vmem>>)
    %c0_i32_568 = arith.constant 0 : i32
    %c0_i32_569 = arith.constant 0 : i32
    %c2_i32_570 = arith.constant 2 : i32
    %c0_i32_571 = arith.constant 0 : i32
    %c2_i32_572 = arith.constant 2 : i32
    %c0_i32_573 = arith.constant 0 : i32
    %734 = tpu.memref_slice %arg2[%c0_i32_568, %c0_i32_573] : memref<20000x256xf32, #tpu.memory_space<any>> -> memref<1x256xf32, #tpu.memory_space<any>>
    %735 = tpu.memref_squeeze %734 : memref<1x256xf32, #tpu.memory_space<any>> -> memref<256xf32, #tpu.memory_space<any>>
    %c0_i32_574 = arith.constant 0 : i32
    %736 = tpu.memref_slice %arg7[%c0_i32_569, %c2_i32_570, %c0_i32_574] : memref<2x8x256xf32, #tpu.memory_space<vmem>> -> memref<1x1x256xf32, #tpu.memory_space<vmem>>
    %737 = tpu.memref_squeeze %736 : memref<1x1x256xf32, #tpu.memory_space<vmem>> -> memref<256xf32, #tpu.memory_space<vmem>>
    %738 = tpu.memref_slice %arg11[%c0_i32_571, %c2_i32_572] : memref<2x8x!tpu.dma_semaphore, #tpu.memory_space<semaphore_mem>> -> memref<1x1x!tpu.dma_semaphore, #tpu.memory_space<semaphore_mem>>
    %739 = tpu.memref_squeeze %738 : memref<1x1x!tpu.dma_semaphore, #tpu.memory_space<semaphore_mem>> -> memref<!tpu.dma_semaphore, #tpu.memory_space<semaphore_mem>>
    tpu.wait_dma2 semaphore(%739 : memref<!tpu.dma_semaphore, #tpu.memory_space<semaphore_mem>>) src(%735 : memref<256xf32, #tpu.memory_space<any>>) dst(%737 : memref<256xf32, #tpu.memory_space<vmem>>)
    %c0_i32_575 = arith.constant 0 : i32
    %c0_i32_576 = arith.constant 0 : i32
    %c3_i32_577 = arith.constant 3 : i32
    %c0_i32_578 = arith.constant 0 : i32
    %c3_i32_579 = arith.constant 3 : i32
    %c0_i32_580 = arith.constant 0 : i32
    %740 = tpu.memref_slice %arg2[%c0_i32_575, %c0_i32_580] : memref<20000x256xf32, #tpu.memory_space<any>> -> memref<1x256xf32, #tpu.memory_space<any>>
    %741 = tpu.memref_squeeze %740 : memref<1x256xf32, #tpu.memory_space<any>> -> memref<256xf32, #tpu.memory_space<any>>
    %c0_i32_581 = arith.constant 0 : i32
    %742 = tpu.memref_slice %arg7[%c0_i32_576, %c3_i32_577, %c0_i32_581] : memref<2x8x256xf32, #tpu.memory_space<vmem>> -> memref<1x1x256xf32, #tpu.memory_space<vmem>>
    %743 = tpu.memref_squeeze %742 : memref<1x1x256xf32, #tpu.memory_space<vmem>> -> memref<256xf32, #tpu.memory_space<vmem>>
    %744 = tpu.memref_slice %arg11[%c0_i32_578, %c3_i32_579] : memref<2x8x!tpu.dma_semaphore, #tpu.memory_space<semaphore_mem>> -> memref<1x1x!tpu.dma_semaphore, #tpu.memory_space<semaphore_mem>>
    %745 = tpu.memref_squeeze %744 : memref<1x1x!tpu.dma_semaphore, #tpu.memory_space<semaphore_mem>> -> memref<!tpu.dma_semaphore, #tpu.memory_space<semaphore_mem>>
    tpu.wait_dma2 semaphore(%745 : memref<!tpu.dma_semaphore, #tpu.memory_space<semaphore_mem>>) src(%741 : memref<256xf32, #tpu.memory_space<any>>) dst(%743 : memref<256xf32, #tpu.memory_space<vmem>>)
    %c0_i32_582 = arith.constant 0 : i32
    %c0_i32_583 = arith.constant 0 : i32
    %c4_i32_584 = arith.constant 4 : i32
    %c0_i32_585 = arith.constant 0 : i32
    %c4_i32_586 = arith.constant 4 : i32
    %c0_i32_587 = arith.constant 0 : i32
    %746 = tpu.memref_slice %arg2[%c0_i32_582, %c0_i32_587] : memref<20000x256xf32, #tpu.memory_space<any>> -> memref<1x256xf32, #tpu.memory_space<any>>
    %747 = tpu.memref_squeeze %746 : memref<1x256xf32, #tpu.memory_space<any>> -> memref<256xf32, #tpu.memory_space<any>>
    %c0_i32_588 = arith.constant 0 : i32
    %748 = tpu.memref_slice %arg7[%c0_i32_583, %c4_i32_584, %c0_i32_588] : memref<2x8x256xf32, #tpu.memory_space<vmem>> -> memref<1x1x256xf32, #tpu.memory_space<vmem>>
    %749 = tpu.memref_squeeze %748 : memref<1x1x256xf32, #tpu.memory_space<vmem>> -> memref<256xf32, #tpu.memory_space<vmem>>
    %750 = tpu.memref_slice %arg11[%c0_i32_585, %c4_i32_586] : memref<2x8x!tpu.dma_semaphore, #tpu.memory_space<semaphore_mem>> -> memref<1x1x!tpu.dma_semaphore, #tpu.memory_space<semaphore_mem>>
    %751 = tpu.memref_squeeze %750 : memref<1x1x!tpu.dma_semaphore, #tpu.memory_space<semaphore_mem>> -> memref<!tpu.dma_semaphore, #tpu.memory_space<semaphore_mem>>
    tpu.wait_dma2 semaphore(%751 : memref<!tpu.dma_semaphore, #tpu.memory_space<semaphore_mem>>) src(%747 : memref<256xf32, #tpu.memory_space<any>>) dst(%749 : memref<256xf32, #tpu.memory_space<vmem>>)
    %c0_i32_589 = arith.constant 0 : i32
    %c0_i32_590 = arith.constant 0 : i32
    %c5_i32_591 = arith.constant 5 : i32
    %c0_i32_592 = arith.constant 0 : i32
    %c5_i32_593 = arith.constant 5 : i32
    %c0_i32_594 = arith.constant 0 : i32
    %752 = tpu.memref_slice %arg2[%c0_i32_589, %c0_i32_594] : memref<20000x256xf32, #tpu.memory_space<any>> -> memref<1x256xf32, #tpu.memory_space<any>>
    %753 = tpu.memref_squeeze %752 : memref<1x256xf32, #tpu.memory_space<any>> -> memref<256xf32, #tpu.memory_space<any>>
    %c0_i32_595 = arith.constant 0 : i32
    %754 = tpu.memref_slice %arg7[%c0_i32_590, %c5_i32_591, %c0_i32_595] : memref<2x8x256xf32, #tpu.memory_space<vmem>> -> memref<1x1x256xf32, #tpu.memory_space<vmem>>
    %755 = tpu.memref_squeeze %754 : memref<1x1x256xf32, #tpu.memory_space<vmem>> -> memref<256xf32, #tpu.memory_space<vmem>>
    %756 = tpu.memref_slice %arg11[%c0_i32_592, %c5_i32_593] : memref<2x8x!tpu.dma_semaphore, #tpu.memory_space<semaphore_mem>> -> memref<1x1x!tpu.dma_semaphore, #tpu.memory_space<semaphore_mem>>
    %757 = tpu.memref_squeeze %756 : memref<1x1x!tpu.dma_semaphore, #tpu.memory_space<semaphore_mem>> -> memref<!tpu.dma_semaphore, #tpu.memory_space<semaphore_mem>>
    tpu.wait_dma2 semaphore(%757 : memref<!tpu.dma_semaphore, #tpu.memory_space<semaphore_mem>>) src(%753 : memref<256xf32, #tpu.memory_space<any>>) dst(%755 : memref<256xf32, #tpu.memory_space<vmem>>)
    %c0_i32_596 = arith.constant 0 : i32
    %c0_i32_597 = arith.constant 0 : i32
    %c6_i32_598 = arith.constant 6 : i32
    %c0_i32_599 = arith.constant 0 : i32
    %c6_i32_600 = arith.constant 6 : i32
    %c0_i32_601 = arith.constant 0 : i32
    %758 = tpu.memref_slice %arg2[%c0_i32_596, %c0_i32_601] : memref<20000x256xf32, #tpu.memory_space<any>> -> memref<1x256xf32, #tpu.memory_space<any>>
    %759 = tpu.memref_squeeze %758 : memref<1x256xf32, #tpu.memory_space<any>> -> memref<256xf32, #tpu.memory_space<any>>
    %c0_i32_602 = arith.constant 0 : i32
    %760 = tpu.memref_slice %arg7[%c0_i32_597, %c6_i32_598, %c0_i32_602] : memref<2x8x256xf32, #tpu.memory_space<vmem>> -> memref<1x1x256xf32, #tpu.memory_space<vmem>>
    %761 = tpu.memref_squeeze %760 : memref<1x1x256xf32, #tpu.memory_space<vmem>> -> memref<256xf32, #tpu.memory_space<vmem>>
    %762 = tpu.memref_slice %arg11[%c0_i32_599, %c6_i32_600] : memref<2x8x!tpu.dma_semaphore, #tpu.memory_space<semaphore_mem>> -> memref<1x1x!tpu.dma_semaphore, #tpu.memory_space<semaphore_mem>>
    %763 = tpu.memref_squeeze %762 : memref<1x1x!tpu.dma_semaphore, #tpu.memory_space<semaphore_mem>> -> memref<!tpu.dma_semaphore, #tpu.memory_space<semaphore_mem>>
    tpu.wait_dma2 semaphore(%763 : memref<!tpu.dma_semaphore, #tpu.memory_space<semaphore_mem>>) src(%759 : memref<256xf32, #tpu.memory_space<any>>) dst(%761 : memref<256xf32, #tpu.memory_space<vmem>>)
    %c0_i32_603 = arith.constant 0 : i32
    %c0_i32_604 = arith.constant 0 : i32
    %c7_i32_605 = arith.constant 7 : i32
    %c0_i32_606 = arith.constant 0 : i32
    %c7_i32_607 = arith.constant 7 : i32
    %c0_i32_608 = arith.constant 0 : i32
    %764 = tpu.memref_slice %arg2[%c0_i32_603, %c0_i32_608] : memref<20000x256xf32, #tpu.memory_space<any>> -> memref<1x256xf32, #tpu.memory_space<any>>
    %765 = tpu.memref_squeeze %764 : memref<1x256xf32, #tpu.memory_space<any>> -> memref<256xf32, #tpu.memory_space<any>>
    %c0_i32_609 = arith.constant 0 : i32
    %766 = tpu.memref_slice %arg7[%c0_i32_604, %c7_i32_605, %c0_i32_609] : memref<2x8x256xf32, #tpu.memory_space<vmem>> -> memref<1x1x256xf32, #tpu.memory_space<vmem>>
    %767 = tpu.memref_squeeze %766 : memref<1x1x256xf32, #tpu.memory_space<vmem>> -> memref<256xf32, #tpu.memory_space<vmem>>
    %768 = tpu.memref_slice %arg11[%c0_i32_606, %c7_i32_607] : memref<2x8x!tpu.dma_semaphore, #tpu.memory_space<semaphore_mem>> -> memref<1x1x!tpu.dma_semaphore, #tpu.memory_space<semaphore_mem>>
    %769 = tpu.memref_squeeze %768 : memref<1x1x!tpu.dma_semaphore, #tpu.memory_space<semaphore_mem>> -> memref<!tpu.dma_semaphore, #tpu.memory_space<semaphore_mem>>
    tpu.wait_dma2 semaphore(%769 : memref<!tpu.dma_semaphore, #tpu.memory_space<semaphore_mem>>) src(%765 : memref<256xf32, #tpu.memory_space<any>>) dst(%767 : memref<256xf32, #tpu.memory_space<vmem>>)
    %c0_610 = arith.constant 0 : index
    %c0_611 = arith.constant 0 : index
    %c0_612 = arith.constant 0 : index
    %770 = vector.load %arg7[%c0_610, %c0_611, %c0_612] : memref<2x8x256xf32, #tpu.memory_space<vmem>>, vector<1x8x256xf32>
    %771 = vector.shape_cast %770 : vector<1x8x256xf32> to vector<8x256xf32>
    %c4_i32_613 = arith.constant 4 : i32
    %772 = arith.addi %3, %c4_i32_613 : i32
    %c1_i32_614 = arith.constant 1 : i32
    %773 = arith.addi %772, %c1_i32_614 : i32
    %c8_i32_615 = arith.constant 8 : i32
    %774 = arith.muli %773, %c8_i32_615 : i32
    %c0_i32_616 = arith.constant 0 : i32
    %775 = arith.addi %774, %c0_i32_616 : i32
    %776 = arith.index_cast %775 : i32 to index
    %777 = memref.load %arg1[%776] : memref<64xi32, #tpu.memory_space<smem>>
    %c1_i32_617 = arith.constant 1 : i32
    %c0_i32_618 = arith.constant 0 : i32
    %c1_i32_619 = arith.constant 1 : i32
    %c0_i32_620 = arith.constant 0 : i32
    %c0_i32_621 = arith.constant 0 : i32
    %778 = tpu.memref_slice %arg2[%777, %c0_i32_621] : memref<20000x256xf32, #tpu.memory_space<any>> -> memref<1x256xf32, #tpu.memory_space<any>>
    %779 = tpu.memref_squeeze %778 : memref<1x256xf32, #tpu.memory_space<any>> -> memref<256xf32, #tpu.memory_space<any>>
    %c0_i32_622 = arith.constant 0 : i32
    %780 = tpu.memref_slice %arg7[%c1_i32_617, %c0_i32_618, %c0_i32_622] : memref<2x8x256xf32, #tpu.memory_space<vmem>> -> memref<1x1x256xf32, #tpu.memory_space<vmem>>
    %781 = tpu.memref_squeeze %780 : memref<1x1x256xf32, #tpu.memory_space<vmem>> -> memref<256xf32, #tpu.memory_space<vmem>>
    %782 = tpu.memref_slice %arg11[%c1_i32_619, %c0_i32_620] : memref<2x8x!tpu.dma_semaphore, #tpu.memory_space<semaphore_mem>> -> memref<1x1x!tpu.dma_semaphore, #tpu.memory_space<semaphore_mem>>
    %783 = tpu.memref_squeeze %782 : memref<1x1x!tpu.dma_semaphore, #tpu.memory_space<semaphore_mem>> -> memref<!tpu.dma_semaphore, #tpu.memory_space<semaphore_mem>>
    tpu.enqueue_dma source(%779 : memref<256xf32, #tpu.memory_space<any>>) target(%781 : memref<256xf32, #tpu.memory_space<vmem>>) target_semaphore(%783 : memref<!tpu.dma_semaphore, #tpu.memory_space<semaphore_mem>>)
    %c1_i32_623 = arith.constant 1 : i32
    %784 = arith.addi %774, %c1_i32_623 : i32
    %785 = arith.index_cast %784 : i32 to index
    %786 = memref.load %arg1[%785] : memref<64xi32, #tpu.memory_space<smem>>
    %c1_i32_624 = arith.constant 1 : i32
    %c1_i32_625 = arith.constant 1 : i32
    %c1_i32_626 = arith.constant 1 : i32
    %c1_i32_627 = arith.constant 1 : i32
    %c0_i32_628 = arith.constant 0 : i32
    %787 = tpu.memref_slice %arg2[%786, %c0_i32_628] : memref<20000x256xf32, #tpu.memory_space<any>> -> memref<1x256xf32, #tpu.memory_space<any>>
    %788 = tpu.memref_squeeze %787 : memref<1x256xf32, #tpu.memory_space<any>> -> memref<256xf32, #tpu.memory_space<any>>
    %c0_i32_629 = arith.constant 0 : i32
    %789 = tpu.memref_slice %arg7[%c1_i32_624, %c1_i32_625, %c0_i32_629] : memref<2x8x256xf32, #tpu.memory_space<vmem>> -> memref<1x1x256xf32, #tpu.memory_space<vmem>>
    %790 = tpu.memref_squeeze %789 : memref<1x1x256xf32, #tpu.memory_space<vmem>> -> memref<256xf32, #tpu.memory_space<vmem>>
    %791 = tpu.memref_slice %arg11[%c1_i32_626, %c1_i32_627] : memref<2x8x!tpu.dma_semaphore, #tpu.memory_space<semaphore_mem>> -> memref<1x1x!tpu.dma_semaphore, #tpu.memory_space<semaphore_mem>>
    %792 = tpu.memref_squeeze %791 : memref<1x1x!tpu.dma_semaphore, #tpu.memory_space<semaphore_mem>> -> memref<!tpu.dma_semaphore, #tpu.memory_space<semaphore_mem>>
    tpu.enqueue_dma source(%788 : memref<256xf32, #tpu.memory_space<any>>) target(%790 : memref<256xf32, #tpu.memory_space<vmem>>) target_semaphore(%792 : memref<!tpu.dma_semaphore, #tpu.memory_space<semaphore_mem>>)
    %c2_i32_630 = arith.constant 2 : i32
    %793 = arith.addi %774, %c2_i32_630 : i32
    %794 = arith.index_cast %793 : i32 to index
    %795 = memref.load %arg1[%794] : memref<64xi32, #tpu.memory_space<smem>>
    %c1_i32_631 = arith.constant 1 : i32
    %c2_i32_632 = arith.constant 2 : i32
    %c1_i32_633 = arith.constant 1 : i32
    %c2_i32_634 = arith.constant 2 : i32
    %c0_i32_635 = arith.constant 0 : i32
    %796 = tpu.memref_slice %arg2[%795, %c0_i32_635] : memref<20000x256xf32, #tpu.memory_space<any>> -> memref<1x256xf32, #tpu.memory_space<any>>
    %797 = tpu.memref_squeeze %796 : memref<1x256xf32, #tpu.memory_space<any>> -> memref<256xf32, #tpu.memory_space<any>>
    %c0_i32_636 = arith.constant 0 : i32
    %798 = tpu.memref_slice %arg7[%c1_i32_631, %c2_i32_632, %c0_i32_636] : memref<2x8x256xf32, #tpu.memory_space<vmem>> -> memref<1x1x256xf32, #tpu.memory_space<vmem>>
    %799 = tpu.memref_squeeze %798 : memref<1x1x256xf32, #tpu.memory_space<vmem>> -> memref<256xf32, #tpu.memory_space<vmem>>
    %800 = tpu.memref_slice %arg11[%c1_i32_633, %c2_i32_634] : memref<2x8x!tpu.dma_semaphore, #tpu.memory_space<semaphore_mem>> -> memref<1x1x!tpu.dma_semaphore, #tpu.memory_space<semaphore_mem>>
    %801 = tpu.memref_squeeze %800 : memref<1x1x!tpu.dma_semaphore, #tpu.memory_space<semaphore_mem>> -> memref<!tpu.dma_semaphore, #tpu.memory_space<semaphore_mem>>
    tpu.enqueue_dma source(%797 : memref<256xf32, #tpu.memory_space<any>>) target(%799 : memref<256xf32, #tpu.memory_space<vmem>>) target_semaphore(%801 : memref<!tpu.dma_semaphore, #tpu.memory_space<semaphore_mem>>)
    %c3_i32_637 = arith.constant 3 : i32
    %802 = arith.addi %774, %c3_i32_637 : i32
    %803 = arith.index_cast %802 : i32 to index
    %804 = memref.load %arg1[%803] : memref<64xi32, #tpu.memory_space<smem>>
    %c1_i32_638 = arith.constant 1 : i32
    %c3_i32_639 = arith.constant 3 : i32
    %c1_i32_640 = arith.constant 1 : i32
    %c3_i32_641 = arith.constant 3 : i32
    %c0_i32_642 = arith.constant 0 : i32
    %805 = tpu.memref_slice %arg2[%804, %c0_i32_642] : memref<20000x256xf32, #tpu.memory_space<any>> -> memref<1x256xf32, #tpu.memory_space<any>>
    %806 = tpu.memref_squeeze %805 : memref<1x256xf32, #tpu.memory_space<any>> -> memref<256xf32, #tpu.memory_space<any>>
    %c0_i32_643 = arith.constant 0 : i32
    %807 = tpu.memref_slice %arg7[%c1_i32_638, %c3_i32_639, %c0_i32_643] : memref<2x8x256xf32, #tpu.memory_space<vmem>> -> memref<1x1x256xf32, #tpu.memory_space<vmem>>
    %808 = tpu.memref_squeeze %807 : memref<1x1x256xf32, #tpu.memory_space<vmem>> -> memref<256xf32, #tpu.memory_space<vmem>>
    %809 = tpu.memref_slice %arg11[%c1_i32_640, %c3_i32_641] : memref<2x8x!tpu.dma_semaphore, #tpu.memory_space<semaphore_mem>> -> memref<1x1x!tpu.dma_semaphore, #tpu.memory_space<semaphore_mem>>
    %810 = tpu.memref_squeeze %809 : memref<1x1x!tpu.dma_semaphore, #tpu.memory_space<semaphore_mem>> -> memref<!tpu.dma_semaphore, #tpu.memory_space<semaphore_mem>>
    tpu.enqueue_dma source(%806 : memref<256xf32, #tpu.memory_space<any>>) target(%808 : memref<256xf32, #tpu.memory_space<vmem>>) target_semaphore(%810 : memref<!tpu.dma_semaphore, #tpu.memory_space<semaphore_mem>>)
    %c4_i32_644 = arith.constant 4 : i32
    %811 = arith.addi %774, %c4_i32_644 : i32
    %812 = arith.index_cast %811 : i32 to index
    %813 = memref.load %arg1[%812] : memref<64xi32, #tpu.memory_space<smem>>
    %c1_i32_645 = arith.constant 1 : i32
    %c4_i32_646 = arith.constant 4 : i32
    %c1_i32_647 = arith.constant 1 : i32
    %c4_i32_648 = arith.constant 4 : i32
    %c0_i32_649 = arith.constant 0 : i32
    %814 = tpu.memref_slice %arg2[%813, %c0_i32_649] : memref<20000x256xf32, #tpu.memory_space<any>> -> memref<1x256xf32, #tpu.memory_space<any>>
    %815 = tpu.memref_squeeze %814 : memref<1x256xf32, #tpu.memory_space<any>> -> memref<256xf32, #tpu.memory_space<any>>
    %c0_i32_650 = arith.constant 0 : i32
    %816 = tpu.memref_slice %arg7[%c1_i32_645, %c4_i32_646, %c0_i32_650] : memref<2x8x256xf32, #tpu.memory_space<vmem>> -> memref<1x1x256xf32, #tpu.memory_space<vmem>>
    %817 = tpu.memref_squeeze %816 : memref<1x1x256xf32, #tpu.memory_space<vmem>> -> memref<256xf32, #tpu.memory_space<vmem>>
    %818 = tpu.memref_slice %arg11[%c1_i32_647, %c4_i32_648] : memref<2x8x!tpu.dma_semaphore, #tpu.memory_space<semaphore_mem>> -> memref<1x1x!tpu.dma_semaphore, #tpu.memory_space<semaphore_mem>>
    %819 = tpu.memref_squeeze %818 : memref<1x1x!tpu.dma_semaphore, #tpu.memory_space<semaphore_mem>> -> memref<!tpu.dma_semaphore, #tpu.memory_space<semaphore_mem>>
    tpu.enqueue_dma source(%815 : memref<256xf32, #tpu.memory_space<any>>) target(%817 : memref<256xf32, #tpu.memory_space<vmem>>) target_semaphore(%819 : memref<!tpu.dma_semaphore, #tpu.memory_space<semaphore_mem>>)
    %c5_i32_651 = arith.constant 5 : i32
    %820 = arith.addi %774, %c5_i32_651 : i32
    %821 = arith.index_cast %820 : i32 to index
    %822 = memref.load %arg1[%821] : memref<64xi32, #tpu.memory_space<smem>>
    %c1_i32_652 = arith.constant 1 : i32
    %c5_i32_653 = arith.constant 5 : i32
    %c1_i32_654 = arith.constant 1 : i32
    %c5_i32_655 = arith.constant 5 : i32
    %c0_i32_656 = arith.constant 0 : i32
    %823 = tpu.memref_slice %arg2[%822, %c0_i32_656] : memref<20000x256xf32, #tpu.memory_space<any>> -> memref<1x256xf32, #tpu.memory_space<any>>
    %824 = tpu.memref_squeeze %823 : memref<1x256xf32, #tpu.memory_space<any>> -> memref<256xf32, #tpu.memory_space<any>>
    %c0_i32_657 = arith.constant 0 : i32
    %825 = tpu.memref_slice %arg7[%c1_i32_652, %c5_i32_653, %c0_i32_657] : memref<2x8x256xf32, #tpu.memory_space<vmem>> -> memref<1x1x256xf32, #tpu.memory_space<vmem>>
    %826 = tpu.memref_squeeze %825 : memref<1x1x256xf32, #tpu.memory_space<vmem>> -> memref<256xf32, #tpu.memory_space<vmem>>
    %827 = tpu.memref_slice %arg11[%c1_i32_654, %c5_i32_655] : memref<2x8x!tpu.dma_semaphore, #tpu.memory_space<semaphore_mem>> -> memref<1x1x!tpu.dma_semaphore, #tpu.memory_space<semaphore_mem>>
    %828 = tpu.memref_squeeze %827 : memref<1x1x!tpu.dma_semaphore, #tpu.memory_space<semaphore_mem>> -> memref<!tpu.dma_semaphore, #tpu.memory_space<semaphore_mem>>
    tpu.enqueue_dma source(%824 : memref<256xf32, #tpu.memory_space<any>>) target(%826 : memref<256xf32, #tpu.memory_space<vmem>>) target_semaphore(%828 : memref<!tpu.dma_semaphore, #tpu.memory_space<semaphore_mem>>)
    %c6_i32_658 = arith.constant 6 : i32
    %829 = arith.addi %774, %c6_i32_658 : i32
    %830 = arith.index_cast %829 : i32 to index
    %831 = memref.load %arg1[%830] : memref<64xi32, #tpu.memory_space<smem>>
    %c1_i32_659 = arith.constant 1 : i32
    %c6_i32_660 = arith.constant 6 : i32
    %c1_i32_661 = arith.constant 1 : i32
    %c6_i32_662 = arith.constant 6 : i32
    %c0_i32_663 = arith.constant 0 : i32
    %832 = tpu.memref_slice %arg2[%831, %c0_i32_663] : memref<20000x256xf32, #tpu.memory_space<any>> -> memref<1x256xf32, #tpu.memory_space<any>>
    %833 = tpu.memref_squeeze %832 : memref<1x256xf32, #tpu.memory_space<any>> -> memref<256xf32, #tpu.memory_space<any>>
    %c0_i32_664 = arith.constant 0 : i32
    %834 = tpu.memref_slice %arg7[%c1_i32_659, %c6_i32_660, %c0_i32_664] : memref<2x8x256xf32, #tpu.memory_space<vmem>> -> memref<1x1x256xf32, #tpu.memory_space<vmem>>
    %835 = tpu.memref_squeeze %834 : memref<1x1x256xf32, #tpu.memory_space<vmem>> -> memref<256xf32, #tpu.memory_space<vmem>>
    %836 = tpu.memref_slice %arg11[%c1_i32_661, %c6_i32_662] : memref<2x8x!tpu.dma_semaphore, #tpu.memory_space<semaphore_mem>> -> memref<1x1x!tpu.dma_semaphore, #tpu.memory_space<semaphore_mem>>
    %837 = tpu.memref_squeeze %836 : memref<1x1x!tpu.dma_semaphore, #tpu.memory_space<semaphore_mem>> -> memref<!tpu.dma_semaphore, #tpu.memory_space<semaphore_mem>>
    tpu.enqueue_dma source(%833 : memref<256xf32, #tpu.memory_space<any>>) target(%835 : memref<256xf32, #tpu.memory_space<vmem>>) target_semaphore(%837 : memref<!tpu.dma_semaphore, #tpu.memory_space<semaphore_mem>>)
    %c7_i32_665 = arith.constant 7 : i32
    %838 = arith.addi %774, %c7_i32_665 : i32
    %839 = arith.index_cast %838 : i32 to index
    %840 = memref.load %arg1[%839] : memref<64xi32, #tpu.memory_space<smem>>
    %c1_i32_666 = arith.constant 1 : i32
    %c7_i32_667 = arith.constant 7 : i32
    %c1_i32_668 = arith.constant 1 : i32
    %c7_i32_669 = arith.constant 7 : i32
    %c0_i32_670 = arith.constant 0 : i32
    %841 = tpu.memref_slice %arg2[%840, %c0_i32_670] : memref<20000x256xf32, #tpu.memory_space<any>> -> memref<1x256xf32, #tpu.memory_space<any>>
    %842 = tpu.memref_squeeze %841 : memref<1x256xf32, #tpu.memory_space<any>> -> memref<256xf32, #tpu.memory_space<any>>
    %c0_i32_671 = arith.constant 0 : i32
    %843 = tpu.memref_slice %arg7[%c1_i32_666, %c7_i32_667, %c0_i32_671] : memref<2x8x256xf32, #tpu.memory_space<vmem>> -> memref<1x1x256xf32, #tpu.memory_space<vmem>>
    %844 = tpu.memref_squeeze %843 : memref<1x1x256xf32, #tpu.memory_space<vmem>> -> memref<256xf32, #tpu.memory_space<vmem>>
    %845 = tpu.memref_slice %arg11[%c1_i32_668, %c7_i32_669] : memref<2x8x!tpu.dma_semaphore, #tpu.memory_space<semaphore_mem>> -> memref<1x1x!tpu.dma_semaphore, #tpu.memory_space<semaphore_mem>>
    %846 = tpu.memref_squeeze %845 : memref<1x1x!tpu.dma_semaphore, #tpu.memory_space<semaphore_mem>> -> memref<!tpu.dma_semaphore, #tpu.memory_space<semaphore_mem>>
    tpu.enqueue_dma source(%842 : memref<256xf32, #tpu.memory_space<any>>) target(%844 : memref<256xf32, #tpu.memory_space<vmem>>) target_semaphore(%846 : memref<!tpu.dma_semaphore, #tpu.memory_space<semaphore_mem>>)
    %847 = arith.truncf %720 : vector<8x64xf32> to vector<8x64xbf16>
    %c0_672 = arith.constant 0 : index
    %c0_673 = arith.constant 0 : index
    %848 = vector.load %arg3[%c0_672, %c0_673] : memref<64x512xbf16, #tpu.memory_space<vmem>>, vector<64x512xbf16>
    %cst_674 = arith.constant dense<0.000000e+00> : vector<8x512xf32>
    %849 = tpu.matmul %847, %848, %cst_674 {dimension_numbers = #tpu.dot_dimension_numbers<[1], [0], [0], [1], [0, 0, 1, 1], [], []>} : vector<8x64xbf16>, vector<64x512xbf16>, vector<8x512xf32> -> vector<8x512xf32>
    %850 = vector.extract_strided_slice %849 {offsets = [0, 0], sizes = [8, 256], strides = [1, 1]} : vector<8x512xf32> to vector<8x256xf32>
    %851 = vector.extract_strided_slice %849 {offsets = [0, 256], sizes = [8, 256], strides = [1, 1]} : vector<8x512xf32> to vector<8x256xf32>
    %852 = vector.shape_cast %81 : vector<8x1xi1> to vector<8x1xi1>
    %853 = vector.broadcast %852 : vector<8x1xi1> to vector<8x256xi1>
    %854 = arith.select %853, %850, %851 : vector<8x256xi1>, vector<8x256xf32>
    %855 = arith.addf %771, %854 : vector<8x256xf32>
    %856 = vector.extract_strided_slice %855 {offsets = [0, 0], sizes = [8, 64], strides = [1, 1]} : vector<8x256xf32> to vector<8x64xf32>
    %857 = arith.negf %856 : vector<8x64xf32>
    %858 = math.exp %857 : vector<8x64xf32>
    %cst_675 = arith.constant 1.000000e+00 : f32
    %859 = vector.broadcast %cst_675 : f32 to vector<8x64xf32>
    %860 = arith.addf %859, %858 : vector<8x64xf32>
    %861 = arith.divf %859, %860 : vector<8x64xf32>
    %862 = vector.extract_strided_slice %855 {offsets = [0, 64], sizes = [8, 64], strides = [1, 1]} : vector<8x256xf32> to vector<8x64xf32>
    %863 = arith.negf %862 : vector<8x64xf32>
    %864 = math.exp %863 : vector<8x64xf32>
    %cst_676 = arith.constant 1.000000e+00 : f32
    %865 = vector.broadcast %cst_676 : f32 to vector<8x64xf32>
    %866 = arith.addf %865, %864 : vector<8x64xf32>
    %867 = arith.divf %865, %866 : vector<8x64xf32>
    %868 = vector.extract_strided_slice %855 {offsets = [0, 128], sizes = [8, 64], strides = [1, 1]} : vector<8x256xf32> to vector<8x64xf32>
    %869 = math.tanh %868 : vector<8x64xf32>
    %870 = vector.extract_strided_slice %855 {offsets = [0, 192], sizes = [8, 64], strides = [1, 1]} : vector<8x256xf32> to vector<8x64xf32>
    %871 = arith.negf %870 : vector<8x64xf32>
    %872 = math.exp %871 : vector<8x64xf32>
    %cst_677 = arith.constant 1.000000e+00 : f32
    %873 = vector.broadcast %cst_677 : f32 to vector<8x64xf32>
    %874 = arith.addf %873, %872 : vector<8x64xf32>
    %875 = arith.divf %873, %874 : vector<8x64xf32>
    %876 = arith.mulf %867, %718 : vector<8x64xf32>
    %877 = arith.mulf %861, %869 : vector<8x64xf32>
    %878 = arith.addf %876, %877 : vector<8x64xf32>
    %879 = math.tanh %878 : vector<8x64xf32>
    %880 = arith.mulf %875, %879 : vector<8x64xf32>
    %c32 = arith.constant 32 : index
    %c0_678 = arith.constant 0 : index
    %881 = vector.load %arg10[%c32, %c0_678] : memref<64x64xf32, #tpu.memory_space<vmem>>, vector<8x64xf32>
    tpu.vector_store %arg10[%c32, %c0_678], %880 {strides = array<i32>} : memref<64x64xf32, #tpu.memory_space<vmem>>, vector<8x64xf32>,
    %c0_i32_679 = arith.constant 0 : i32
    %c1_i32_680 = arith.constant 1 : i32
    %c0_i32_681 = arith.constant 0 : i32
    %c1_i32_682 = arith.constant 1 : i32
    %c0_i32_683 = arith.constant 0 : i32
    %c0_i32_684 = arith.constant 0 : i32
    %882 = tpu.memref_slice %arg2[%c0_i32_679, %c0_i32_684] : memref<20000x256xf32, #tpu.memory_space<any>> -> memref<1x256xf32, #tpu.memory_space<any>>
    %883 = tpu.memref_squeeze %882 : memref<1x256xf32, #tpu.memory_space<any>> -> memref<256xf32, #tpu.memory_space<any>>
    %c0_i32_685 = arith.constant 0 : i32
    %884 = tpu.memref_slice %arg7[%c1_i32_680, %c0_i32_681, %c0_i32_685] : memref<2x8x256xf32, #tpu.memory_space<vmem>> -> memref<1x1x256xf32, #tpu.memory_space<vmem>>
    %885 = tpu.memref_squeeze %884 : memref<1x1x256xf32, #tpu.memory_space<vmem>> -> memref<256xf32, #tpu.memory_space<vmem>>
    %886 = tpu.memref_slice %arg11[%c1_i32_682, %c0_i32_683] : memref<2x8x!tpu.dma_semaphore, #tpu.memory_space<semaphore_mem>> -> memref<1x1x!tpu.dma_semaphore, #tpu.memory_space<semaphore_mem>>
    %887 = tpu.memref_squeeze %886 : memref<1x1x!tpu.dma_semaphore, #tpu.memory_space<semaphore_mem>> -> memref<!tpu.dma_semaphore, #tpu.memory_space<semaphore_mem>>
    tpu.wait_dma2 semaphore(%887 : memref<!tpu.dma_semaphore, #tpu.memory_space<semaphore_mem>>) src(%883 : memref<256xf32, #tpu.memory_space<any>>) dst(%885 : memref<256xf32, #tpu.memory_space<vmem>>)
    %c0_i32_686 = arith.constant 0 : i32
    %c1_i32_687 = arith.constant 1 : i32
    %c1_i32_688 = arith.constant 1 : i32
    %c1_i32_689 = arith.constant 1 : i32
    %c1_i32_690 = arith.constant 1 : i32
    %c0_i32_691 = arith.constant 0 : i32
    %888 = tpu.memref_slice %arg2[%c0_i32_686, %c0_i32_691] : memref<20000x256xf32, #tpu.memory_space<any>> -> memref<1x256xf32, #tpu.memory_space<any>>
    %889 = tpu.memref_squeeze %888 : memref<1x256xf32, #tpu.memory_space<any>> -> memref<256xf32, #tpu.memory_space<any>>
    %c0_i32_692 = arith.constant 0 : i32
    %890 = tpu.memref_slice %arg7[%c1_i32_687, %c1_i32_688, %c0_i32_692] : memref<2x8x256xf32, #tpu.memory_space<vmem>> -> memref<1x1x256xf32, #tpu.memory_space<vmem>>
    %891 = tpu.memref_squeeze %890 : memref<1x1x256xf32, #tpu.memory_space<vmem>> -> memref<256xf32, #tpu.memory_space<vmem>>
    %892 = tpu.memref_slice %arg11[%c1_i32_689, %c1_i32_690] : memref<2x8x!tpu.dma_semaphore, #tpu.memory_space<semaphore_mem>> -> memref<1x1x!tpu.dma_semaphore, #tpu.memory_space<semaphore_mem>>
    %893 = tpu.memref_squeeze %892 : memref<1x1x!tpu.dma_semaphore, #tpu.memory_space<semaphore_mem>> -> memref<!tpu.dma_semaphore, #tpu.memory_space<semaphore_mem>>
    tpu.wait_dma2 semaphore(%893 : memref<!tpu.dma_semaphore, #tpu.memory_space<semaphore_mem>>) src(%889 : memref<256xf32, #tpu.memory_space<any>>) dst(%891 : memref<256xf32, #tpu.memory_space<vmem>>)
    %c0_i32_693 = arith.constant 0 : i32
    %c1_i32_694 = arith.constant 1 : i32
    %c2_i32_695 = arith.constant 2 : i32
    %c1_i32_696 = arith.constant 1 : i32
    %c2_i32_697 = arith.constant 2 : i32
    %c0_i32_698 = arith.constant 0 : i32
    %894 = tpu.memref_slice %arg2[%c0_i32_693, %c0_i32_698] : memref<20000x256xf32, #tpu.memory_space<any>> -> memref<1x256xf32, #tpu.memory_space<any>>
    %895 = tpu.memref_squeeze %894 : memref<1x256xf32, #tpu.memory_space<any>> -> memref<256xf32, #tpu.memory_space<any>>
    %c0_i32_699 = arith.constant 0 : i32
    %896 = tpu.memref_slice %arg7[%c1_i32_694, %c2_i32_695, %c0_i32_699] : memref<2x8x256xf32, #tpu.memory_space<vmem>> -> memref<1x1x256xf32, #tpu.memory_space<vmem>>
    %897 = tpu.memref_squeeze %896 : memref<1x1x256xf32, #tpu.memory_space<vmem>> -> memref<256xf32, #tpu.memory_space<vmem>>
    %898 = tpu.memref_slice %arg11[%c1_i32_696, %c2_i32_697] : memref<2x8x!tpu.dma_semaphore, #tpu.memory_space<semaphore_mem>> -> memref<1x1x!tpu.dma_semaphore, #tpu.memory_space<semaphore_mem>>
    %899 = tpu.memref_squeeze %898 : memref<1x1x!tpu.dma_semaphore, #tpu.memory_space<semaphore_mem>> -> memref<!tpu.dma_semaphore, #tpu.memory_space<semaphore_mem>>
    tpu.wait_dma2 semaphore(%899 : memref<!tpu.dma_semaphore, #tpu.memory_space<semaphore_mem>>) src(%895 : memref<256xf32, #tpu.memory_space<any>>) dst(%897 : memref<256xf32, #tpu.memory_space<vmem>>)
    %c0_i32_700 = arith.constant 0 : i32
    %c1_i32_701 = arith.constant 1 : i32
    %c3_i32_702 = arith.constant 3 : i32
    %c1_i32_703 = arith.constant 1 : i32
    %c3_i32_704 = arith.constant 3 : i32
    %c0_i32_705 = arith.constant 0 : i32
    %900 = tpu.memref_slice %arg2[%c0_i32_700, %c0_i32_705] : memref<20000x256xf32, #tpu.memory_space<any>> -> memref<1x256xf32, #tpu.memory_space<any>>
    %901 = tpu.memref_squeeze %900 : memref<1x256xf32, #tpu.memory_space<any>> -> memref<256xf32, #tpu.memory_space<any>>
    %c0_i32_706 = arith.constant 0 : i32
    %902 = tpu.memref_slice %arg7[%c1_i32_701, %c3_i32_702, %c0_i32_706] : memref<2x8x256xf32, #tpu.memory_space<vmem>> -> memref<1x1x256xf32, #tpu.memory_space<vmem>>
    %903 = tpu.memref_squeeze %902 : memref<1x1x256xf32, #tpu.memory_space<vmem>> -> memref<256xf32, #tpu.memory_space<vmem>>
    %904 = tpu.memref_slice %arg11[%c1_i32_703, %c3_i32_704] : memref<2x8x!tpu.dma_semaphore, #tpu.memory_space<semaphore_mem>> -> memref<1x1x!tpu.dma_semaphore, #tpu.memory_space<semaphore_mem>>
    %905 = tpu.memref_squeeze %904 : memref<1x1x!tpu.dma_semaphore, #tpu.memory_space<semaphore_mem>> -> memref<!tpu.dma_semaphore, #tpu.memory_space<semaphore_mem>>
    tpu.wait_dma2 semaphore(%905 : memref<!tpu.dma_semaphore, #tpu.memory_space<semaphore_mem>>) src(%901 : memref<256xf32, #tpu.memory_space<any>>) dst(%903 : memref<256xf32, #tpu.memory_space<vmem>>)
    %c0_i32_707 = arith.constant 0 : i32
    %c1_i32_708 = arith.constant 1 : i32
    %c4_i32_709 = arith.constant 4 : i32
    %c1_i32_710 = arith.constant 1 : i32
    %c4_i32_711 = arith.constant 4 : i32
    %c0_i32_712 = arith.constant 0 : i32
    %906 = tpu.memref_slice %arg2[%c0_i32_707, %c0_i32_712] : memref<20000x256xf32, #tpu.memory_space<any>> -> memref<1x256xf32, #tpu.memory_space<any>>
    %907 = tpu.memref_squeeze %906 : memref<1x256xf32, #tpu.memory_space<any>> -> memref<256xf32, #tpu.memory_space<any>>
    %c0_i32_713 = arith.constant 0 : i32
    %908 = tpu.memref_slice %arg7[%c1_i32_708, %c4_i32_709, %c0_i32_713] : memref<2x8x256xf32, #tpu.memory_space<vmem>> -> memref<1x1x256xf32, #tpu.memory_space<vmem>>
    %909 = tpu.memref_squeeze %908 : memref<1x1x256xf32, #tpu.memory_space<vmem>> -> memref<256xf32, #tpu.memory_space<vmem>>
    %910 = tpu.memref_slice %arg11[%c1_i32_710, %c4_i32_711] : memref<2x8x!tpu.dma_semaphore, #tpu.memory_space<semaphore_mem>> -> memref<1x1x!tpu.dma_semaphore, #tpu.memory_space<semaphore_mem>>
    %911 = tpu.memref_squeeze %910 : memref<1x1x!tpu.dma_semaphore, #tpu.memory_space<semaphore_mem>> -> memref<!tpu.dma_semaphore, #tpu.memory_space<semaphore_mem>>
    tpu.wait_dma2 semaphore(%911 : memref<!tpu.dma_semaphore, #tpu.memory_space<semaphore_mem>>) src(%907 : memref<256xf32, #tpu.memory_space<any>>) dst(%909 : memref<256xf32, #tpu.memory_space<vmem>>)
    %c0_i32_714 = arith.constant 0 : i32
    %c1_i32_715 = arith.constant 1 : i32
    %c5_i32_716 = arith.constant 5 : i32
    %c1_i32_717 = arith.constant 1 : i32
    %c5_i32_718 = arith.constant 5 : i32
    %c0_i32_719 = arith.constant 0 : i32
    %912 = tpu.memref_slice %arg2[%c0_i32_714, %c0_i32_719] : memref<20000x256xf32, #tpu.memory_space<any>> -> memref<1x256xf32, #tpu.memory_space<any>>
    %913 = tpu.memref_squeeze %912 : memref<1x256xf32, #tpu.memory_space<any>> -> memref<256xf32, #tpu.memory_space<any>>
    %c0_i32_720 = arith.constant 0 : i32
    %914 = tpu.memref_slice %arg7[%c1_i32_715, %c5_i32_716, %c0_i32_720] : memref<2x8x256xf32, #tpu.memory_space<vmem>> -> memref<1x1x256xf32, #tpu.memory_space<vmem>>
    %915 = tpu.memref_squeeze %914 : memref<1x1x256xf32, #tpu.memory_space<vmem>> -> memref<256xf32, #tpu.memory_space<vmem>>
    %916 = tpu.memref_slice %arg11[%c1_i32_717, %c5_i32_718] : memref<2x8x!tpu.dma_semaphore, #tpu.memory_space<semaphore_mem>> -> memref<1x1x!tpu.dma_semaphore, #tpu.memory_space<semaphore_mem>>
    %917 = tpu.memref_squeeze %916 : memref<1x1x!tpu.dma_semaphore, #tpu.memory_space<semaphore_mem>> -> memref<!tpu.dma_semaphore, #tpu.memory_space<semaphore_mem>>
    tpu.wait_dma2 semaphore(%917 : memref<!tpu.dma_semaphore, #tpu.memory_space<semaphore_mem>>) src(%913 : memref<256xf32, #tpu.memory_space<any>>) dst(%915 : memref<256xf32, #tpu.memory_space<vmem>>)
    %c0_i32_721 = arith.constant 0 : i32
    %c1_i32_722 = arith.constant 1 : i32
    %c6_i32_723 = arith.constant 6 : i32
    %c1_i32_724 = arith.constant 1 : i32
    %c6_i32_725 = arith.constant 6 : i32
    %c0_i32_726 = arith.constant 0 : i32
    %918 = tpu.memref_slice %arg2[%c0_i32_721, %c0_i32_726] : memref<20000x256xf32, #tpu.memory_space<any>> -> memref<1x256xf32, #tpu.memory_space<any>>
    %919 = tpu.memref_squeeze %918 : memref<1x256xf32, #tpu.memory_space<any>> -> memref<256xf32, #tpu.memory_space<any>>
    %c0_i32_727 = arith.constant 0 : i32
    %920 = tpu.memref_slice %arg7[%c1_i32_722, %c6_i32_723, %c0_i32_727] : memref<2x8x256xf32, #tpu.memory_space<vmem>> -> memref<1x1x256xf32, #tpu.memory_space<vmem>>
    %921 = tpu.memref_squeeze %920 : memref<1x1x256xf32, #tpu.memory_space<vmem>> -> memref<256xf32, #tpu.memory_space<vmem>>
    %922 = tpu.memref_slice %arg11[%c1_i32_724, %c6_i32_725] : memref<2x8x!tpu.dma_semaphore, #tpu.memory_space<semaphore_mem>> -> memref<1x1x!tpu.dma_semaphore, #tpu.memory_space<semaphore_mem>>
    %923 = tpu.memref_squeeze %922 : memref<1x1x!tpu.dma_semaphore, #tpu.memory_space<semaphore_mem>> -> memref<!tpu.dma_semaphore, #tpu.memory_space<semaphore_mem>>
    tpu.wait_dma2 semaphore(%923 : memref<!tpu.dma_semaphore, #tpu.memory_space<semaphore_mem>>) src(%919 : memref<256xf32, #tpu.memory_space<any>>) dst(%921 : memref<256xf32, #tpu.memory_space<vmem>>)
    %c0_i32_728 = arith.constant 0 : i32
    %c1_i32_729 = arith.constant 1 : i32
    %c7_i32_730 = arith.constant 7 : i32
    %c1_i32_731 = arith.constant 1 : i32
    %c7_i32_732 = arith.constant 7 : i32
    %c0_i32_733 = arith.constant 0 : i32
    %924 = tpu.memref_slice %arg2[%c0_i32_728, %c0_i32_733] : memref<20000x256xf32, #tpu.memory_space<any>> -> memref<1x256xf32, #tpu.memory_space<any>>
    %925 = tpu.memref_squeeze %924 : memref<1x256xf32, #tpu.memory_space<any>> -> memref<256xf32, #tpu.memory_space<any>>
    %c0_i32_734 = arith.constant 0 : i32
    %926 = tpu.memref_slice %arg7[%c1_i32_729, %c7_i32_730, %c0_i32_734] : memref<2x8x256xf32, #tpu.memory_space<vmem>> -> memref<1x1x256xf32, #tpu.memory_space<vmem>>
    %927 = tpu.memref_squeeze %926 : memref<1x1x256xf32, #tpu.memory_space<vmem>> -> memref<256xf32, #tpu.memory_space<vmem>>
    %928 = tpu.memref_slice %arg11[%c1_i32_731, %c7_i32_732] : memref<2x8x!tpu.dma_semaphore, #tpu.memory_space<semaphore_mem>> -> memref<1x1x!tpu.dma_semaphore, #tpu.memory_space<semaphore_mem>>
    %929 = tpu.memref_squeeze %928 : memref<1x1x!tpu.dma_semaphore, #tpu.memory_space<semaphore_mem>> -> memref<!tpu.dma_semaphore, #tpu.memory_space<semaphore_mem>>
    tpu.wait_dma2 semaphore(%929 : memref<!tpu.dma_semaphore, #tpu.memory_space<semaphore_mem>>) src(%925 : memref<256xf32, #tpu.memory_space<any>>) dst(%927 : memref<256xf32, #tpu.memory_space<vmem>>)
    %c1_735 = arith.constant 1 : index
    %c0_736 = arith.constant 0 : index
    %c0_737 = arith.constant 0 : index
    %930 = vector.load %arg7[%c1_735, %c0_736, %c0_737] : memref<2x8x256xf32, #tpu.memory_space<vmem>>, vector<1x8x256xf32>
    %931 = vector.shape_cast %930 : vector<1x8x256xf32> to vector<8x256xf32>
    %c5_i32_738 = arith.constant 5 : i32
    %932 = arith.addi %3, %c5_i32_738 : i32
    %c1_i32_739 = arith.constant 1 : i32
    %933 = arith.addi %932, %c1_i32_739 : i32
    %c8_i32_740 = arith.constant 8 : i32
    %934 = arith.muli %933, %c8_i32_740 : i32
    %c0_i32_741 = arith.constant 0 : i32
    %935 = arith.addi %934, %c0_i32_741 : i32
    %936 = arith.index_cast %935 : i32 to index
    %937 = memref.load %arg1[%936] : memref<64xi32, #tpu.memory_space<smem>>
    %c0_i32_742 = arith.constant 0 : i32
    %c0_i32_743 = arith.constant 0 : i32
    %c0_i32_744 = arith.constant 0 : i32
    %c0_i32_745 = arith.constant 0 : i32
    %c0_i32_746 = arith.constant 0 : i32
    %938 = tpu.memref_slice %arg2[%937, %c0_i32_746] : memref<20000x256xf32, #tpu.memory_space<any>> -> memref<1x256xf32, #tpu.memory_space<any>>
    %939 = tpu.memref_squeeze %938 : memref<1x256xf32, #tpu.memory_space<any>> -> memref<256xf32, #tpu.memory_space<any>>
    %c0_i32_747 = arith.constant 0 : i32
    %940 = tpu.memref_slice %arg7[%c0_i32_742, %c0_i32_743, %c0_i32_747] : memref<2x8x256xf32, #tpu.memory_space<vmem>> -> memref<1x1x256xf32, #tpu.memory_space<vmem>>
    %941 = tpu.memref_squeeze %940 : memref<1x1x256xf32, #tpu.memory_space<vmem>> -> memref<256xf32, #tpu.memory_space<vmem>>
    %942 = tpu.memref_slice %arg11[%c0_i32_744, %c0_i32_745] : memref<2x8x!tpu.dma_semaphore, #tpu.memory_space<semaphore_mem>> -> memref<1x1x!tpu.dma_semaphore, #tpu.memory_space<semaphore_mem>>
    %943 = tpu.memref_squeeze %942 : memref<1x1x!tpu.dma_semaphore, #tpu.memory_space<semaphore_mem>> -> memref<!tpu.dma_semaphore, #tpu.memory_space<semaphore_mem>>
    tpu.enqueue_dma source(%939 : memref<256xf32, #tpu.memory_space<any>>) target(%941 : memref<256xf32, #tpu.memory_space<vmem>>) target_semaphore(%943 : memref<!tpu.dma_semaphore, #tpu.memory_space<semaphore_mem>>)
    %c1_i32_748 = arith.constant 1 : i32
    %944 = arith.addi %934, %c1_i32_748 : i32
    %945 = arith.index_cast %944 : i32 to index
    %946 = memref.load %arg1[%945] : memref<64xi32, #tpu.memory_space<smem>>
    %c0_i32_749 = arith.constant 0 : i32
    %c1_i32_750 = arith.constant 1 : i32
    %c0_i32_751 = arith.constant 0 : i32
    %c1_i32_752 = arith.constant 1 : i32
    %c0_i32_753 = arith.constant 0 : i32
    %947 = tpu.memref_slice %arg2[%946, %c0_i32_753] : memref<20000x256xf32, #tpu.memory_space<any>> -> memref<1x256xf32, #tpu.memory_space<any>>
    %948 = tpu.memref_squeeze %947 : memref<1x256xf32, #tpu.memory_space<any>> -> memref<256xf32, #tpu.memory_space<any>>
    %c0_i32_754 = arith.constant 0 : i32
    %949 = tpu.memref_slice %arg7[%c0_i32_749, %c1_i32_750, %c0_i32_754] : memref<2x8x256xf32, #tpu.memory_space<vmem>> -> memref<1x1x256xf32, #tpu.memory_space<vmem>>
    %950 = tpu.memref_squeeze %949 : memref<1x1x256xf32, #tpu.memory_space<vmem>> -> memref<256xf32, #tpu.memory_space<vmem>>
    %951 = tpu.memref_slice %arg11[%c0_i32_751, %c1_i32_752] : memref<2x8x!tpu.dma_semaphore, #tpu.memory_space<semaphore_mem>> -> memref<1x1x!tpu.dma_semaphore, #tpu.memory_space<semaphore_mem>>
    %952 = tpu.memref_squeeze %951 : memref<1x1x!tpu.dma_semaphore, #tpu.memory_space<semaphore_mem>> -> memref<!tpu.dma_semaphore, #tpu.memory_space<semaphore_mem>>
    tpu.enqueue_dma source(%948 : memref<256xf32, #tpu.memory_space<any>>) target(%950 : memref<256xf32, #tpu.memory_space<vmem>>) target_semaphore(%952 : memref<!tpu.dma_semaphore, #tpu.memory_space<semaphore_mem>>)
    %c2_i32_755 = arith.constant 2 : i32
    %953 = arith.addi %934, %c2_i32_755 : i32
    %954 = arith.index_cast %953 : i32 to index
    %955 = memref.load %arg1[%954] : memref<64xi32, #tpu.memory_space<smem>>
    %c0_i32_756 = arith.constant 0 : i32
    %c2_i32_757 = arith.constant 2 : i32
    %c0_i32_758 = arith.constant 0 : i32
    %c2_i32_759 = arith.constant 2 : i32
    %c0_i32_760 = arith.constant 0 : i32
    %956 = tpu.memref_slice %arg2[%955, %c0_i32_760] : memref<20000x256xf32, #tpu.memory_space<any>> -> memref<1x256xf32, #tpu.memory_space<any>>
    %957 = tpu.memref_squeeze %956 : memref<1x256xf32, #tpu.memory_space<any>> -> memref<256xf32, #tpu.memory_space<any>>
    %c0_i32_761 = arith.constant 0 : i32
    %958 = tpu.memref_slice %arg7[%c0_i32_756, %c2_i32_757, %c0_i32_761] : memref<2x8x256xf32, #tpu.memory_space<vmem>> -> memref<1x1x256xf32, #tpu.memory_space<vmem>>
    %959 = tpu.memref_squeeze %958 : memref<1x1x256xf32, #tpu.memory_space<vmem>> -> memref<256xf32, #tpu.memory_space<vmem>>
    %960 = tpu.memref_slice %arg11[%c0_i32_758, %c2_i32_759] : memref<2x8x!tpu.dma_semaphore, #tpu.memory_space<semaphore_mem>> -> memref<1x1x!tpu.dma_semaphore, #tpu.memory_space<semaphore_mem>>
    %961 = tpu.memref_squeeze %960 : memref<1x1x!tpu.dma_semaphore, #tpu.memory_space<semaphore_mem>> -> memref<!tpu.dma_semaphore, #tpu.memory_space<semaphore_mem>>
    tpu.enqueue_dma source(%957 : memref<256xf32, #tpu.memory_space<any>>) target(%959 : memref<256xf32, #tpu.memory_space<vmem>>) target_semaphore(%961 : memref<!tpu.dma_semaphore, #tpu.memory_space<semaphore_mem>>)
    %c3_i32_762 = arith.constant 3 : i32
    %962 = arith.addi %934, %c3_i32_762 : i32
    %963 = arith.index_cast %962 : i32 to index
    %964 = memref.load %arg1[%963] : memref<64xi32, #tpu.memory_space<smem>>
    %c0_i32_763 = arith.constant 0 : i32
    %c3_i32_764 = arith.constant 3 : i32
    %c0_i32_765 = arith.constant 0 : i32
    %c3_i32_766 = arith.constant 3 : i32
    %c0_i32_767 = arith.constant 0 : i32
    %965 = tpu.memref_slice %arg2[%964, %c0_i32_767] : memref<20000x256xf32, #tpu.memory_space<any>> -> memref<1x256xf32, #tpu.memory_space<any>>
    %966 = tpu.memref_squeeze %965 : memref<1x256xf32, #tpu.memory_space<any>> -> memref<256xf32, #tpu.memory_space<any>>
    %c0_i32_768 = arith.constant 0 : i32
    %967 = tpu.memref_slice %arg7[%c0_i32_763, %c3_i32_764, %c0_i32_768] : memref<2x8x256xf32, #tpu.memory_space<vmem>> -> memref<1x1x256xf32, #tpu.memory_space<vmem>>
    %968 = tpu.memref_squeeze %967 : memref<1x1x256xf32, #tpu.memory_space<vmem>> -> memref<256xf32, #tpu.memory_space<vmem>>
    %969 = tpu.memref_slice %arg11[%c0_i32_765, %c3_i32_766] : memref<2x8x!tpu.dma_semaphore, #tpu.memory_space<semaphore_mem>> -> memref<1x1x!tpu.dma_semaphore, #tpu.memory_space<semaphore_mem>>
    %970 = tpu.memref_squeeze %969 : memref<1x1x!tpu.dma_semaphore, #tpu.memory_space<semaphore_mem>> -> memref<!tpu.dma_semaphore, #tpu.memory_space<semaphore_mem>>
    tpu.enqueue_dma source(%966 : memref<256xf32, #tpu.memory_space<any>>) target(%968 : memref<256xf32, #tpu.memory_space<vmem>>) target_semaphore(%970 : memref<!tpu.dma_semaphore, #tpu.memory_space<semaphore_mem>>)
    %c4_i32_769 = arith.constant 4 : i32
    %971 = arith.addi %934, %c4_i32_769 : i32
    %972 = arith.index_cast %971 : i32 to index
    %973 = memref.load %arg1[%972] : memref<64xi32, #tpu.memory_space<smem>>
    %c0_i32_770 = arith.constant 0 : i32
    %c4_i32_771 = arith.constant 4 : i32
    %c0_i32_772 = arith.constant 0 : i32
    %c4_i32_773 = arith.constant 4 : i32
    %c0_i32_774 = arith.constant 0 : i32
    %974 = tpu.memref_slice %arg2[%973, %c0_i32_774] : memref<20000x256xf32, #tpu.memory_space<any>> -> memref<1x256xf32, #tpu.memory_space<any>>
    %975 = tpu.memref_squeeze %974 : memref<1x256xf32, #tpu.memory_space<any>> -> memref<256xf32, #tpu.memory_space<any>>
    %c0_i32_775 = arith.constant 0 : i32
    %976 = tpu.memref_slice %arg7[%c0_i32_770, %c4_i32_771, %c0_i32_775] : memref<2x8x256xf32, #tpu.memory_space<vmem>> -> memref<1x1x256xf32, #tpu.memory_space<vmem>>
    %977 = tpu.memref_squeeze %976 : memref<1x1x256xf32, #tpu.memory_space<vmem>> -> memref<256xf32, #tpu.memory_space<vmem>>
    %978 = tpu.memref_slice %arg11[%c0_i32_772, %c4_i32_773] : memref<2x8x!tpu.dma_semaphore, #tpu.memory_space<semaphore_mem>> -> memref<1x1x!tpu.dma_semaphore, #tpu.memory_space<semaphore_mem>>
    %979 = tpu.memref_squeeze %978 : memref<1x1x!tpu.dma_semaphore, #tpu.memory_space<semaphore_mem>> -> memref<!tpu.dma_semaphore, #tpu.memory_space<semaphore_mem>>
    tpu.enqueue_dma source(%975 : memref<256xf32, #tpu.memory_space<any>>) target(%977 : memref<256xf32, #tpu.memory_space<vmem>>) target_semaphore(%979 : memref<!tpu.dma_semaphore, #tpu.memory_space<semaphore_mem>>)
    %c5_i32_776 = arith.constant 5 : i32
    %980 = arith.addi %934, %c5_i32_776 : i32
    %981 = arith.index_cast %980 : i32 to index
    %982 = memref.load %arg1[%981] : memref<64xi32, #tpu.memory_space<smem>>
    %c0_i32_777 = arith.constant 0 : i32
    %c5_i32_778 = arith.constant 5 : i32
    %c0_i32_779 = arith.constant 0 : i32
    %c5_i32_780 = arith.constant 5 : i32
    %c0_i32_781 = arith.constant 0 : i32
    %983 = tpu.memref_slice %arg2[%982, %c0_i32_781] : memref<20000x256xf32, #tpu.memory_space<any>> -> memref<1x256xf32, #tpu.memory_space<any>>
    %984 = tpu.memref_squeeze %983 : memref<1x256xf32, #tpu.memory_space<any>> -> memref<256xf32, #tpu.memory_space<any>>
    %c0_i32_782 = arith.constant 0 : i32
    %985 = tpu.memref_slice %arg7[%c0_i32_777, %c5_i32_778, %c0_i32_782] : memref<2x8x256xf32, #tpu.memory_space<vmem>> -> memref<1x1x256xf32, #tpu.memory_space<vmem>>
    %986 = tpu.memref_squeeze %985 : memref<1x1x256xf32, #tpu.memory_space<vmem>> -> memref<256xf32, #tpu.memory_space<vmem>>
    %987 = tpu.memref_slice %arg11[%c0_i32_779, %c5_i32_780] : memref<2x8x!tpu.dma_semaphore, #tpu.memory_space<semaphore_mem>> -> memref<1x1x!tpu.dma_semaphore, #tpu.memory_space<semaphore_mem>>
    %988 = tpu.memref_squeeze %987 : memref<1x1x!tpu.dma_semaphore, #tpu.memory_space<semaphore_mem>> -> memref<!tpu.dma_semaphore, #tpu.memory_space<semaphore_mem>>
    tpu.enqueue_dma source(%984 : memref<256xf32, #tpu.memory_space<any>>) target(%986 : memref<256xf32, #tpu.memory_space<vmem>>) target_semaphore(%988 : memref<!tpu.dma_semaphore, #tpu.memory_space<semaphore_mem>>)
    %c6_i32_783 = arith.constant 6 : i32
    %989 = arith.addi %934, %c6_i32_783 : i32
    %990 = arith.index_cast %989 : i32 to index
    %991 = memref.load %arg1[%990] : memref<64xi32, #tpu.memory_space<smem>>
    %c0_i32_784 = arith.constant 0 : i32
    %c6_i32_785 = arith.constant 6 : i32
    %c0_i32_786 = arith.constant 0 : i32
    %c6_i32_787 = arith.constant 6 : i32
    %c0_i32_788 = arith.constant 0 : i32
    %992 = tpu.memref_slice %arg2[%991, %c0_i32_788] : memref<20000x256xf32, #tpu.memory_space<any>> -> memref<1x256xf32, #tpu.memory_space<any>>
    %993 = tpu.memref_squeeze %992 : memref<1x256xf32, #tpu.memory_space<any>> -> memref<256xf32, #tpu.memory_space<any>>
    %c0_i32_789 = arith.constant 0 : i32
    %994 = tpu.memref_slice %arg7[%c0_i32_784, %c6_i32_785, %c0_i32_789] : memref<2x8x256xf32, #tpu.memory_space<vmem>> -> memref<1x1x256xf32, #tpu.memory_space<vmem>>
    %995 = tpu.memref_squeeze %994 : memref<1x1x256xf32, #tpu.memory_space<vmem>> -> memref<256xf32, #tpu.memory_space<vmem>>
    %996 = tpu.memref_slice %arg11[%c0_i32_786, %c6_i32_787] : memref<2x8x!tpu.dma_semaphore, #tpu.memory_space<semaphore_mem>> -> memref<1x1x!tpu.dma_semaphore, #tpu.memory_space<semaphore_mem>>
    %997 = tpu.memref_squeeze %996 : memref<1x1x!tpu.dma_semaphore, #tpu.memory_space<semaphore_mem>> -> memref<!tpu.dma_semaphore, #tpu.memory_space<semaphore_mem>>
    tpu.enqueue_dma source(%993 : memref<256xf32, #tpu.memory_space<any>>) target(%995 : memref<256xf32, #tpu.memory_space<vmem>>) target_semaphore(%997 : memref<!tpu.dma_semaphore, #tpu.memory_space<semaphore_mem>>)
    %c7_i32_790 = arith.constant 7 : i32
    %998 = arith.addi %934, %c7_i32_790 : i32
    %999 = arith.index_cast %998 : i32 to index
    %1000 = memref.load %arg1[%999] : memref<64xi32, #tpu.memory_space<smem>>
    %c0_i32_791 = arith.constant 0 : i32
    %c7_i32_792 = arith.constant 7 : i32
    %c0_i32_793 = arith.constant 0 : i32
    %c7_i32_794 = arith.constant 7 : i32
    %c0_i32_795 = arith.constant 0 : i32
    %1001 = tpu.memref_slice %arg2[%1000, %c0_i32_795] : memref<20000x256xf32, #tpu.memory_space<any>> -> memref<1x256xf32, #tpu.memory_space<any>>
    %1002 = tpu.memref_squeeze %1001 : memref<1x256xf32, #tpu.memory_space<any>> -> memref<256xf32, #tpu.memory_space<any>>
    %c0_i32_796 = arith.constant 0 : i32
    %1003 = tpu.memref_slice %arg7[%c0_i32_791, %c7_i32_792, %c0_i32_796] : memref<2x8x256xf32, #tpu.memory_space<vmem>> -> memref<1x1x256xf32, #tpu.memory_space<vmem>>
    %1004 = tpu.memref_squeeze %1003 : memref<1x1x256xf32, #tpu.memory_space<vmem>> -> memref<256xf32, #tpu.memory_space<vmem>>
    %1005 = tpu.memref_slice %arg11[%c0_i32_793, %c7_i32_794] : memref<2x8x!tpu.dma_semaphore, #tpu.memory_space<semaphore_mem>> -> memref<1x1x!tpu.dma_semaphore, #tpu.memory_space<semaphore_mem>>
    %1006 = tpu.memref_squeeze %1005 : memref<1x1x!tpu.dma_semaphore, #tpu.memory_space<semaphore_mem>> -> memref<!tpu.dma_semaphore, #tpu.memory_space<semaphore_mem>>
    tpu.enqueue_dma source(%1002 : memref<256xf32, #tpu.memory_space<any>>) target(%1004 : memref<256xf32, #tpu.memory_space<vmem>>) target_semaphore(%1006 : memref<!tpu.dma_semaphore, #tpu.memory_space<semaphore_mem>>)
    %1007 = arith.truncf %880 : vector<8x64xf32> to vector<8x64xbf16>
    %c0_797 = arith.constant 0 : index
    %c0_798 = arith.constant 0 : index
    %1008 = vector.load %arg3[%c0_797, %c0_798] : memref<64x512xbf16, #tpu.memory_space<vmem>>, vector<64x512xbf16>
    %cst_799 = arith.constant dense<0.000000e+00> : vector<8x512xf32>
    %1009 = tpu.matmul %1007, %1008, %cst_799 {dimension_numbers = #tpu.dot_dimension_numbers<[1], [0], [0], [1], [0, 0, 1, 1], [], []>} : vector<8x64xbf16>, vector<64x512xbf16>, vector<8x512xf32> -> vector<8x512xf32>
    %1010 = vector.extract_strided_slice %1009 {offsets = [0, 0], sizes = [8, 256], strides = [1, 1]} : vector<8x512xf32> to vector<8x256xf32>
    %1011 = vector.extract_strided_slice %1009 {offsets = [0, 256], sizes = [8, 256], strides = [1, 1]} : vector<8x512xf32> to vector<8x256xf32>
    %1012 = vector.shape_cast %81 : vector<8x1xi1> to vector<8x1xi1>
    %1013 = vector.broadcast %1012 : vector<8x1xi1> to vector<8x256xi1>
    %1014 = arith.select %1013, %1010, %1011 : vector<8x256xi1>, vector<8x256xf32>
    %1015 = arith.addf %931, %1014 : vector<8x256xf32>
    %1016 = vector.extract_strided_slice %1015 {offsets = [0, 0], sizes = [8, 64], strides = [1, 1]} : vector<8x256xf32> to vector<8x64xf32>
    %1017 = arith.negf %1016 : vector<8x64xf32>
    %1018 = math.exp %1017 : vector<8x64xf32>
    %cst_800 = arith.constant 1.000000e+00 : f32
    %1019 = vector.broadcast %cst_800 : f32 to vector<8x64xf32>
    %1020 = arith.addf %1019, %1018 : vector<8x64xf32>
    %1021 = arith.divf %1019, %1020 : vector<8x64xf32>
    %1022 = vector.extract_strided_slice %1015 {offsets = [0, 64], sizes = [8, 64], strides = [1, 1]} : vector<8x256xf32> to vector<8x64xf32>
    %1023 = arith.negf %1022 : vector<8x64xf32>
    %1024 = math.exp %1023 : vector<8x64xf32>
    %cst_801 = arith.constant 1.000000e+00 : f32
    %1025 = vector.broadcast %cst_801 : f32 to vector<8x64xf32>
    %1026 = arith.addf %1025, %1024 : vector<8x64xf32>
    %1027 = arith.divf %1025, %1026 : vector<8x64xf32>
    %1028 = vector.extract_strided_slice %1015 {offsets = [0, 128], sizes = [8, 64], strides = [1, 1]} : vector<8x256xf32> to vector<8x64xf32>
    %1029 = math.tanh %1028 : vector<8x64xf32>
    %1030 = vector.extract_strided_slice %1015 {offsets = [0, 192], sizes = [8, 64], strides = [1, 1]} : vector<8x256xf32> to vector<8x64xf32>
    %1031 = arith.negf %1030 : vector<8x64xf32>
    %1032 = math.exp %1031 : vector<8x64xf32>
    %cst_802 = arith.constant 1.000000e+00 : f32
    %1033 = vector.broadcast %cst_802 : f32 to vector<8x64xf32>
    %1034 = arith.addf %1033, %1032 : vector<8x64xf32>
    %1035 = arith.divf %1033, %1034 : vector<8x64xf32>
    %1036 = arith.mulf %1027, %878 : vector<8x64xf32>
    %1037 = arith.mulf %1021, %1029 : vector<8x64xf32>
    %1038 = arith.addf %1036, %1037 : vector<8x64xf32>
    %1039 = math.tanh %1038 : vector<8x64xf32>
    %1040 = arith.mulf %1035, %1039 : vector<8x64xf32>
    %c40 = arith.constant 40 : index
    %c0_803 = arith.constant 0 : index
    %1041 = vector.load %arg10[%c40, %c0_803] : memref<64x64xf32, #tpu.memory_space<vmem>>, vector<8x64xf32>
    tpu.vector_store %arg10[%c40, %c0_803], %1040 {strides = array<i32>} : memref<64x64xf32, #tpu.memory_space<vmem>>, vector<8x64xf32>,
    %c0_i32_804 = arith.constant 0 : i32
    %c0_i32_805 = arith.constant 0 : i32
    %c0_i32_806 = arith.constant 0 : i32
    %c0_i32_807 = arith.constant 0 : i32
    %c0_i32_808 = arith.constant 0 : i32
    %c0_i32_809 = arith.constant 0 : i32
    %1042 = tpu.memref_slice %arg2[%c0_i32_804, %c0_i32_809] : memref<20000x256xf32, #tpu.memory_space<any>> -> memref<1x256xf32, #tpu.memory_space<any>>
    %1043 = tpu.memref_squeeze %1042 : memref<1x256xf32, #tpu.memory_space<any>> -> memref<256xf32, #tpu.memory_space<any>>
    %c0_i32_810 = arith.constant 0 : i32
    %1044 = tpu.memref_slice %arg7[%c0_i32_805, %c0_i32_806, %c0_i32_810] : memref<2x8x256xf32, #tpu.memory_space<vmem>> -> memref<1x1x256xf32, #tpu.memory_space<vmem>>
    %1045 = tpu.memref_squeeze %1044 : memref<1x1x256xf32, #tpu.memory_space<vmem>> -> memref<256xf32, #tpu.memory_space<vmem>>
    %1046 = tpu.memref_slice %arg11[%c0_i32_807, %c0_i32_808] : memref<2x8x!tpu.dma_semaphore, #tpu.memory_space<semaphore_mem>> -> memref<1x1x!tpu.dma_semaphore, #tpu.memory_space<semaphore_mem>>
    %1047 = tpu.memref_squeeze %1046 : memref<1x1x!tpu.dma_semaphore, #tpu.memory_space<semaphore_mem>> -> memref<!tpu.dma_semaphore, #tpu.memory_space<semaphore_mem>>
    tpu.wait_dma2 semaphore(%1047 : memref<!tpu.dma_semaphore, #tpu.memory_space<semaphore_mem>>) src(%1043 : memref<256xf32, #tpu.memory_space<any>>) dst(%1045 : memref<256xf32, #tpu.memory_space<vmem>>)
    %c0_i32_811 = arith.constant 0 : i32
    %c0_i32_812 = arith.constant 0 : i32
    %c1_i32_813 = arith.constant 1 : i32
    %c0_i32_814 = arith.constant 0 : i32
    %c1_i32_815 = arith.constant 1 : i32
    %c0_i32_816 = arith.constant 0 : i32
    %1048 = tpu.memref_slice %arg2[%c0_i32_811, %c0_i32_816] : memref<20000x256xf32, #tpu.memory_space<any>> -> memref<1x256xf32, #tpu.memory_space<any>>
    %1049 = tpu.memref_squeeze %1048 : memref<1x256xf32, #tpu.memory_space<any>> -> memref<256xf32, #tpu.memory_space<any>>
    %c0_i32_817 = arith.constant 0 : i32
    %1050 = tpu.memref_slice %arg7[%c0_i32_812, %c1_i32_813, %c0_i32_817] : memref<2x8x256xf32, #tpu.memory_space<vmem>> -> memref<1x1x256xf32, #tpu.memory_space<vmem>>
    %1051 = tpu.memref_squeeze %1050 : memref<1x1x256xf32, #tpu.memory_space<vmem>> -> memref<256xf32, #tpu.memory_space<vmem>>
    %1052 = tpu.memref_slice %arg11[%c0_i32_814, %c1_i32_815] : memref<2x8x!tpu.dma_semaphore, #tpu.memory_space<semaphore_mem>> -> memref<1x1x!tpu.dma_semaphore, #tpu.memory_space<semaphore_mem>>
    %1053 = tpu.memref_squeeze %1052 : memref<1x1x!tpu.dma_semaphore, #tpu.memory_space<semaphore_mem>> -> memref<!tpu.dma_semaphore, #tpu.memory_space<semaphore_mem>>
    tpu.wait_dma2 semaphore(%1053 : memref<!tpu.dma_semaphore, #tpu.memory_space<semaphore_mem>>) src(%1049 : memref<256xf32, #tpu.memory_space<any>>) dst(%1051 : memref<256xf32, #tpu.memory_space<vmem>>)
    %c0_i32_818 = arith.constant 0 : i32
    %c0_i32_819 = arith.constant 0 : i32
    %c2_i32_820 = arith.constant 2 : i32
    %c0_i32_821 = arith.constant 0 : i32
    %c2_i32_822 = arith.constant 2 : i32
    %c0_i32_823 = arith.constant 0 : i32
    %1054 = tpu.memref_slice %arg2[%c0_i32_818, %c0_i32_823] : memref<20000x256xf32, #tpu.memory_space<any>> -> memref<1x256xf32, #tpu.memory_space<any>>
    %1055 = tpu.memref_squeeze %1054 : memref<1x256xf32, #tpu.memory_space<any>> -> memref<256xf32, #tpu.memory_space<any>>
    %c0_i32_824 = arith.constant 0 : i32
    %1056 = tpu.memref_slice %arg7[%c0_i32_819, %c2_i32_820, %c0_i32_824] : memref<2x8x256xf32, #tpu.memory_space<vmem>> -> memref<1x1x256xf32, #tpu.memory_space<vmem>>
    %1057 = tpu.memref_squeeze %1056 : memref<1x1x256xf32, #tpu.memory_space<vmem>> -> memref<256xf32, #tpu.memory_space<vmem>>
    %1058 = tpu.memref_slice %arg11[%c0_i32_821, %c2_i32_822] : memref<2x8x!tpu.dma_semaphore, #tpu.memory_space<semaphore_mem>> -> memref<1x1x!tpu.dma_semaphore, #tpu.memory_space<semaphore_mem>>
    %1059 = tpu.memref_squeeze %1058 : memref<1x1x!tpu.dma_semaphore, #tpu.memory_space<semaphore_mem>> -> memref<!tpu.dma_semaphore, #tpu.memory_space<semaphore_mem>>
    tpu.wait_dma2 semaphore(%1059 : memref<!tpu.dma_semaphore, #tpu.memory_space<semaphore_mem>>) src(%1055 : memref<256xf32, #tpu.memory_space<any>>) dst(%1057 : memref<256xf32, #tpu.memory_space<vmem>>)
    %c0_i32_825 = arith.constant 0 : i32
    %c0_i32_826 = arith.constant 0 : i32
    %c3_i32_827 = arith.constant 3 : i32
    %c0_i32_828 = arith.constant 0 : i32
    %c3_i32_829 = arith.constant 3 : i32
    %c0_i32_830 = arith.constant 0 : i32
    %1060 = tpu.memref_slice %arg2[%c0_i32_825, %c0_i32_830] : memref<20000x256xf32, #tpu.memory_space<any>> -> memref<1x256xf32, #tpu.memory_space<any>>
    %1061 = tpu.memref_squeeze %1060 : memref<1x256xf32, #tpu.memory_space<any>> -> memref<256xf32, #tpu.memory_space<any>>
    %c0_i32_831 = arith.constant 0 : i32
    %1062 = tpu.memref_slice %arg7[%c0_i32_826, %c3_i32_827, %c0_i32_831] : memref<2x8x256xf32, #tpu.memory_space<vmem>> -> memref<1x1x256xf32, #tpu.memory_space<vmem>>
    %1063 = tpu.memref_squeeze %1062 : memref<1x1x256xf32, #tpu.memory_space<vmem>> -> memref<256xf32, #tpu.memory_space<vmem>>
    %1064 = tpu.memref_slice %arg11[%c0_i32_828, %c3_i32_829] : memref<2x8x!tpu.dma_semaphore, #tpu.memory_space<semaphore_mem>> -> memref<1x1x!tpu.dma_semaphore, #tpu.memory_space<semaphore_mem>>
    %1065 = tpu.memref_squeeze %1064 : memref<1x1x!tpu.dma_semaphore, #tpu.memory_space<semaphore_mem>> -> memref<!tpu.dma_semaphore, #tpu.memory_space<semaphore_mem>>
    tpu.wait_dma2 semaphore(%1065 : memref<!tpu.dma_semaphore, #tpu.memory_space<semaphore_mem>>) src(%1061 : memref<256xf32, #tpu.memory_space<any>>) dst(%1063 : memref<256xf32, #tpu.memory_space<vmem>>)
    %c0_i32_832 = arith.constant 0 : i32
    %c0_i32_833 = arith.constant 0 : i32
    %c4_i32_834 = arith.constant 4 : i32
    %c0_i32_835 = arith.constant 0 : i32
    %c4_i32_836 = arith.constant 4 : i32
    %c0_i32_837 = arith.constant 0 : i32
    %1066 = tpu.memref_slice %arg2[%c0_i32_832, %c0_i32_837] : memref<20000x256xf32, #tpu.memory_space<any>> -> memref<1x256xf32, #tpu.memory_space<any>>
    %1067 = tpu.memref_squeeze %1066 : memref<1x256xf32, #tpu.memory_space<any>> -> memref<256xf32, #tpu.memory_space<any>>
    %c0_i32_838 = arith.constant 0 : i32
    %1068 = tpu.memref_slice %arg7[%c0_i32_833, %c4_i32_834, %c0_i32_838] : memref<2x8x256xf32, #tpu.memory_space<vmem>> -> memref<1x1x256xf32, #tpu.memory_space<vmem>>
    %1069 = tpu.memref_squeeze %1068 : memref<1x1x256xf32, #tpu.memory_space<vmem>> -> memref<256xf32, #tpu.memory_space<vmem>>
    %1070 = tpu.memref_slice %arg11[%c0_i32_835, %c4_i32_836] : memref<2x8x!tpu.dma_semaphore, #tpu.memory_space<semaphore_mem>> -> memref<1x1x!tpu.dma_semaphore, #tpu.memory_space<semaphore_mem>>
    %1071 = tpu.memref_squeeze %1070 : memref<1x1x!tpu.dma_semaphore, #tpu.memory_space<semaphore_mem>> -> memref<!tpu.dma_semaphore, #tpu.memory_space<semaphore_mem>>
    tpu.wait_dma2 semaphore(%1071 : memref<!tpu.dma_semaphore, #tpu.memory_space<semaphore_mem>>) src(%1067 : memref<256xf32, #tpu.memory_space<any>>) dst(%1069 : memref<256xf32, #tpu.memory_space<vmem>>)
    %c0_i32_839 = arith.constant 0 : i32
    %c0_i32_840 = arith.constant 0 : i32
    %c5_i32_841 = arith.constant 5 : i32
    %c0_i32_842 = arith.constant 0 : i32
    %c5_i32_843 = arith.constant 5 : i32
    %c0_i32_844 = arith.constant 0 : i32
    %1072 = tpu.memref_slice %arg2[%c0_i32_839, %c0_i32_844] : memref<20000x256xf32, #tpu.memory_space<any>> -> memref<1x256xf32, #tpu.memory_space<any>>
    %1073 = tpu.memref_squeeze %1072 : memref<1x256xf32, #tpu.memory_space<any>> -> memref<256xf32, #tpu.memory_space<any>>
    %c0_i32_845 = arith.constant 0 : i32
    %1074 = tpu.memref_slice %arg7[%c0_i32_840, %c5_i32_841, %c0_i32_845] : memref<2x8x256xf32, #tpu.memory_space<vmem>> -> memref<1x1x256xf32, #tpu.memory_space<vmem>>
    %1075 = tpu.memref_squeeze %1074 : memref<1x1x256xf32, #tpu.memory_space<vmem>> -> memref<256xf32, #tpu.memory_space<vmem>>
    %1076 = tpu.memref_slice %arg11[%c0_i32_842, %c5_i32_843] : memref<2x8x!tpu.dma_semaphore, #tpu.memory_space<semaphore_mem>> -> memref<1x1x!tpu.dma_semaphore, #tpu.memory_space<semaphore_mem>>
    %1077 = tpu.memref_squeeze %1076 : memref<1x1x!tpu.dma_semaphore, #tpu.memory_space<semaphore_mem>> -> memref<!tpu.dma_semaphore, #tpu.memory_space<semaphore_mem>>
    tpu.wait_dma2 semaphore(%1077 : memref<!tpu.dma_semaphore, #tpu.memory_space<semaphore_mem>>) src(%1073 : memref<256xf32, #tpu.memory_space<any>>) dst(%1075 : memref<256xf32, #tpu.memory_space<vmem>>)
    %c0_i32_846 = arith.constant 0 : i32
    %c0_i32_847 = arith.constant 0 : i32
    %c6_i32_848 = arith.constant 6 : i32
    %c0_i32_849 = arith.constant 0 : i32
    %c6_i32_850 = arith.constant 6 : i32
    %c0_i32_851 = arith.constant 0 : i32
    %1078 = tpu.memref_slice %arg2[%c0_i32_846, %c0_i32_851] : memref<20000x256xf32, #tpu.memory_space<any>> -> memref<1x256xf32, #tpu.memory_space<any>>
    %1079 = tpu.memref_squeeze %1078 : memref<1x256xf32, #tpu.memory_space<any>> -> memref<256xf32, #tpu.memory_space<any>>
    %c0_i32_852 = arith.constant 0 : i32
    %1080 = tpu.memref_slice %arg7[%c0_i32_847, %c6_i32_848, %c0_i32_852] : memref<2x8x256xf32, #tpu.memory_space<vmem>> -> memref<1x1x256xf32, #tpu.memory_space<vmem>>
    %1081 = tpu.memref_squeeze %1080 : memref<1x1x256xf32, #tpu.memory_space<vmem>> -> memref<256xf32, #tpu.memory_space<vmem>>
    %1082 = tpu.memref_slice %arg11[%c0_i32_849, %c6_i32_850] : memref<2x8x!tpu.dma_semaphore, #tpu.memory_space<semaphore_mem>> -> memref<1x1x!tpu.dma_semaphore, #tpu.memory_space<semaphore_mem>>
    %1083 = tpu.memref_squeeze %1082 : memref<1x1x!tpu.dma_semaphore, #tpu.memory_space<semaphore_mem>> -> memref<!tpu.dma_semaphore, #tpu.memory_space<semaphore_mem>>
    tpu.wait_dma2 semaphore(%1083 : memref<!tpu.dma_semaphore, #tpu.memory_space<semaphore_mem>>) src(%1079 : memref<256xf32, #tpu.memory_space<any>>) dst(%1081 : memref<256xf32, #tpu.memory_space<vmem>>)
    %c0_i32_853 = arith.constant 0 : i32
    %c0_i32_854 = arith.constant 0 : i32
    %c7_i32_855 = arith.constant 7 : i32
    %c0_i32_856 = arith.constant 0 : i32
    %c7_i32_857 = arith.constant 7 : i32
    %c0_i32_858 = arith.constant 0 : i32
    %1084 = tpu.memref_slice %arg2[%c0_i32_853, %c0_i32_858] : memref<20000x256xf32, #tpu.memory_space<any>> -> memref<1x256xf32, #tpu.memory_space<any>>
    %1085 = tpu.memref_squeeze %1084 : memref<1x256xf32, #tpu.memory_space<any>> -> memref<256xf32, #tpu.memory_space<any>>
    %c0_i32_859 = arith.constant 0 : i32
    %1086 = tpu.memref_slice %arg7[%c0_i32_854, %c7_i32_855, %c0_i32_859] : memref<2x8x256xf32, #tpu.memory_space<vmem>> -> memref<1x1x256xf32, #tpu.memory_space<vmem>>
    %1087 = tpu.memref_squeeze %1086 : memref<1x1x256xf32, #tpu.memory_space<vmem>> -> memref<256xf32, #tpu.memory_space<vmem>>
    %1088 = tpu.memref_slice %arg11[%c0_i32_856, %c7_i32_857] : memref<2x8x!tpu.dma_semaphore, #tpu.memory_space<semaphore_mem>> -> memref<1x1x!tpu.dma_semaphore, #tpu.memory_space<semaphore_mem>>
    %1089 = tpu.memref_squeeze %1088 : memref<1x1x!tpu.dma_semaphore, #tpu.memory_space<semaphore_mem>> -> memref<!tpu.dma_semaphore, #tpu.memory_space<semaphore_mem>>
    tpu.wait_dma2 semaphore(%1089 : memref<!tpu.dma_semaphore, #tpu.memory_space<semaphore_mem>>) src(%1085 : memref<256xf32, #tpu.memory_space<any>>) dst(%1087 : memref<256xf32, #tpu.memory_space<vmem>>)
    %c0_860 = arith.constant 0 : index
    %c0_861 = arith.constant 0 : index
    %c0_862 = arith.constant 0 : index
    %1090 = vector.load %arg7[%c0_860, %c0_861, %c0_862] : memref<2x8x256xf32, #tpu.memory_space<vmem>>, vector<1x8x256xf32>
    %1091 = vector.shape_cast %1090 : vector<1x8x256xf32> to vector<8x256xf32>
    %c6_i32_863 = arith.constant 6 : i32
    %1092 = arith.addi %3, %c6_i32_863 : i32
    %c1_i32_864 = arith.constant 1 : i32
    %1093 = arith.addi %1092, %c1_i32_864 : i32
    %c8_i32_865 = arith.constant 8 : i32
    %1094 = arith.muli %1093, %c8_i32_865 : i32
    %c0_i32_866 = arith.constant 0 : i32
    %1095 = arith.addi %1094, %c0_i32_866 : i32
    %1096 = arith.index_cast %1095 : i32 to index
    %1097 = memref.load %arg1[%1096] : memref<64xi32, #tpu.memory_space<smem>>
    %c1_i32_867 = arith.constant 1 : i32
    %c0_i32_868 = arith.constant 0 : i32
    %c1_i32_869 = arith.constant 1 : i32
    %c0_i32_870 = arith.constant 0 : i32
    %c0_i32_871 = arith.constant 0 : i32
    %1098 = tpu.memref_slice %arg2[%1097, %c0_i32_871] : memref<20000x256xf32, #tpu.memory_space<any>> -> memref<1x256xf32, #tpu.memory_space<any>>
    %1099 = tpu.memref_squeeze %1098 : memref<1x256xf32, #tpu.memory_space<any>> -> memref<256xf32, #tpu.memory_space<any>>
    %c0_i32_872 = arith.constant 0 : i32
    %1100 = tpu.memref_slice %arg7[%c1_i32_867, %c0_i32_868, %c0_i32_872] : memref<2x8x256xf32, #tpu.memory_space<vmem>> -> memref<1x1x256xf32, #tpu.memory_space<vmem>>
    %1101 = tpu.memref_squeeze %1100 : memref<1x1x256xf32, #tpu.memory_space<vmem>> -> memref<256xf32, #tpu.memory_space<vmem>>
    %1102 = tpu.memref_slice %arg11[%c1_i32_869, %c0_i32_870] : memref<2x8x!tpu.dma_semaphore, #tpu.memory_space<semaphore_mem>> -> memref<1x1x!tpu.dma_semaphore, #tpu.memory_space<semaphore_mem>>
    %1103 = tpu.memref_squeeze %1102 : memref<1x1x!tpu.dma_semaphore, #tpu.memory_space<semaphore_mem>> -> memref<!tpu.dma_semaphore, #tpu.memory_space<semaphore_mem>>
    tpu.enqueue_dma source(%1099 : memref<256xf32, #tpu.memory_space<any>>) target(%1101 : memref<256xf32, #tpu.memory_space<vmem>>) target_semaphore(%1103 : memref<!tpu.dma_semaphore, #tpu.memory_space<semaphore_mem>>)
    %c1_i32_873 = arith.constant 1 : i32
    %1104 = arith.addi %1094, %c1_i32_873 : i32
    %1105 = arith.index_cast %1104 : i32 to index
    %1106 = memref.load %arg1[%1105] : memref<64xi32, #tpu.memory_space<smem>>
    %c1_i32_874 = arith.constant 1 : i32
    %c1_i32_875 = arith.constant 1 : i32
    %c1_i32_876 = arith.constant 1 : i32
    %c1_i32_877 = arith.constant 1 : i32
    %c0_i32_878 = arith.constant 0 : i32
    %1107 = tpu.memref_slice %arg2[%1106, %c0_i32_878] : memref<20000x256xf32, #tpu.memory_space<any>> -> memref<1x256xf32, #tpu.memory_space<any>>
    %1108 = tpu.memref_squeeze %1107 : memref<1x256xf32, #tpu.memory_space<any>> -> memref<256xf32, #tpu.memory_space<any>>
    %c0_i32_879 = arith.constant 0 : i32
    %1109 = tpu.memref_slice %arg7[%c1_i32_874, %c1_i32_875, %c0_i32_879] : memref<2x8x256xf32, #tpu.memory_space<vmem>> -> memref<1x1x256xf32, #tpu.memory_space<vmem>>
    %1110 = tpu.memref_squeeze %1109 : memref<1x1x256xf32, #tpu.memory_space<vmem>> -> memref<256xf32, #tpu.memory_space<vmem>>
    %1111 = tpu.memref_slice %arg11[%c1_i32_876, %c1_i32_877] : memref<2x8x!tpu.dma_semaphore, #tpu.memory_space<semaphore_mem>> -> memref<1x1x!tpu.dma_semaphore, #tpu.memory_space<semaphore_mem>>
    %1112 = tpu.memref_squeeze %1111 : memref<1x1x!tpu.dma_semaphore, #tpu.memory_space<semaphore_mem>> -> memref<!tpu.dma_semaphore, #tpu.memory_space<semaphore_mem>>
    tpu.enqueue_dma source(%1108 : memref<256xf32, #tpu.memory_space<any>>) target(%1110 : memref<256xf32, #tpu.memory_space<vmem>>) target_semaphore(%1112 : memref<!tpu.dma_semaphore, #tpu.memory_space<semaphore_mem>>)
    %c2_i32_880 = arith.constant 2 : i32
    %1113 = arith.addi %1094, %c2_i32_880 : i32
    %1114 = arith.index_cast %1113 : i32 to index
    %1115 = memref.load %arg1[%1114] : memref<64xi32, #tpu.memory_space<smem>>
    %c1_i32_881 = arith.constant 1 : i32
    %c2_i32_882 = arith.constant 2 : i32
    %c1_i32_883 = arith.constant 1 : i32
    %c2_i32_884 = arith.constant 2 : i32
    %c0_i32_885 = arith.constant 0 : i32
    %1116 = tpu.memref_slice %arg2[%1115, %c0_i32_885] : memref<20000x256xf32, #tpu.memory_space<any>> -> memref<1x256xf32, #tpu.memory_space<any>>
    %1117 = tpu.memref_squeeze %1116 : memref<1x256xf32, #tpu.memory_space<any>> -> memref<256xf32, #tpu.memory_space<any>>
    %c0_i32_886 = arith.constant 0 : i32
    %1118 = tpu.memref_slice %arg7[%c1_i32_881, %c2_i32_882, %c0_i32_886] : memref<2x8x256xf32, #tpu.memory_space<vmem>> -> memref<1x1x256xf32, #tpu.memory_space<vmem>>
    %1119 = tpu.memref_squeeze %1118 : memref<1x1x256xf32, #tpu.memory_space<vmem>> -> memref<256xf32, #tpu.memory_space<vmem>>
    %1120 = tpu.memref_slice %arg11[%c1_i32_883, %c2_i32_884] : memref<2x8x!tpu.dma_semaphore, #tpu.memory_space<semaphore_mem>> -> memref<1x1x!tpu.dma_semaphore, #tpu.memory_space<semaphore_mem>>
    %1121 = tpu.memref_squeeze %1120 : memref<1x1x!tpu.dma_semaphore, #tpu.memory_space<semaphore_mem>> -> memref<!tpu.dma_semaphore, #tpu.memory_space<semaphore_mem>>
    tpu.enqueue_dma source(%1117 : memref<256xf32, #tpu.memory_space<any>>) target(%1119 : memref<256xf32, #tpu.memory_space<vmem>>) target_semaphore(%1121 : memref<!tpu.dma_semaphore, #tpu.memory_space<semaphore_mem>>)
    %c3_i32_887 = arith.constant 3 : i32
    %1122 = arith.addi %1094, %c3_i32_887 : i32
    %1123 = arith.index_cast %1122 : i32 to index
    %1124 = memref.load %arg1[%1123] : memref<64xi32, #tpu.memory_space<smem>>
    %c1_i32_888 = arith.constant 1 : i32
    %c3_i32_889 = arith.constant 3 : i32
    %c1_i32_890 = arith.constant 1 : i32
    %c3_i32_891 = arith.constant 3 : i32
    %c0_i32_892 = arith.constant 0 : i32
    %1125 = tpu.memref_slice %arg2[%1124, %c0_i32_892] : memref<20000x256xf32, #tpu.memory_space<any>> -> memref<1x256xf32, #tpu.memory_space<any>>
    %1126 = tpu.memref_squeeze %1125 : memref<1x256xf32, #tpu.memory_space<any>> -> memref<256xf32, #tpu.memory_space<any>>
    %c0_i32_893 = arith.constant 0 : i32
    %1127 = tpu.memref_slice %arg7[%c1_i32_888, %c3_i32_889, %c0_i32_893] : memref<2x8x256xf32, #tpu.memory_space<vmem>> -> memref<1x1x256xf32, #tpu.memory_space<vmem>>
    %1128 = tpu.memref_squeeze %1127 : memref<1x1x256xf32, #tpu.memory_space<vmem>> -> memref<256xf32, #tpu.memory_space<vmem>>
    %1129 = tpu.memref_slice %arg11[%c1_i32_890, %c3_i32_891] : memref<2x8x!tpu.dma_semaphore, #tpu.memory_space<semaphore_mem>> -> memref<1x1x!tpu.dma_semaphore, #tpu.memory_space<semaphore_mem>>
    %1130 = tpu.memref_squeeze %1129 : memref<1x1x!tpu.dma_semaphore, #tpu.memory_space<semaphore_mem>> -> memref<!tpu.dma_semaphore, #tpu.memory_space<semaphore_mem>>
    tpu.enqueue_dma source(%1126 : memref<256xf32, #tpu.memory_space<any>>) target(%1128 : memref<256xf32, #tpu.memory_space<vmem>>) target_semaphore(%1130 : memref<!tpu.dma_semaphore, #tpu.memory_space<semaphore_mem>>)
    %c4_i32_894 = arith.constant 4 : i32
    %1131 = arith.addi %1094, %c4_i32_894 : i32
    %1132 = arith.index_cast %1131 : i32 to index
    %1133 = memref.load %arg1[%1132] : memref<64xi32, #tpu.memory_space<smem>>
    %c1_i32_895 = arith.constant 1 : i32
    %c4_i32_896 = arith.constant 4 : i32
    %c1_i32_897 = arith.constant 1 : i32
    %c4_i32_898 = arith.constant 4 : i32
    %c0_i32_899 = arith.constant 0 : i32
    %1134 = tpu.memref_slice %arg2[%1133, %c0_i32_899] : memref<20000x256xf32, #tpu.memory_space<any>> -> memref<1x256xf32, #tpu.memory_space<any>>
    %1135 = tpu.memref_squeeze %1134 : memref<1x256xf32, #tpu.memory_space<any>> -> memref<256xf32, #tpu.memory_space<any>>
    %c0_i32_900 = arith.constant 0 : i32
    %1136 = tpu.memref_slice %arg7[%c1_i32_895, %c4_i32_896, %c0_i32_900] : memref<2x8x256xf32, #tpu.memory_space<vmem>> -> memref<1x1x256xf32, #tpu.memory_space<vmem>>
    %1137 = tpu.memref_squeeze %1136 : memref<1x1x256xf32, #tpu.memory_space<vmem>> -> memref<256xf32, #tpu.memory_space<vmem>>
    %1138 = tpu.memref_slice %arg11[%c1_i32_897, %c4_i32_898] : memref<2x8x!tpu.dma_semaphore, #tpu.memory_space<semaphore_mem>> -> memref<1x1x!tpu.dma_semaphore, #tpu.memory_space<semaphore_mem>>
    %1139 = tpu.memref_squeeze %1138 : memref<1x1x!tpu.dma_semaphore, #tpu.memory_space<semaphore_mem>> -> memref<!tpu.dma_semaphore, #tpu.memory_space<semaphore_mem>>
    tpu.enqueue_dma source(%1135 : memref<256xf32, #tpu.memory_space<any>>) target(%1137 : memref<256xf32, #tpu.memory_space<vmem>>) target_semaphore(%1139 : memref<!tpu.dma_semaphore, #tpu.memory_space<semaphore_mem>>)
    %c5_i32_901 = arith.constant 5 : i32
    %1140 = arith.addi %1094, %c5_i32_901 : i32
    %1141 = arith.index_cast %1140 : i32 to index
    %1142 = memref.load %arg1[%1141] : memref<64xi32, #tpu.memory_space<smem>>
    %c1_i32_902 = arith.constant 1 : i32
    %c5_i32_903 = arith.constant 5 : i32
    %c1_i32_904 = arith.constant 1 : i32
    %c5_i32_905 = arith.constant 5 : i32
    %c0_i32_906 = arith.constant 0 : i32
    %1143 = tpu.memref_slice %arg2[%1142, %c0_i32_906] : memref<20000x256xf32, #tpu.memory_space<any>> -> memref<1x256xf32, #tpu.memory_space<any>>
    %1144 = tpu.memref_squeeze %1143 : memref<1x256xf32, #tpu.memory_space<any>> -> memref<256xf32, #tpu.memory_space<any>>
    %c0_i32_907 = arith.constant 0 : i32
    %1145 = tpu.memref_slice %arg7[%c1_i32_902, %c5_i32_903, %c0_i32_907] : memref<2x8x256xf32, #tpu.memory_space<vmem>> -> memref<1x1x256xf32, #tpu.memory_space<vmem>>
    %1146 = tpu.memref_squeeze %1145 : memref<1x1x256xf32, #tpu.memory_space<vmem>> -> memref<256xf32, #tpu.memory_space<vmem>>
    %1147 = tpu.memref_slice %arg11[%c1_i32_904, %c5_i32_905] : memref<2x8x!tpu.dma_semaphore, #tpu.memory_space<semaphore_mem>> -> memref<1x1x!tpu.dma_semaphore, #tpu.memory_space<semaphore_mem>>
    %1148 = tpu.memref_squeeze %1147 : memref<1x1x!tpu.dma_semaphore, #tpu.memory_space<semaphore_mem>> -> memref<!tpu.dma_semaphore, #tpu.memory_space<semaphore_mem>>
    tpu.enqueue_dma source(%1144 : memref<256xf32, #tpu.memory_space<any>>) target(%1146 : memref<256xf32, #tpu.memory_space<vmem>>) target_semaphore(%1148 : memref<!tpu.dma_semaphore, #tpu.memory_space<semaphore_mem>>)
    %c6_i32_908 = arith.constant 6 : i32
    %1149 = arith.addi %1094, %c6_i32_908 : i32
    %1150 = arith.index_cast %1149 : i32 to index
    %1151 = memref.load %arg1[%1150] : memref<64xi32, #tpu.memory_space<smem>>
    %c1_i32_909 = arith.constant 1 : i32
    %c6_i32_910 = arith.constant 6 : i32
    %c1_i32_911 = arith.constant 1 : i32
    %c6_i32_912 = arith.constant 6 : i32
    %c0_i32_913 = arith.constant 0 : i32
    %1152 = tpu.memref_slice %arg2[%1151, %c0_i32_913] : memref<20000x256xf32, #tpu.memory_space<any>> -> memref<1x256xf32, #tpu.memory_space<any>>
    %1153 = tpu.memref_squeeze %1152 : memref<1x256xf32, #tpu.memory_space<any>> -> memref<256xf32, #tpu.memory_space<any>>
    %c0_i32_914 = arith.constant 0 : i32
    %1154 = tpu.memref_slice %arg7[%c1_i32_909, %c6_i32_910, %c0_i32_914] : memref<2x8x256xf32, #tpu.memory_space<vmem>> -> memref<1x1x256xf32, #tpu.memory_space<vmem>>
    %1155 = tpu.memref_squeeze %1154 : memref<1x1x256xf32, #tpu.memory_space<vmem>> -> memref<256xf32, #tpu.memory_space<vmem>>
    %1156 = tpu.memref_slice %arg11[%c1_i32_911, %c6_i32_912] : memref<2x8x!tpu.dma_semaphore, #tpu.memory_space<semaphore_mem>> -> memref<1x1x!tpu.dma_semaphore, #tpu.memory_space<semaphore_mem>>
    %1157 = tpu.memref_squeeze %1156 : memref<1x1x!tpu.dma_semaphore, #tpu.memory_space<semaphore_mem>> -> memref<!tpu.dma_semaphore, #tpu.memory_space<semaphore_mem>>
    tpu.enqueue_dma source(%1153 : memref<256xf32, #tpu.memory_space<any>>) target(%1155 : memref<256xf32, #tpu.memory_space<vmem>>) target_semaphore(%1157 : memref<!tpu.dma_semaphore, #tpu.memory_space<semaphore_mem>>)
    %c7_i32_915 = arith.constant 7 : i32
    %1158 = arith.addi %1094, %c7_i32_915 : i32
    %1159 = arith.index_cast %1158 : i32 to index
    %1160 = memref.load %arg1[%1159] : memref<64xi32, #tpu.memory_space<smem>>
    %c1_i32_916 = arith.constant 1 : i32
    %c7_i32_917 = arith.constant 7 : i32
    %c1_i32_918 = arith.constant 1 : i32
    %c7_i32_919 = arith.constant 7 : i32
    %c0_i32_920 = arith.constant 0 : i32
    %1161 = tpu.memref_slice %arg2[%1160, %c0_i32_920] : memref<20000x256xf32, #tpu.memory_space<any>> -> memref<1x256xf32, #tpu.memory_space<any>>
    %1162 = tpu.memref_squeeze %1161 : memref<1x256xf32, #tpu.memory_space<any>> -> memref<256xf32, #tpu.memory_space<any>>
    %c0_i32_921 = arith.constant 0 : i32
    %1163 = tpu.memref_slice %arg7[%c1_i32_916, %c7_i32_917, %c0_i32_921] : memref<2x8x256xf32, #tpu.memory_space<vmem>> -> memref<1x1x256xf32, #tpu.memory_space<vmem>>
    %1164 = tpu.memref_squeeze %1163 : memref<1x1x256xf32, #tpu.memory_space<vmem>> -> memref<256xf32, #tpu.memory_space<vmem>>
    %1165 = tpu.memref_slice %arg11[%c1_i32_918, %c7_i32_919] : memref<2x8x!tpu.dma_semaphore, #tpu.memory_space<semaphore_mem>> -> memref<1x1x!tpu.dma_semaphore, #tpu.memory_space<semaphore_mem>>
    %1166 = tpu.memref_squeeze %1165 : memref<1x1x!tpu.dma_semaphore, #tpu.memory_space<semaphore_mem>> -> memref<!tpu.dma_semaphore, #tpu.memory_space<semaphore_mem>>
    tpu.enqueue_dma source(%1162 : memref<256xf32, #tpu.memory_space<any>>) target(%1164 : memref<256xf32, #tpu.memory_space<vmem>>) target_semaphore(%1166 : memref<!tpu.dma_semaphore, #tpu.memory_space<semaphore_mem>>)
    %1167 = arith.truncf %1040 : vector<8x64xf32> to vector<8x64xbf16>
    %c0_922 = arith.constant 0 : index
    %c0_923 = arith.constant 0 : index
    %1168 = vector.load %arg3[%c0_922, %c0_923] : memref<64x512xbf16, #tpu.memory_space<vmem>>, vector<64x512xbf16>
    %cst_924 = arith.constant dense<0.000000e+00> : vector<8x512xf32>
    %1169 = tpu.matmul %1167, %1168, %cst_924 {dimension_numbers = #tpu.dot_dimension_numbers<[1], [0], [0], [1], [0, 0, 1, 1], [], []>} : vector<8x64xbf16>, vector<64x512xbf16>, vector<8x512xf32> -> vector<8x512xf32>
    %1170 = vector.extract_strided_slice %1169 {offsets = [0, 0], sizes = [8, 256], strides = [1, 1]} : vector<8x512xf32> to vector<8x256xf32>
    %1171 = vector.extract_strided_slice %1169 {offsets = [0, 256], sizes = [8, 256], strides = [1, 1]} : vector<8x512xf32> to vector<8x256xf32>
    %1172 = vector.shape_cast %81 : vector<8x1xi1> to vector<8x1xi1>
    %1173 = vector.broadcast %1172 : vector<8x1xi1> to vector<8x256xi1>
    %1174 = arith.select %1173, %1170, %1171 : vector<8x256xi1>, vector<8x256xf32>
    %1175 = arith.addf %1091, %1174 : vector<8x256xf32>
    %1176 = vector.extract_strided_slice %1175 {offsets = [0, 0], sizes = [8, 64], strides = [1, 1]} : vector<8x256xf32> to vector<8x64xf32>
    %1177 = arith.negf %1176 : vector<8x64xf32>
    %1178 = math.exp %1177 : vector<8x64xf32>
    %cst_925 = arith.constant 1.000000e+00 : f32
    %1179 = vector.broadcast %cst_925 : f32 to vector<8x64xf32>
    %1180 = arith.addf %1179, %1178 : vector<8x64xf32>
    %1181 = arith.divf %1179, %1180 : vector<8x64xf32>
    %1182 = vector.extract_strided_slice %1175 {offsets = [0, 64], sizes = [8, 64], strides = [1, 1]} : vector<8x256xf32> to vector<8x64xf32>
    %1183 = arith.negf %1182 : vector<8x64xf32>
    %1184 = math.exp %1183 : vector<8x64xf32>
    %cst_926 = arith.constant 1.000000e+00 : f32
    %1185 = vector.broadcast %cst_926 : f32 to vector<8x64xf32>
    %1186 = arith.addf %1185, %1184 : vector<8x64xf32>
    %1187 = arith.divf %1185, %1186 : vector<8x64xf32>
    %1188 = vector.extract_strided_slice %1175 {offsets = [0, 128], sizes = [8, 64], strides = [1, 1]} : vector<8x256xf32> to vector<8x64xf32>
    %1189 = math.tanh %1188 : vector<8x64xf32>
    %1190 = vector.extract_strided_slice %1175 {offsets = [0, 192], sizes = [8, 64], strides = [1, 1]} : vector<8x256xf32> to vector<8x64xf32>
    %1191 = arith.negf %1190 : vector<8x64xf32>
    %1192 = math.exp %1191 : vector<8x64xf32>
    %cst_927 = arith.constant 1.000000e+00 : f32
    %1193 = vector.broadcast %cst_927 : f32 to vector<8x64xf32>
    %1194 = arith.addf %1193, %1192 : vector<8x64xf32>
    %1195 = arith.divf %1193, %1194 : vector<8x64xf32>
    %1196 = arith.mulf %1187, %1038 : vector<8x64xf32>
    %1197 = arith.mulf %1181, %1189 : vector<8x64xf32>
    %1198 = arith.addf %1196, %1197 : vector<8x64xf32>
    %1199 = math.tanh %1198 : vector<8x64xf32>
    %1200 = arith.mulf %1195, %1199 : vector<8x64xf32>
    %c48 = arith.constant 48 : index
    %c0_928 = arith.constant 0 : index
    %1201 = vector.load %arg10[%c48, %c0_928] : memref<64x64xf32, #tpu.memory_space<vmem>>, vector<8x64xf32>
    tpu.vector_store %arg10[%c48, %c0_928], %1200 {strides = array<i32>} : memref<64x64xf32, #tpu.memory_space<vmem>>, vector<8x64xf32>,
    %c0_i32_929 = arith.constant 0 : i32
    %c1_i32_930 = arith.constant 1 : i32
    %c0_i32_931 = arith.constant 0 : i32
    %c1_i32_932 = arith.constant 1 : i32
    %c0_i32_933 = arith.constant 0 : i32
    %c0_i32_934 = arith.constant 0 : i32
    %1202 = tpu.memref_slice %arg2[%c0_i32_929, %c0_i32_934] : memref<20000x256xf32, #tpu.memory_space<any>> -> memref<1x256xf32, #tpu.memory_space<any>>
    %1203 = tpu.memref_squeeze %1202 : memref<1x256xf32, #tpu.memory_space<any>> -> memref<256xf32, #tpu.memory_space<any>>
    %c0_i32_935 = arith.constant 0 : i32
    %1204 = tpu.memref_slice %arg7[%c1_i32_930, %c0_i32_931, %c0_i32_935] : memref<2x8x256xf32, #tpu.memory_space<vmem>> -> memref<1x1x256xf32, #tpu.memory_space<vmem>>
    %1205 = tpu.memref_squeeze %1204 : memref<1x1x256xf32, #tpu.memory_space<vmem>> -> memref<256xf32, #tpu.memory_space<vmem>>
    %1206 = tpu.memref_slice %arg11[%c1_i32_932, %c0_i32_933] : memref<2x8x!tpu.dma_semaphore, #tpu.memory_space<semaphore_mem>> -> memref<1x1x!tpu.dma_semaphore, #tpu.memory_space<semaphore_mem>>
    %1207 = tpu.memref_squeeze %1206 : memref<1x1x!tpu.dma_semaphore, #tpu.memory_space<semaphore_mem>> -> memref<!tpu.dma_semaphore, #tpu.memory_space<semaphore_mem>>
    tpu.wait_dma2 semaphore(%1207 : memref<!tpu.dma_semaphore, #tpu.memory_space<semaphore_mem>>) src(%1203 : memref<256xf32, #tpu.memory_space<any>>) dst(%1205 : memref<256xf32, #tpu.memory_space<vmem>>)
    %c0_i32_936 = arith.constant 0 : i32
    %c1_i32_937 = arith.constant 1 : i32
    %c1_i32_938 = arith.constant 1 : i32
    %c1_i32_939 = arith.constant 1 : i32
    %c1_i32_940 = arith.constant 1 : i32
    %c0_i32_941 = arith.constant 0 : i32
    %1208 = tpu.memref_slice %arg2[%c0_i32_936, %c0_i32_941] : memref<20000x256xf32, #tpu.memory_space<any>> -> memref<1x256xf32, #tpu.memory_space<any>>
    %1209 = tpu.memref_squeeze %1208 : memref<1x256xf32, #tpu.memory_space<any>> -> memref<256xf32, #tpu.memory_space<any>>
    %c0_i32_942 = arith.constant 0 : i32
    %1210 = tpu.memref_slice %arg7[%c1_i32_937, %c1_i32_938, %c0_i32_942] : memref<2x8x256xf32, #tpu.memory_space<vmem>> -> memref<1x1x256xf32, #tpu.memory_space<vmem>>
    %1211 = tpu.memref_squeeze %1210 : memref<1x1x256xf32, #tpu.memory_space<vmem>> -> memref<256xf32, #tpu.memory_space<vmem>>
    %1212 = tpu.memref_slice %arg11[%c1_i32_939, %c1_i32_940] : memref<2x8x!tpu.dma_semaphore, #tpu.memory_space<semaphore_mem>> -> memref<1x1x!tpu.dma_semaphore, #tpu.memory_space<semaphore_mem>>
    %1213 = tpu.memref_squeeze %1212 : memref<1x1x!tpu.dma_semaphore, #tpu.memory_space<semaphore_mem>> -> memref<!tpu.dma_semaphore, #tpu.memory_space<semaphore_mem>>
    tpu.wait_dma2 semaphore(%1213 : memref<!tpu.dma_semaphore, #tpu.memory_space<semaphore_mem>>) src(%1209 : memref<256xf32, #tpu.memory_space<any>>) dst(%1211 : memref<256xf32, #tpu.memory_space<vmem>>)
    %c0_i32_943 = arith.constant 0 : i32
    %c1_i32_944 = arith.constant 1 : i32
    %c2_i32_945 = arith.constant 2 : i32
    %c1_i32_946 = arith.constant 1 : i32
    %c2_i32_947 = arith.constant 2 : i32
    %c0_i32_948 = arith.constant 0 : i32
    %1214 = tpu.memref_slice %arg2[%c0_i32_943, %c0_i32_948] : memref<20000x256xf32, #tpu.memory_space<any>> -> memref<1x256xf32, #tpu.memory_space<any>>
    %1215 = tpu.memref_squeeze %1214 : memref<1x256xf32, #tpu.memory_space<any>> -> memref<256xf32, #tpu.memory_space<any>>
    %c0_i32_949 = arith.constant 0 : i32
    %1216 = tpu.memref_slice %arg7[%c1_i32_944, %c2_i32_945, %c0_i32_949] : memref<2x8x256xf32, #tpu.memory_space<vmem>> -> memref<1x1x256xf32, #tpu.memory_space<vmem>>
    %1217 = tpu.memref_squeeze %1216 : memref<1x1x256xf32, #tpu.memory_space<vmem>> -> memref<256xf32, #tpu.memory_space<vmem>>
    %1218 = tpu.memref_slice %arg11[%c1_i32_946, %c2_i32_947] : memref<2x8x!tpu.dma_semaphore, #tpu.memory_space<semaphore_mem>> -> memref<1x1x!tpu.dma_semaphore, #tpu.memory_space<semaphore_mem>>
    %1219 = tpu.memref_squeeze %1218 : memref<1x1x!tpu.dma_semaphore, #tpu.memory_space<semaphore_mem>> -> memref<!tpu.dma_semaphore, #tpu.memory_space<semaphore_mem>>
    tpu.wait_dma2 semaphore(%1219 : memref<!tpu.dma_semaphore, #tpu.memory_space<semaphore_mem>>) src(%1215 : memref<256xf32, #tpu.memory_space<any>>) dst(%1217 : memref<256xf32, #tpu.memory_space<vmem>>)
    %c0_i32_950 = arith.constant 0 : i32
    %c1_i32_951 = arith.constant 1 : i32
    %c3_i32_952 = arith.constant 3 : i32
    %c1_i32_953 = arith.constant 1 : i32
    %c3_i32_954 = arith.constant 3 : i32
    %c0_i32_955 = arith.constant 0 : i32
    %1220 = tpu.memref_slice %arg2[%c0_i32_950, %c0_i32_955] : memref<20000x256xf32, #tpu.memory_space<any>> -> memref<1x256xf32, #tpu.memory_space<any>>
    %1221 = tpu.memref_squeeze %1220 : memref<1x256xf32, #tpu.memory_space<any>> -> memref<256xf32, #tpu.memory_space<any>>
    %c0_i32_956 = arith.constant 0 : i32
    %1222 = tpu.memref_slice %arg7[%c1_i32_951, %c3_i32_952, %c0_i32_956] : memref<2x8x256xf32, #tpu.memory_space<vmem>> -> memref<1x1x256xf32, #tpu.memory_space<vmem>>
    %1223 = tpu.memref_squeeze %1222 : memref<1x1x256xf32, #tpu.memory_space<vmem>> -> memref<256xf32, #tpu.memory_space<vmem>>
    %1224 = tpu.memref_slice %arg11[%c1_i32_953, %c3_i32_954] : memref<2x8x!tpu.dma_semaphore, #tpu.memory_space<semaphore_mem>> -> memref<1x1x!tpu.dma_semaphore, #tpu.memory_space<semaphore_mem>>
    %1225 = tpu.memref_squeeze %1224 : memref<1x1x!tpu.dma_semaphore, #tpu.memory_space<semaphore_mem>> -> memref<!tpu.dma_semaphore, #tpu.memory_space<semaphore_mem>>
    tpu.wait_dma2 semaphore(%1225 : memref<!tpu.dma_semaphore, #tpu.memory_space<semaphore_mem>>) src(%1221 : memref<256xf32, #tpu.memory_space<any>>) dst(%1223 : memref<256xf32, #tpu.memory_space<vmem>>)
    %c0_i32_957 = arith.constant 0 : i32
    %c1_i32_958 = arith.constant 1 : i32
    %c4_i32_959 = arith.constant 4 : i32
    %c1_i32_960 = arith.constant 1 : i32
    %c4_i32_961 = arith.constant 4 : i32
    %c0_i32_962 = arith.constant 0 : i32
    %1226 = tpu.memref_slice %arg2[%c0_i32_957, %c0_i32_962] : memref<20000x256xf32, #tpu.memory_space<any>> -> memref<1x256xf32, #tpu.memory_space<any>>
    %1227 = tpu.memref_squeeze %1226 : memref<1x256xf32, #tpu.memory_space<any>> -> memref<256xf32, #tpu.memory_space<any>>
    %c0_i32_963 = arith.constant 0 : i32
    %1228 = tpu.memref_slice %arg7[%c1_i32_958, %c4_i32_959, %c0_i32_963] : memref<2x8x256xf32, #tpu.memory_space<vmem>> -> memref<1x1x256xf32, #tpu.memory_space<vmem>>
    %1229 = tpu.memref_squeeze %1228 : memref<1x1x256xf32, #tpu.memory_space<vmem>> -> memref<256xf32, #tpu.memory_space<vmem>>
    %1230 = tpu.memref_slice %arg11[%c1_i32_960, %c4_i32_961] : memref<2x8x!tpu.dma_semaphore, #tpu.memory_space<semaphore_mem>> -> memref<1x1x!tpu.dma_semaphore, #tpu.memory_space<semaphore_mem>>
    %1231 = tpu.memref_squeeze %1230 : memref<1x1x!tpu.dma_semaphore, #tpu.memory_space<semaphore_mem>> -> memref<!tpu.dma_semaphore, #tpu.memory_space<semaphore_mem>>
    tpu.wait_dma2 semaphore(%1231 : memref<!tpu.dma_semaphore, #tpu.memory_space<semaphore_mem>>) src(%1227 : memref<256xf32, #tpu.memory_space<any>>) dst(%1229 : memref<256xf32, #tpu.memory_space<vmem>>)
    %c0_i32_964 = arith.constant 0 : i32
    %c1_i32_965 = arith.constant 1 : i32
    %c5_i32_966 = arith.constant 5 : i32
    %c1_i32_967 = arith.constant 1 : i32
    %c5_i32_968 = arith.constant 5 : i32
    %c0_i32_969 = arith.constant 0 : i32
    %1232 = tpu.memref_slice %arg2[%c0_i32_964, %c0_i32_969] : memref<20000x256xf32, #tpu.memory_space<any>> -> memref<1x256xf32, #tpu.memory_space<any>>
    %1233 = tpu.memref_squeeze %1232 : memref<1x256xf32, #tpu.memory_space<any>> -> memref<256xf32, #tpu.memory_space<any>>
    %c0_i32_970 = arith.constant 0 : i32
    %1234 = tpu.memref_slice %arg7[%c1_i32_965, %c5_i32_966, %c0_i32_970] : memref<2x8x256xf32, #tpu.memory_space<vmem>> -> memref<1x1x256xf32, #tpu.memory_space<vmem>>
    %1235 = tpu.memref_squeeze %1234 : memref<1x1x256xf32, #tpu.memory_space<vmem>> -> memref<256xf32, #tpu.memory_space<vmem>>
    %1236 = tpu.memref_slice %arg11[%c1_i32_967, %c5_i32_968] : memref<2x8x!tpu.dma_semaphore, #tpu.memory_space<semaphore_mem>> -> memref<1x1x!tpu.dma_semaphore, #tpu.memory_space<semaphore_mem>>
    %1237 = tpu.memref_squeeze %1236 : memref<1x1x!tpu.dma_semaphore, #tpu.memory_space<semaphore_mem>> -> memref<!tpu.dma_semaphore, #tpu.memory_space<semaphore_mem>>
    tpu.wait_dma2 semaphore(%1237 : memref<!tpu.dma_semaphore, #tpu.memory_space<semaphore_mem>>) src(%1233 : memref<256xf32, #tpu.memory_space<any>>) dst(%1235 : memref<256xf32, #tpu.memory_space<vmem>>)
    %c0_i32_971 = arith.constant 0 : i32
    %c1_i32_972 = arith.constant 1 : i32
    %c6_i32_973 = arith.constant 6 : i32
    %c1_i32_974 = arith.constant 1 : i32
    %c6_i32_975 = arith.constant 6 : i32
    %c0_i32_976 = arith.constant 0 : i32
    %1238 = tpu.memref_slice %arg2[%c0_i32_971, %c0_i32_976] : memref<20000x256xf32, #tpu.memory_space<any>> -> memref<1x256xf32, #tpu.memory_space<any>>
    %1239 = tpu.memref_squeeze %1238 : memref<1x256xf32, #tpu.memory_space<any>> -> memref<256xf32, #tpu.memory_space<any>>
    %c0_i32_977 = arith.constant 0 : i32
    %1240 = tpu.memref_slice %arg7[%c1_i32_972, %c6_i32_973, %c0_i32_977] : memref<2x8x256xf32, #tpu.memory_space<vmem>> -> memref<1x1x256xf32, #tpu.memory_space<vmem>>
    %1241 = tpu.memref_squeeze %1240 : memref<1x1x256xf32, #tpu.memory_space<vmem>> -> memref<256xf32, #tpu.memory_space<vmem>>
    %1242 = tpu.memref_slice %arg11[%c1_i32_974, %c6_i32_975] : memref<2x8x!tpu.dma_semaphore, #tpu.memory_space<semaphore_mem>> -> memref<1x1x!tpu.dma_semaphore, #tpu.memory_space<semaphore_mem>>
    %1243 = tpu.memref_squeeze %1242 : memref<1x1x!tpu.dma_semaphore, #tpu.memory_space<semaphore_mem>> -> memref<!tpu.dma_semaphore, #tpu.memory_space<semaphore_mem>>
    tpu.wait_dma2 semaphore(%1243 : memref<!tpu.dma_semaphore, #tpu.memory_space<semaphore_mem>>) src(%1239 : memref<256xf32, #tpu.memory_space<any>>) dst(%1241 : memref<256xf32, #tpu.memory_space<vmem>>)
    %c0_i32_978 = arith.constant 0 : i32
    %c1_i32_979 = arith.constant 1 : i32
    %c7_i32_980 = arith.constant 7 : i32
    %c1_i32_981 = arith.constant 1 : i32
    %c7_i32_982 = arith.constant 7 : i32
    %c0_i32_983 = arith.constant 0 : i32
    %1244 = tpu.memref_slice %arg2[%c0_i32_978, %c0_i32_983] : memref<20000x256xf32, #tpu.memory_space<any>> -> memref<1x256xf32, #tpu.memory_space<any>>
    %1245 = tpu.memref_squeeze %1244 : memref<1x256xf32, #tpu.memory_space<any>> -> memref<256xf32, #tpu.memory_space<any>>
    %c0_i32_984 = arith.constant 0 : i32
    %1246 = tpu.memref_slice %arg7[%c1_i32_979, %c7_i32_980, %c0_i32_984] : memref<2x8x256xf32, #tpu.memory_space<vmem>> -> memref<1x1x256xf32, #tpu.memory_space<vmem>>
    %1247 = tpu.memref_squeeze %1246 : memref<1x1x256xf32, #tpu.memory_space<vmem>> -> memref<256xf32, #tpu.memory_space<vmem>>
    %1248 = tpu.memref_slice %arg11[%c1_i32_981, %c7_i32_982] : memref<2x8x!tpu.dma_semaphore, #tpu.memory_space<semaphore_mem>> -> memref<1x1x!tpu.dma_semaphore, #tpu.memory_space<semaphore_mem>>
    %1249 = tpu.memref_squeeze %1248 : memref<1x1x!tpu.dma_semaphore, #tpu.memory_space<semaphore_mem>> -> memref<!tpu.dma_semaphore, #tpu.memory_space<semaphore_mem>>
    tpu.wait_dma2 semaphore(%1249 : memref<!tpu.dma_semaphore, #tpu.memory_space<semaphore_mem>>) src(%1245 : memref<256xf32, #tpu.memory_space<any>>) dst(%1247 : memref<256xf32, #tpu.memory_space<vmem>>)
    %c1_985 = arith.constant 1 : index
    %c0_986 = arith.constant 0 : index
    %c0_987 = arith.constant 0 : index
    %1250 = vector.load %arg7[%c1_985, %c0_986, %c0_987] : memref<2x8x256xf32, #tpu.memory_space<vmem>>, vector<1x8x256xf32>
    %1251 = vector.shape_cast %1250 : vector<1x8x256xf32> to vector<8x256xf32>
    %1252 = arith.truncf %1200 : vector<8x64xf32> to vector<8x64xbf16>
    %c0_988 = arith.constant 0 : index
    %c0_989 = arith.constant 0 : index
    %1253 = vector.load %arg3[%c0_988, %c0_989] : memref<64x512xbf16, #tpu.memory_space<vmem>>, vector<64x512xbf16>
    %cst_990 = arith.constant dense<0.000000e+00> : vector<8x512xf32>
    %1254 = tpu.matmul %1252, %1253, %cst_990 {dimension_numbers = #tpu.dot_dimension_numbers<[1], [0], [0], [1], [0, 0, 1, 1], [], []>} : vector<8x64xbf16>, vector<64x512xbf16>, vector<8x512xf32> -> vector<8x512xf32>
    %1255 = vector.extract_strided_slice %1254 {offsets = [0, 0], sizes = [8, 256], strides = [1, 1]} : vector<8x512xf32> to vector<8x256xf32>
    %1256 = vector.extract_strided_slice %1254 {offsets = [0, 256], sizes = [8, 256], strides = [1, 1]} : vector<8x512xf32> to vector<8x256xf32>
    %1257 = vector.shape_cast %81 : vector<8x1xi1> to vector<8x1xi1>
    %1258 = vector.broadcast %1257 : vector<8x1xi1> to vector<8x256xi1>
    %1259 = arith.select %1258, %1255, %1256 : vector<8x256xi1>, vector<8x256xf32>
    %1260 = arith.addf %1251, %1259 : vector<8x256xf32>
    %1261 = vector.extract_strided_slice %1260 {offsets = [0, 0], sizes = [8, 64], strides = [1, 1]} : vector<8x256xf32> to vector<8x64xf32>
    %1262 = arith.negf %1261 : vector<8x64xf32>
    %1263 = math.exp %1262 : vector<8x64xf32>
    %cst_991 = arith.constant 1.000000e+00 : f32
    %1264 = vector.broadcast %cst_991 : f32 to vector<8x64xf32>
    %1265 = arith.addf %1264, %1263 : vector<8x64xf32>
    %1266 = arith.divf %1264, %1265 : vector<8x64xf32>
    %1267 = vector.extract_strided_slice %1260 {offsets = [0, 64], sizes = [8, 64], strides = [1, 1]} : vector<8x256xf32> to vector<8x64xf32>
    %1268 = arith.negf %1267 : vector<8x64xf32>
    %1269 = math.exp %1268 : vector<8x64xf32>
    %cst_992 = arith.constant 1.000000e+00 : f32
    %1270 = vector.broadcast %cst_992 : f32 to vector<8x64xf32>
    %1271 = arith.addf %1270, %1269 : vector<8x64xf32>
    %1272 = arith.divf %1270, %1271 : vector<8x64xf32>
    %1273 = vector.extract_strided_slice %1260 {offsets = [0, 128], sizes = [8, 64], strides = [1, 1]} : vector<8x256xf32> to vector<8x64xf32>
    %1274 = math.tanh %1273 : vector<8x64xf32>
    %1275 = vector.extract_strided_slice %1260 {offsets = [0, 192], sizes = [8, 64], strides = [1, 1]} : vector<8x256xf32> to vector<8x64xf32>
    %1276 = arith.negf %1275 : vector<8x64xf32>
    %1277 = math.exp %1276 : vector<8x64xf32>
    %cst_993 = arith.constant 1.000000e+00 : f32
    %1278 = vector.broadcast %cst_993 : f32 to vector<8x64xf32>
    %1279 = arith.addf %1278, %1277 : vector<8x64xf32>
    %1280 = arith.divf %1278, %1279 : vector<8x64xf32>
    %1281 = arith.mulf %1272, %1198 : vector<8x64xf32>
    %1282 = arith.mulf %1266, %1274 : vector<8x64xf32>
    %1283 = arith.addf %1281, %1282 : vector<8x64xf32>
    %1284 = math.tanh %1283 : vector<8x64xf32>
    %1285 = arith.mulf %1280, %1284 : vector<8x64xf32>
    %c56 = arith.constant 56 : index
    %c0_994 = arith.constant 0 : index
    %1286 = vector.load %arg10[%c56, %c0_994] : memref<64x64xf32, #tpu.memory_space<vmem>>, vector<8x64xf32>
    tpu.vector_store %arg10[%c56, %c0_994], %1285 {strides = array<i32>} : memref<64x64xf32, #tpu.memory_space<vmem>>, vector<8x64xf32>,
    %c0_995 = arith.constant 0 : index
    %c0_996 = arith.constant 0 : index
    %1287 = vector.load %arg8[%c0_995, %c0_996] : memref<8x64xf32, #tpu.memory_space<vmem>>, vector<8x64xf32>
    tpu.vector_store %arg8[%c0_995, %c0_996], %1285 {strides = array<i32>} : memref<8x64xf32, #tpu.memory_space<vmem>>, vector<8x64xf32>,
    %c0_997 = arith.constant 0 : index
    %c0_998 = arith.constant 0 : index
    %1288 = vector.load %arg9[%c0_997, %c0_998] : memref<8x64xf32, #tpu.memory_space<vmem>>, vector<8x64xf32>
    tpu.vector_store %arg9[%c0_997, %c0_998], %1283 {strides = array<i32>} : memref<8x64xf32, #tpu.memory_space<vmem>>, vector<8x64xf32>,
    %c0_999 = arith.constant 0 : index
    %c0_1000 = arith.constant 0 : index
    %1289 = vector.load %arg10[%c0_999, %c0_1000] : memref<64x64xf32, #tpu.memory_space<vmem>>, vector<64x64xf32>
    %c0_1001 = arith.constant 0 : index
    %c0_1002 = arith.constant 0 : index
    %1290 = vector.load %arg4[%c0_1001, %c0_1002] : memref<64x64xf32, #tpu.memory_space<vmem>>, vector<64x64xf32>
    %cst_1003 = arith.constant dense<0.000000e+00> : vector<64x64xf32>
    %1291 = tpu.matmul %1289, %1290, %cst_1003 {dimension_numbers = #tpu.dot_dimension_numbers<[1], [0], [0], [1], [0, 0, 1, 1], [], []>} : vector<64x64xf32>, vector<64x64xf32>, vector<64x64xf32> -> vector<64x64xf32>
    %c0_1004 = arith.constant 0 : index
    %c0_1005 = arith.constant 0 : index
    %1292 = vector.load %arg5[%c0_1004, %c0_1005] : memref<1x64xf32, #tpu.memory_space<vmem>>, vector<1x64xf32>
    %1293 = vector.broadcast %1292 : vector<1x64xf32> to vector<64x64xf32>
    %1294 = arith.addf %1291, %1293 : vector<64x64xf32>
    %c0_1006 = arith.constant 0 : index
    %c0_1007 = arith.constant 0 : index
    %1295 = vector.load %arg6[%c0_1006, %c0_1007] : memref<64x64xf32, #tpu.memory_space<vmem>>, vector<64x64xf32>
    tpu.vector_store %arg6[%c0_1006, %c0_1007], %1294 {strides = array<i32>} : memref<64x64xf32, #tpu.memory_space<vmem>>, vector<64x64xf32>,
    return
  }
  func.func @transform_1(%arg0: i32, %arg1: memref<64xi32, #tpu.memory_space<smem>>) -> (i32, i32) {
    %c0_i32 = arith.constant 0 : i32
    %c0_i32_0 = arith.constant 0 : i32
    %c0_i32_1 = arith.constant 0 : i32
    return %c0_i32, %c0_i32_0 : i32, i32
  }
  func.func @transform_2(%arg0: i32, %arg1: memref<64xi32, #tpu.memory_space<smem>>) -> (i32, i32) {
    %c0_i32 = arith.constant 0 : i32
    %c0_i32_0 = arith.constant 0 : i32
    %c0_i32_1 = arith.constant 0 : i32
    return %c0_i32, %c0_i32_0 : i32, i32
  }
  func.func @transform_3(%arg0: i32, %arg1: memref<64xi32, #tpu.memory_space<smem>>) -> (i32, i32) {
    %c0_i32 = arith.constant 0 : i32
    %c0_i32_0 = arith.constant 0 : i32
    %c0_i32_1 = arith.constant 0 : i32
    return %c0_i32, %c0_i32_0 : i32, i32
  }
  func.func @transform_4(%arg0: i32, %arg1: memref<64xi32, #tpu.memory_space<smem>>) -> (i32, i32) {
    %c0_i32 = arith.constant 0 : i32
    %c0_i32_0 = arith.constant 0 : i32
    return %arg0, %c0_i32 : i32, i32
  }
}

</mosaic_0001>

<bundles_post_ra>
// kernel: net1_forward.1
= control target key start
LH: loop header
LB: loop body
LE: loop exit
PB: predicated region body
PF: predicated region fallthrough
CT: control target
= control target key end

     0   :  { %s7365_s0 = inlined_call_operand.vmem [shape: s32[64], index: 0, kind: input, shape index: {}]   ;;  %s7366_s1 = inlined_call_operand.hbm [shape: f32[20000,256], index: 1, kind: input, shape index: {}]   ;;  %s7367_s2 = inlined_call_operand.hbm [shape: bf16[64,512], index: 2, kind: input, shape index: {}]   ;;  %s7368_s3 = inlined_call_operand.hbm [shape: f32[64,64], index: 3, kind: input, shape index: {}]   ;;  %s7369_s4 = inlined_call_operand.hbm [shape: f32[1,64], index: 4, kind: input, shape index: {}]   ;;  %s7370_s5 = inlined_call_operand.vmem [shape: f32[64,64], index: 5, kind: output, shape index: {}]  }
   0x1   :  { %7459 = sst [smem:[#allocation172_spill]] %s7370_s5  ;;  %s10_s20 = sshll.u32 %s7365_s0, 4  ;;  %s11_s20 = int_to_ptr.vmem [resolvable:$true] %s10_s20 }
   0x2   :  { %s4112_s21 = scalar_lea.vmem %s11_s20, 16  ;;  %p4117_p1 = scmp.lt.s32.totalorder %s11_s20, %s11_s20 }
   0x3   :  { %p4113_p0 = scmp.ne.s32.totalorder %s11_s20, %s4112_s21  ;;  %p4118_p2 = scmp.lt.s32.totalorder %s4112_s21, %s4112_s21 }
   0x5   :  { %p4119_p3 = por %p4118_p2, %p4117_p1 }
   0x7   :  { %p4120_p4 = pnand %p4119_p3, %p4113_p0 }
   0x9   :  { %4123 = shalt.err (!%p4120_p4)  }
   0xa   :  { %s5860_s22 = smov [#allocation8]  }
   0xb   :  { %13 = dma.vmem_to_smem %s11_s20, 16, %s5860_s22, [#allocation7] }
   0xc   :  { %5726 = dma.done.wait [#allocation7], 16 }
   0xd   :  { %5727 = vsyncadd [#allocation7], 4294967280 }
   0xe   :  { %15 = sfence }
   0xf   :  { %16 = vsyncpa [#allocation10], 0 }
  0x10   :  { %17 = vsyncpa [#allocation12], 0  ;;  %s5861_s23 = smov [#allocation11]   ;;  %s4124_s26 = scalar_lea.hbm %s7368_s3, 1024 }
  0x11   :  { %s35_s24 = sshll.u32 %s5861_s23, 4  ;;  %p4125_p5 = scmp.ne.s32.totalorder %s7368_s3, %s4124_s26  ;;  %s36_s24 = int_to_ptr.vmem [resolvable:$true] %s35_s24 }
  0x12   :  { %p4128_p6 = scmp.lt.u32.totalorder %s4124_s26, %s7368_s3 }
  0x14   :  { %p4130_p7 = pnand %p4128_p6, %p4125_p5 }
  0x16   :  { %4133 = shalt.err (!%p4130_p7)
}
  0x17   :  { %s4134_s6 = scalar_lea.vmem %s36_s24, 1024  ;;  %p4139_p9 = scmp.lt.s32.totalorder %s36_s24, %s36_s24 }
  0x18   :  { %p4135_p8 = scmp.ne.s32.totalorder %s36_s24, %s4134_s6  ;;  %p4140_p10 = scmp.lt.s32.totalorder %s4134_s6, %s4134_s6 }
  0x1a   :  { %p4141_p11 = por %p4140_p10, %p4139_p9 }
  0x1c   :  { %p4142_p12 = pnand %p4141_p11, %p4135_p8 }
  0x1e   :  { %4145 = shalt.err (!%p4142_p12)
}
  0x1f   :  { %s7373_s7 = smov 128   ;;  %s5863_s8 = smov 8  }
  0x20   :  { %41 = dma.hbm_to_vmem [thread:$0]  %s7368_s3, 1024, %s36_s24, [#allocation12], %s7373_s7, %s7373_s7, %s5863_s8  }
  0x21   :  { %s5864_s11 = smov [#allocation9]   ;;  %s4146_s15 = scalar_lea.hbm %s7367_s2, 2048 }
  0x22   :  { %s23_s12 = sshll.u32 %s5864_s11, 4  ;;  %p4147_p13 = scmp.ne.s32.totalorder %s7367_s2, %s4146_s15  ;;  %s24_s12 = int_to_ptr.vmem [resolvable:$true] %s23_s12 }
  0x23   :  { %p4150_p0 = scmp.lt.u32.totalorder %s4146_s15, %s7367_s2 }
  0x25   :  { %p4152_p1 = pnand %p4150_p0, %p4147_p13 }
  0x27   :  { %4155 = shalt.err (!%p4152_p1)
}
  0x28   :  { %s4156_s20 = scalar_lea.vmem %s24_s12, 2048  ;;  %p4161_p3 = scmp.lt.s32.totalorder %s24_s12, %s24_s12 }
  0x29   :  { %p4157_p2 = scmp.ne.s32.totalorder %s24_s12, %s4156_s20  ;;  %p4162_p4 = scmp.lt.s32.totalorder %s4156_s20, %s4156_s20 }
  0x2b   :  { %p4163_p5 = por %p4162_p4, %p4161_p3 }
  0x2d   :  { %p4164_p6 = pnand %p4163_p5, %p4157_p2 }
  0x2f   :  { %4167 = shalt.err (!%p4164_p6)
}
  0x30   :  { %s5865_s3 = smov 256   ;;  %s5866_s21 = smov 16  }
  0x31   :  { %29 = dma.hbm_to_vmem [thread:$0]  %s7367_s2, 2048, %s24_s12, [#allocation10], %s5865_s3, %s5865_s3, %s5866_s21  }
  0x32   :  { %s5867_s24 = smov [#allocation13]   ;;  %s4168_s27 = scalar_lea.hbm %s7369_s4, 16 }
  0x33   :  { %s48_s25 = sshll.u32 %s5867_s24, 4  ;;  %p4169_p7 = scmp.ne.s32.totalorder %s7369_s4, %s4168_s27  ;;  %s49_s25 = int_to_ptr.vmem [resolvable:$true] %s48_s25 }
  0x34   :  { %p4172_p8 = scmp.lt.u32.totalorder %s4168_s27, %s7369_s4 }
  0x36   :  { %p4174_p9 = pnand %p4172_p8, %p4169_p7 }
  0x38   :  { %4177 = shalt.err (!%p4174_p9)
}
  0x39   :  { %s4178_s8 = scalar_lea.vmem %s49_s25, 16  ;;  %s4182_s2 = scalar_lea.vmem %s49_s25, 32 }
  0x3a   :  { %p4179_p10 = scmp.ne.s32.totalorder %s49_s25, %s4178_s8  ;;  %p4183_p11 = scmp.lt.s32.totalorder %s49_s25, %s49_s25 }
  0x3b   :  { %p4184_p12 = scmp.lt.s32.totalorder %s4182_s2, %s4178_s8 }
  0x3d   :  { %p4185_p13 = por %p4184_p12, %p4183_p11 }
  0x3f   :  { %p4186_p0 = pnand %p4185_p13, %p4179_p10 }
  0x41   :  { %4189 = shalt.err (!%p4186_p0)
}
  0x42   :  { %51 = dma.hbm_to_vmem [thread:$0]  %s7369_s4, 16, %s49_s25, [#allocation12]  }
  0x43   :  { %5728 = dma.done.wait [#allocation10], 2048  }
  0x44   :  { %5729 = vsyncadd [#allocation10], 4294965248 }
  0x45   :  { %5730 = dma.done.wait [#allocation12], 1040  }
  0x46   :  { %5731 = vsyncadd [#allocation12], 4294966256  ;;  %vm66_vm0 = vcmask 523264   ;;  %v190_v0 = vlaneseq  ;;  %v5868_v1 = vmov 0.0   ;;  %s71_s11 = sld [smem:[#allocation8]]  ;;  %s5869_s12 = smov [#allocation2]  }
  0x47   :  { %67 = vst.msk [vmem:[#allocation3] sm:$0xff] %vm66_vm0, %v5868_v1  ;;  %68 = vst.msk [vmem:[#allocation4] sm:$0xff] %vm66_vm0, %v5868_v1  ;;  %s79_s13 = sshll.u32 %s5869_s12, 4  ;;  %s3362_s14 = sld [smem:[#allocation8 + $0x1]]  ;;  %s5963_s13 = int_to_ptr.vmem [resolvable:$true] %s79_s13 }
  0x48   :  { %v5961_v2 = vshrl.u32 %v190_v0, 7  ;;  %s5965_s4 = sld [smem:[#allocation8 + $0x2]]  ;;  %s5870_s15 = smov [#allocation2 + $0x1]  }
  0x49   :  { %s94_s16 = sshll.u32 %s5870_s15, 4  ;;  %s5871_s17 = smov [#allocation2 + $0x2]   ;;  %s5968_s16 = int_to_ptr.vmem [resolvable:$true] %s94_s16 }
  0x4a   :  { %vm192_vm1 = vcmp.lt.s32.totalorder %v5961_v2, 2  ;;  %s109_s18 = sshll.u32 %s5871_s17, 4  ;;  %s5972_s19 = sld [smem:[#allocation8 + $0x3]]  ;;  %s5970_s18 = int_to_ptr.vmem [resolvable:$true] %s109_s18 }
  0x4b   :  { %7460 = sst [smem:[#allocation145_spill]] %s5970_s18  ;;  %s5984_s2 = scalar_lea.hbm %s7366_s1, 640000 }
  0x4c   :  { %s72_s20 = sshrl.u32 %s71_s11, 3  ;;  %s73_s3 = sand.u32 7, %s71_s11  }
  0x4d   :  { %s3360_s21 = sshll.u32 %s72_s20, 4  ;;  %s85_s22 = sshrl.u32 %s3362_s14, 3 }
  0x4e   :  { %v5974_v3 = vld [vmem:[#allocation3] sm:$0xff]  ;;  %v5976_v4 = vld [vmem:[#allocation4] sm:$0xff]  ;;  %s75_s23 = sadd.s32 %s3360_s21, %s73_s3  ;;  %s86_s24 = sand.u32 7, %s3362_s14  }
  0x4f   :  { %s3361_s25 = sshll.u32 %s75_s23, 4  ;;  %s3363_s0 = sshll.u32 %s85_s22, 4 }
  0x50   :  { %s77_s28 = scalar_lea.hbm %s7366_s1, %s3361_s25  ;;  %s88_s29 = sadd.s32 %s3363_s0, %s86_s24 }
  0x51   :  { %s4190_s30 = scalar_lea.hbm %s77_s28, 32  ;;  %p4193_p2 = scmp.lt.u32.totalorder %s77_s28, %s7366_s1 }
  0x52   :  { %p4191_p1 = scmp.ne.s32.totalorder %s77_s28, %s4190_s30  ;;  %p4194_p3 = scmp.lt.u32.totalorder %s5984_s2, %s4190_s30 }
  0x53   :  { %p4196_p5 = scmp.lt.u32.totalorder %s4190_s30, %s77_s28 }
  0x54   :  { %p4195_p4 = por %p4194_p3, %p4193_p2 }
  0x56   :  { %p4197_p6 = por %p4196_p5, %p4195_p4 }
  0x58   :  { %p4198_p7 = pnand %p4197_p6, %p4191_p1 }
  0x5a   :  { %4201 = shalt.err (!%p4198_p7)  }
  0x5b   :  { %s4202_s11 = scalar_lea.vmem %s5963_s13, 32  ;;  %s5993_s12 = scalar_lea.vmem %s5963_s13, 512 }
  0x5c   :  { %p4203_p8 = scmp.ne.s32.totalorder %s5963_s13, %s4202_s11  ;;  %p4207_p9 = scmp.lt.s32.totalorder %s5963_s13, %s5963_s13 }
  0x5d   :  { %p4208_p10 = scmp.lt.s32.totalorder %s5993_s12, %s4202_s11 }
  0x5f   :  { %p4209_p11 = por %p4208_p10, %p4207_p9 }
  0x61   :  { %p5998_p12 = pnand %p4209_p11, %p4203_p8 }
  0x63   :  { %4213 = shalt.err (!%p5998_p12)  }
  0x64   :  { %s7375_s15 = smov 1   ;;  %s3364_s17 = sshll.u32 %s88_s29, 4 }
  0x65   :  { %82 = dma.hbm_to_vmem [thread:$0]  %s77_s28, 32, %s5963_s13, [#allocation6], %s7373_s7, %s7373_s7, %s7375_s15 }
  0x66   :  { %s100_s20 = sshrl.u32 %s5965_s4, 3  ;;  %s90_s22 = scalar_lea.hbm %s7366_s1, %s3364_s17 }
  0x67   :  { %s101_s23 = sand.u32 7, %s5965_s4   ;;  %s4214_s24 = scalar_lea.hbm %s90_s22, 32 }
  0x68   :  { %p4215_p13 = scmp.ne.s32.totalorder %s90_s22, %s4214_s24  ;;  %p4217_p0 = scmp.lt.u32.totalorder %s90_s22, %s7366_s1 }
  0x69   :  { %p4218_p1 = scmp.lt.u32.totalorder %s5984_s2, %s4214_s24  ;;  %p4220_p3 = scmp.lt.u32.totalorder %s4214_s24, %s90_s22 }
  0x6b   :  { %p4219_p2 = por %p4218_p1, %p4217_p0 }
  0x6d   :  { %p4221_p4 = por %p4220_p3, %p4219_p2 }
  0x6f   :  { %p4222_p5 = pnand %p4221_p4, %p4215_p13 }
  0x71   :  { %4225 = shalt.err (!%p4222_p5)  }
  0x72   :  { %s4226_s26 = scalar_lea.vmem %s5968_s16, 32  ;;  %p4231_p7 = scmp.lt.s32.totalorder %s5968_s16, %s5963_s13 }
  0x73   :  { %p4227_p6 = scmp.ne.s32.totalorder %s5968_s16, %s4226_s26  ;;  %p4232_p8 = scmp.lt.s32.totalorder %s5993_s12, %s4226_s26 }
  0x75   :  { %p4233_p9 = por %p4232_p8, %p4231_p7 }
  0x77   :  { %p6022_p10 = pnand %p4233_p9, %p4227_p6 }
  0x79   :  { %4237 = shalt.err (!%p6022_p10)  }
  0x7a   :  { %97 = dma.hbm_to_vmem [thread:$0]  %s90_s22, 32, %s5968_s16, [#allocation6 + $0x1], %s7373_s7, %s7373_s7, %s7375_s15 }
  0x7b   :  { %s3366_s27 = sshll.u32 %s100_s20, 4  ;;  %s115_s28 = sshrl.u32 %s5972_s19, 3 }
  0x7c   :  { %s103_s29 = sadd.s32 %s3366_s27, %s101_s23  ;;  %s116_s30 = sand.u32 7, %s5972_s19  }
  0x7d   :  { %s3367_s6 = sshll.u32 %s103_s29, 4  ;;  %s3369_s8 = sshll.u32 %s115_s28, 4 }
  0x7e   :  { %s105_s11 = scalar_lea.hbm %s7366_s1, %s3367_s6  ;;  %s118_s17 = sadd.s32 %s3369_s8, %s116_s30 }
  0x7f   :  { %s4238_s3 = scalar_lea.hbm %s105_s11, 32  ;;  %p4241_p13 = scmp.lt.u32.totalorder %s105_s11, %s7366_s1 }
  0x80   :  { %p4239_p11 = scmp.ne.s32.totalorder %s105_s11, %s4238_s3  ;;  %p4242_p0 = scmp.lt.u32.totalorder %s5984_s2, %s4238_s3 }
  0x81   :  { %p4244_p2 = scmp.lt.u32.totalorder %s4238_s3, %s105_s11 }
  0x82   :  { %p4243_p1 = por %p4242_p0, %p4241_p13 }
  0x84   :  { %p4245_p3 = por %p4244_p2, %p4243_p1 }
  0x86   :  { %p4246_p4 = pnand %p4245_p3, %p4239_p11 }
  0x88   :  { %4249 = shalt.err (!%p4246_p4)  }
  0x89   :  { %s4250_s19 = scalar_lea.vmem %s5970_s18, 32  ;;  %p4255_p6 = scmp.lt.s32.totalorder %s5970_s18, %s5963_s13 }
  0x8a   :  { %p4251_p5 = scmp.ne.s32.totalorder %s5970_s18, %s4250_s19  ;;  %p4256_p7 = scmp.lt.s32.totalorder %s5993_s12, %s4250_s19 }
  0x8c   :  { %p4257_p8 = por %p4256_p7, %p4255_p6 }
  0x8e   :  { %p6046_p9 = pnand %p4257_p8, %p4251_p5 }
  0x90   :  { %s7463_s20 = scalar_select %p6046_p9, 1, 0 }
  0x92   :  { %7464 = sst [smem:[#allocation146_spill]] %s7463_s20 }
  0x93   :  { %4261 = shalt.err (!%p6046_p9)  }
  0x94   :  { %112 = dma.hbm_to_vmem [thread:$0]  %s105_s11, 32, %s5970_s18, [#allocation6 + $0x2], %s7373_s7, %s7373_s7, %s7375_s15 }
  0x95   :  { %s3370_s22 = sshll.u32 %s118_s17, 4  ;;  %s5873_s26 = smov [#allocation2 + $0x3]  }
  0x96   :  { %s120_s0 = scalar_lea.hbm %s7366_s1, %s3370_s22  ;;  %s124_s27 = sshll.u32 %s5873_s26, 4  ;;  %s6059_s27 = int_to_ptr.vmem [resolvable:$true] %s124_s27 }
  0x97   :  { %7465 = sst [smem:[#allocation147_spill]] %s6059_s27  ;;  %s6061_s28 = sld [smem:[#allocation8 + $0x4]] }
  0x98   :  { %s4262_s29 = scalar_lea.hbm %s120_s0, 32  ;;  %p4265_p13 = scmp.lt.u32.totalorder %s120_s0, %s7366_s1 }
  0x99   :  { %p4263_p11 = scmp.ne.s32.totalorder %s120_s0, %s4262_s29  ;;  %p4266_p0 = scmp.lt.u32.totalorder %s5984_s2, %s4262_s29 }
  0x9a   :  { %p4268_p2 = scmp.lt.u32.totalorder %s4262_s29, %s120_s0 }
  0x9b   :  { %p4267_p1 = por %p4266_p0, %p4265_p13 }
  0x9d   :  { %p4269_p3 = por %p4268_p2, %p4267_p1 }
  0x9f   :  { %p4270_p4 = pnand %p4269_p3, %p4263_p11 }
  0xa1   :  { %4273 = shalt.err (!%p4270_p4)  }
  0xa2   :  { %s4274_s8 = scalar_lea.vmem %s6059_s27, 32  ;;  %p4279_p6 = scmp.lt.s32.totalorder %s6059_s27, %s5963_s13 }
  0xa3   :  { %p4275_p5 = scmp.ne.s32.totalorder %s6059_s27, %s4274_s8  ;;  %p4280_p7 = scmp.lt.s32.totalorder %s5993_s12, %s4274_s8 }
  0xa5   :  { %p4281_p8 = por %p4280_p7, %p4279_p6 }
  0xa7   :  { %p6072_p9 = pnand %p4281_p8, %p4275_p5 }
  0xa9   :  { %s7466_s9 = scalar_select %p6072_p9, 1, 0 }
  0xab   :  { %7467 = sst [smem:[#allocation148_spill]] %s7466_s9 }
  0xac   :  { %4285 = shalt.err (!%p6072_p9)  }
  0xad   :  { %127 = dma.hbm_to_vmem [thread:$0]  %s120_s0, 32, %s6059_s27, [#allocation6 + $0x3], %s7373_s7, %s7373_s7, %s7375_s15 }
  0xae   :  { %s6082_s10 = sld [smem:[#allocation8 + $0x5]]  ;;  %s5874_s11 = smov [#allocation2 + $0x4]  }
  0xaf   :  { %s139_s17 = sshll.u32 %s5874_s11, 4  ;;  %s5875_s3 = smov [#allocation2 + $0x5]   ;;  %s6084_s17 = int_to_ptr.vmem [resolvable:$true] %s139_s17 }
  0xb0   :  { %7468 = sst [smem:[#allocation149_spill]] %s6084_s17  ;;  %s154_s21 = sshll.u32 %s5875_s3, 4  ;;  %s6086_s21 = int_to_ptr.vmem [resolvable:$true] %s154_s21 }
  0xb1   :  { %7469 = sst [smem:[#allocation150_spill]] %s6086_s21  ;;  %s130_s19 = sshrl.u32 %s6061_s28, 3 }
  0xb2   :  { %s6088_s24 = sld [smem:[#allocation8 + $0x6]]  ;;  %s131_s22 = sand.u32 7, %s6061_s28  }
  0xb3   :  { %s3372_s23 = sshll.u32 %s130_s19, 4 }
  0xb4   :  { %s133_s25 = sadd.s32 %s3372_s23, %s131_s22  ;;  %s145_s0 = sshrl.u32 %s6082_s10, 3 }
  0xb5   :  { %s3373_s26 = sshll.u32 %s133_s25, 4  ;;  %s146_s29 = sand.u32 7, %s6082_s10  }
  0xb6   :  { %s135_s8 = scalar_lea.hbm %s7366_s1, %s3373_s26  ;;  %s3375_s11 = sshll.u32 %s145_s0, 4 }
  0xb7   :  { %s4286_s7 = scalar_lea.hbm %s135_s8, 32  ;;  %p4289_p13 = scmp.lt.u32.totalorder %s135_s8, %s7366_s1 }
  0xb8   :  { %p4287_p11 = scmp.ne.s32.totalorder %s135_s8, %s4286_s7  ;;  %p4290_p0 = scmp.lt.u32.totalorder %s5984_s2, %s4286_s7 }
  0xb9   :  { %p4292_p2 = scmp.lt.u32.totalorder %s4286_s7, %s135_s8 }
  0xba   :  { %p4291_p1 = por %p4290_p0, %p4289_p13 }
  0xbc   :  { %p4293_p3 = por %p4292_p2, %p4291_p1 }
  0xbe   :  { %p4294_p4 = pnand %p4293_p3, %p4287_p11 }
  0xc0   :  { %4297 = shalt.err (!%p4294_p4)  }
  0xc1   :  { %s4298_s28 = scalar_lea.vmem %s6084_s17, 32  ;;  %p4303_p6 = scmp.lt.s32.totalorder %s6084_s17, %s5963_s13 }
  0xc2   :  { %p4299_p5 = scmp.ne.s32.totalorder %s6084_s17, %s4298_s28  ;;  %p4304_p7 = scmp.lt.s32.totalorder %s5993_s12, %s4298_s28 }
  0xc4   :  { %p4305_p8 = por %p4304_p7, %p4303_p6 }
  0xc6   :  { %p6106_p9 = pnand %p4305_p8, %p4299_p5 }
  0xc8   :  { %s7470_s10 = scalar_select %p6106_p9, 1, 0 }
  0xca   :  { %7471 = sst [smem:[#allocation151_spill]] %s7470_s10 }
  0xcb   :  { %4309 = shalt.err (!%p6106_p9)  }
  0xcc   :  { %s7472_s7 = smov 1   ;;  %s7473_s15 = smov 128  }
  0xcd   :  { %142 = dma.hbm_to_vmem [thread:$0]  %s135_s8, 32, %s6084_s17, [#allocation6 + $0x4], %s7473_s15, %s7473_s15, %s7472_s7 }
  0xce   :  { %s148_s19 = sadd.s32 %s3375_s11, %s146_s29  ;;  %s160_s22 = sshrl.u32 %s6088_s24, 3 }
  0xcf   :  { %s3376_s23 = sshll.u32 %s148_s19, 4  ;;  %s161_s25 = sand.u32 7, %s6088_s24  }
  0xd0   :  { %s150_s30 = scalar_lea.hbm %s7366_s1, %s3376_s23  ;;  %s3378_s6 = sshll.u32 %s160_s22, 4 }
  0xd1   :  { %s4310_s3 = scalar_lea.hbm %s150_s30, 32  ;;  %p4313_p13 = scmp.lt.u32.totalorder %s150_s30, %s7366_s1 }
  0xd2   :  { %p4311_p11 = scmp.ne.s32.totalorder %s150_s30, %s4310_s3  ;;  %p4314_p0 = scmp.lt.u32.totalorder %s5984_s2, %s4310_s3 }
  0xd3   :  { %p4316_p2 = scmp.lt.u32.totalorder %s4310_s3, %s150_s30 }
  0xd4   :  { %p4315_p1 = por %p4314_p0, %p4313_p13 }
  0xd6   :  { %p4317_p3 = por %p4316_p2, %p4315_p1 }
  0xd8   :  { %p4318_p4 = pnand %p4317_p3, %p4311_p11 }
  0xda   :  { %4321 = shalt.err (!%p4318_p4)  }
  0xdb   :  { %s4322_s24 = scalar_lea.vmem %s6086_s21, 32  ;;  %p4327_p6 = scmp.lt.s32.totalorder %s6086_s21, %s5963_s13 }
  0xdc   :  { %p4323_p5 = scmp.ne.s32.totalorder %s6086_s21, %s4322_s24  ;;  %p4328_p7 = scmp.lt.s32.totalorder %s5993_s12, %s4322_s24 }
  0xde   :  { %p4329_p8 = por %p4328_p7, %p4327_p6 }
  0xe0   :  { %p6130_p9 = pnand %p4329_p8, %p4323_p5 }
  0xe2   :  { %s7474_s29 = scalar_select %p6130_p9, 1, 0 }
  0xe4   :  { %7475 = sst [smem:[#allocation152_spill]] %s7474_s29 }
  0xe5   :  { %4333 = shalt.err (!%p6130_p9)  }
  0xe6   :  { %157 = dma.hbm_to_vmem [thread:$0]  %s150_s30, 32, %s6086_s21, [#allocation6 + $0x5], %s7473_s15, %s7473_s15, %s7472_s7 }
  0xe7   :  { %s163_s5 = sadd.s32 %s3378_s6, %s161_s25  ;;  %s5876_s8 = smov [#allocation2 + $0x6]  }
  0xe8   :  { %s169_s11 = sshll.u32 %s5876_s8, 4  ;;  %s3379_s19 = sshll.u32 %s163_s5, 4  ;;  %s6140_s11 = int_to_ptr.vmem [resolvable:$true] %s169_s11 }
  0xe9   :  { %7476 = sst [smem:[#allocation153_spill]] %s6140_s11  ;;  %s165_s0 = scalar_lea.hbm %s7366_s1, %s3379_s19 }
  0xea   :  { %s3380_s26 = sld [smem:[#allocation8 + $0x7]]  ;;  %s4334_s3 = scalar_lea.hbm %s165_s0, 32 }
  0xeb   :  { %p4335_p11 = scmp.ne.s32.totalorder %s165_s0, %s4334_s3  ;;  %p4337_p13 = scmp.lt.u32.totalorder %s165_s0, %s7366_s1 }
  0xec   :  { %p4338_p0 = scmp.lt.u32.totalorder %s5984_s2, %s4334_s3  ;;  %p4340_p2 = scmp.lt.u32.totalorder %s4334_s3, %s165_s0 }
  0xee   :  { %p4339_p1 = por %p4338_p0, %p4337_p13 }
  0xf0   :  { %p4341_p3 = por %p4340_p2, %p4339_p1 }
  0xf2   :  { %p4342_p4 = pnand %p4341_p3, %p4335_p11 }
  0xf4   :  { %4345 = shalt.err (!%p4342_p4)  }
  0xf5   :  { %s4346_s25 = scalar_lea.vmem %s6140_s11, 32  ;;  %p4351_p6 = scmp.lt.s32.totalorder %s6140_s11, %s5963_s13 }
  0xf6   :  { %p4347_p5 = scmp.ne.s32.totalorder %s6140_s11, %s4346_s25  ;;  %p4352_p7 = scmp.lt.s32.totalorder %s5993_s12, %s4346_s25 }
  0xf8   :  { %p4353_p8 = por %p4352_p7, %p4351_p6 }
  0xfa   :  { %p6154_p9 = pnand %p4353_p8, %p4347_p5 }
  0xfc   :  { %s7477_s30 = scalar_select %p6154_p9, 1, 0 }
  0xfe   :  { %7478 = sst [smem:[#allocation154_spill]] %s7477_s30 }
  0xff   :  { %4357 = shalt.err (!%p6154_p9)  }
 0x100   :  { %172 = dma.hbm_to_vmem [thread:$0]  %s165_s0, 32, %s6140_s11, [#allocation6 + $0x6], %s7473_s15, %s7473_s15, %s7472_s7 }
 0x101   :  { %s5877_s6 = smov [#allocation2 + $0x7]   ;;  %s175_s8 = sshrl.u32 %s3380_s26, 3 }
 0x102   :  { %s184_s5 = sshll.u32 %s5877_s6, 4  ;;  %s176_s19 = sand.u32 7, %s3380_s26   ;;  %s6164_s5 = int_to_ptr.vmem [resolvable:$true] %s184_s5 }
 0x103   :  { %s3381_s22 = sshll.u32 %s175_s8, 4  ;;  %7479 = sst [smem:[#allocation155_spill]] %s6164_s5 }
 0x104   :  { %s178_s23 = sadd.s32 %s3381_s22, %s176_s19 }
 0x105   :  { %s3382_s3 = sshll.u32 %s178_s23, 4 }
 0x106   :  { %s180_s25 = scalar_lea.hbm %s7366_s1, %s3382_s3 }
 0x107   :  { %s4358_s30 = scalar_lea.hbm %s180_s25, 32  ;;  %p4361_p13 = scmp.lt.u32.totalorder %s180_s25, %s7366_s1 }
 0x108   :  { %p4359_p11 = scmp.ne.s32.totalorder %s180_s25, %s4358_s30  ;;  %p4362_p0 = scmp.lt.u32.totalorder %s5984_s2, %s4358_s30 }
 0x109   :  { %p4364_p2 = scmp.lt.u32.totalorder %s4358_s30, %s180_s25 }
 0x10a   :  { %p4363_p1 = por %p4362_p0, %p4361_p13 }
 0x10c   :  { %p4365_p3 = por %p4364_p2, %p4363_p1 }
 0x10e   :  { %p4366_p4 = pnand %p4365_p3, %p4359_p11 }
 0x110   :  { %4369 = shalt.err (!%p4366_p4)  }
 0x111   :  { %s4370_s0 = scalar_lea.vmem %s6164_s5, 32  ;;  %p4375_p6 = scmp.lt.s32.totalorder %s6164_s5, %s5963_s13 }
 0x112   :  { %p4371_p5 = scmp.ne.s32.totalorder %s6164_s5, %s4370_s0  ;;  %p4376_p7 = scmp.lt.s32.totalorder %s5993_s12, %s4370_s0 }
 0x114   :  { %p4377_p8 = por %p4376_p7, %p4375_p6 }
 0x116   :  { %p6178_p9 = pnand %p4377_p8, %p4371_p5 }
 0x118   :  { %s7480_s26 = scalar_select %p6178_p9, 1, 0 }
 0x11a   :  { %7481 = sst [smem:[#allocation156_spill]] %s7480_s26 }
 0x11b   :  { %4381 = shalt.err (!%p6178_p9)  }
 0x11c   :  { %187 = dma.hbm_to_vmem [thread:$0]  %s180_s25, 32, %s6164_s5, [#allocation6 + $0x7], %s7473_s15, %s7473_s15, %s7472_s7 }
 0x11d   :  { %5732 = dma.done.wait [#allocation6], 32 }
 0x11e   :  { %5733 = vsyncadd [#allocation6], 4294967264 }
 0x11f   :  { %5734 = dma.done.wait [#allocation6 + $0x1], 32 }
 0x120   :  { %5735 = vsyncadd [#allocation6 + $0x1], 4294967264 }
 0x121   :  { %5736 = dma.done.wait [#allocation6 + $0x2], 32 }
 0x122   :  { %5737 = vsyncadd [#allocation6 + $0x2], 4294967264 }
 0x123   :  { %5738 = dma.done.wait [#allocation6 + $0x3], 32 }
 0x124   :  { %5739 = vsyncadd [#allocation6 + $0x3], 4294967264 }
 0x125   :  { %5740 = dma.done.wait [#allocation6 + $0x4], 32 }
 0x126   :  { %5741 = vsyncadd [#allocation6 + $0x4], 4294967264 }
 0x127   :  { %5742 = dma.done.wait [#allocation6 + $0x5], 32 }
 0x128   :  { %5743 = vsyncadd [#allocation6 + $0x5], 4294967264 }
 0x129   :  { %5744 = dma.done.wait [#allocation6 + $0x6], 32 }
 0x12a   :  { %5745 = vsyncadd [#allocation6 + $0x6], 4294967264 }
 0x12b   :  { %5746 = dma.done.wait [#allocation6 + $0x7], 32 }
 0x12c   :  { %5747 = vsyncadd [#allocation6 + $0x7], 4294967264  ;;  %v5878_v5 = vmov 0   ;;  %s7392_s21 = smov 64   ;;  %v3824_v6 = vld [vmem:[#allocation9 + $0x4] ss:$16 sps:$4 sm:$0xff]   ;;  %v332_v15 = vpack.c.bf16 %v5974_v3, %v5974_v3 }
 0x12d   :  { %465 = vmatprep.mubr.bf16.mxu1 %v5878_v5  ;;  %535 = vrot.lane.b32.xlu0 %v5976_v4, %s7392_s21  ;;  %v3826_v7 = vld [vmem:[#allocation9] ss:$16 sps:$4 sm:$0xff]   ;;  %v3827_v8 = vld [vmem:[#allocation9 + $0x24] ss:$16 sps:$4 sm:$0xff]   ;;  %v3838_v14 = vld [vmem:[#allocation9 + $0xc] ss:$16 sps:$4 sm:$0xff]  }
 0x12e   :  { %433 = vmatprep.subr.bf16.mxu1 %v3824_v6  ;;  %v3829_v9 = vld [vmem:[#allocation9 + $0x20] ss:$16 sps:$4 sm:$0xff]   ;;  %v3830_v10 = vld [vmem:[#allocation9 + $0x44] ss:$16 sps:$4 sm:$0xff]   ;;  %v3836_v16 = vld [vmem:[#allocation9 + $0x8] ss:$16 sps:$4 sm:$0xff]  }
 0x12f   :  { %434 = vmatpush1.bf16.msra.mxu1 %v3826_v7  ;;  %v3832_v11 = vld [vmem:[#allocation9 + $0x40] ss:$16 sps:$4 sm:$0xff]   ;;  %v3833_v12 = vld [vmem:[#allocation9 + $0x64] ss:$16 sps:$4 sm:$0xff]   ;;  %v3841_v17 = vld [vmem:[#allocation9 + $0x2c] ss:$16 sps:$4 sm:$0xff]  }
 0x130   :  { %435 = vmatprep.subr.bf16.mxu1 %v3827_v8  ;;  %v3835_v13 = vld [vmem:[#allocation9 + $0x60] ss:$16 sps:$4 sm:$0xff]   ;;  %v3839_v18 = vld [vmem:[#allocation9 + $0x28] ss:$16 sps:$4 sm:$0xff]   ;;  %v3844_v19 = vld [vmem:[#allocation9 + $0x4c] ss:$16 sps:$4 sm:$0xff]  }
 0x131   :  { %v3842_v20 = vld [vmem:[#allocation9 + $0x48] ss:$16 sps:$4 sm:$0xff]   ;;  %v3847_v21 = vld [vmem:[#allocation9 + $0x6c] ss:$16 sps:$4 sm:$0xff]   ;;  %v209_v27 = vld [vmem:[#allocation2] sm:$0xff]  ;;  %s3383_s29 = sld [smem:[#allocation8 + $0x8]] }
 0x132   :  { %v3845_v22 = vld [vmem:[#allocation9 + $0x68] ss:$16 sps:$4 sm:$0xff]   ;;  %s5880_s30 = smov [#allocation2 + $0x10]   ;;  %s3386_s8 = sld [smem:[#allocation8 + $0x9]] }
 0x133   :  { %436 = vmatpush1.bf16.msra.mxu1 %v3829_v9  ;;  %v210_v36 = vld [vmem:[#allocation2 + $0x8] sm:$0xff]  ;;  %s223_s6 = sshll.u32 %s5880_s30, 4  ;;  %s5881_s19 = smov [#allocation2 + $0x11]   ;;  %s6207_s6 = int_to_ptr.vmem [resolvable:$true] %s223_s6 }
 0x134   :  { %437 = vmatprep.subr.bf16.mxu1 %v3830_v10  ;;  %7482 = sst [smem:[#allocation157_spill]] %s6207_s6  ;;  %s238_s22 = sshll.u32 %s5881_s19, 4  ;;  %s6211_s22 = int_to_ptr.vmem [resolvable:$true] %s238_s22 }
 0x135   :  { %s6209_s23 = sld [smem:[#allocation8 + $0xa]]  ;;  %7483 = sst [smem:[#allocation158_spill]] %s6211_s22 }
 0x136   :  { %s5882_s3 = smov [#allocation2 + $0x12]   ;;  %s6215_s24 = sld [smem:[#allocation8 + $0xb]] }
 0x137   :  { %438 = vmatpush1.bf16.msra.mxu1 %v3832_v11  ;;  %s6213_s28 = sshll.u32 %s5882_s3, 4  ;;  %s214_s25 = sshrl.u32 %s3383_s29, 3  ;;  %s6264_s28 = int_to_ptr.vmem [resolvable:$true] %s6213_s28 }
 0x138   :  { %439 = vmatprep.subr.bf16.mxu1 %v3833_v12  ;;  %s215_s0 = sand.u32 7, %s3383_s29   ;;  %s229_s5 = sshrl.u32 %s3386_s8, 3 }
 0x139   :  { %s230_s26 = sand.u32 7, %s3386_s8   ;;  %s3387_s17 = sshll.u32 %s229_s5, 4 }
 0x13a   :  { %s232_s9 = sadd.s32 %s3387_s17, %s230_s26 }
 0x13b   :  { %440 = vmatpush1.bf16.msra.mxu1 %v3835_v13 }
 0x13c   :  { %474 = vmatprep.subr.bf16.mxu1 %v3838_v14 }
 0x13e   :  { %3423 = vmatmul.mubr.msk.bf16.vlgmr.msra.gmra.mrb[0].mxu1 %vm66_vm0, %v332_v15 }
 0x13f   :  { %475 = vmatpush1.bf16.msra.mxu1 %v3836_v16  ;;  %506 = vmatprep.mubr.bf16.mxu1 %v5878_v5 }
 0x140   :  { %476 = vmatprep.subr.bf16.mxu1 %v3841_v17 }
 0x143   :  { %477 = vmatpush1.bf16.msra.mxu1 %v3839_v18 }
 0x144   :  { %478 = vmatprep.subr.bf16.mxu1 %v3844_v19 }
 0x147   :  { %479 = vmatpush1.bf16.msra.mxu1 %v3842_v20 }
 0x148   :  { %480 = vmatprep.subr.bf16.mxu1 %v3847_v21 }
 0x14b   :  { %481 = vmatpush1.bf16.msra.mxu1 %v3845_v22 }
 0x14e   :  { %3424 = vmatmul.mubr.msk.bf16.vlgmr.msra.gmra.mrb[4].mxu1 %vm66_vm0, %v332_v15 }
 0x211   :  { %v467_v23 = vpop.f32.mrb[0].mxu1 }
 0x212   :  { %v469_v24 = vpop.f32.mrb[1].mxu1 }
 0x213   :  { %v471_v25 = vpop.f32.mrb[2].mxu1 }
 0x214   :  { %v472_v26 = vpop.f32.mrb[3].mxu1 }
 0x221   :  { %v508_v28 = vpop.f32.mrb[4].mxu1 }
 0x222   :  { %v517_v29 = vsel %vm192_vm1, %v467_v23, %v508_v28  ;;  %v510_v30 = vpop.f32.mrb[5].mxu1 }
 0x223   :  { %v519_v31 = vadd.f32 %v517_v29, %v209_v27  ;;  %v518_v32 = vsel %vm192_vm1, %v469_v24, %v510_v30  ;;  %v512_v33 = vpop.f32.mrb[6].mxu1 }
 0x224   :  { %v513_v34 = vpop.f32.mrb[7].mxu1  ;;  %v6200_v37 = vadd.f32 %v518_v32, %v210_v36 }
 0x225   :  { %v3425_v35 = vmul.f32 -1.442695, %v519_v31 }
 0x227   :  { %3848 = vpow2.f32 %v3425_v35 }
 0x228   :  { %3850 = vtanh.f32 %v6200_v37 }
 0x231   :  { %v3849_v38 = vpop.eup %3848 }
 0x232   :  { %v524_v39 = vadd.f32 1.0, %v3849_v38  ;;  %v3851_v40 = vpop.eup %3850 }
 0x234   :  { %3852 = vrcp.f32 %v524_v39 }
 0x23e   :  { %v6203_v41 = vpop.eup %3852 }
 0x23f   :  { %v539_v42 = vmul.f32 %v6203_v41, %v3851_v40 }
 0x241   :  { %541 = vrot.lane.b32.xlu0 %v539_v42, %s7392_s21  ;;  %s3384_s21 = sshll.u32 %s214_s25, 4 }
 0x242   :  { %s217_s30 = sadd.s32 %s3384_s21, %s215_s0 }
 0x243   :  { %s3385_s11 = sshll.u32 %s217_s30, 4 }
 0x244   :  { %s219_s27 = scalar_lea.hbm %s7366_s1, %s3385_s11 }
 0x245   :  { %s4382_s18 = scalar_lea.hbm %s219_s27, 32  ;;  %p4385_p13 = scmp.lt.u32.totalorder %s219_s27, %s7366_s1 }
 0x246   :  { %p4383_p11 = scmp.ne.s32.totalorder %s219_s27, %s4382_s18  ;;  %p4386_p0 = scmp.lt.u32.totalorder %s5984_s2, %s4382_s18 }
 0x247   :  { %p4388_p2 = scmp.lt.u32.totalorder %s4382_s18, %s219_s27 }
 0x248   :  { %p4387_p1 = por %p4386_p0, %p4385_p13 }
 0x24a   :  { %p4389_p3 = por %p4388_p2, %p4387_p1 }
 0x24c   :  { %p4390_p4 = pnand %p4389_p3, %p4383_p11 }
 0x24e   :  { %4393 = shalt.err (!%p4390_p4)  }
 0x24f   :  { %s4394_s10 = scalar_lea.vmem %s6207_s6, 32  ;;  %p4399_p6 = scmp.lt.s32.totalorder %s6207_s6, %s5963_s13 }
 0x250   :  { %p4395_p5 = scmp.ne.s32.totalorder %s6207_s6, %s4394_s10  ;;  %p4400_p7 = scmp.lt.s32.totalorder %s5993_s12, %s4394_s10 }
 0x252   :  { %p4401_p8 = por %p4400_p7, %p4399_p6 }
 0x254   :  { %p6229_p9 = pnand %p4401_p8, %p4395_p5 }
 0x256   :  { %s7484_s17 = scalar_select %p6229_p9, 1, 0 }
 0x257   :  { %4405 = shalt.err (!%p6229_p9)  }
 0x258   :  { %226 = dma.hbm_to_vmem [thread:$0]  %s219_s27, 32, %s6207_s6, [#allocation6 + $0x8], %s7473_s15, %s7473_s15, %s7472_s7 }
 0x259   :  { %s3388_s18 = sshll.u32 %s232_s9, 4  ;;  %s244_s20 = sshrl.u32 %s6209_s23, 3 }
 0x25a   :  { %s234_s26 = scalar_lea.hbm %s7366_s1, %s3388_s18  ;;  %s245_s21 = sand.u32 7, %s6209_s23  }
 0x25b   :  { %s4406_s29 = scalar_lea.hbm %s234_s26, 32  ;;  %p4409_p13 = scmp.lt.u32.totalorder %s234_s26, %s7366_s1 }
 0x25c   :  { %p4407_p11 = scmp.ne.s32.totalorder %s234_s26, %s4406_s29  ;;  %p4410_p0 = scmp.lt.u32.totalorder %s5984_s2, %s4406_s29 }
 0x25d   :  { %p4412_p2 = scmp.lt.u32.totalorder %s4406_s29, %s234_s26 }
 0x25e   :  { %p4411_p1 = por %p4410_p0, %p4409_p13 }
 0x260   :  { %p4413_p3 = por %p4412_p2, %p4411_p1 }
 0x262   :  { %p4414_p4 = pnand %p4413_p3, %p4407_p11 }
 0x264   :  { %4417 = shalt.err (!%p4414_p4)  }
 0x265   :  { %s4418_s27 = scalar_lea.vmem %s6211_s22, 32  ;;  %p4423_p6 = scmp.lt.s32.totalorder %s6211_s22, %s5963_s13 }
 0x266   :  { %p4419_p5 = scmp.ne.s32.totalorder %s6211_s22, %s4418_s27  ;;  %p4424_p7 = scmp.lt.s32.totalorder %s5993_s12, %s4418_s27 }
 0x268   :  { %p4425_p8 = por %p4424_p7, %p4423_p6 }
 0x26a   :  { %p6253_p9 = pnand %p4425_p8, %p4419_p5 }
 0x26c   :  { %s7485_s9 = scalar_select %p6253_p9, 1, 0 }
 0x26e   :  { %7486 = sst [smem:[#allocation159_spill]] %s7485_s9 }
 0x26f   :  { %4429 = shalt.err (!%p6253_p9)  }
 0x270   :  { %241 = dma.hbm_to_vmem [thread:$0]  %s234_s26, 32, %s6211_s22, [#allocation6 + $0x9], %s7473_s15, %s7473_s15, %s7472_s7 }
 0x271   :  { %s3390_s23 = sshll.u32 %s244_s20, 4  ;;  %7487 = sst [smem:[#allocation160_spill]] %s6264_s28 }
 0x272   :  { %s247_s0 = sadd.s32 %s3390_s23, %s245_s21  ;;  %s259_s30 = sshrl.u32 %s6215_s24, 3 }
 0x273   :  { %s3391_s19 = sshll.u32 %s247_s0, 4  ;;  %s260_s3 = sand.u32 7, %s6215_s24  }
 0x274   :  { %s249_s11 = scalar_lea.hbm %s7366_s1, %s3391_s19  ;;  %s3393_s5 = sshll.u32 %s259_s30, 4 }
 0x275   :  { %s4430_s29 = scalar_lea.hbm %s249_s11, 32  ;;  %p4433_p13 = scmp.lt.u32.totalorder %s249_s11, %s7366_s1 }
 0x276   :  { %p4431_p11 = scmp.ne.s32.totalorder %s249_s11, %s4430_s29  ;;  %p4434_p0 = scmp.lt.u32.totalorder %s5984_s2, %s4430_s29 }
 0x277   :  { %p4436_p2 = scmp.lt.u32.totalorder %s4430_s29, %s249_s11 }
 0x278   :  { %p4435_p1 = por %p4434_p0, %p4433_p13 }
 0x27a   :  { %p4437_p3 = por %p4436_p2, %p4435_p1 }
 0x27c   :  { %p4438_p4 = pnand %p4437_p3, %p4431_p11 }
 0x27e   :  { %4441 = shalt.err (!%p4438_p4)  }
 0x27f   :  { %s4442_s24 = scalar_lea.vmem %s6264_s28, 32  ;;  %p4447_p6 = scmp.lt.s32.totalorder %s6264_s28, %s5963_s13 }
 0x280   :  { %p4443_p5 = scmp.ne.s32.totalorder %s6264_s28, %s4442_s24  ;;  %p4448_p7 = scmp.lt.s32.totalorder %s5993_s12, %s4442_s24 }
 0x282   :  { %p4449_p8 = por %p4448_p7, %p4447_p6 }
 0x284   :  { %p6280_p9 = pnand %p4449_p8, %p4443_p5 }
 0x286   :  { %s7488_s20 = scalar_select %p6280_p9, 1, 0 }
 0x288   :  { %7489 = sst [smem:[#allocation161_spill]] %s7488_s20 }
 0x289   :  { %4453 = shalt.err (!%p6280_p9)  }
 0x28a   :  { %256 = dma.hbm_to_vmem [thread:$0]  %s249_s11, 32, %s6264_s28, [#allocation6 + $0xa], %s7473_s15, %s7473_s15, %s7472_s7 }
 0x28b   :  { %s262_s26 = sadd.s32 %s3393_s5, %s260_s3  ;;  %s5883_s27 = smov [#allocation2 + $0x13]  }
 0x28c   :  { %s3394_s21 = sshll.u32 %s262_s26, 4  ;;  %s268_s23 = sshll.u32 %s5883_s27, 4  ;;  %s6293_s23 = int_to_ptr.vmem [resolvable:$true] %s268_s23 }
 0x28d   :  { %s264_s19 = scalar_lea.hbm %s7366_s1, %s3394_s21  ;;  %7490 = sst [smem:[#allocation162_spill]] %s6293_s23 }
 0x28e   :  { %s4454_s10 = scalar_lea.hbm %s264_s19, 32  ;;  %p4457_p13 = scmp.lt.u32.totalorder %s264_s19, %s7366_s1 }
 0x28f   :  { %p4455_p11 = scmp.ne.s32.totalorder %s264_s19, %s4454_s10  ;;  %p4458_p0 = scmp.lt.u32.totalorder %s5984_s2, %s4454_s10 }
 0x290   :  { %p4460_p2 = scmp.lt.u32.totalorder %s4454_s10, %s264_s19 }
 0x291   :  { %p4459_p1 = por %p4458_p0, %p4457_p13 }
 0x293   :  { %p4461_p3 = por %p4460_p2, %p4459_p1 }
 0x295   :  { %p4462_p4 = pnand %p4461_p3, %p4455_p11 }
 0x297   :  { %4465 = shalt.err (!%p4462_p4)  }
 0x298   :  { %s4466_s3 = scalar_lea.vmem %s6293_s23, 32  ;;  %p4471_p6 = scmp.lt.s32.totalorder %s6293_s23, %s5963_s13 }
 0x299   :  { %p4467_p5 = scmp.ne.s32.totalorder %s6293_s23, %s4466_s3  ;;  %p4472_p7 = scmp.lt.s32.totalorder %s5993_s12, %s4466_s3 }
 0x29b   :  { %p4473_p8 = por %p4472_p7, %p4471_p6 }
 0x29d   :  { %p6304_p9 = pnand %p4473_p8, %p4467_p5 }
 0x29f   :  { %s7491_s11 = scalar_select %p6304_p9, 1, 0 }
 0x2a1   :  { %7492 = sst [smem:[#allocation163_spill]] %s7491_s11 }
 0x2a2   :  { %4477 = shalt.err (!%p6304_p9)  }
 0x2a3   :  { %271 = dma.hbm_to_vmem [thread:$0]  %s264_s19, 32, %s6293_s23, [#allocation6 + $0xb], %s7473_s15, %s7473_s15, %s7472_s7 }
 0x2a4   :  { %s3395_s5 = sld [smem:[#allocation8 + $0xc]]  ;;  %s3398_s8 = sld [smem:[#allocation8 + $0xd]] }
 0x2a5   :  { %s5884_s25 = smov [#allocation2 + $0x14]   ;;  %s5885_s26 = smov [#allocation2 + $0x15]  }
 0x2a6   :  { %s283_s24 = sshll.u32 %s5884_s25, 4  ;;  %s298_s21 = sshll.u32 %s5885_s26, 4  ;;  %s6314_s24 = int_to_ptr.vmem [resolvable:$true] %s283_s24  ;;  %s6316_s21 = int_to_ptr.vmem [resolvable:$true] %s298_s21 }
 0x2a7   :  { %7493 = sst [smem:[#allocation164_spill]] %s6314_s24 }
 0x2a8   :  { %7494 = sst [smem:[#allocation165_spill]] %s6316_s21 }
 0x2aa   :  { %s274_s27 = sshrl.u32 %s3395_s5, 3  ;;  %s275_s0 = sand.u32 7, %s3395_s5  }
 0x2ab   :  { %s3396_s30 = sshll.u32 %s274_s27, 4  ;;  %s289_s10 = sshrl.u32 %s3398_s8, 3 }
 0x2ac   :  { %s277_s18 = sadd.s32 %s3396_s30, %s275_s0  ;;  %s290_s29 = sand.u32 7, %s3398_s8  }
 0x2ad   :  { %s3397_s3 = sshll.u32 %s277_s18, 4  ;;  %s3399_s11 = sshll.u32 %s289_s10, 4 }
 0x2ae   :  { %s279_s28 = scalar_lea.hbm %s7366_s1, %s3397_s3  ;;  %s292_s25 = sadd.s32 %s3399_s11, %s290_s29 }
 0x2af   :  { %s4478_s20 = scalar_lea.hbm %s279_s28, 32  ;;  %p4481_p13 = scmp.lt.u32.totalorder %s279_s28, %s7366_s1 }
 0x2b0   :  { %p4479_p11 = scmp.ne.s32.totalorder %s279_s28, %s4478_s20  ;;  %p4482_p0 = scmp.lt.u32.totalorder %s5984_s2, %s4478_s20 }
 0x2b1   :  { %p4484_p2 = scmp.lt.u32.totalorder %s4478_s20, %s279_s28 }
 0x2b2   :  { %p4483_p1 = por %p4482_p0, %p4481_p13 }
 0x2b4   :  { %p4485_p3 = por %p4484_p2, %p4483_p1 }
 0x2b6   :  { %p4486_p4 = pnand %p4485_p3, %p4479_p11 }
 0x2b8   :  { %4489 = shalt.err (!%p4486_p4)  }
 0x2b9   :  { %s4490_s23 = scalar_lea.vmem %s6314_s24, 32  ;;  %p4495_p6 = scmp.lt.s32.totalorder %s6314_s24, %s5963_s13 }
 0x2ba   :  { %p4491_p5 = scmp.ne.s32.totalorder %s6314_s24, %s4490_s23  ;;  %p4496_p7 = scmp.lt.s32.totalorder %s5993_s12, %s4490_s23 }
 0x2bc   :  { %p4497_p8 = por %p4496_p7, %p4495_p6 }
 0x2be   :  { %p6330_p9 = pnand %p4497_p8, %p4491_p5 }
 0x2c0   :  { %s7495_s11 = scalar_select %p6330_p9, 1, 0 }
 0x2c2   :  { %7496 = sst [smem:[#allocation166_spill]] %s7495_s11 }
 0x2c3   :  { %4501 = shalt.err (!%p6330_p9)  }
 0x2c4   :  { %286 = dma.hbm_to_vmem [thread:$0]  %s279_s28, 32, %s6314_s24, [#allocation6 + $0xc], %s7473_s15, %s7473_s15, %s7472_s7 }
 0x2c5   :  { %s3400_s22 = sshll.u32 %s292_s25, 4 }
 0x2c6   :  { %s294_s8 = scalar_lea.hbm %s7366_s1, %s3400_s22 }
 0x2c7   :  { %s4502_s27 = scalar_lea.hbm %s294_s8, 32  ;;  %p4505_p13 = scmp.lt.u32.totalorder %s294_s8, %s7366_s1 }
 0x2c8   :  { %p4503_p11 = scmp.ne.s32.totalorder %s294_s8, %s4502_s27  ;;  %p4506_p0 = scmp.lt.u32.totalorder %s5984_s2, %s4502_s27 }
 0x2c9   :  { %p4508_p2 = scmp.lt.u32.totalorder %s4502_s27, %s294_s8 }
 0x2ca   :  { %p4507_p1 = por %p4506_p0, %p4505_p13 }
 0x2cc   :  { %p4509_p3 = por %p4508_p2, %p4507_p1 }
 0x2ce   :  { %p4510_p4 = pnand %p4509_p3, %p4503_p11 }
 0x2d0   :  { %4513 = shalt.err (!%p4510_p4)  }
 0x2d1   :  { %s4514_s28 = scalar_lea.vmem %s6316_s21, 32  ;;  %p4519_p6 = scmp.lt.s32.totalorder %s6316_s21, %s5963_s13 }
 0x2d2   :  { %p4515_p5 = scmp.ne.s32.totalorder %s6316_s21, %s4514_s28  ;;  %p4520_p7 = scmp.lt.s32.totalorder %s5993_s12, %s4514_s28 }
 0x2d4   :  { %p4521_p8 = por %p4520_p7, %p4519_p6 }
 0x2d6   :  { %p6352_p9 = pnand %p4521_p8, %p4515_p5 }
 0x2d8   :  { %s7497_s10 = scalar_select %p6352_p9, 1, 0 }
 0x2da   :  { %7498 = sst [smem:[#allocation167_spill]] %s7497_s10 }
 0x2db   :  { %4525 = shalt.err (!%p6352_p9)  }
 0x2dc   :  { %301 = dma.hbm_to_vmem [thread:$0]  %s294_s8, 32, %s6316_s21, [#allocation6 + $0xd], %s7473_s15, %s7473_s15, %s7472_s7  ;;  %v3426_v43 = vmul.f32 -1.442695, %v6200_v37  ;;  %v536_v45 = vpop.permute.xlu0 %535 }
 0x2dd   :  { %s3401_s18 = sld [smem:[#allocation8 + $0xe]]  ;;  %s6363_s29 = sld [smem:[#allocation8 + $0xf]]  ;;  %v538_v47 = vmul.f32 %v6203_v41, %v536_v45 }
 0x2de   :  { %3854 = vpow2.f32 %v3426_v43  ;;  %s5886_s22 = smov [#allocation2 + $0x16]  }
 0x2df   :  { %s313_s20 = sshll.u32 %s5886_s22, 4  ;;  %s6371_s20 = int_to_ptr.vmem [resolvable:$true] %s313_s20 }
 0x2e0   :  { %v542_v48 = vpop.permute.xlu0 %541  ;;  %7499 = sst [smem:[#allocation168_spill]] %s6371_s20 }
 0x2e1   :  { %v6366_v49 = vadd.f32 %v542_v48, %v538_v47 }
 0x2e3   :  { %s304_s3 = sshrl.u32 %s3401_s18, 3  ;;  %s305_s19 = sand.u32 7, %s3401_s18  }
 0x2e4   :  { %s3402_s25 = sshll.u32 %s304_s3, 4 }
 0x2e5   :  { %s307_s26 = sadd.s32 %s3402_s25, %s305_s19 }
 0x2e6   :  { %s3403_s23 = sshll.u32 %s307_s26, 4 }
 0x2e7   :  { %s309_s27 = scalar_lea.hbm %s7366_s1, %s3403_s23 }
 0x2e8   :  { %v3855_v44 = vpop.eup %3854  ;;  %s4526_s0 = scalar_lea.hbm %s309_s27, 32  ;;  %p4529_p13 = scmp.lt.u32.totalorder %s309_s27, %s7366_s1 }
 0x2e9   :  { %v531_v46 = vadd.f32 1.0, %v3855_v44  ;;  %p4527_p11 = scmp.ne.s32.totalorder %s309_s27, %s4526_s0  ;;  %p4530_p0 = scmp.lt.u32.totalorder %s5984_s2, %s4526_s0 }
 0x2ea   :  { %p4532_p2 = scmp.lt.u32.totalorder %s4526_s0, %s309_s27 }
 0x2eb   :  { %3856 = vrcp.f32 %v531_v46  ;;  %p4531_p1 = por %p4530_p0, %p4529_p13 }
 0x2ed   :  { %p4533_p3 = por %p4532_p2, %p4531_p1 }
 0x2ef   :  { %p4534_p4 = pnand %p4533_p3, %p4527_p11 }
 0x2f1   :  { %4537 = shalt.err (!%p4534_p4)  }
 0x2f2   :  { %s4538_s18 = scalar_lea.vmem %s6371_s20, 32  ;;  %p4543_p6 = scmp.lt.s32.totalorder %s6371_s20, %s5963_s13 }
 0x2f3   :  { %p4539_p5 = scmp.ne.s32.totalorder %s6371_s20, %s4538_s18  ;;  %p4544_p7 = scmp.lt.s32.totalorder %s5993_s12, %s4538_s18 }
 0x2f5   :  { %p4545_p8 = por %p4544_p7, %p4543_p6 }
 0x2f7   :  { %p6382_p9 = pnand %p4545_p8, %p4539_p5 }
 0x2f9   :  { %s7500_s3 = scalar_select %p6382_p9, 1, 0 }
 0x2fb   :  { %7501 = sst [smem:[#allocation169_spill]] %s7500_s3 }
 0x2fc   :  { %4549 = shalt.err (!%p6382_p9)  }
 0x2fd   :  { %316 = dma.hbm_to_vmem [thread:$0]  %s309_s27, 32, %s6371_s20, [#allocation6 + $0xe], %s7473_s15, %s7473_s15, %s7472_s7  ;;  %3858 = vtanh.f32 %v6366_v49 }
 0x2fe   :  { %s319_s19 = sshrl.u32 %s6363_s29, 3  ;;  %s320_s25 = sand.u32 7, %s6363_s29  }
 0x2ff   :  { %s3405_s26 = sshll.u32 %s319_s19, 4  ;;  %s5887_s22 = smov [#allocation2 + $0x17]  }
 0x300   :  { %s322_s23 = sadd.s32 %s3405_s26, %s320_s25  ;;  %s328_s5 = sshll.u32 %s5887_s22, 4  ;;  %s6395_s5 = int_to_ptr.vmem [resolvable:$true] %s328_s5 }
 0x301   :  { %s3406_s8 = sshll.u32 %s322_s23, 4  ;;  %7502 = sst [smem:[#allocation170_spill]] %s6395_s5 }
 0x302   :  { %s324_s28 = scalar_lea.hbm %s7366_s1, %s3406_s8 }
 0x303   :  { %s4550_s18 = scalar_lea.hbm %s324_s28, 32  ;;  %p4553_p13 = scmp.lt.u32.totalorder %s324_s28, %s7366_s1 }
 0x304   :  { %p4551_p11 = scmp.ne.s32.totalorder %s324_s28, %s4550_s18  ;;  %p4554_p0 = scmp.lt.u32.totalorder %s5984_s2, %s4550_s18 }
 0x305   :  { %p4556_p2 = scmp.lt.u32.totalorder %s4550_s18, %s324_s28 }
 0x306   :  { %p4555_p1 = por %p4554_p0, %p4553_p13 }
 0x308   :  { %p4557_p3 = por %p4556_p2, %p4555_p1 }
 0x30a   :  { %p4558_p4 = pnand %p4557_p3, %p4551_p11 }
 0x30c   :  { %4561 = shalt.err (!%p4558_p4)  }
 0x30d   :  { %s4562_s29 = scalar_lea.vmem %s6395_s5, 32  ;;  %p4567_p6 = scmp.lt.s32.totalorder %s6395_s5, %s5963_s13 }
 0x30e   :  { %p4563_p5 = scmp.ne.s32.totalorder %s6395_s5, %s4562_s29  ;;  %p4568_p7 = scmp.lt.s32.totalorder %s5993_s12, %s4562_s29 }
 0x310   :  { %p4569_p8 = por %p4568_p7, %p4567_p6 }
 0x312   :  { %p6409_p9 = pnand %p4569_p8, %p4563_p5 }
 0x314   :  { %s7503_s27 = scalar_select %p6409_p9, 1, 0 }
 0x316   :  { %7504 = sst [smem:[#allocation171_spill]] %s7503_s27 }
 0x317   :  { %4573 = shalt.err (!%p6409_p9)  }
 0x318   :  { %331 = dma.hbm_to_vmem [thread:$0]  %s324_s28, 32, %s6395_s5, [#allocation6 + $0xf], %s7473_s15, %s7473_s15, %s7472_s7  ;;  %v3857_v50 = vpop.eup %3856 }
 0x319   :  { %v3859_v51 = vpop.eup %3858  ;;  %s7505_s21 = smov 64  }
 0x31a   :  { %v546_v52 = vmul.f32 %v3859_v51, %v3857_v50 }
 0x31c   :  { %548 = vrot.lane.b32.xlu1 %v546_v52, %s7505_s21 }
 0x38e   :  { %v549_v53 = vpop.permute.xlu1 %548 }
 0x38f   :  { %551 = vst.msk [vmem:[#allocation5] sm:$0xff] %vm66_vm0, %v549_v53 }
 0x390   :  { %5748 = dma.done.wait [#allocation6 + $0x8], 32 }
 0x391   :  { %5749 = vsyncadd [#allocation6 + $0x8], 4294967264 }
 0x392   :  { %5750 = dma.done.wait [#allocation6 + $0x9], 32 }
 0x393   :  { %5751 = vsyncadd [#allocation6 + $0x9], 4294967264 }
 0x394   :  { %5752 = dma.done.wait [#allocation6 + $0xa], 32 }
 0x395   :  { %5753 = vsyncadd [#allocation6 + $0xa], 4294967264 }
 0x396   :  { %5754 = dma.done.wait [#allocation6 + $0xb], 32 }
 0x397   :  { %5755 = vsyncadd [#allocation6 + $0xb], 4294967264 }
 0x398   :  { %5756 = dma.done.wait [#allocation6 + $0xc], 32 }
 0x399   :  { %5757 = vsyncadd [#allocation6 + $0xc], 4294967264 }
 0x39a   :  { %5758 = dma.done.wait [#allocation6 + $0xd], 32 }
 0x39b   :  { %5759 = vsyncadd [#allocation6 + $0xd], 4294967264 }
 0x39c   :  { %5760 = dma.done.wait [#allocation6 + $0xe], 32 }
 0x39d   :  { %5761 = vsyncadd [#allocation6 + $0xe], 4294967264  ;;  %v676_v54 = vpack.c.bf16 %v546_v52, %v546_v52 }
 0x39e   :  { %5762 = dma.done.wait [#allocation6 + $0xf], 32 }
 0x39f   :  { %5763 = vsyncadd [#allocation6 + $0xf], 4294967264  ;;  %811 = vmatprep.mubr.bf16.mxu0 %v5878_v5  ;;  %852 = vmatprep.mubr.bf16.mxu1 %v5878_v5  ;;  %v3860_v55 = vld [vmem:[#allocation9 + $0x4] ss:$16 sps:$4 sm:$0xff]   ;;  %v3862_v56 = vld [vmem:[#allocation9 + $0xc] ss:$16 sps:$4 sm:$0xff]  }
 0x3a0   :  { %694 = vrot.lane.b32.xlu0 %v676_v54, %s7505_s21  ;;  %779 = vmatprep.subr.bf16.mxu0 %v3860_v55  ;;  %v3864_v57 = vld [vmem:[#allocation9] ss:$16 sps:$4 sm:$0xff]   ;;  %v3865_v58 = vld [vmem:[#allocation9 + $0x8] ss:$16 sps:$4 sm:$0xff]   ;;  %v3866_v59 = vld [vmem:[#allocation9 + $0x24] ss:$16 sps:$4 sm:$0xff]  }
 0x3a1   :  { %820 = vmatprep.subr.bf16.mxu1 %v3862_v56  ;;  %780 = vmatpush1.bf16.msra.mxu0 %v3864_v57  ;;  %v3868_v60 = vld [vmem:[#allocation9 + $0x2c] ss:$16 sps:$4 sm:$0xff]   ;;  %v3870_v61 = vld [vmem:[#allocation9 + $0x20] ss:$16 sps:$4 sm:$0xff]   ;;  %v3871_v62 = vld [vmem:[#allocation9 + $0x28] ss:$16 sps:$4 sm:$0xff]  }
 0x3a2   :  { %821 = vmatpush1.bf16.msra.mxu1 %v3865_v58  ;;  %781 = vmatprep.subr.bf16.mxu0 %v3866_v59  ;;  %v3872_v63 = vld [vmem:[#allocation9 + $0x44] ss:$16 sps:$4 sm:$0xff]   ;;  %v3874_v0 = vld [vmem:[#allocation9 + $0x4c] ss:$16 sps:$4 sm:$0xff]   ;;  %v3876_v1 = vld [vmem:[#allocation9 + $0x40] ss:$16 sps:$4 sm:$0xff]  }
 0x3a3   :  { %822 = vmatprep.subr.bf16.mxu1 %v3868_v60  ;;  %v3877_v3 = vld [vmem:[#allocation9 + $0x48] ss:$16 sps:$4 sm:$0xff]   ;;  %v3878_v4 = vld [vmem:[#allocation9 + $0x64] ss:$16 sps:$4 sm:$0xff]   ;;  %v3880_v6 = vld [vmem:[#allocation9 + $0x6c] ss:$16 sps:$4 sm:$0xff]  }
 0x3a4   :  { %v3882_v7 = vld [vmem:[#allocation9 + $0x60] ss:$16 sps:$4 sm:$0xff]   ;;  %v3883_v8 = vld [vmem:[#allocation9 + $0x68] ss:$16 sps:$4 sm:$0xff]   ;;  %s3427_s12 = sld [smem:[#allocation8 + $0x10]]  ;;  %s3430_s3 = sld [smem:[#allocation8 + $0x11]] }
 0x3a5   :  { %782 = vmatpush1.bf16.msra.mxu0 %v3870_v61  ;;  %v569_v10 = vld [vmem:[#allocation2 + $0x10] sm:$0xff]  ;;  %v570_v23 = vld [vmem:[#allocation2 + $0x18] sm:$0xff]  ;;  %s6437_s19 = sld [smem:[#allocation8 + $0x12]]  ;;  %s6439_s25 = sld [smem:[#allocation8 + $0x13]] }
 0x3a6   :  { %823 = vmatpush1.bf16.msra.mxu1 %v3871_v62  ;;  %783 = vmatprep.subr.bf16.mxu0 %v3872_v63  ;;  %s6441_s26 = sld [smem:[#allocation8 + $0x14]]  ;;  %s6443_s23 = sld [smem:[#allocation8 + $0x15]] }
 0x3a7   :  { %824 = vmatprep.subr.bf16.mxu1 %v3874_v0 }
 0x3a9   :  { %784 = vmatpush1.bf16.msra.mxu0 %v3876_v1 }
 0x3aa   :  { %825 = vmatpush1.bf16.msra.mxu1 %v3877_v3  ;;  %785 = vmatprep.subr.bf16.mxu0 %v3878_v4  ;;  %s574_s22 = sshrl.u32 %s3427_s12, 3  ;;  %s575_s8 = sand.u32 7, %s3427_s12  }
 0x3ab   :  { %826 = vmatprep.subr.bf16.mxu1 %v3880_v6  ;;  %s3428_s0 = sshll.u32 %s574_s22, 4  ;;  %s587_s30 = sshrl.u32 %s3430_s3, 3 }
 0x3ac   :  { %s577_s28 = sadd.s32 %s3428_s0, %s575_s8  ;;  %s588_s18 = sand.u32 7, %s3430_s3  }
 0x3ad   :  { %786 = vmatpush1.bf16.msra.mxu0 %v3882_v7  ;;  %s3429_s29 = sshll.u32 %s577_s28, 4  ;;  %s3431_s5 = sshll.u32 %s587_s30, 4 }
 0x3ae   :  { %827 = vmatpush1.bf16.msra.mxu1 %v3883_v8  ;;  %s579_s10 = scalar_lea.hbm %s7366_s1, %s3429_s29  ;;  %s590_s24 = sadd.s32 %s3431_s5, %s588_s18 }
 0x3af   :  { %s4574_s11 = scalar_lea.hbm %s579_s10, 32  ;;  %p4577_p13 = scmp.lt.u32.totalorder %s579_s10, %s7366_s1 }
 0x3b0   :  { %p4575_p11 = scmp.ne.s32.totalorder %s579_s10, %s4574_s11  ;;  %p4578_p0 = scmp.lt.u32.totalorder %s5984_s2, %s4574_s11 }
 0x3b1   :  { %p4580_p2 = scmp.lt.u32.totalorder %s4574_s11, %s579_s10 }
 0x3b2   :  { %p4579_p1 = por %p4578_p0, %p4577_p13 }
 0x3b4   :  { %p4581_p3 = por %p4580_p2, %p4579_p1 }
 0x3b6   :  { %p4582_p4 = pnand %p4581_p3, %p4575_p11 }
 0x412   :  { %v695_v9 = vpop.permute.xlu0 %694 }
 0x413   :  { %3467 = vmatmul.mubr.msk.bf16.vlgmr.msra.gmra.mrb[0].mxu0 %vm66_vm0, %v695_v9  ;;  %3468 = vmatmul.mubr.msk.bf16.vlgmr.msra.gmra.mrb[8].mxu1 %vm66_vm0, %v695_v9 }
 0x4e6   :  { %v813_v11 = vpop.f32.mrb[0].mxu0  ;;  %v854_v12 = vpop.f32.mrb[8].mxu1 }
 0x4e7   :  { %v861_v13 = vsel %vm192_vm1, %v813_v11, %v854_v12  ;;  %v815_v14 = vpop.f32.mrb[1].mxu0  ;;  %v856_v15 = vpop.f32.mrb[9].mxu1 }
 0x4e8   :  { %v863_v16 = vadd.f32 %v861_v13, %v569_v10  ;;  %v862_v17 = vsel %vm192_vm1, %v815_v14, %v856_v15  ;;  %v817_v18 = vpop.f32.mrb[2].mxu0  ;;  %v858_v19 = vpop.f32.mrb[10].mxu1 }
 0x4e9   :  { %v818_v20 = vpop.f32.mrb[3].mxu0  ;;  %v859_v21 = vpop.f32.mrb[11].mxu1  ;;  %v6430_v24 = vadd.f32 %v862_v17, %v570_v23 }
 0x4ea   :  { %v3469_v22 = vmul.f32 -1.442695, %v863_v16 }
 0x4ec   :  { %3884 = vpow2.f32 %v3469_v22 }
 0x4ed   :  { %3886 = vtanh.f32 %v6430_v24 }
 0x4f6   :  { %v3885_v25 = vpop.eup %3884 }
 0x4f7   :  { %v868_v26 = vadd.f32 1.0, %v3885_v25  ;;  %v3887_v27 = vpop.eup %3886 }
 0x4f9   :  { %3888 = vrcp.f32 %v868_v26 }
 0x503   :  { %v6433_v28 = vpop.eup %3888 }
 0x504   :  { %v879_v29 = vmul.f32 %v6433_v28, %v3887_v27 }
 0x506   :  { %881 = vrot.lane.b32.xlu0 %v879_v29, %s7505_s21 }
 0x507   :  { %4585 = shalt.err (!%p4582_p4)  }
 0x508   :  { %4597 = shalt.err (!%p5998_p12)  }
 0x509   :  { %584 = dma.hbm_to_vmem [thread:$0]  %s579_s10, 32, %s5963_s13, [#allocation6], %s7473_s15, %s7473_s15, %s7472_s7 }
 0x50a   :  { %s3432_s20 = sshll.u32 %s590_s24, 4  ;;  %s600_s6 = sshrl.u32 %s6437_s19, 3 }
 0x50b   :  { %s592_s11 = scalar_lea.hbm %s7366_s1, %s3432_s20  ;;  %s601_s27 = sand.u32 7, %s6437_s19  }
 0x50c   :  { %s4598_s12 = scalar_lea.hbm %s592_s11, 32  ;;  %p4601_p6 = scmp.lt.u32.totalorder %s592_s11, %s7366_s1 }
 0x50d   :  { %p4599_p5 = scmp.ne.s32.totalorder %s592_s11, %s4598_s12  ;;  %p4602_p7 = scmp.lt.u32.totalorder %s5984_s2, %s4598_s12 }
 0x50e   :  { %p4604_p11 = scmp.lt.u32.totalorder %s4598_s12, %s592_s11 }
 0x50f   :  { %p4603_p8 = por %p4602_p7, %p4601_p6 }
 0x511   :  { %p4605_p13 = por %p4604_p11, %p4603_p8 }
 0x513   :  { %p4606_p0 = pnand %p4605_p13, %p4599_p5 }
 0x515   :  { %4609 = shalt.err (!%p4606_p0)  }
 0x516   :  { %4621 = shalt.err (!%p6022_p10)  }
 0x517   :  { %597 = dma.hbm_to_vmem [thread:$0]  %s592_s11, 32, %s5968_s16, [#allocation6 + $0x1], %s7473_s15, %s7473_s15, %s7472_s7 }
 0x518   :  { %s3434_s24 = sshll.u32 %s600_s6, 4  ;;  %s613_s10 = sshrl.u32 %s6439_s25, 3 }
 0x519   :  { %s603_s19 = sadd.s32 %s3434_s24, %s601_s27  ;;  %s614_s8 = sand.u32 7, %s6439_s25  }
 0x51a   :  { %s3435_s0 = sshll.u32 %s603_s19, 4  ;;  %s3437_s30 = sshll.u32 %s613_s10, 4 }
 0x51b   :  { %s605_s29 = scalar_lea.hbm %s7366_s1, %s3435_s0  ;;  %s616_s20 = sadd.s32 %s3437_s30, %s614_s8 }
 0x51c   :  { %s4622_s9 = scalar_lea.hbm %s605_s29, 32  ;;  %p4625_p2 = scmp.lt.u32.totalorder %s605_s29, %s7366_s1 }
 0x51d   :  { %p4623_p1 = scmp.ne.s32.totalorder %s605_s29, %s4622_s9  ;;  %p4626_p3 = scmp.lt.u32.totalorder %s5984_s2, %s4622_s9 }
 0x51e   :  { %p4628_p5 = scmp.lt.u32.totalorder %s4622_s9, %s605_s29 }
 0x51f   :  { %p4627_p4 = por %p4626_p3, %p4625_p2 }
 0x521   :  { %p4629_p6 = por %p4628_p5, %p4627_p4 }
 0x523   :  { %p4630_p7 = pnand %p4629_p6, %p4623_p1 }
 0x525   :  { %4633 = shalt.err (!%p4630_p7)  }
 0x526   :  { %s7506_s25 = sld [smem:[#allocation146_spill]] }
 0x52c   :  { %p7507_p8 = scmp.ne.s32.totalorder %s7506_s25, 0 }
 0x52e   :  { %4645 = shalt.err (!%p7507_p8)  }
 0x52f   :  { %s7508_s6 = sld [smem:[#allocation145_spill]]  ;;  %s3438_s11 = sshll.u32 %s616_s20, 4 }
 0x530   :  { %s626_s27 = sshrl.u32 %s6441_s26, 3  ;;  %s618_s24 = scalar_lea.hbm %s7366_s1, %s3438_s11 }
 0x531   :  { %s627_s10 = sand.u32 7, %s6441_s26   ;;  %s4646_s19 = scalar_lea.hbm %s618_s24, 32 }
 0x532   :  { %p4647_p11 = scmp.ne.s32.totalorder %s618_s24, %s4646_s19  ;;  %p4649_p13 = scmp.lt.u32.totalorder %s618_s24, %s7366_s1 }
 0x533   :  { %p4650_p0 = scmp.lt.u32.totalorder %s5984_s2, %s4646_s19  ;;  %p4652_p2 = scmp.lt.u32.totalorder %s4646_s19, %s618_s24 }
 0x535   :  { %610 = dma.hbm_to_vmem [thread:$0]  %s605_s29, 32, %s7508_s6, [#allocation6 + $0x2], %s7473_s15, %s7473_s15, %s7472_s7 }
 0x536   :  { %p4651_p1 = por %p4650_p0, %p4649_p13 }
 0x538   :  { %p4653_p3 = por %p4652_p2, %p4651_p1 }
 0x53a   :  { %p4654_p4 = pnand %p4653_p3, %p4647_p11 }
 0x53c   :  { %4657 = shalt.err (!%p4654_p4)  }
 0x53d   :  { %s7509_s30 = sld [smem:[#allocation148_spill]] }
 0x543   :  { %p7510_p5 = scmp.ne.s32.totalorder %s7509_s30, 0 }
 0x545   :  { %4669 = shalt.err (!%p7510_p5)  }
 0x546   :  { %s7511_s28 = sld [smem:[#allocation147_spill]]  ;;  %s3440_s26 = sshll.u32 %s626_s27, 4 }
 0x547   :  { %s639_s18 = sshrl.u32 %s6443_s23, 3  ;;  %s629_s29 = sadd.s32 %s3440_s26, %s627_s10 }
 0x548   :  { %s640_s20 = sand.u32 7, %s6443_s23   ;;  %s3441_s9 = sshll.u32 %s629_s29, 4 }
 0x549   :  { %s3443_s5 = sshll.u32 %s639_s18, 4  ;;  %s631_s3 = scalar_lea.hbm %s7366_s1, %s3441_s9 }
 0x54a   :  { %s642_s22 = sadd.s32 %s3443_s5, %s640_s20  ;;  %s4670_s19 = scalar_lea.hbm %s631_s3, 32 }
 0x54b   :  { %p4671_p6 = scmp.ne.s32.totalorder %s631_s3, %s4670_s19  ;;  %p4673_p7 = scmp.lt.u32.totalorder %s631_s3, %s7366_s1 }
 0x54c   :  { %623 = dma.hbm_to_vmem [thread:$0]  %s618_s24, 32, %s7511_s28, [#allocation6 + $0x3], %s7473_s15, %s7473_s15, %s7472_s7 }
 0x54d   :  { %p4674_p11 = scmp.lt.u32.totalorder %s5984_s2, %s4670_s19  ;;  %p4676_p0 = scmp.lt.u32.totalorder %s4670_s19, %s631_s3 }
 0x54f   :  { %p4675_p13 = por %p4674_p11, %p4673_p7 }
 0x551   :  { %p4677_p1 = por %p4676_p0, %p4675_p13 }
 0x553   :  { %p4678_p2 = pnand %p4677_p1, %p4671_p6 }
 0x555   :  { %4681 = shalt.err (!%p4678_p2)  }
 0x556   :  { %s7512_s23 = sld [smem:[#allocation151_spill]] }
 0x55c   :  { %p7513_p3 = scmp.ne.s32.totalorder %s7512_s23, 0 }
 0x55e   :  { %4693 = shalt.err (!%p7513_p3)  }
 0x55f   :  { %s7514_s27 = sld [smem:[#allocation149_spill]]  ;;  %s3444_s24 = sshll.u32 %s642_s22, 4 }
 0x560   :  { %s644_s18 = scalar_lea.hbm %s7366_s1, %s3444_s24 }
 0x561   :  { %s4694_s29 = scalar_lea.hbm %s644_s18, 32  ;;  %p4697_p6 = scmp.lt.u32.totalorder %s644_s18, %s7366_s1 }
 0x562   :  { %p4695_p4 = scmp.ne.s32.totalorder %s644_s18, %s4694_s29  ;;  %p4698_p7 = scmp.lt.u32.totalorder %s5984_s2, %s4694_s29 }
 0x563   :  { %p4700_p13 = scmp.lt.u32.totalorder %s4694_s29, %s644_s18 }
 0x564   :  { %p4699_p11 = por %p4698_p7, %p4697_p6 }
 0x565   :  { %636 = dma.hbm_to_vmem [thread:$0]  %s631_s3, 32, %s7514_s27, [#allocation6 + $0x4], %s7473_s15, %s7473_s15, %s7472_s7 }
 0x566   :  { %p4701_p0 = por %p4700_p13, %p4699_p11 }
 0x568   :  { %p4702_p1 = pnand %p4701_p0, %p4695_p4 }
 0x56a   :  { %4705 = shalt.err (!%p4702_p1)  }
 0x56b   :  { %s7515_s5 = sld [smem:[#allocation152_spill]] }
 0x571   :  { %p7516_p2 = scmp.ne.s32.totalorder %s7515_s5, 0 }
 0x573   :  { %4717 = shalt.err (!%p7516_p2)  }
 0x574   :  { %s7517_s12 = sld [smem:[#allocation150_spill]]  ;;  %v3470_v30 = vmul.f32 -1.442695, %v6430_v24  ;;  %s6532_s3 = sld [smem:[#allocation8 + $0x17]]  ;;  %v878_v33 = vmul.f32 %v6433_v28, %v6366_v49 }
 0x575   :  { %s3445_s11 = sld [smem:[#allocation8 + $0x16]] }
 0x576   :  { %3890 = vpow2.f32 %v3470_v30 }
 0x578   :  { %v882_v34 = vpop.permute.xlu0 %881 }
 0x579   :  { %v6538_v35 = vadd.f32 %v882_v34, %v878_v33 }
 0x57a   :  { %649 = dma.hbm_to_vmem [thread:$0]  %s644_s18, 32, %s7517_s12, [#allocation6 + $0x5], %s7473_s15, %s7473_s15, %s7472_s7 }
 0x57b   :  { %s652_s22 = sshrl.u32 %s3445_s11, 3  ;;  %s653_s19 = sand.u32 7, %s3445_s11  }
 0x57c   :  { %s3446_s8 = sshll.u32 %s652_s22, 4  ;;  %s665_s24 = sshrl.u32 %s6532_s3, 3 }
 0x57d   :  { %s655_s0 = sadd.s32 %s3446_s8, %s653_s19  ;;  %s666_s26 = sand.u32 7, %s6532_s3  }
 0x57e   :  { %s3447_s10 = sshll.u32 %s655_s0, 4  ;;  %s3449_s9 = sshll.u32 %s665_s24, 4 }
 0x57f   :  { %s657_s20 = scalar_lea.hbm %s7366_s1, %s3447_s10 }
 0x580   :  { %v3891_v31 = vpop.eup %3890  ;;  %s4718_s12 = scalar_lea.hbm %s657_s20, 32  ;;  %p4721_p6 = scmp.lt.u32.totalorder %s657_s20, %s7366_s1 }
 0x581   :  { %v875_v32 = vadd.f32 1.0, %v3891_v31  ;;  %p4719_p4 = scmp.ne.s32.totalorder %s657_s20, %s4718_s12  ;;  %p4722_p7 = scmp.lt.u32.totalorder %s5984_s2, %s4718_s12 }
 0x582   :  { %p4724_p13 = scmp.lt.u32.totalorder %s4718_s12, %s657_s20 }
 0x583   :  { %3892 = vrcp.f32 %v875_v32  ;;  %p4723_p11 = por %p4722_p7, %p4721_p6 }
 0x585   :  { %p4725_p0 = por %p4724_p13, %p4723_p11 }
 0x587   :  { %p4726_p1 = pnand %p4725_p0, %p4719_p4 }
 0x589   :  { %4729 = shalt.err (!%p4726_p1)  }
 0x58a   :  { %s7518_s3 = sld [smem:[#allocation154_spill]] }
 0x590   :  { %p7519_p2 = scmp.ne.s32.totalorder %s7518_s3, 0 }
 0x592   :  { %4741 = shalt.err (!%p7519_p2)  }
 0x593   :  { %s7520_s19 = sld [smem:[#allocation153_spill]]  ;;  %3894 = vtanh.f32 %v6538_v35  ;;  %s668_s8 = sadd.s32 %s3449_s9, %s666_s26 }
 0x594   :  { %s3450_s0 = sshll.u32 %s668_s8, 4 }
 0x595   :  { %s670_s12 = scalar_lea.hbm %s7366_s1, %s3450_s0 }
 0x596   :  { %s4742_s18 = scalar_lea.hbm %s670_s12, 32  ;;  %p4745_p6 = scmp.lt.u32.totalorder %s670_s12, %s7366_s1 }
 0x597   :  { %p4743_p4 = scmp.ne.s32.totalorder %s670_s12, %s4742_s18  ;;  %p4746_p7 = scmp.lt.u32.totalorder %s5984_s2, %s4742_s18 }
 0x598   :  { %p4748_p13 = scmp.lt.u32.totalorder %s4742_s18, %s670_s12 }
 0x599   :  { %662 = dma.hbm_to_vmem [thread:$0]  %s657_s20, 32, %s7520_s19, [#allocation6 + $0x6], %s7473_s15, %s7473_s15, %s7472_s7 }
 0x59a   :  { %p4747_p11 = por %p4746_p7, %p4745_p6 }
 0x59c   :  { %p4749_p0 = por %p4748_p13, %p4747_p11 }
 0x59e   :  { %p4750_p1 = pnand %p4749_p0, %p4743_p4 }
 0x5a0   :  { %4753 = shalt.err (!%p4750_p1)  }
 0x5a1   :  { %s7521_s20 = sld [smem:[#allocation156_spill]] }
 0x5a7   :  { %p7522_p2 = scmp.ne.s32.totalorder %s7521_s20, 0 }
 0x5a9   :  { %4765 = shalt.err (!%p7522_p2)  }
 0x5aa   :  { %s7523_s26 = sld [smem:[#allocation155_spill]]  ;;  %v3893_v36 = vpop.eup %3892 }
 0x5ab   :  { %v3895_v37 = vpop.eup %3894 }
 0x5ac   :  { %v886_v38 = vmul.f32 %v3895_v37, %v3893_v36 }
 0x5ae   :  { %888 = vrot.lane.b32.xlu1 %v886_v38, %s7505_s21 }
 0x5b0   :  { %675 = dma.hbm_to_vmem [thread:$0]  %s670_s12, 32, %s7523_s26, [#allocation6 + $0x7], %s7473_s15, %s7473_s15, %s7472_s7 }
 0x620   :  { %v889_v39 = vpop.permute.xlu1 %888 }
 0x621   :  { %891 = vst.msk [vmem:[#allocation5 + $0x8] sm:$0xff] %vm66_vm0, %v889_v39 }
 0x622   :  { %5764 = dma.done.wait [#allocation6], 32 }
 0x623   :  { %5765 = vsyncadd [#allocation6], 4294967264 }
 0x624   :  { %5766 = dma.done.wait [#allocation6 + $0x1], 32 }
 0x625   :  { %5767 = vsyncadd [#allocation6 + $0x1], 4294967264 }
 0x626   :  { %5768 = dma.done.wait [#allocation6 + $0x2], 32 }
 0x627   :  { %5769 = vsyncadd [#allocation6 + $0x2], 4294967264 }
 0x628   :  { %5770 = dma.done.wait [#allocation6 + $0x3], 32 }
 0x629   :  { %5771 = vsyncadd [#allocation6 + $0x3], 4294967264 }
 0x62a   :  { %5772 = dma.done.wait [#allocation6 + $0x4], 32 }
 0x62b   :  { %5773 = vsyncadd [#allocation6 + $0x4], 4294967264 }
 0x62c   :  { %5774 = dma.done.wait [#allocation6 + $0x5], 32 }
 0x62d   :  { %5775 = vsyncadd [#allocation6 + $0x5], 4294967264 }
 0x62e   :  { %5776 = dma.done.wait [#allocation6 + $0x6], 32 }
 0x62f   :  { %5777 = vsyncadd [#allocation6 + $0x6], 4294967264  ;;  %v1015_v40 = vpack.c.bf16 %v886_v38, %v886_v38 }
 0x630   :  { %5778 = dma.done.wait [#allocation6 + $0x7], 32 }
 0x631   :  { %5779 = vsyncadd [#allocation6 + $0x7], 4294967264  ;;  %1150 = vmatprep.mubr.bf16.mxu0 %v5878_v5  ;;  %1191 = vmatprep.mubr.bf16.mxu1 %v5878_v5  ;;  %v3896_v41 = vld [vmem:[#allocation9 + $0x4] ss:$16 sps:$4 sm:$0xff]   ;;  %v3898_v42 = vld [vmem:[#allocation9 + $0xc] ss:$16 sps:$4 sm:$0xff]  }
 0x632   :  { %1033 = vrot.lane.b32.xlu0 %v1015_v40, %s7505_s21  ;;  %1118 = vmatprep.subr.bf16.mxu0 %v3896_v41  ;;  %v3900_v43 = vld [vmem:[#allocation9] ss:$16 sps:$4 sm:$0xff]   ;;  %v3901_v44 = vld [vmem:[#allocation9 + $0x8] ss:$16 sps:$4 sm:$0xff]   ;;  %v3902_v45 = vld [vmem:[#allocation9 + $0x24] ss:$16 sps:$4 sm:$0xff]  }
 0x633   :  { %1159 = vmatprep.subr.bf16.mxu1 %v3898_v42  ;;  %1119 = vmatpush1.bf16.msra.mxu0 %v3900_v43  ;;  %v3904_v46 = vld [vmem:[#allocation9 + $0x2c] ss:$16 sps:$4 sm:$0xff]   ;;  %v3906_v47 = vld [vmem:[#allocation9 + $0x20] ss:$16 sps:$4 sm:$0xff]   ;;  %v3907_v48 = vld [vmem:[#allocation9 + $0x28] ss:$16 sps:$4 sm:$0xff]  }
 0x634   :  { %1160 = vmatpush1.bf16.msra.mxu1 %v3901_v44  ;;  %1120 = vmatprep.subr.bf16.mxu0 %v3902_v45  ;;  %v3908_v49 = vld [vmem:[#allocation9 + $0x44] ss:$16 sps:$4 sm:$0xff]   ;;  %v3910_v50 = vld [vmem:[#allocation9 + $0x4c] ss:$16 sps:$4 sm:$0xff]   ;;  %v3912_v51 = vld [vmem:[#allocation9 + $0x40] ss:$16 sps:$4 sm:$0xff]  }
 0x635   :  { %1161 = vmatprep.subr.bf16.mxu1 %v3904_v46  ;;  %v3913_v52 = vld [vmem:[#allocation9 + $0x48] ss:$16 sps:$4 sm:$0xff]   ;;  %v3914_v53 = vld [vmem:[#allocation9 + $0x64] ss:$16 sps:$4 sm:$0xff]   ;;  %v3916_v54 = vld [vmem:[#allocation9 + $0x6c] ss:$16 sps:$4 sm:$0xff]  }
 0x636   :  { %v3918_v55 = vld [vmem:[#allocation9 + $0x60] ss:$16 sps:$4 sm:$0xff]   ;;  %v3919_v56 = vld [vmem:[#allocation9 + $0x68] ss:$16 sps:$4 sm:$0xff]   ;;  %s3471_s9 = sld [smem:[#allocation8 + $0x18]]  ;;  %s3474_s22 = sld [smem:[#allocation8 + $0x19]] }
 0x637   :  { %1121 = vmatpush1.bf16.msra.mxu0 %v3906_v47  ;;  %v908_v58 = vld [vmem:[#allocation2] sm:$0xff]  ;;  %v909_v9 = vld [vmem:[#allocation2 + $0x8] sm:$0xff]  ;;  %s6585_s8 = sld [smem:[#allocation8 + $0x1a]]  ;;  %s6587_s0 = sld [smem:[#allocation8 + $0x1b]] }
 0x638   :  { %1162 = vmatpush1.bf16.msra.mxu1 %v3907_v48  ;;  %1122 = vmatprep.subr.bf16.mxu0 %v3908_v49  ;;  %s6589_s24 = sld [smem:[#allocation8 + $0x1c]]  ;;  %s6591_s10 = sld [smem:[#allocation8 + $0x1d]] }
 0x639   :  { %1163 = vmatprep.subr.bf16.mxu1 %v3910_v50 }
 0x63b   :  { %1123 = vmatpush1.bf16.msra.mxu0 %v3912_v51 }
 0x63c   :  { %1164 = vmatpush1.bf16.msra.mxu1 %v3913_v52  ;;  %1124 = vmatprep.subr.bf16.mxu0 %v3914_v53  ;;  %s913_s12 = sshrl.u32 %s3471_s9, 3  ;;  %s914_s18 = sand.u32 7, %s3471_s9  }
 0x63d   :  { %1165 = vmatprep.subr.bf16.mxu1 %v3916_v54  ;;  %s3472_s29 = sshll.u32 %s913_s12, 4  ;;  %s926_s11 = sshrl.u32 %s3474_s22, 3 }
 0x63e   :  { %s916_s26 = sadd.s32 %s3472_s29, %s914_s18  ;;  %s927_s20 = sand.u32 7, %s3474_s22  }
 0x63f   :  { %1125 = vmatpush1.bf16.msra.mxu0 %v3918_v55  ;;  %s3473_s19 = sshll.u32 %s916_s26, 4  ;;  %s3475_s3 = sshll.u32 %s926_s11, 4 }
 0x640   :  { %1166 = vmatpush1.bf16.msra.mxu1 %v3919_v56  ;;  %s918_s23 = scalar_lea.hbm %s7366_s1, %s3473_s19  ;;  %s929_s28 = sadd.s32 %s3475_s3, %s927_s20 }
 0x641   :  { %s4766_s30 = scalar_lea.hbm %s918_s23, 32  ;;  %p4769_p6 = scmp.lt.u32.totalorder %s918_s23, %s7366_s1 }
 0x642   :  { %p4767_p4 = scmp.ne.s32.totalorder %s918_s23, %s4766_s30  ;;  %p4770_p7 = scmp.lt.u32.totalorder %s5984_s2, %s4766_s30 }
 0x643   :  { %p4772_p13 = scmp.lt.u32.totalorder %s4766_s30, %s918_s23 }
 0x644   :  { %p4771_p11 = por %p4770_p7, %p4769_p6 }
 0x646   :  { %p4773_p0 = por %p4772_p13, %p4771_p11 }
 0x648   :  { %p4774_p1 = pnand %p4773_p0, %p4767_p4 }
 0x6a4   :  { %v1034_v57 = vpop.permute.xlu0 %1033 }
 0x6a5   :  { %3511 = vmatmul.mubr.msk.bf16.vlgmr.msra.gmra.mrb[4].mxu0 %vm66_vm0, %v1034_v57  ;;  %3512 = vmatmul.mubr.msk.bf16.vlgmr.msra.gmra.mrb[12].mxu1 %vm66_vm0, %v1034_v57 }
 0x778   :  { %v1152_v59 = vpop.f32.mrb[4].mxu0  ;;  %v1193_v60 = vpop.f32.mrb[12].mxu1 }
 0x779   :  { %v1200_v61 = vsel %vm192_vm1, %v1152_v59, %v1193_v60  ;;  %v1154_v62 = vpop.f32.mrb[5].mxu0  ;;  %v1195_v63 = vpop.f32.mrb[13].mxu1 }
 0x77a   :  { %v1202_v0 = vadd.f32 %v1200_v61, %v908_v58  ;;  %v1201_v1 = vsel %vm192_vm1, %v1154_v62, %v1195_v63  ;;  %v1156_v3 = vpop.f32.mrb[6].mxu0  ;;  %v1197_v4 = vpop.f32.mrb[14].mxu1 }
 0x77b   :  { %v1157_v6 = vpop.f32.mrb[7].mxu0  ;;  %v1198_v7 = vpop.f32.mrb[15].mxu1  ;;  %v6578_v10 = vadd.f32 %v1201_v1, %v909_v9 }
 0x77c   :  { %v3513_v8 = vmul.f32 -1.442695, %v1202_v0 }
 0x77e   :  { %3920 = vpow2.f32 %v3513_v8 }
 0x77f   :  { %3922 = vtanh.f32 %v6578_v10 }
 0x788   :  { %v3921_v11 = vpop.eup %3920 }
 0x789   :  { %v1207_v12 = vadd.f32 1.0, %v3921_v11  ;;  %v3923_v13 = vpop.eup %3922 }
 0x78b   :  { %3924 = vrcp.f32 %v1207_v12 }
 0x795   :  { %v6581_v14 = vpop.eup %3924 }
 0x796   :  { %v1218_v15 = vmul.f32 %v6581_v14, %v3923_v13 }
 0x798   :  { %1220 = vrot.lane.b32.xlu0 %v1218_v15, %s7505_s21 }
 0x799   :  { %4777 = shalt.err (!%p4774_p1)  }
 0x79a   :  { %p7524_p2 = scmp.ne.s32.totalorder %s7484_s17, 0 }
 0x79c   :  { %4789 = shalt.err (!%p7524_p2)  }
 0x79d   :  { %s7525_s27 = sld [smem:[#allocation157_spill]]  ;;  %s3476_s5 = sshll.u32 %s929_s28, 4 }
 0x79e   :  { %s939_s25 = sshrl.u32 %s6585_s8, 3  ;;  %s931_s30 = scalar_lea.hbm %s7366_s1, %s3476_s5 }
 0x79f   :  { %s940_s19 = sand.u32 7, %s6585_s8   ;;  %s4790_s20 = scalar_lea.hbm %s931_s30, 32 }
 0x7a0   :  { %p4791_p4 = scmp.ne.s32.totalorder %s931_s30, %s4790_s20  ;;  %p4793_p6 = scmp.lt.u32.totalorder %s931_s30, %s7366_s1 }
 0x7a1   :  { %p4794_p7 = scmp.lt.u32.totalorder %s5984_s2, %s4790_s20  ;;  %p4796_p13 = scmp.lt.u32.totalorder %s4790_s20, %s931_s30 }
 0x7a3   :  { %923 = dma.hbm_to_vmem [thread:$0]  %s918_s23, 32, %s7525_s27, [#allocation6 + $0x8], %s7473_s15, %s7473_s15, %s7472_s7 }
 0x7a4   :  { %p4795_p11 = por %p4794_p7, %p4793_p6 }
 0x7a6   :  { %p4797_p0 = por %p4796_p13, %p4795_p11 }
 0x7a8   :  { %p4798_p1 = pnand %p4797_p0, %p4791_p4 }
 0x7aa   :  { %4801 = shalt.err (!%p4798_p1)  }
 0x7ab   :  { %s7526_s23 = sld [smem:[#allocation159_spill]] }
 0x7b1   :  { %p7527_p2 = scmp.ne.s32.totalorder %s7526_s23, 0 }
 0x7b3   :  { %4813 = shalt.err (!%p7527_p2)  }
 0x7b4   :  { %s7528_s28 = sld [smem:[#allocation158_spill]]  ;;  %s3478_s22 = sshll.u32 %s939_s25, 4 }
 0x7b5   :  { %s952_s8 = sshrl.u32 %s6587_s0, 3  ;;  %s942_s12 = sadd.s32 %s3478_s22, %s940_s19 }
 0x7b6   :  { %s953_s18 = sand.u32 7, %s6587_s0   ;;  %s3479_s29 = sshll.u32 %s942_s12, 4 }
 0x7b7   :  { %s3481_s11 = sshll.u32 %s952_s8, 4  ;;  %s944_s3 = scalar_lea.hbm %s7366_s1, %s3479_s29 }
 0x7b8   :  { %s955_s20 = sadd.s32 %s3481_s11, %s953_s18  ;;  %s4814_s26 = scalar_lea.hbm %s944_s3, 32 }
 0x7b9   :  { %p4815_p4 = scmp.ne.s32.totalorder %s944_s3, %s4814_s26  ;;  %p4817_p6 = scmp.lt.u32.totalorder %s944_s3, %s7366_s1 }
 0x7ba   :  { %936 = dma.hbm_to_vmem [thread:$0]  %s931_s30, 32, %s7528_s28, [#allocation6 + $0x9], %s7473_s15, %s7473_s15, %s7472_s7 }
 0x7bb   :  { %p4818_p7 = scmp.lt.u32.totalorder %s5984_s2, %s4814_s26  ;;  %p4820_p13 = scmp.lt.u32.totalorder %s4814_s26, %s944_s3 }
 0x7bd   :  { %p4819_p11 = por %p4818_p7, %p4817_p6 }
 0x7bf   :  { %p4821_p0 = por %p4820_p13, %p4819_p11 }
 0x7c1   :  { %p4822_p1 = pnand %p4821_p0, %p4815_p4 }
 0x7c3   :  { %4825 = shalt.err (!%p4822_p1)  }
 0x7c4   :  { %s7529_s0 = sld [smem:[#allocation161_spill]] }
 0x7ca   :  { %p7530_p2 = scmp.ne.s32.totalorder %s7529_s0, 0 }
 0x7cc   :  { %4837 = shalt.err (!%p7530_p2)  }
 0x7cd   :  { %s7531_s25 = sld [smem:[#allocation160_spill]]  ;;  %s3482_s30 = sshll.u32 %s955_s20, 4 }
 0x7ce   :  { %s965_s19 = sshrl.u32 %s6589_s24, 3  ;;  %s957_s8 = scalar_lea.hbm %s7366_s1, %s3482_s30 }
 0x7cf   :  { %s966_s12 = sand.u32 7, %s6589_s24   ;;  %s4838_s18 = scalar_lea.hbm %s957_s8, 32 }
 0x7d0   :  { %p4839_p4 = scmp.ne.s32.totalorder %s957_s8, %s4838_s18  ;;  %p4841_p6 = scmp.lt.u32.totalorder %s957_s8, %s7366_s1 }
 0x7d1   :  { %p4842_p7 = scmp.lt.u32.totalorder %s5984_s2, %s4838_s18  ;;  %p4844_p13 = scmp.lt.u32.totalorder %s4838_s18, %s957_s8 }
 0x7d3   :  { %949 = dma.hbm_to_vmem [thread:$0]  %s944_s3, 32, %s7531_s25, [#allocation6 + $0xa], %s7473_s15, %s7473_s15, %s7472_s7 }
 0x7d4   :  { %p4843_p11 = por %p4842_p7, %p4841_p6 }
 0x7d6   :  { %p4845_p0 = por %p4844_p13, %p4843_p11 }
 0x7d8   :  { %p4846_p1 = pnand %p4845_p0, %p4839_p4 }
 0x7da   :  { %4849 = shalt.err (!%p4846_p1)  }
 0x7db   :  { %s7532_s5 = sld [smem:[#allocation163_spill]] }
 0x7e1   :  { %p7533_p2 = scmp.ne.s32.totalorder %s7532_s5, 0 }
 0x7e3   :  { %4861 = shalt.err (!%p7533_p2)  }
 0x7e4   :  { %s7534_s6 = sld [smem:[#allocation162_spill]]  ;;  %s3484_s24 = sshll.u32 %s965_s19, 4 }
 0x7e5   :  { %s978_s3 = sshrl.u32 %s6591_s10, 3  ;;  %s968_s20 = sadd.s32 %s3484_s24, %s966_s12 }
 0x7e6   :  { %s979_s26 = sand.u32 7, %s6591_s10   ;;  %s3485_s9 = sshll.u32 %s968_s20, 4 }
 0x7e7   :  { %s3487_s30 = sshll.u32 %s978_s3, 4  ;;  %s970_s18 = scalar_lea.hbm %s7366_s1, %s3485_s9 }
 0x7e8   :  { %s981_s29 = sadd.s32 %s3487_s30, %s979_s26  ;;  %s4862_s11 = scalar_lea.hbm %s970_s18, 32 }
 0x7e9   :  { %p4863_p4 = scmp.ne.s32.totalorder %s970_s18, %s4862_s11  ;;  %p4865_p6 = scmp.lt.u32.totalorder %s970_s18, %s7366_s1 }
 0x7ea   :  { %962 = dma.hbm_to_vmem [thread:$0]  %s957_s8, 32, %s7534_s6, [#allocation6 + $0xb], %s7473_s15, %s7473_s15, %s7472_s7 }
 0x7eb   :  { %p4866_p7 = scmp.lt.u32.totalorder %s5984_s2, %s4862_s11  ;;  %p4868_p13 = scmp.lt.u32.totalorder %s4862_s11, %s970_s18 }
 0x7ed   :  { %p4867_p11 = por %p4866_p7, %p4865_p6 }
 0x7ef   :  { %p4869_p0 = por %p4868_p13, %p4867_p11 }
 0x7f1   :  { %p4870_p1 = pnand %p4869_p0, %p4863_p4 }
 0x7f3   :  { %4873 = shalt.err (!%p4870_p1)  }
 0x7f4   :  { %s7535_s10 = sld [smem:[#allocation166_spill]] }
 0x7fa   :  { %p7536_p2 = scmp.ne.s32.totalorder %s7535_s10, 0 }
 0x7fc   :  { %4885 = shalt.err (!%p7536_p2)  }
 0x7fd   :  { %s7537_s19 = sld [smem:[#allocation164_spill]]  ;;  %s3488_s8 = sshll.u32 %s981_s29, 4 }
 0x7fe   :  { %s983_s25 = scalar_lea.hbm %s7366_s1, %s3488_s8 }
 0x7ff   :  { %s4886_s5 = scalar_lea.hbm %s983_s25, 32  ;;  %p4889_p4 = scmp.lt.u32.totalorder %s983_s25, %s7366_s1 }
 0x800   :  { %p4887_p6 = scmp.ne.s32.totalorder %s983_s25, %s4886_s5  ;;  %p4890_p7 = scmp.lt.u32.totalorder %s5984_s2, %s4886_s5 }
 0x801   :  { %p4892_p13 = scmp.lt.u32.totalorder %s4886_s5, %s983_s25 }
 0x802   :  { %p4891_p11 = por %p4890_p7, %p4889_p4 }
 0x803   :  { %975 = dma.hbm_to_vmem [thread:$0]  %s970_s18, 32, %s7537_s19, [#allocation6 + $0xc], %s7473_s15, %s7473_s15, %s7472_s7 }
 0x804   :  { %p4893_p0 = por %p4892_p13, %p4891_p11 }
 0x806   :  { %p4894_p1 = pnand %p4893_p0, %p4887_p6 }
 0x808   :  { %4897 = shalt.err (!%p4894_p1)  }
 0x809   :  { %s7538_s26 = sld [smem:[#allocation167_spill]] }
 0x80f   :  { %p7539_p2 = scmp.ne.s32.totalorder %s7538_s26, 0 }
 0x811   :  { %4909 = shalt.err (!%p7539_p2)  }
 0x812   :  { %s7540_s9 = sld [smem:[#allocation165_spill]]  ;;  %v3514_v16 = vmul.f32 -1.442695, %v6578_v10  ;;  %s3489_s30 = sld [smem:[#allocation8 + $0x1e]]  ;;  %v1217_v19 = vmul.f32 %v6581_v14, %v6538_v35  ;;  %v1221_v20 = vpop.permute.xlu0 %1220 }
 0x813   :  { %s6680_s23 = sld [smem:[#allocation8 + $0x1f]] }
 0x814   :  { %3926 = vpow2.f32 %v3514_v16  ;;  %v6686_v21 = vadd.f32 %v1221_v20, %v1217_v19 }
 0x818   :  { %988 = dma.hbm_to_vmem [thread:$0]  %s983_s25, 32, %s7540_s9, [#allocation6 + $0xd], %s7473_s15, %s7473_s15, %s7472_s7 }
 0x819   :  { %s991_s22 = sshrl.u32 %s3489_s30, 3  ;;  %s992_s18 = sand.u32 7, %s3489_s30  }
 0x81a   :  { %s3490_s29 = sshll.u32 %s991_s22, 4  ;;  %s1004_s8 = sshrl.u32 %s6680_s23, 3 }
 0x81b   :  { %s994_s11 = sadd.s32 %s3490_s29, %s992_s18  ;;  %s1005_s24 = sand.u32 7, %s6680_s23  }
 0x81c   :  { %s3491_s12 = sshll.u32 %s994_s11, 4  ;;  %s3493_s20 = sshll.u32 %s1004_s8, 4 }
 0x81d   :  { %s996_s3 = scalar_lea.hbm %s7366_s1, %s3491_s12 }
 0x81e   :  { %v3927_v17 = vpop.eup %3926  ;;  %s4910_s9 = scalar_lea.hbm %s996_s3, 32  ;;  %p4913_p4 = scmp.lt.u32.totalorder %s996_s3, %s7366_s1 }
 0x81f   :  { %v1214_v18 = vadd.f32 1.0, %v3927_v17  ;;  %p4911_p6 = scmp.ne.s32.totalorder %s996_s3, %s4910_s9  ;;  %p4914_p7 = scmp.lt.u32.totalorder %s5984_s2, %s4910_s9 }
 0x820   :  { %p4916_p13 = scmp.lt.u32.totalorder %s4910_s9, %s996_s3 }
 0x821   :  { %3928 = vrcp.f32 %v1214_v18  ;;  %p4915_p11 = por %p4914_p7, %p4913_p4 }
 0x823   :  { %p4917_p0 = por %p4916_p13, %p4915_p11 }
 0x825   :  { %p4918_p1 = pnand %p4917_p0, %p4911_p6 }
 0x827   :  { %4921 = shalt.err (!%p4918_p1)  }
 0x828   :  { %s7541_s23 = sld [smem:[#allocation169_spill]] }
 0x82e   :  { %p7542_p2 = scmp.ne.s32.totalorder %s7541_s23, 0 }
 0x830   :  { %4933 = shalt.err (!%p7542_p2)  }
 0x831   :  { %s7543_s18 = sld [smem:[#allocation168_spill]]  ;;  %3930 = vtanh.f32 %v6686_v21  ;;  %s1007_s29 = sadd.s32 %s3493_s20, %s1005_s24 }
 0x832   :  { %s3494_s11 = sshll.u32 %s1007_s29, 4 }
 0x833   :  { %s1009_s9 = scalar_lea.hbm %s7366_s1, %s3494_s11 }
 0x834   :  { %s4934_s25 = scalar_lea.hbm %s1009_s9, 32  ;;  %p4937_p4 = scmp.lt.u32.totalorder %s1009_s9, %s7366_s1 }
 0x835   :  { %p4935_p6 = scmp.ne.s32.totalorder %s1009_s9, %s4934_s25  ;;  %p4938_p7 = scmp.lt.u32.totalorder %s5984_s2, %s4934_s25 }
 0x836   :  { %p4940_p13 = scmp.lt.u32.totalorder %s4934_s25, %s1009_s9 }
 0x837   :  { %1001 = dma.hbm_to_vmem [thread:$0]  %s996_s3, 32, %s7543_s18, [#allocation6 + $0xe], %s7473_s15, %s7473_s15, %s7472_s7 }
 0x838   :  { %p4939_p11 = por %p4938_p7, %p4937_p4 }
 0x83a   :  { %p4941_p0 = por %p4940_p13, %p4939_p11 }
 0x83c   :  { %p4942_p1 = pnand %p4941_p0, %p4935_p6 }
 0x83e   :  { %4945 = shalt.err (!%p4942_p1)  }
 0x83f   :  { %4957 = shalt.err (!%p6409_p9)  }
 0x840   :  { %s7545_s24 = sld [smem:[#allocation170_spill]]  ;;  %v3929_v22 = vpop.eup %3928 }
 0x841   :  { %v3931_v23 = vpop.eup %3930 }
 0x842   :  { %v1225_v24 = vmul.f32 %v3931_v23, %v3929_v22 }
 0x844   :  { %1227 = vrot.lane.b32.xlu1 %v1225_v24, %s7505_s21 }
 0x846   :  { %1014 = dma.hbm_to_vmem [thread:$0]  %s1009_s9, 32, %s7545_s24, [#allocation6 + $0xf], %s7473_s15, %s7473_s15, %s7472_s7 }
 0x8b6   :  { %v1228_v25 = vpop.permute.xlu1 %1227 }
 0x8b7   :  { %1230 = vst.msk [vmem:[#allocation5 + $0x10] sm:$0xff] %vm66_vm0, %v1228_v25 }
 0x8b8   :  { %5780 = dma.done.wait [#allocation6 + $0x8], 32 }
 0x8b9   :  { %5781 = vsyncadd [#allocation6 + $0x8], 4294967264 }
 0x8ba   :  { %5782 = dma.done.wait [#allocation6 + $0x9], 32 }
 0x8bb   :  { %5783 = vsyncadd [#allocation6 + $0x9], 4294967264 }
 0x8bc   :  { %5784 = dma.done.wait [#allocation6 + $0xa], 32 }
 0x8bd   :  { %5785 = vsyncadd [#allocation6 + $0xa], 4294967264 }
 0x8be   :  { %5786 = dma.done.wait [#allocation6 + $0xb], 32 }
 0x8bf   :  { %5787 = vsyncadd [#allocation6 + $0xb], 4294967264 }
 0x8c0   :  { %5788 = dma.done.wait [#allocation6 + $0xc], 32 }
 0x8c1   :  { %5789 = vsyncadd [#allocation6 + $0xc], 4294967264 }
 0x8c2   :  { %5790 = dma.done.wait [#allocation6 + $0xd], 32 }
 0x8c3   :  { %5791 = vsyncadd [#allocation6 + $0xd], 4294967264 }
 0x8c4   :  { %5792 = dma.done.wait [#allocation6 + $0xe], 32 }
 0x8c5   :  { %5793 = vsyncadd [#allocation6 + $0xe], 4294967264  ;;  %v1354_v26 = vpack.c.bf16 %v1225_v24, %v1225_v24 }
 0x8c6   :  { %5794 = dma.done.wait [#allocation6 + $0xf], 32 }
 0x8c7   :  { %5795 = vsyncadd [#allocation6 + $0xf], 4294967264  ;;  %1489 = vmatprep.mubr.bf16.mxu0 %v5878_v5  ;;  %1530 = vmatprep.mubr.bf16.mxu1 %v5878_v5  ;;  %v3932_v27 = vld [vmem:[#allocation9 + $0x4] ss:$16 sps:$4 sm:$0xff]   ;;  %v3934_v28 = vld [vmem:[#allocation9 + $0xc] ss:$16 sps:$4 sm:$0xff]  }
 0x8c8   :  { %1372 = vrot.lane.b32.xlu0 %v1354_v26, %s7505_s21  ;;  %1457 = vmatprep.subr.bf16.mxu0 %v3932_v27  ;;  %v3936_v29 = vld [vmem:[#allocation9] ss:$16 sps:$4 sm:$0xff]   ;;  %v3937_v30 = vld [vmem:[#allocation9 + $0x8] ss:$16 sps:$4 sm:$0xff]   ;;  %v3938_v31 = vld [vmem:[#allocation9 + $0x24] ss:$16 sps:$4 sm:$0xff]  }
 0x8c9   :  { %1498 = vmatprep.subr.bf16.mxu1 %v3934_v28  ;;  %1458 = vmatpush1.bf16.msra.mxu0 %v3936_v29  ;;  %v3940_v32 = vld [vmem:[#allocation9 + $0x2c] ss:$16 sps:$4 sm:$0xff]   ;;  %v3942_v33 = vld [vmem:[#allocation9 + $0x20] ss:$16 sps:$4 sm:$0xff]   ;;  %v3943_v34 = vld [vmem:[#allocation9 + $0x28] ss:$16 sps:$4 sm:$0xff]  }
 0x8ca   :  { %1499 = vmatpush1.bf16.msra.mxu1 %v3937_v30  ;;  %1459 = vmatprep.subr.bf16.mxu0 %v3938_v31  ;;  %v3944_v35 = vld [vmem:[#allocation9 + $0x44] ss:$16 sps:$4 sm:$0xff]   ;;  %v3946_v36 = vld [vmem:[#allocation9 + $0x4c] ss:$16 sps:$4 sm:$0xff]   ;;  %v3948_v37 = vld [vmem:[#allocation9 + $0x40] ss:$16 sps:$4 sm:$0xff]  }
 0x8cb   :  { %1500 = vmatprep.subr.bf16.mxu1 %v3940_v32  ;;  %v3949_v38 = vld [vmem:[#allocation9 + $0x48] ss:$16 sps:$4 sm:$0xff]   ;;  %v3950_v39 = vld [vmem:[#allocation9 + $0x64] ss:$16 sps:$4 sm:$0xff]   ;;  %v3952_v40 = vld [vmem:[#allocation9 + $0x6c] ss:$16 sps:$4 sm:$0xff]  }
 0x8cc   :  { %v3954_v41 = vld [vmem:[#allocation9 + $0x60] ss:$16 sps:$4 sm:$0xff]   ;;  %v3955_v42 = vld [vmem:[#allocation9 + $0x68] ss:$16 sps:$4 sm:$0xff]   ;;  %s3515_s20 = sld [smem:[#allocation8 + $0x20]]  ;;  %s3518_s22 = sld [smem:[#allocation8 + $0x21]] }
 0x8cd   :  { %1460 = vmatpush1.bf16.msra.mxu0 %v3942_v33  ;;  %v1247_v44 = vld [vmem:[#allocation2 + $0x10] sm:$0xff]  ;;  %v1248_v57 = vld [vmem:[#allocation2 + $0x18] sm:$0xff]  ;;  %s6733_s29 = sld [smem:[#allocation8 + $0x22]]  ;;  %s6735_s11 = sld [smem:[#allocation8 + $0x23]] }
 0x8ce   :  { %1501 = vmatpush1.bf16.msra.mxu1 %v3943_v34  ;;  %1461 = vmatprep.subr.bf16.mxu0 %v3944_v35  ;;  %s6737_s8 = sld [smem:[#allocation8 + $0x24]]  ;;  %s6739_s12 = sld [smem:[#allocation8 + $0x25]] }
 0x8cf   :  { %1502 = vmatprep.subr.bf16.mxu1 %v3946_v36 }
 0x8d1   :  { %1462 = vmatpush1.bf16.msra.mxu0 %v3948_v37 }
 0x8d2   :  { %1503 = vmatpush1.bf16.msra.mxu1 %v3949_v38  ;;  %1463 = vmatprep.subr.bf16.mxu0 %v3950_v39  ;;  %s1252_s9 = sshrl.u32 %s3515_s20, 3  ;;  %s1253_s25 = sand.u32 7, %s3515_s20  }
 0x8d3   :  { %1504 = vmatprep.subr.bf16.mxu1 %v3952_v40  ;;  %s3516_s5 = sshll.u32 %s1252_s9, 4  ;;  %s1265_s30 = sshrl.u32 %s3518_s22, 3 }
 0x8d4   :  { %s1255_s24 = sadd.s32 %s3516_s5, %s1253_s25  ;;  %s1266_s3 = sand.u32 7, %s3518_s22  }
 0x8d5   :  { %1464 = vmatpush1.bf16.msra.mxu0 %v3954_v41  ;;  %s3517_s18 = sshll.u32 %s1255_s24, 4  ;;  %s3519_s23 = sshll.u32 %s1265_s30, 4 }
 0x8d6   :  { %1505 = vmatpush1.bf16.msra.mxu1 %v3955_v42  ;;  %s1257_s10 = scalar_lea.hbm %s7366_s1, %s3517_s18  ;;  %s1268_s6 = sadd.s32 %s3519_s23, %s1266_s3 }
 0x8d7   :  { %s4958_s0 = scalar_lea.hbm %s1257_s10, 32  ;;  %p4961_p4 = scmp.lt.u32.totalorder %s1257_s10, %s7366_s1 }
 0x8d8   :  { %p4959_p6 = scmp.ne.s32.totalorder %s1257_s10, %s4958_s0  ;;  %p4962_p7 = scmp.lt.u32.totalorder %s5984_s2, %s4958_s0 }
 0x8d9   :  { %p4964_p13 = scmp.lt.u32.totalorder %s4958_s0, %s1257_s10 }
 0x8da   :  { %p4963_p11 = por %p4962_p7, %p4961_p4 }
 0x8dc   :  { %p4965_p0 = por %p4964_p13, %p4963_p11 }
 0x8de   :  { %p4966_p1 = pnand %p4965_p0, %p4959_p6 }
 0x93a   :  { %v1373_v43 = vpop.permute.xlu0 %1372 }
 0x93b   :  { %3555 = vmatmul.mubr.msk.bf16.vlgmr.msra.gmra.mrb[8].mxu0 %vm66_vm0, %v1373_v43  ;;  %3556 = vmatmul.mubr.msk.bf16.vlgmr.msra.gmra.mrb[16].mxu1 %vm66_vm0, %v1373_v43 }
 0xa0e   :  { %v1491_v45 = vpop.f32.mrb[8].mxu0  ;;  %v1532_v46 = vpop.f32.mrb[16].mxu1 }
 0xa0f   :  { %v1539_v47 = vsel %vm192_vm1, %v1491_v45, %v1532_v46  ;;  %v1493_v48 = vpop.f32.mrb[9].mxu0  ;;  %v1534_v49 = vpop.f32.mrb[17].mxu1 }
 0xa10   :  { %v1541_v50 = vadd.f32 %v1539_v47, %v1247_v44  ;;  %v1540_v51 = vsel %vm192_vm1, %v1493_v48, %v1534_v49  ;;  %v1495_v52 = vpop.f32.mrb[10].mxu0  ;;  %v1536_v53 = vpop.f32.mrb[18].mxu1 }
 0xa11   :  { %v1496_v54 = vpop.f32.mrb[11].mxu0  ;;  %v1537_v55 = vpop.f32.mrb[19].mxu1  ;;  %v6726_v58 = vadd.f32 %v1540_v51, %v1248_v57 }
 0xa12   :  { %v3557_v56 = vmul.f32 -1.442695, %v1541_v50 }
 0xa14   :  { %3956 = vpow2.f32 %v3557_v56 }
 0xa15   :  { %3958 = vtanh.f32 %v6726_v58 }
 0xa1e   :  { %v3957_v59 = vpop.eup %3956 }
 0xa1f   :  { %v1546_v60 = vadd.f32 1.0, %v3957_v59  ;;  %v3959_v61 = vpop.eup %3958 }
 0xa21   :  { %3960 = vrcp.f32 %v1546_v60 }
 0xa2b   :  { %v6729_v62 = vpop.eup %3960 }
 0xa2c   :  { %v1557_v63 = vmul.f32 %v6729_v62, %v3959_v61 }
 0xa2e   :  { %1559 = vrot.lane.b32.xlu0 %v1557_v63, %s7505_s21 }
 0xa2f   :  { %4969 = shalt.err (!%p4966_p1)  }
 0xa30   :  { %4981 = shalt.err (!%p5998_p12)  }
 0xa31   :  { %1262 = dma.hbm_to_vmem [thread:$0]  %s1257_s10, 32, %s5963_s13, [#allocation6], %s7473_s15, %s7473_s15, %s7472_s7 }
 0xa32   :  { %s3520_s19 = sshll.u32 %s1268_s6, 4  ;;  %s1278_s27 = sshrl.u32 %s6733_s29, 3 }
 0xa33   :  { %s1270_s0 = scalar_lea.hbm %s7366_s1, %s3520_s19  ;;  %s1279_s23 = sand.u32 7, %s6733_s29  }
 0xa34   :  { %s4982_s18 = scalar_lea.hbm %s1270_s0, 32  ;;  %p4985_p4 = scmp.lt.u32.totalorder %s1270_s0, %s7366_s1 }
 0xa35   :  { %p4983_p6 = scmp.ne.s32.totalorder %s1270_s0, %s4982_s18  ;;  %p4986_p7 = scmp.lt.u32.totalorder %s5984_s2, %s4982_s18 }
 0xa36   :  { %p4988_p13 = scmp.lt.u32.totalorder %s4982_s18, %s1270_s0 }
 0xa37   :  { %p4987_p11 = por %p4986_p7, %p4985_p4 }
 0xa39   :  { %p4989_p0 = por %p4988_p13, %p4987_p11 }
 0xa3b   :  { %p4990_p1 = pnand %p4989_p0, %p4983_p6 }
 0xa3d   :  { %4993 = shalt.err (!%p4990_p1)  }
 0xa3e   :  { %5005 = shalt.err (!%p6022_p10)  }
 0xa3f   :  { %1275 = dma.hbm_to_vmem [thread:$0]  %s1270_s0, 32, %s5968_s16, [#allocation6 + $0x1], %s7473_s15, %s7473_s15, %s7472_s7 }
 0xa40   :  { %s3522_s6 = sshll.u32 %s1278_s27, 4  ;;  %s1291_s10 = sshrl.u32 %s6735_s11, 3 }
 0xa41   :  { %s1281_s20 = sadd.s32 %s3522_s6, %s1279_s23  ;;  %s1292_s22 = sand.u32 7, %s6735_s11  }
 0xa42   :  { %s3523_s29 = sshll.u32 %s1281_s20, 4  ;;  %s3525_s9 = sshll.u32 %s1291_s10, 4 }
 0xa43   :  { %s1283_s30 = scalar_lea.hbm %s7366_s1, %s3523_s29  ;;  %s1294_s19 = sadd.s32 %s3525_s9, %s1292_s22 }
 0xa44   :  { %s5006_s28 = scalar_lea.hbm %s1283_s30, 32  ;;  %p5009_p4 = scmp.lt.u32.totalorder %s1283_s30, %s7366_s1 }
 0xa45   :  { %p5007_p6 = scmp.ne.s32.totalorder %s1283_s30, %s5006_s28  ;;  %p5010_p7 = scmp.lt.u32.totalorder %s5984_s2, %s5006_s28 }
 0xa46   :  { %p5012_p13 = scmp.lt.u32.totalorder %s5006_s28, %s1283_s30 }
 0xa47   :  { %p5011_p11 = por %p5010_p7, %p5009_p4 }
 0xa49   :  { %p5013_p0 = por %p5012_p13, %p5011_p11 }
 0xa4b   :  { %p5014_p1 = pnand %p5013_p0, %p5007_p6 }
 0xa4d   :  { %5017 = shalt.err (!%p5014_p1)  }
 0xa4e   :  { %5029 = shalt.err (!%p7507_p8)  }
 0xa4f   :  { %s7547_s27 = sld [smem:[#allocation145_spill]]  ;;  %s3526_s0 = sshll.u32 %s1294_s19, 4 }
 0xa50   :  { %s1304_s23 = sshrl.u32 %s6737_s8, 3  ;;  %s1296_s6 = scalar_lea.hbm %s7366_s1, %s3526_s0 }
 0xa51   :  { %s1305_s10 = sand.u32 7, %s6737_s8   ;;  %s5030_s20 = scalar_lea.hbm %s1296_s6, 32 }
 0xa52   :  { %p5031_p6 = scmp.ne.s32.totalorder %s1296_s6, %s5030_s20  ;;  %p5033_p4 = scmp.lt.u32.totalorder %s1296_s6, %s7366_s1 }
 0xa53   :  { %p5034_p7 = scmp.lt.u32.totalorder %s5984_s2, %s5030_s20  ;;  %p5036_p13 = scmp.lt.u32.totalorder %s5030_s20, %s1296_s6 }
 0xa55   :  { %1288 = dma.hbm_to_vmem [thread:$0]  %s1283_s30, 32, %s7547_s27, [#allocation6 + $0x2], %s7473_s15, %s7473_s15, %s7472_s7 }
 0xa56   :  { %p5035_p11 = por %p5034_p7, %p5033_p4 }
 0xa58   :  { %p5037_p0 = por %p5036_p13, %p5035_p11 }
 0xa5a   :  { %p5038_p1 = pnand %p5037_p0, %p5031_p6 }
 0xa5c   :  { %5041 = shalt.err (!%p5038_p1)  }
 0xa5d   :  { %5053 = shalt.err (!%p7510_p5)  }
 0xa5e   :  { %s7549_s25 = sld [smem:[#allocation147_spill]]  ;;  %s3528_s8 = sshll.u32 %s1304_s23, 4 }
 0xa5f   :  { %s1317_s5 = sshrl.u32 %s6739_s12, 3  ;;  %s1307_s30 = sadd.s32 %s3528_s8, %s1305_s10 }
 0xa60   :  { %s1318_s19 = sand.u32 7, %s6739_s12   ;;  %s3529_s28 = sshll.u32 %s1307_s30, 4 }
 0xa61   :  { %s3531_s26 = sshll.u32 %s1317_s5, 4  ;;  %s1309_s3 = scalar_lea.hbm %s7366_s1, %s3529_s28 }
 0xa62   :  { %s1320_s24 = sadd.s32 %s3531_s26, %s1318_s19  ;;  %s5054_s20 = scalar_lea.hbm %s1309_s3, 32 }
 0xa63   :  { %p5055_p6 = scmp.ne.s32.totalorder %s1309_s3, %s5054_s20  ;;  %p5057_p4 = scmp.lt.u32.totalorder %s1309_s3, %s7366_s1 }
 0xa64   :  { %1301 = dma.hbm_to_vmem [thread:$0]  %s1296_s6, 32, %s7549_s25, [#allocation6 + $0x3], %s7473_s15, %s7473_s15, %s7472_s7 }
 0xa65   :  { %p5058_p7 = scmp.lt.u32.totalorder %s5984_s2, %s5054_s20  ;;  %p5060_p13 = scmp.lt.u32.totalorder %s5054_s20, %s1309_s3 }
 0xa67   :  { %p5059_p11 = por %p5058_p7, %p5057_p4 }
 0xa69   :  { %p5061_p0 = por %p5060_p13, %p5059_p11 }
 0xa6b   :  { %p5062_p1 = pnand %p5061_p0, %p5055_p6 }
 0xa6d   :  { %5065 = shalt.err (!%p5062_p1)  }
 0xa6e   :  { %5077 = shalt.err (!%p7513_p3)  }
 0xa6f   :  { %s7551_s23 = sld [smem:[#allocation149_spill]]  ;;  %s3532_s6 = sshll.u32 %s1320_s24, 4 }
 0xa70   :  { %s1322_s5 = scalar_lea.hbm %s7366_s1, %s3532_s6 }
 0xa71   :  { %s5078_s30 = scalar_lea.hbm %s1322_s5, 32  ;;  %p5081_p6 = scmp.lt.u32.totalorder %s1322_s5, %s7366_s1 }
 0xa72   :  { %p5079_p4 = scmp.ne.s32.totalorder %s1322_s5, %s5078_s30  ;;  %p5082_p7 = scmp.lt.u32.totalorder %s5984_s2, %s5078_s30 }
 0xa73   :  { %p5084_p13 = scmp.lt.u32.totalorder %s5078_s30, %s1322_s5 }
 0xa74   :  { %p5083_p11 = por %p5082_p7, %p5081_p6 }
 0xa75   :  { %1314 = dma.hbm_to_vmem [thread:$0]  %s1309_s3, 32, %s7551_s23, [#allocation6 + $0x4], %s7473_s15, %s7473_s15, %s7472_s7 }
 0xa76   :  { %p5085_p0 = por %p5084_p13, %p5083_p11 }
 0xa78   :  { %p5086_p1 = pnand %p5085_p0, %p5079_p4 }
 0xa7a   :  { %5089 = shalt.err (!%p5086_p1)  }
 0xa7b   :  { %s7552_s26 = sld [smem:[#allocation152_spill]] }
 0xa81   :  { %p7553_p3 = scmp.ne.s32.totalorder %s7552_s26, 0 }
 0xa83   :  { %5101 = shalt.err (!%p7553_p3)  }
 0xa84   :  { %s7554_s18 = sld [smem:[#allocation150_spill]]  ;;  %v3558_v0 = vmul.f32 -1.442695, %v6726_v58  ;;  %s6828_s3 = sld [smem:[#allocation8 + $0x27]]  ;;  %v1556_v4 = vmul.f32 %v6729_v62, %v6686_v21 }
 0xa85   :  { %s3533_s0 = sld [smem:[#allocation8 + $0x26]] }
 0xa86   :  { %3962 = vpow2.f32 %v3558_v0 }
 0xa8a   :  { %1327 = dma.hbm_to_vmem [thread:$0]  %s1322_s5, 32, %s7554_s18, [#allocation6 + $0x5], %s7473_s15, %s7473_s15, %s7472_s7 }
 0xa8b   :  { %s1330_s24 = sshrl.u32 %s3533_s0, 3  ;;  %s1331_s20 = sand.u32 7, %s3533_s0  }
 0xa8c   :  { %s3534_s22 = sshll.u32 %s1330_s24, 4  ;;  %s1343_s6 = sshrl.u32 %s6828_s3, 3 }
 0xa8d   :  { %s1333_s29 = sadd.s32 %s3534_s22, %s1331_s20  ;;  %s1344_s8 = sand.u32 7, %s6828_s3  }
 0xa8e   :  { %s3535_s10 = sshll.u32 %s1333_s29, 4  ;;  %s3537_s28 = sshll.u32 %s1343_s6, 4 }
 0xa8f   :  { %s1335_s19 = scalar_lea.hbm %s7366_s1, %s3535_s10 }
 0xa90   :  { %v3963_v1 = vpop.eup %3962  ;;  %s5102_s18 = scalar_lea.hbm %s1335_s19, 32  ;;  %p5105_p6 = scmp.lt.u32.totalorder %s1335_s19, %s7366_s1 }
 0xa91   :  { %v1553_v3 = vadd.f32 1.0, %v3963_v1  ;;  %p5103_p4 = scmp.ne.s32.totalorder %s1335_s19, %s5102_s18  ;;  %p5106_p7 = scmp.lt.u32.totalorder %s5984_s2, %s5102_s18 }
 0xa92   :  { %p5108_p13 = scmp.lt.u32.totalorder %s5102_s18, %s1335_s19 }
 0xa93   :  { %3964 = vrcp.f32 %v1553_v3  ;;  %p5107_p11 = por %p5106_p7, %p5105_p6 }
 0xa95   :  { %p5109_p0 = por %p5108_p13, %p5107_p11 }
 0xa97   :  { %p5110_p1 = pnand %p5109_p0, %p5103_p4 }
 0xaa0   :  { %v1560_v6 = vpop.permute.xlu0 %1559 }
 0xaa1   :  { %v6834_v7 = vadd.f32 %v1560_v6, %v1556_v4 }
 0xaa2   :  { %5113 = shalt.err (!%p5110_p1)  }
 0xaa3   :  { %s7555_s3 = sld [smem:[#allocation154_spill]] }
 0xaa9   :  { %p7556_p3 = scmp.ne.s32.totalorder %s7555_s3, 0 }
 0xaab   :  { %5125 = shalt.err (!%p7556_p3)  }
 0xaac   :  { %s7557_s20 = sld [smem:[#allocation153_spill]]  ;;  %3966 = vtanh.f32 %v6834_v7  ;;  %s1346_s22 = sadd.s32 %s3537_s28, %s1344_s8 }
 0xaad   :  { %s3538_s29 = sshll.u32 %s1346_s22, 4 }
 0xaae   :  { %s1348_s18 = scalar_lea.hbm %s7366_s1, %s3538_s29 }
 0xaaf   :  { %s5126_s5 = scalar_lea.hbm %s1348_s18, 32  ;;  %p5129_p6 = scmp.lt.u32.totalorder %s1348_s18, %s7366_s1 }
 0xab0   :  { %p5127_p4 = scmp.ne.s32.totalorder %s1348_s18, %s5126_s5  ;;  %p5130_p7 = scmp.lt.u32.totalorder %s5984_s2, %s5126_s5 }
 0xab1   :  { %p5132_p13 = scmp.lt.u32.totalorder %s5126_s5, %s1348_s18 }
 0xab2   :  { %1340 = dma.hbm_to_vmem [thread:$0]  %s1335_s19, 32, %s7557_s20, [#allocation6 + $0x6], %s7473_s15, %s7473_s15, %s7472_s7 }
 0xab3   :  { %p5131_p11 = por %p5130_p7, %p5129_p6 }
 0xab5   :  { %p5133_p0 = por %p5132_p13, %p5131_p11 }
 0xab7   :  { %p5134_p1 = pnand %p5133_p0, %p5127_p4 }
 0xab9   :  { %5137 = shalt.err (!%p5134_p1)  }
 0xaba   :  { %s7558_s19 = sld [smem:[#allocation156_spill]] }
 0xac0   :  { %p7559_p3 = scmp.ne.s32.totalorder %s7558_s19, 0 }
 0xac2   :  { %5149 = shalt.err (!%p7559_p3)  }
 0xac3   :  { %s7560_s8 = sld [smem:[#allocation155_spill]]  ;;  %v3965_v8 = vpop.eup %3964 }
 0xac4   :  { %v3967_v9 = vpop.eup %3966 }
 0xac5   :  { %v1564_v10 = vmul.f32 %v3967_v9, %v3965_v8 }
 0xac7   :  { %1566 = vrot.lane.b32.xlu1 %v1564_v10, %s7505_s21 }
 0xac9   :  { %1353 = dma.hbm_to_vmem [thread:$0]  %s1348_s18, 32, %s7560_s8, [#allocation6 + $0x7], %s7473_s15, %s7473_s15, %s7472_s7 }
 0xb39   :  { %v1567_v11 = vpop.permute.xlu1 %1566 }
 0xb3a   :  { %1569 = vst.msk [vmem:[#allocation5 + $0x18] sm:$0xff] %vm66_vm0, %v1567_v11 }
 0xb3b   :  { %5796 = dma.done.wait [#allocation6], 32 }
 0xb3c   :  { %5797 = vsyncadd [#allocation6], 4294967264 }
 0xb3d   :  { %5798 = dma.done.wait [#allocation6 + $0x1], 32 }
 0xb3e   :  { %5799 = vsyncadd [#allocation6 + $0x1], 4294967264 }
 0xb3f   :  { %5800 = dma.done.wait [#allocation6 + $0x2], 32 }
 0xb40   :  { %5801 = vsyncadd [#allocation6 + $0x2], 4294967264 }
 0xb41   :  { %5802 = dma.done.wait [#allocation6 + $0x3], 32 }
 0xb42   :  { %5803 = vsyncadd [#allocation6 + $0x3], 4294967264 }
 0xb43   :  { %5804 = dma.done.wait [#allocation6 + $0x4], 32 }
 0xb44   :  { %5805 = vsyncadd [#allocation6 + $0x4], 4294967264 }
 0xb45   :  { %5806 = dma.done.wait [#allocation6 + $0x5], 32 }
 0xb46   :  { %5807 = vsyncadd [#allocation6 + $0x5], 4294967264 }
 0xb47   :  { %5808 = dma.done.wait [#allocation6 + $0x6], 32 }
 0xb48   :  { %5809 = vsyncadd [#allocation6 + $0x6], 4294967264  ;;  %v1693_v12 = vpack.c.bf16 %v1564_v10, %v1564_v10 }
 0xb49   :  { %5810 = dma.done.wait [#allocation6 + $0x7], 32 }
 0xb4a   :  { %5811 = vsyncadd [#allocation6 + $0x7], 4294967264  ;;  %1828 = vmatprep.mubr.bf16.mxu0 %v5878_v5  ;;  %1869 = vmatprep.mubr.bf16.mxu1 %v5878_v5  ;;  %v3968_v13 = vld [vmem:[#allocation9 + $0x4] ss:$16 sps:$4 sm:$0xff]   ;;  %v3970_v14 = vld [vmem:[#allocation9 + $0xc] ss:$16 sps:$4 sm:$0xff]  }
 0xb4b   :  { %1711 = vrot.lane.b32.xlu0 %v1693_v12, %s7505_s21  ;;  %1796 = vmatprep.subr.bf16.mxu0 %v3968_v13  ;;  %v3972_v15 = vld [vmem:[#allocation9] ss:$16 sps:$4 sm:$0xff]   ;;  %v3973_v16 = vld [vmem:[#allocation9 + $0x8] ss:$16 sps:$4 sm:$0xff]   ;;  %v3974_v17 = vld [vmem:[#allocation9 + $0x24] ss:$16 sps:$4 sm:$0xff]  }
 0xb4c   :  { %1837 = vmatprep.subr.bf16.mxu1 %v3970_v14  ;;  %1797 = vmatpush1.bf16.msra.mxu0 %v3972_v15  ;;  %v3976_v18 = vld [vmem:[#allocation9 + $0x2c] ss:$16 sps:$4 sm:$0xff]   ;;  %v3978_v19 = vld [vmem:[#allocation9 + $0x20] ss:$16 sps:$4 sm:$0xff]   ;;  %v3979_v20 = vld [vmem:[#allocation9 + $0x28] ss:$16 sps:$4 sm:$0xff]  }
 0xb4d   :  { %1838 = vmatpush1.bf16.msra.mxu1 %v3973_v16  ;;  %1798 = vmatprep.subr.bf16.mxu0 %v3974_v17  ;;  %v3980_v21 = vld [vmem:[#allocation9 + $0x44] ss:$16 sps:$4 sm:$0xff]   ;;  %v3982_v22 = vld [vmem:[#allocation9 + $0x4c] ss:$16 sps:$4 sm:$0xff]   ;;  %v3984_v23 = vld [vmem:[#allocation9 + $0x40] ss:$16 sps:$4 sm:$0xff]  }
 0xb4e   :  { %1839 = vmatprep.subr.bf16.mxu1 %v3976_v18  ;;  %v3985_v24 = vld [vmem:[#allocation9 + $0x48] ss:$16 sps:$4 sm:$0xff]   ;;  %v3986_v25 = vld [vmem:[#allocation9 + $0x64] ss:$16 sps:$4 sm:$0xff]   ;;  %v3988_v26 = vld [vmem:[#allocation9 + $0x6c] ss:$16 sps:$4 sm:$0xff]  }
 0xb4f   :  { %v3990_v27 = vld [vmem:[#allocation9 + $0x60] ss:$16 sps:$4 sm:$0xff]   ;;  %v3991_v28 = vld [vmem:[#allocation9 + $0x68] ss:$16 sps:$4 sm:$0xff]   ;;  %s3559_s28 = sld [smem:[#allocation8 + $0x28]]  ;;  %s3562_s24 = sld [smem:[#allocation8 + $0x29]] }
 0xb50   :  { %1799 = vmatpush1.bf16.msra.mxu0 %v3978_v19  ;;  %v1586_v30 = vld [vmem:[#allocation2] sm:$0xff]  ;;  %v1587_v43 = vld [vmem:[#allocation2 + $0x8] sm:$0xff]  ;;  %s6881_s22 = sld [smem:[#allocation8 + $0x2a]]  ;;  %s6883_s29 = sld [smem:[#allocation8 + $0x2b]] }
 0xb51   :  { %1840 = vmatpush1.bf16.msra.mxu1 %v3979_v20  ;;  %1800 = vmatprep.subr.bf16.mxu0 %v3980_v21  ;;  %s6885_s6 = sld [smem:[#allocation8 + $0x2c]]  ;;  %s6887_s10 = sld [smem:[#allocation8 + $0x2d]] }
 0xb52   :  { %1841 = vmatprep.subr.bf16.mxu1 %v3982_v22 }
 0xb54   :  { %1801 = vmatpush1.bf16.msra.mxu0 %v3984_v23 }
 0xb55   :  { %1842 = vmatpush1.bf16.msra.mxu1 %v3985_v24  ;;  %1802 = vmatprep.subr.bf16.mxu0 %v3986_v25  ;;  %s1591_s18 = sshrl.u32 %s3559_s28, 3  ;;  %s1592_s5 = sand.u32 7, %s3559_s28  }
 0xb56   :  { %1843 = vmatprep.subr.bf16.mxu1 %v3988_v26  ;;  %s3560_s30 = sshll.u32 %s1591_s18, 4  ;;  %s1604_s0 = sshrl.u32 %s3562_s24, 3 }
 0xb57   :  { %s1594_s8 = sadd.s32 %s3560_s30, %s1592_s5  ;;  %s1605_s19 = sand.u32 7, %s3562_s24  }
 0xb58   :  { %1803 = vmatpush1.bf16.msra.mxu0 %v3990_v27  ;;  %s3561_s20 = sshll.u32 %s1594_s8, 4  ;;  %s3563_s3 = sshll.u32 %s1604_s0, 4 }
 0xb59   :  { %1844 = vmatpush1.bf16.msra.mxu1 %v3991_v28  ;;  %s1596_s12 = scalar_lea.hbm %s7366_s1, %s3561_s20  ;;  %s1607_s25 = sadd.s32 %s3563_s3, %s1605_s19 }
 0xb5a   :  { %s5150_s9 = scalar_lea.hbm %s1596_s12, 32  ;;  %p5153_p6 = scmp.lt.u32.totalorder %s1596_s12, %s7366_s1 }
 0xb5b   :  { %p5151_p4 = scmp.ne.s32.totalorder %s1596_s12, %s5150_s9  ;;  %p5154_p7 = scmp.lt.u32.totalorder %s5984_s2, %s5150_s9 }
 0xb5c   :  { %p5156_p13 = scmp.lt.u32.totalorder %s5150_s9, %s1596_s12 }
 0xb5d   :  { %p5155_p11 = por %p5154_p7, %p5153_p6 }
 0xb5f   :  { %p5157_p0 = por %p5156_p13, %p5155_p11 }
 0xb61   :  { %p5158_p1 = pnand %p5157_p0, %p5151_p4 }
 0xbbd   :  { %v1712_v29 = vpop.permute.xlu0 %1711 }
 0xbbe   :  { %3599 = vmatmul.mubr.msk.bf16.vlgmr.msra.gmra.mrb[12].mxu0 %vm66_vm0, %v1712_v29  ;;  %3600 = vmatmul.mubr.msk.bf16.vlgmr.msra.gmra.mrb[20].mxu1 %vm66_vm0, %v1712_v29 }
 0xc91   :  { %v1830_v31 = vpop.f32.mrb[12].mxu0  ;;  %v1871_v32 = vpop.f32.mrb[20].mxu1 }
 0xc92   :  { %v1878_v33 = vsel %vm192_vm1, %v1830_v31, %v1871_v32  ;;  %v1832_v34 = vpop.f32.mrb[13].mxu0  ;;  %v1873_v35 = vpop.f32.mrb[21].mxu1 }
 0xc93   :  { %v1880_v36 = vadd.f32 %v1878_v33, %v1586_v30  ;;  %v1879_v37 = vsel %vm192_vm1, %v1832_v34, %v1873_v35  ;;  %v1834_v38 = vpop.f32.mrb[14].mxu0  ;;  %v1875_v39 = vpop.f32.mrb[22].mxu1 }
 0xc94   :  { %v1835_v40 = vpop.f32.mrb[15].mxu0  ;;  %v1876_v41 = vpop.f32.mrb[23].mxu1  ;;  %v6874_v44 = vadd.f32 %v1879_v37, %v1587_v43 }
 0xc95   :  { %v3601_v42 = vmul.f32 -1.442695, %v1880_v36 }
 0xc97   :  { %3992 = vpow2.f32 %v3601_v42 }
 0xc98   :  { %3994 = vtanh.f32 %v6874_v44 }
 0xca1   :  { %v3993_v45 = vpop.eup %3992 }
 0xca2   :  { %v1885_v46 = vadd.f32 1.0, %v3993_v45  ;;  %v3995_v47 = vpop.eup %3994 }
 0xca4   :  { %3996 = vrcp.f32 %v1885_v46 }
 0xcae   :  { %v6877_v48 = vpop.eup %3996 }
 0xcaf   :  { %v1896_v49 = vmul.f32 %v6877_v48, %v3995_v47 }
 0xcb1   :  { %1898 = vrot.lane.b32.xlu0 %v1896_v49, %s7505_s21 }
 0xcb2   :  { %5161 = shalt.err (!%p5158_p1)  }
 0xcb3   :  { %p7561_p3 = scmp.ne.s32.totalorder %s7484_s17, 0 }
 0xcb5   :  { %5173 = shalt.err (!%p7561_p3)  }
 0xcb6   :  { %s7562_s23 = sld [smem:[#allocation157_spill]]  ;;  %s3564_s26 = sshll.u32 %s1607_s25, 4 }
 0xcb7   :  { %s1617_s11 = sshrl.u32 %s6881_s22, 3  ;;  %s1609_s9 = scalar_lea.hbm %s7366_s1, %s3564_s26 }
 0xcb8   :  { %s1618_s20 = sand.u32 7, %s6881_s22   ;;  %s5174_s19 = scalar_lea.hbm %s1609_s9, 32 }
 0xcb9   :  { %p5175_p4 = scmp.ne.s32.totalorder %s1609_s9, %s5174_s19  ;;  %p5177_p6 = scmp.lt.u32.totalorder %s1609_s9, %s7366_s1 }
 0xcba   :  { %p5178_p7 = scmp.lt.u32.totalorder %s5984_s2, %s5174_s19  ;;  %p5180_p13 = scmp.lt.u32.totalorder %s5174_s19, %s1609_s9 }
 0xcbc   :  { %1601 = dma.hbm_to_vmem [thread:$0]  %s1596_s12, 32, %s7562_s23, [#allocation6 + $0x8], %s7473_s15, %s7473_s15, %s7472_s7 }
 0xcbd   :  { %p5179_p11 = por %p5178_p7, %p5177_p6 }
 0xcbf   :  { %p5181_p0 = por %p5180_p13, %p5179_p11 }
 0xcc1   :  { %p5182_p1 = pnand %p5181_p0, %p5175_p4 }
 0xcc3   :  { %5185 = shalt.err (!%p5182_p1)  }
 0xcc4   :  { %s7563_s12 = sld [smem:[#allocation159_spill]] }
 0xcca   :  { %p7564_p3 = scmp.ne.s32.totalorder %s7563_s12, 0 }
 0xccc   :  { %5197 = shalt.err (!%p7564_p3)  }
 0xccd   :  { %s7565_s25 = sld [smem:[#allocation158_spill]]  ;;  %s3566_s24 = sshll.u32 %s1617_s11, 4 }
 0xcce   :  { %s1630_s22 = sshrl.u32 %s6883_s29, 3  ;;  %s1620_s18 = sadd.s32 %s3566_s24, %s1618_s20 }
 0xccf   :  { %s1631_s5 = sand.u32 7, %s6883_s29   ;;  %s3567_s30 = sshll.u32 %s1620_s18, 4 }
 0xcd0   :  { %s3569_s0 = sshll.u32 %s1630_s22, 4  ;;  %s1622_s3 = scalar_lea.hbm %s7366_s1, %s3567_s30 }
 0xcd1   :  { %s1633_s19 = sadd.s32 %s3569_s0, %s1631_s5  ;;  %s5198_s8 = scalar_lea.hbm %s1622_s3, 32 }
 0xcd2   :  { %p5199_p4 = scmp.ne.s32.totalorder %s1622_s3, %s5198_s8  ;;  %p5201_p6 = scmp.lt.u32.totalorder %s1622_s3, %s7366_s1 }
 0xcd3   :  { %1614 = dma.hbm_to_vmem [thread:$0]  %s1609_s9, 32, %s7565_s25, [#allocation6 + $0x9], %s7473_s15, %s7473_s15, %s7472_s7 }
 0xcd4   :  { %p5202_p7 = scmp.lt.u32.totalorder %s5984_s2, %s5198_s8  ;;  %p5204_p13 = scmp.lt.u32.totalorder %s5198_s8, %s1622_s3 }
 0xcd6   :  { %p5203_p11 = por %p5202_p7, %p5201_p6 }
 0xcd8   :  { %p5205_p0 = por %p5204_p13, %p5203_p11 }
 0xcda   :  { %p5206_p1 = pnand %p5205_p0, %p5199_p4 }
 0xcdc   :  { %5209 = shalt.err (!%p5206_p1)  }
 0xcdd   :  { %s7566_s29 = sld [smem:[#allocation161_spill]] }
 0xce3   :  { %p7567_p3 = scmp.ne.s32.totalorder %s7566_s29, 0 }
 0xce5   :  { %5221 = shalt.err (!%p7567_p3)  }
 0xce6   :  { %s7568_s11 = sld [smem:[#allocation160_spill]]  ;;  %s3570_s9 = sshll.u32 %s1633_s19, 4 }
 0xce7   :  { %s1643_s20 = sshrl.u32 %s6885_s6, 3  ;;  %s1635_s22 = scalar_lea.hbm %s7366_s1, %s3570_s9 }
 0xce8   :  { %s1644_s18 = sand.u32 7, %s6885_s6   ;;  %s5222_s5 = scalar_lea.hbm %s1635_s22, 32 }
 0xce9   :  { %p5223_p4 = scmp.ne.s32.totalorder %s1635_s22, %s5222_s5  ;;  %p5225_p6 = scmp.lt.u32.totalorder %s1635_s22, %s7366_s1 }
 0xcea   :  { %p5226_p7 = scmp.lt.u32.totalorder %s5984_s2, %s5222_s5  ;;  %p5228_p13 = scmp.lt.u32.totalorder %s5222_s5, %s1635_s22 }
 0xcec   :  { %1627 = dma.hbm_to_vmem [thread:$0]  %s1622_s3, 32, %s7568_s11, [#allocation6 + $0xa], %s7473_s15, %s7473_s15, %s7472_s7 }
 0xced   :  { %p5227_p11 = por %p5226_p7, %p5225_p6 }
 0xcef   :  { %p5229_p0 = por %p5228_p13, %p5227_p11 }
 0xcf1   :  { %p5230_p1 = pnand %p5229_p0, %p5223_p4 }
 0xcf3   :  { %5233 = shalt.err (!%p5230_p1)  }
 0xcf4   :  { %s7569_s26 = sld [smem:[#allocation163_spill]] }
 0xcfa   :  { %p7570_p3 = scmp.ne.s32.totalorder %s7569_s26, 0 }
 0xcfc   :  { %5245 = shalt.err (!%p7570_p3)  }
 0xcfd   :  { %s7571_s27 = sld [smem:[#allocation162_spill]]  ;;  %s3572_s6 = sshll.u32 %s1643_s20, 4 }
 0xcfe   :  { %s1656_s3 = sshrl.u32 %s6887_s10, 3  ;;  %s1646_s19 = sadd.s32 %s3572_s6, %s1644_s18 }
 0xcff   :  { %s1657_s8 = sand.u32 7, %s6887_s10   ;;  %s3573_s28 = sshll.u32 %s1646_s19, 4 }
 0xd00   :  { %s3575_s9 = sshll.u32 %s1656_s3, 4  ;;  %s1648_s5 = scalar_lea.hbm %s7366_s1, %s3573_s28 }
 0xd01   :  { %s1659_s30 = sadd.s32 %s3575_s9, %s1657_s8  ;;  %s5246_s0 = scalar_lea.hbm %s1648_s5, 32 }
 0xd02   :  { %p5247_p4 = scmp.ne.s32.totalorder %s1648_s5, %s5246_s0  ;;  %p5249_p6 = scmp.lt.u32.totalorder %s1648_s5, %s7366_s1 }
 0xd03   :  { %1640 = dma.hbm_to_vmem [thread:$0]  %s1635_s22, 32, %s7571_s27, [#allocation6 + $0xb], %s7473_s15, %s7473_s15, %s7472_s7 }
 0xd04   :  { %p5250_p7 = scmp.lt.u32.totalorder %s5984_s2, %s5246_s0  ;;  %p5252_p13 = scmp.lt.u32.totalorder %s5246_s0, %s1648_s5 }
 0xd06   :  { %p5251_p11 = por %p5250_p7, %p5249_p6 }
 0xd08   :  { %p5253_p0 = por %p5252_p13, %p5251_p11 }
 0xd0a   :  { %p5254_p1 = pnand %p5253_p0, %p5247_p4 }
 0xd0c   :  { %5257 = shalt.err (!%p5254_p1)  }
 0xd0d   :  { %s7572_s10 = sld [smem:[#allocation166_spill]] }
 0xd13   :  { %p7573_p3 = scmp.ne.s32.totalorder %s7572_s10, 0 }
 0xd15   :  { %5269 = shalt.err (!%p7573_p3)  }
 0xd16   :  { %s7574_s20 = sld [smem:[#allocation164_spill]]  ;;  %s3576_s22 = sshll.u32 %s1659_s30, 4 }
 0xd17   :  { %s1661_s11 = scalar_lea.hbm %s7366_s1, %s3576_s22 }
 0xd18   :  { %s5270_s26 = scalar_lea.hbm %s1661_s11, 32  ;;  %p5273_p4 = scmp.lt.u32.totalorder %s1661_s11, %s7366_s1 }
 0xd19   :  { %p5271_p6 = scmp.ne.s32.totalorder %s1661_s11, %s5270_s26  ;;  %p5274_p7 = scmp.lt.u32.totalorder %s5984_s2, %s5270_s26 }
 0xd1a   :  { %p5276_p13 = scmp.lt.u32.totalorder %s5270_s26, %s1661_s11 }
 0xd1b   :  { %p5275_p11 = por %p5274_p7, %p5273_p4 }
 0xd1c   :  { %1653 = dma.hbm_to_vmem [thread:$0]  %s1648_s5, 32, %s7574_s20, [#allocation6 + $0xc], %s7473_s15, %s7473_s15, %s7472_s7 }
 0xd1d   :  { %p5277_p0 = por %p5276_p13, %p5275_p11 }
 0xd1f   :  { %p5278_p1 = pnand %p5277_p0, %p5271_p6 }
 0xd21   :  { %5281 = shalt.err (!%p5278_p1)  }
 0xd22   :  { %s7575_s8 = sld [smem:[#allocation167_spill]] }
 0xd28   :  { %p7576_p3 = scmp.ne.s32.totalorder %s7575_s8, 0 }
 0xd2a   :  { %5293 = shalt.err (!%p7576_p3)  }
 0xd2b   :  { %s7577_s28 = sld [smem:[#allocation165_spill]]  ;;  %v3602_v50 = vmul.f32 -1.442695, %v6874_v44  ;;  %s3577_s9 = sld [smem:[#allocation8 + $0x2e]]  ;;  %v1895_v53 = vmul.f32 %v6877_v48, %v6834_v7  ;;  %v1899_v54 = vpop.permute.xlu0 %1898 }
 0xd2c   :  { %s6976_s12 = sld [smem:[#allocation8 + $0x2f]] }
 0xd2d   :  { %3998 = vpow2.f32 %v3602_v50  ;;  %v6982_v55 = vadd.f32 %v1899_v54, %v1895_v53 }
 0xd31   :  { %1666 = dma.hbm_to_vmem [thread:$0]  %s1661_s11, 32, %s7577_s28, [#allocation6 + $0xd], %s7473_s15, %s7473_s15, %s7472_s7 }
 0xd32   :  { %s1669_s24 = sshrl.u32 %s3577_s9, 3  ;;  %s1670_s5 = sand.u32 7, %s3577_s9  }
 0xd33   :  { %s3578_s30 = sshll.u32 %s1669_s24, 4  ;;  %s1682_s22 = sshrl.u32 %s6976_s12, 3 }
 0xd34   :  { %s1672_s0 = sadd.s32 %s3578_s30, %s1670_s5  ;;  %s1683_s6 = sand.u32 7, %s6976_s12  }
 0xd35   :  { %s3579_s18 = sshll.u32 %s1672_s0, 4  ;;  %s3581_s19 = sshll.u32 %s1682_s22, 4 }
 0xd36   :  { %s1674_s3 = scalar_lea.hbm %s7366_s1, %s3579_s18 }
 0xd37   :  { %v3999_v51 = vpop.eup %3998  ;;  %s5294_s28 = scalar_lea.hbm %s1674_s3, 32  ;;  %p5297_p4 = scmp.lt.u32.totalorder %s1674_s3, %s7366_s1 }
 0xd38   :  { %v1892_v52 = vadd.f32 1.0, %v3999_v51  ;;  %p5295_p6 = scmp.ne.s32.totalorder %s1674_s3, %s5294_s28  ;;  %p5298_p7 = scmp.lt.u32.totalorder %s5984_s2, %s5294_s28 }
 0xd39   :  { %p5300_p13 = scmp.lt.u32.totalorder %s5294_s28, %s1674_s3 }
 0xd3a   :  { %4000 = vrcp.f32 %v1892_v52  ;;  %p5299_p11 = por %p5298_p7, %p5297_p4 }
 0xd3c   :  { %p5301_p0 = por %p5300_p13, %p5299_p11 }
 0xd3e   :  { %p5302_p1 = pnand %p5301_p0, %p5295_p6 }
 0xd40   :  { %5305 = shalt.err (!%p5302_p1)  }
 0xd41   :  { %5317 = shalt.err (!%p7542_p2)  }
 0xd42   :  { %s7579_s5 = sld [smem:[#allocation168_spill]]  ;;  %4002 = vtanh.f32 %v6982_v55  ;;  %s1685_s30 = sadd.s32 %s3581_s19, %s1683_s6 }
 0xd43   :  { %s3582_s0 = sshll.u32 %s1685_s30, 4 }
 0xd44   :  { %s1687_s28 = scalar_lea.hbm %s7366_s1, %s3582_s0 }
 0xd45   :  { %s5318_s11 = scalar_lea.hbm %s1687_s28, 32  ;;  %p5321_p4 = scmp.lt.u32.totalorder %s1687_s28, %s7366_s1 }
 0xd46   :  { %p5319_p6 = scmp.ne.s32.totalorder %s1687_s28, %s5318_s11  ;;  %p5322_p7 = scmp.lt.u32.totalorder %s5984_s2, %s5318_s11 }
 0xd47   :  { %p5324_p13 = scmp.lt.u32.totalorder %s5318_s11, %s1687_s28 }
 0xd48   :  { %1679 = dma.hbm_to_vmem [thread:$0]  %s1674_s3, 32, %s7579_s5, [#allocation6 + $0xe], %s7473_s15, %s7473_s15, %s7472_s7 }
 0xd49   :  { %p5323_p11 = por %p5322_p7, %p5321_p4 }
 0xd4b   :  { %p5325_p0 = por %p5324_p13, %p5323_p11 }
 0xd4d   :  { %p5326_p1 = pnand %p5325_p0, %p5319_p6 }
 0xd4f   :  { %5329 = shalt.err (!%p5326_p1)  }
 0xd50   :  { %5341 = shalt.err (!%p6409_p9)  }
 0xd51   :  { %s7581_s6 = sld [smem:[#allocation170_spill]]  ;;  %v4001_v56 = vpop.eup %4000 }
 0xd52   :  { %v4003_v57 = vpop.eup %4002 }
 0xd53   :  { %v1903_v58 = vmul.f32 %v4003_v57, %v4001_v56 }
 0xd55   :  { %1905 = vrot.lane.b32.xlu1 %v1903_v58, %s7505_s21 }
 0xd57   :  { %1692 = dma.hbm_to_vmem [thread:$0]  %s1687_s28, 32, %s7581_s6, [#allocation6 + $0xf], %s7473_s15, %s7473_s15, %s7472_s7 }
 0xdc7   :  { %v1906_v59 = vpop.permute.xlu1 %1905 }
 0xdc8   :  { %1908 = vst.msk [vmem:[#allocation5 + $0x20] sm:$0xff] %vm66_vm0, %v1906_v59 }
 0xdc9   :  { %5812 = dma.done.wait [#allocation6 + $0x8], 32 }
 0xdca   :  { %5813 = vsyncadd [#allocation6 + $0x8], 4294967264 }
 0xdcb   :  { %5814 = dma.done.wait [#allocation6 + $0x9], 32 }
 0xdcc   :  { %5815 = vsyncadd [#allocation6 + $0x9], 4294967264 }
 0xdcd   :  { %5816 = dma.done.wait [#allocation6 + $0xa], 32 }
 0xdce   :  { %5817 = vsyncadd [#allocation6 + $0xa], 4294967264 }
 0xdcf   :  { %5818 = dma.done.wait [#allocation6 + $0xb], 32 }
 0xdd0   :  { %5819 = vsyncadd [#allocation6 + $0xb], 4294967264 }
 0xdd1   :  { %5820 = dma.done.wait [#allocation6 + $0xc], 32 }
 0xdd2   :  { %5821 = vsyncadd [#allocation6 + $0xc], 4294967264 }
 0xdd3   :  { %5822 = dma.done.wait [#allocation6 + $0xd], 32 }
 0xdd4   :  { %5823 = vsyncadd [#allocation6 + $0xd], 4294967264 }
 0xdd5   :  { %5824 = dma.done.wait [#allocation6 + $0xe], 32 }
 0xdd6   :  { %5825 = vsyncadd [#allocation6 + $0xe], 4294967264  ;;  %v2032_v60 = vpack.c.bf16 %v1903_v58, %v1903_v58 }
 0xdd7   :  { %5826 = dma.done.wait [#allocation6 + $0xf], 32 }
 0xdd8   :  { %5827 = vsyncadd [#allocation6 + $0xf], 4294967264  ;;  %2167 = vmatprep.mubr.bf16.mxu0 %v5878_v5  ;;  %2208 = vmatprep.mubr.bf16.mxu1 %v5878_v5  ;;  %v4004_v61 = vld [vmem:[#allocation9 + $0x4] ss:$16 sps:$4 sm:$0xff]   ;;  %v4006_v62 = vld [vmem:[#allocation9 + $0xc] ss:$16 sps:$4 sm:$0xff]  }
 0xdd9   :  { %2050 = vrot.lane.b32.xlu0 %v2032_v60, %s7505_s21  ;;  %2135 = vmatprep.subr.bf16.mxu0 %v4004_v61  ;;  %v4008_v63 = vld [vmem:[#allocation9] ss:$16 sps:$4 sm:$0xff]   ;;  %v4009_v0 = vld [vmem:[#allocation9 + $0x8] ss:$16 sps:$4 sm:$0xff]   ;;  %v4010_v1 = vld [vmem:[#allocation9 + $0x24] ss:$16 sps:$4 sm:$0xff]  }
 0xdda   :  { %2176 = vmatprep.subr.bf16.mxu1 %v4006_v62  ;;  %2136 = vmatpush1.bf16.msra.mxu0 %v4008_v63  ;;  %v4012_v3 = vld [vmem:[#allocation9 + $0x2c] ss:$16 sps:$4 sm:$0xff]   ;;  %v4014_v4 = vld [vmem:[#allocation9 + $0x20] ss:$16 sps:$4 sm:$0xff]   ;;  %v4015_v6 = vld [vmem:[#allocation9 + $0x28] ss:$16 sps:$4 sm:$0xff]  }
 0xddb   :  { %2177 = vmatpush1.bf16.msra.mxu1 %v4009_v0  ;;  %2137 = vmatprep.subr.bf16.mxu0 %v4010_v1  ;;  %v4016_v7 = vld [vmem:[#allocation9 + $0x44] ss:$16 sps:$4 sm:$0xff]   ;;  %v4018_v8 = vld [vmem:[#allocation9 + $0x4c] ss:$16 sps:$4 sm:$0xff]   ;;  %v4020_v9 = vld [vmem:[#allocation9 + $0x40] ss:$16 sps:$4 sm:$0xff]  }
 0xddc   :  { %2178 = vmatprep.subr.bf16.mxu1 %v4012_v3  ;;  %v4021_v10 = vld [vmem:[#allocation9 + $0x48] ss:$16 sps:$4 sm:$0xff]   ;;  %v4022_v11 = vld [vmem:[#allocation9 + $0x64] ss:$16 sps:$4 sm:$0xff]   ;;  %v4024_v12 = vld [vmem:[#allocation9 + $0x6c] ss:$16 sps:$4 sm:$0xff]  }
 0xddd   :  { %v4026_v13 = vld [vmem:[#allocation9 + $0x60] ss:$16 sps:$4 sm:$0xff]   ;;  %v4027_v14 = vld [vmem:[#allocation9 + $0x68] ss:$16 sps:$4 sm:$0xff]   ;;  %s3603_s19 = sld [smem:[#allocation8 + $0x30]]  ;;  %s3606_s24 = sld [smem:[#allocation8 + $0x31]] }
 0xdde   :  { %2138 = vmatpush1.bf16.msra.mxu0 %v4014_v4  ;;  %v1925_v16 = vld [vmem:[#allocation2 + $0x10] sm:$0xff]  ;;  %v1926_v29 = vld [vmem:[#allocation2 + $0x18] sm:$0xff]  ;;  %s7029_s30 = sld [smem:[#allocation8 + $0x32]]  ;;  %s7031_s0 = sld [smem:[#allocation8 + $0x33]] }
 0xddf   :  { %2179 = vmatpush1.bf16.msra.mxu1 %v4015_v6  ;;  %2139 = vmatprep.subr.bf16.mxu0 %v4016_v7  ;;  %s7033_s22 = sld [smem:[#allocation8 + $0x34]]  ;;  %s7035_s18 = sld [smem:[#allocation8 + $0x35]] }
 0xde0   :  { %2180 = vmatprep.subr.bf16.mxu1 %v4018_v8 }
 0xde2   :  { %2140 = vmatpush1.bf16.msra.mxu0 %v4020_v9 }
 0xde3   :  { %2181 = vmatpush1.bf16.msra.mxu1 %v4021_v10  ;;  %2141 = vmatprep.subr.bf16.mxu0 %v4022_v11  ;;  %s1930_s28 = sshrl.u32 %s3603_s19, 3  ;;  %s1931_s11 = sand.u32 7, %s3603_s19  }
 0xde4   :  { %2182 = vmatprep.subr.bf16.mxu1 %v4024_v12  ;;  %s3604_s26 = sshll.u32 %s1930_s28, 4  ;;  %s1943_s9 = sshrl.u32 %s3606_s24, 3 }
 0xde5   :  { %s1933_s6 = sadd.s32 %s3604_s26, %s1931_s11  ;;  %s1944_s3 = sand.u32 7, %s3606_s24  }
 0xde6   :  { %2142 = vmatpush1.bf16.msra.mxu0 %v4026_v13  ;;  %s3605_s5 = sshll.u32 %s1933_s6, 4  ;;  %s3607_s12 = sshll.u32 %s1943_s9, 4 }
 0xde7   :  { %2183 = vmatpush1.bf16.msra.mxu1 %v4027_v14  ;;  %s1935_s10 = scalar_lea.hbm %s7366_s1, %s3605_s5  ;;  %s1946_s27 = sadd.s32 %s3607_s12, %s1944_s3 }
 0xde8   :  { %s5342_s29 = scalar_lea.hbm %s1935_s10, 32  ;;  %p5345_p4 = scmp.lt.u32.totalorder %s1935_s10, %s7366_s1 }
 0xde9   :  { %p5343_p6 = scmp.ne.s32.totalorder %s1935_s10, %s5342_s29  ;;  %p5346_p7 = scmp.lt.u32.totalorder %s5984_s2, %s5342_s29 }
 0xdea   :  { %p5348_p13 = scmp.lt.u32.totalorder %s5342_s29, %s1935_s10 }
 0xdeb   :  { %p5347_p11 = por %p5346_p7, %p5345_p4 }
 0xded   :  { %p5349_p0 = por %p5348_p13, %p5347_p11 }
 0xdef   :  { %p5350_p1 = pnand %p5349_p0, %p5343_p6 }
 0xe4b   :  { %v2051_v15 = vpop.permute.xlu0 %2050 }
 0xe4c   :  { %3643 = vmatmul.mubr.msk.bf16.vlgmr.msra.gmra.mrb[16].mxu0 %vm66_vm0, %v2051_v15  ;;  %3644 = vmatmul.mubr.msk.bf16.vlgmr.msra.gmra.mrb[24].mxu1 %vm66_vm0, %v2051_v15 }
 0xf1f   :  { %v2169_v17 = vpop.f32.mrb[16].mxu0  ;;  %v2210_v18 = vpop.f32.mrb[24].mxu1 }
 0xf20   :  { %v2217_v19 = vsel %vm192_vm1, %v2169_v17, %v2210_v18  ;;  %v2171_v20 = vpop.f32.mrb[17].mxu0  ;;  %v2212_v21 = vpop.f32.mrb[25].mxu1 }
 0xf21   :  { %v2219_v22 = vadd.f32 %v2217_v19, %v1925_v16  ;;  %v2218_v23 = vsel %vm192_vm1, %v2171_v20, %v2212_v21  ;;  %v2173_v24 = vpop.f32.mrb[18].mxu0  ;;  %v2214_v25 = vpop.f32.mrb[26].mxu1 }
 0xf22   :  { %v2174_v26 = vpop.f32.mrb[19].mxu0  ;;  %v2215_v27 = vpop.f32.mrb[27].mxu1  ;;  %v7022_v30 = vadd.f32 %v2218_v23, %v1926_v29 }
 0xf23   :  { %v3645_v28 = vmul.f32 -1.442695, %v2219_v22 }
 0xf25   :  { %4028 = vpow2.f32 %v3645_v28 }
 0xf26   :  { %4030 = vtanh.f32 %v7022_v30 }
 0xf2f   :  { %v4029_v31 = vpop.eup %4028 }
 0xf30   :  { %v2224_v32 = vadd.f32 1.0, %v4029_v31  ;;  %v4031_v33 = vpop.eup %4030 }
 0xf32   :  { %4032 = vrcp.f32 %v2224_v32 }
 0xf3c   :  { %v7025_v34 = vpop.eup %4032 }
 0xf3d   :  { %v2235_v35 = vmul.f32 %v7025_v34, %v4031_v33 }
 0xf3f   :  { %2237 = vrot.lane.b32.xlu0 %v2235_v35, %s7505_s21 }
 0xf40   :  { %5353 = shalt.err (!%p5350_p1)  }
 0xf41   :  { %5365 = shalt.err (!%p5998_p12)  }
 0xf42   :  { %1940 = dma.hbm_to_vmem [thread:$0]  %s1935_s10, 32, %s5963_s13, [#allocation6], %s7473_s15, %s7473_s15, %s7472_s7 }
 0xf43   :  { %s3608_s20 = sshll.u32 %s1946_s27, 4  ;;  %s1956_s23 = sshrl.u32 %s7029_s30, 3 }
 0xf44   :  { %s1948_s29 = scalar_lea.hbm %s7366_s1, %s3608_s20  ;;  %s1957_s12 = sand.u32 7, %s7029_s30  }
 0xf45   :  { %s5366_s5 = scalar_lea.hbm %s1948_s29, 32  ;;  %p5369_p12 = scmp.lt.u32.totalorder %s1948_s29, %s7366_s1 }
 0xf46   :  { %p5367_p6 = scmp.ne.s32.totalorder %s1948_s29, %s5366_s5  ;;  %p5370_p4 = scmp.lt.u32.totalorder %s5984_s2, %s5366_s5 }
 0xf47   :  { %p5372_p11 = scmp.lt.u32.totalorder %s5366_s5, %s1948_s29 }
 0xf48   :  { %p5371_p7 = por %p5370_p4, %p5369_p12 }
 0xf4a   :  { %p5373_p13 = por %p5372_p11, %p5371_p7 }
 0xf4c   :  { %p5374_p0 = pnand %p5373_p13, %p5367_p6 }
 0xf4e   :  { %5377 = shalt.err (!%p5374_p0)  }
 0xf4f   :  { %5389 = shalt.err (!%p6022_p10)  }
 0xf50   :  { %1953 = dma.hbm_to_vmem [thread:$0]  %s1948_s29, 32, %s5968_s16, [#allocation6 + $0x1], %s7473_s15, %s7473_s15, %s7472_s7 }
 0xf51   :  { %s3610_s13 = sshll.u32 %s1956_s23, 4  ;;  %s1969_s27 = sshrl.u32 %s7031_s0, 3 }
 0xf52   :  { %s1959_s10 = sadd.s32 %s3610_s13, %s1957_s12  ;;  %s1970_s6 = sand.u32 7, %s7031_s0  }
 0xf53   :  { %s3611_s19 = sshll.u32 %s1959_s10, 4  ;;  %s3613_s24 = sshll.u32 %s1969_s27, 4 }
 0xf54   :  { %s1961_s11 = scalar_lea.hbm %s7366_s1, %s3611_s19  ;;  %s1972_s4 = sadd.s32 %s3613_s24, %s1970_s6 }
 0xf55   :  { %s5390_s26 = scalar_lea.hbm %s1961_s11, 32  ;;  %p5393_p1 = scmp.lt.u32.totalorder %s1961_s11, %s7366_s1 }
 0xf56   :  { %p5391_p10 = scmp.ne.s32.totalorder %s1961_s11, %s5390_s26  ;;  %p5394_p6 = scmp.lt.u32.totalorder %s5984_s2, %s5390_s26 }
 0xf57   :  { %p5396_p4 = scmp.lt.u32.totalorder %s5390_s26, %s1961_s11 }
 0xf58   :  { %p5395_p12 = por %p5394_p6, %p5393_p1 }
 0xf5a   :  { %p5397_p7 = por %p5396_p4, %p5395_p12 }
 0xf5c   :  { %p5398_p11 = pnand %p5397_p7, %p5391_p10 }
 0xf5e   :  { %5401 = shalt.err (!%p5398_p11)  }
 0xf5f   :  { %5413 = shalt.err (!%p7507_p8)  }
 0xf60   :  { %s7583_s0 = sld [smem:[#allocation145_spill]]  ;;  %s3614_s23 = sshll.u32 %s1972_s4, 4 }
 0xf61   :  { %s1982_s25 = sshrl.u32 %s7033_s22, 3  ;;  %s1974_s12 = scalar_lea.hbm %s7366_s1, %s3614_s23 }
 0xf62   :  { %s1983_s5 = sand.u32 7, %s7033_s22   ;;  %s5414_s3 = scalar_lea.hbm %s1974_s12, 32 }
 0xf63   :  { %p5415_p13 = scmp.ne.s32.totalorder %s1974_s12, %s5414_s3  ;;  %p5417_p8 = scmp.lt.u32.totalorder %s1974_s12, %s7366_s1 }
 0xf64   :  { %p5418_p0 = scmp.lt.u32.totalorder %s5984_s2, %s5414_s3  ;;  %p5420_p1 = scmp.lt.u32.totalorder %s5414_s3, %s1974_s12 }
 0xf66   :  { %1966 = dma.hbm_to_vmem [thread:$0]  %s1961_s11, 32, %s7583_s0, [#allocation6 + $0x2], %s7473_s15, %s7473_s15, %s7472_s7 }
 0xf67   :  { %p5419_p10 = por %p5418_p0, %p5417_p8 }
 0xf69   :  { %p5421_p6 = por %p5420_p1, %p5419_p10 }
 0xf6b   :  { %p5422_p12 = pnand %p5421_p6, %p5415_p13 }
 0xf6d   :  { %5425 = shalt.err (!%p5422_p12)  }
 0xf6e   :  { %5437 = shalt.err (!%p7510_p5)  }
 0xf6f   :  { %s7585_s10 = sld [smem:[#allocation147_spill]]  ;;  %s3616_s22 = sshll.u32 %s1982_s25, 4 }
 0xf70   :  { %s1995_s6 = sshrl.u32 %s7035_s18, 3  ;;  %s1985_s19 = sadd.s32 %s3616_s22, %s1983_s5 }
 0xf71   :  { %s1996_s24 = sand.u32 7, %s7035_s18   ;;  %s3617_s30 = sshll.u32 %s1985_s19, 4 }
 0xf72   :  { %s3619_s28 = sshll.u32 %s1995_s6, 4  ;;  %s1987_s26 = scalar_lea.hbm %s7366_s1, %s3617_s30 }
 0xf73   :  { %s1998_s9 = sadd.s32 %s3619_s28, %s1996_s24  ;;  %s5438_s20 = scalar_lea.hbm %s1987_s26, 32 }
 0xf74   :  { %p5439_p5 = scmp.ne.s32.totalorder %s1987_s26, %s5438_s20  ;;  %p5441_p4 = scmp.lt.u32.totalorder %s1987_s26, %s7366_s1 }
 0xf75   :  { %1979 = dma.hbm_to_vmem [thread:$0]  %s1974_s12, 32, %s7585_s10, [#allocation6 + $0x3], %s7473_s15, %s7473_s15, %s7472_s7 }
 0xf76   :  { %p5442_p7 = scmp.lt.u32.totalorder %s5984_s2, %s5438_s20  ;;  %p5444_p13 = scmp.lt.u32.totalorder %s5438_s20, %s1987_s26 }
 0xf78   :  { %p5443_p11 = por %p5442_p7, %p5441_p4 }
 0xf7a   :  { %p5445_p8 = por %p5444_p13, %p5443_p11 }
 0xf7c   :  { %p5446_p0 = pnand %p5445_p8, %p5439_p5 }
 0xf7e   :  { %5449 = shalt.err (!%p5446_p0)  }
 0xf7f   :  { %s7586_s18 = sld [smem:[#allocation151_spill]] }
 0xf85   :  { %p7587_p10 = scmp.ne.s32.totalorder %s7586_s18, 0 }
 0xf87   :  { %5461 = shalt.err (!%p7587_p10)  }
 0xf88   :  { %s7588_s23 = sld [smem:[#allocation149_spill]]  ;;  %s3620_s25 = sshll.u32 %s1998_s9, 4 }
 0xf89   :  { %s2000_s12 = scalar_lea.hbm %s7366_s1, %s3620_s25 }
 0xf8a   :  { %s5462_s5 = scalar_lea.hbm %s2000_s12, 32  ;;  %p5465_p6 = scmp.lt.u32.totalorder %s2000_s12, %s7366_s1 }
 0xf8b   :  { %p5463_p1 = scmp.ne.s32.totalorder %s2000_s12, %s5462_s5  ;;  %p5466_p12 = scmp.lt.u32.totalorder %s5984_s2, %s5462_s5 }
 0xf8c   :  { %p5468_p4 = scmp.lt.u32.totalorder %s5462_s5, %s2000_s12 }
 0xf8d   :  { %p5467_p5 = por %p5466_p12, %p5465_p6 }
 0xf8e   :  { %1992 = dma.hbm_to_vmem [thread:$0]  %s1987_s26, 32, %s7588_s23, [#allocation6 + $0x4], %s7473_s15, %s7473_s15, %s7472_s7 }
 0xf8f   :  { %p5469_p7 = por %p5468_p4, %p5467_p5 }
 0xf91   :  { %p5470_p11 = pnand %p5469_p7, %p5463_p1 }
 0xf93   :  { %5473 = shalt.err (!%p5470_p11)  }
 0xf94   :  { %s7589_s13 = sld [smem:[#allocation152_spill]] }
 0xf9a   :  { %p7590_p13 = scmp.ne.s32.totalorder %s7589_s13, 0 }
 0xf9c   :  { %5485 = shalt.err (!%p7590_p13)  }
 0xf9d   :  { %s7591_s27 = sld [smem:[#allocation150_spill]]  ;;  %v3646_v36 = vmul.f32 -1.442695, %v7022_v30  ;;  %s7124_s22 = sld [smem:[#allocation8 + $0x37]]  ;;  %v2234_v39 = vmul.f32 %v7025_v34, %v6982_v55 }
 0xf9e   :  { %s3621_s10 = sld [smem:[#allocation8 + $0x36]] }
 0xf9f   :  { %4034 = vpow2.f32 %v3646_v36 }
 0xfa3   :  { %2005 = dma.hbm_to_vmem [thread:$0]  %s2000_s12, 32, %s7591_s27, [#allocation6 + $0x5], %s7473_s15, %s7473_s15, %s7472_s7 }
 0xfa4   :  { %s2008_s6 = sshrl.u32 %s3621_s10, 3  ;;  %s2009_s19 = sand.u32 7, %s3621_s10  }
 0xfa5   :  { %s3622_s24 = sshll.u32 %s2008_s6, 4  ;;  %s2021_s28 = sshrl.u32 %s7124_s22, 3 }
 0xfa6   :  { %s2011_s30 = sadd.s32 %s3622_s24, %s2009_s19  ;;  %s2022_s4 = sand.u32 7, %s7124_s22  }
 0xfa7   :  { %s3623_s11 = sshll.u32 %s2011_s30, 4  ;;  %s3625_s16 = sshll.u32 %s2021_s28, 4 }
 0xfa8   :  { %s2013_s20 = scalar_lea.hbm %s7366_s1, %s3623_s11 }
 0xfa9   :  { %v4035_v37 = vpop.eup %4034  ;;  %s5486_s0 = scalar_lea.hbm %s2013_s20, 32  ;;  %p5489_p0 = scmp.lt.u32.totalorder %s2013_s20, %s7366_s1 }
 0xfaa   :  { %v2231_v38 = vadd.f32 1.0, %v4035_v37  ;;  %p5487_p8 = scmp.ne.s32.totalorder %s2013_s20, %s5486_s0  ;;  %p5490_p10 = scmp.lt.u32.totalorder %s5984_s2, %s5486_s0 }
 0xfab   :  { %p5492_p6 = scmp.lt.u32.totalorder %s5486_s0, %s2013_s20 }
 0xfac   :  { %4036 = vrcp.f32 %v2231_v38  ;;  %p5491_p1 = por %p5490_p10, %p5489_p0 }
 0xfae   :  { %p5493_p12 = por %p5492_p6, %p5491_p1 }
 0xfb0   :  { %p5494_p5 = pnand %p5493_p12, %p5487_p8 }
 0xfb1   :  { %v2238_v40 = vpop.permute.xlu0 %2237 }
 0xfb2   :  { %v7130_v41 = vadd.f32 %v2238_v40, %v2234_v39 }
 0xfb3   :  { %5497 = shalt.err (!%p5494_p5)  }
 0xfb4   :  { %s7592_s25 = sld [smem:[#allocation154_spill]] }
 0xfba   :  { %p7593_p4 = scmp.ne.s32.totalorder %s7592_s25, 0 }
 0xfbc   :  { %5509 = shalt.err (!%p7593_p4)  }
 0xfbd   :  { %s7594_s8 = sld [smem:[#allocation153_spill]]  ;;  %4038 = vtanh.f32 %v7130_v41  ;;  %s2024_s29 = sadd.s32 %s3625_s16, %s2022_s4 }
 0xfbe   :  { %s3626_s12 = sshll.u32 %s2024_s29, 4 }
 0xfbf   :  { %s2026_s14 = scalar_lea.hbm %s7366_s1, %s3626_s12 }
 0xfc0   :  { %s5510_s13 = scalar_lea.hbm %s2026_s14, 32  ;;  %p5513_p11 = scmp.lt.u32.totalorder %s2026_s14, %s7366_s1 }
 0xfc1   :  { %p5511_p7 = scmp.ne.s32.totalorder %s2026_s14, %s5510_s13  ;;  %p5514_p13 = scmp.lt.u32.totalorder %s5984_s2, %s5510_s13 }
 0xfc2   :  { %p5516_p0 = scmp.lt.u32.totalorder %s5510_s13, %s2026_s14 }
 0xfc3   :  { %2018 = dma.hbm_to_vmem [thread:$0]  %s2013_s20, 32, %s7594_s8, [#allocation6 + $0x6], %s7473_s15, %s7473_s15, %s7472_s7 }
 0xfc4   :  { %p5515_p8 = por %p5514_p13, %p5513_p11 }
 0xfc6   :  { %p5517_p10 = por %p5516_p0, %p5515_p8 }
 0xfc8   :  { %p5518_p1 = pnand %p5517_p10, %p5511_p7 }
 0xfca   :  { %5521 = shalt.err (!%p5518_p1)  }
 0xfcb   :  { %s7595_s22 = sld [smem:[#allocation156_spill]] }
 0xfd1   :  { %p7596_p6 = scmp.ne.s32.totalorder %s7595_s22, 0 }
 0xfd3   :  { %5533 = shalt.err (!%p7596_p6)  }
 0xfd4   :  { %s7597_s6 = sld [smem:[#allocation155_spill]]  ;;  %v4037_v42 = vpop.eup %4036 }
 0xfd5   :  { %v4039_v43 = vpop.eup %4038 }
 0xfd6   :  { %v2242_v44 = vmul.f32 %v4039_v43, %v4037_v42 }
 0xfd8   :  { %2244 = vrot.lane.b32.xlu1 %v2242_v44, %s7505_s21 }
 0xfda   :  { %2031 = dma.hbm_to_vmem [thread:$0]  %s2026_s14, 32, %s7597_s6, [#allocation6 + $0x7], %s7473_s15, %s7473_s15, %s7472_s7 }
0x104a   :  { %v2245_v45 = vpop.permute.xlu1 %2244 }
0x104b   :  { %2247 = vst.msk [vmem:[#allocation5 + $0x28] sm:$0xff] %vm66_vm0, %v2245_v45 }
0x104c   :  { %5828 = dma.done.wait [#allocation6], 32 }
0x104d   :  { %5829 = vsyncadd [#allocation6], 4294967264 }
0x104e   :  { %5830 = dma.done.wait [#allocation6 + $0x1], 32 }
0x104f   :  { %5831 = vsyncadd [#allocation6 + $0x1], 4294967264 }
0x1050   :  { %5832 = dma.done.wait [#allocation6 + $0x2], 32 }
0x1051   :  { %5833 = vsyncadd [#allocation6 + $0x2], 4294967264 }
0x1052   :  { %5834 = dma.done.wait [#allocation6 + $0x3], 32 }
0x1053   :  { %5835 = vsyncadd [#allocation6 + $0x3], 4294967264 }
0x1054   :  { %5836 = dma.done.wait [#allocation6 + $0x4], 32 }
0x1055   :  { %5837 = vsyncadd [#allocation6 + $0x4], 4294967264 }
0x1056   :  { %5838 = dma.done.wait [#allocation6 + $0x5], 32 }
0x1057   :  { %5839 = vsyncadd [#allocation6 + $0x5], 4294967264 }
0x1058   :  { %5840 = dma.done.wait [#allocation6 + $0x6], 32 }
0x1059   :  { %5841 = vsyncadd [#allocation6 + $0x6], 4294967264  ;;  %v2371_v46 = vpack.c.bf16 %v2242_v44, %v2242_v44 }
0x105a   :  { %5842 = dma.done.wait [#allocation6 + $0x7], 32 }
0x105b   :  { %5843 = vsyncadd [#allocation6 + $0x7], 4294967264  ;;  %2506 = vmatprep.mubr.bf16.mxu0 %v5878_v5  ;;  %2547 = vmatprep.mubr.bf16.mxu1 %v5878_v5  ;;  %v4040_v47 = vld [vmem:[#allocation9 + $0x4] ss:$16 sps:$4 sm:$0xff]   ;;  %v4042_v48 = vld [vmem:[#allocation9 + $0xc] ss:$16 sps:$4 sm:$0xff]  }
0x105c   :  { %2389 = vrot.lane.b32.xlu0 %v2371_v46, %s7505_s21  ;;  %2474 = vmatprep.subr.bf16.mxu0 %v4040_v47  ;;  %v4044_v49 = vld [vmem:[#allocation9] ss:$16 sps:$4 sm:$0xff]   ;;  %v4045_v50 = vld [vmem:[#allocation9 + $0x8] ss:$16 sps:$4 sm:$0xff]   ;;  %v4046_v51 = vld [vmem:[#allocation9 + $0x24] ss:$16 sps:$4 sm:$0xff]  }
0x105d   :  { %2515 = vmatprep.subr.bf16.mxu1 %v4042_v48  ;;  %2475 = vmatpush1.bf16.msra.mxu0 %v4044_v49  ;;  %v4048_v52 = vld [vmem:[#allocation9 + $0x2c] ss:$16 sps:$4 sm:$0xff]   ;;  %v4050_v53 = vld [vmem:[#allocation9 + $0x20] ss:$16 sps:$4 sm:$0xff]   ;;  %v4051_v54 = vld [vmem:[#allocation9 + $0x28] ss:$16 sps:$4 sm:$0xff]  }
0x105e   :  { %2516 = vmatpush1.bf16.msra.mxu1 %v4045_v50  ;;  %2476 = vmatprep.subr.bf16.mxu0 %v4046_v51  ;;  %v4052_v55 = vld [vmem:[#allocation9 + $0x44] ss:$16 sps:$4 sm:$0xff]   ;;  %v4054_v56 = vld [vmem:[#allocation9 + $0x4c] ss:$16 sps:$4 sm:$0xff]   ;;  %v4056_v57 = vld [vmem:[#allocation9 + $0x40] ss:$16 sps:$4 sm:$0xff]  }
0x105f   :  { %2517 = vmatprep.subr.bf16.mxu1 %v4048_v52  ;;  %v4057_v58 = vld [vmem:[#allocation9 + $0x48] ss:$16 sps:$4 sm:$0xff]   ;;  %v4058_v59 = vld [vmem:[#allocation9 + $0x64] ss:$16 sps:$4 sm:$0xff]   ;;  %v4060_v60 = vld [vmem:[#allocation9 + $0x6c] ss:$16 sps:$4 sm:$0xff]  }
0x1060   :  { %v4062_v61 = vld [vmem:[#allocation9 + $0x60] ss:$16 sps:$4 sm:$0xff]   ;;  %v4063_v62 = vld [vmem:[#allocation9 + $0x68] ss:$16 sps:$4 sm:$0xff]   ;;  %s3647_s19 = sld [smem:[#allocation8 + $0x38]]  ;;  %s3650_s24 = sld [smem:[#allocation8 + $0x39]] }
0x1061   :  { %2477 = vmatpush1.bf16.msra.mxu0 %v4050_v53  ;;  %v2264_v0 = vld [vmem:[#allocation2] sm:$0xff]  ;;  %v2265_v15 = vld [vmem:[#allocation2 + $0x8] sm:$0xff]  ;;  %s7177_s30 = sld [smem:[#allocation8 + $0x3a]]  ;;  %s7179_s28 = sld [smem:[#allocation8 + $0x3b]] }
0x1062   :  { %2518 = vmatpush1.bf16.msra.mxu1 %v4051_v54  ;;  %2478 = vmatprep.subr.bf16.mxu0 %v4052_v55  ;;  %s7181_s11 = sld [smem:[#allocation8 + $0x3c]]  ;;  %s7183_s4 = sld [smem:[#allocation8 + $0x3d]] }
0x1063   :  { %2519 = vmatprep.subr.bf16.mxu1 %v4054_v56 }
0x1065   :  { %2479 = vmatpush1.bf16.msra.mxu0 %v4056_v57 }
0x1066   :  { %2520 = vmatpush1.bf16.msra.mxu1 %v4057_v58  ;;  %2480 = vmatprep.subr.bf16.mxu0 %v4058_v59  ;;  %s2269_s26 = sshrl.u32 %s3647_s19, 3  ;;  %s2270_s9 = sand.u32 7, %s3647_s19  }
0x1067   :  { %2521 = vmatprep.subr.bf16.mxu1 %v4060_v60  ;;  %s3648_s20 = sshll.u32 %s2269_s26, 4  ;;  %s2282_s16 = sshrl.u32 %s3650_s24, 3 }
0x1068   :  { %s2272_s0 = sadd.s32 %s3648_s20, %s2270_s9  ;;  %s2283_s18 = sand.u32 7, %s3650_s24  }
0x1069   :  { %2481 = vmatpush1.bf16.msra.mxu0 %v4062_v61  ;;  %s3649_s23 = sshll.u32 %s2272_s0, 4  ;;  %s3651_s25 = sshll.u32 %s2282_s16, 4 }
0x106a   :  { %2522 = vmatpush1.bf16.msra.mxu1 %v4063_v62  ;;  %s2274_s12 = scalar_lea.hbm %s7366_s1, %s3649_s23  ;;  %s2285_s5 = sadd.s32 %s3651_s25, %s2283_s18 }
0x106b   :  { %s5534_s3 = scalar_lea.hbm %s2274_s12, 32  ;;  %p5537_p5 = scmp.lt.u32.totalorder %s2274_s12, %s7366_s1 }
0x106c   :  { %p5535_p12 = scmp.ne.s32.totalorder %s2274_s12, %s5534_s3  ;;  %p5538_p4 = scmp.lt.u32.totalorder %s5984_s2, %s5534_s3 }
0x106d   :  { %p5540_p11 = scmp.lt.u32.totalorder %s5534_s3, %s2274_s12 }
0x106e   :  { %p5539_p7 = por %p5538_p4, %p5537_p5 }
0x1070   :  { %p5541_p13 = por %p5540_p11, %p5539_p7 }
0x1072   :  { %p5542_p8 = pnand %p5541_p13, %p5535_p12 }
0x10ce   :  { %v2390_v63 = vpop.permute.xlu0 %2389 }
0x10cf   :  { %3687 = vmatmul.mubr.msk.bf16.vlgmr.msra.gmra.mrb[20].mxu0 %vm66_vm0, %v2390_v63  ;;  %3688 = vmatmul.mubr.msk.bf16.vlgmr.msra.gmra.mrb[28].mxu1 %vm66_vm0, %v2390_v63 }
0x11a2   :  { %v2508_v1 = vpop.f32.mrb[20].mxu0  ;;  %v2549_v3 = vpop.f32.mrb[28].mxu1 }
0x11a3   :  { %v2556_v4 = vsel %vm192_vm1, %v2508_v1, %v2549_v3  ;;  %v2510_v6 = vpop.f32.mrb[21].mxu0  ;;  %v2551_v7 = vpop.f32.mrb[29].mxu1 }
0x11a4   :  { %v2558_v8 = vadd.f32 %v2556_v4, %v2264_v0  ;;  %v2557_v9 = vsel %vm192_vm1, %v2510_v6, %v2551_v7  ;;  %v2512_v10 = vpop.f32.mrb[22].mxu0  ;;  %v2553_v11 = vpop.f32.mrb[30].mxu1 }
0x11a5   :  { %v2513_v12 = vpop.f32.mrb[23].mxu0  ;;  %v2554_v13 = vpop.f32.mrb[31].mxu1  ;;  %v7170_v16 = vadd.f32 %v2557_v9, %v2265_v15 }
0x11a6   :  { %v3689_v14 = vmul.f32 -1.442695, %v2558_v8 }
0x11a8   :  { %4064 = vpow2.f32 %v3689_v14 }
0x11a9   :  { %4066 = vtanh.f32 %v7170_v16 }
0x11b2   :  { %v4065_v17 = vpop.eup %4064 }
0x11b3   :  { %v2563_v18 = vadd.f32 1.0, %v4065_v17  ;;  %v4067_v19 = vpop.eup %4066 }
0x11b5   :  { %4068 = vrcp.f32 %v2563_v18 }
0x11bf   :  { %v7173_v20 = vpop.eup %4068 }
0x11c0   :  { %v2574_v21 = vmul.f32 %v7173_v20, %v4067_v19 }
0x11c2   :  { %2576 = vrot.lane.b32.xlu0 %v2574_v21, %s7505_s21 }
0x11c3   :  { %5545 = shalt.err (!%p5542_p8)  }
0x11c4   :  { %p7598_p0 = scmp.ne.s32.totalorder %s7484_s17, 0 }
0x11c6   :  { %5557 = shalt.err (!%p7598_p0)  }
0x11c7   :  { %s7599_s27 = sld [smem:[#allocation157_spill]]  ;;  %s3652_s10 = sshll.u32 %s2285_s5, 4 }
0x11c8   :  { %s2295_s22 = sshrl.u32 %s7177_s30, 3  ;;  %s2287_s24 = scalar_lea.hbm %s7366_s1, %s3652_s10 }
0x11c9   :  { %s2296_s26 = sand.u32 7, %s7177_s30   ;;  %s5558_s9 = scalar_lea.hbm %s2287_s24, 32 }
0x11ca   :  { %p5559_p10 = scmp.ne.s32.totalorder %s2287_s24, %s5558_s9  ;;  %p5561_p1 = scmp.lt.u32.totalorder %s2287_s24, %s7366_s1 }
0x11cb   :  { %p5562_p6 = scmp.lt.u32.totalorder %s5984_s2, %s5558_s9  ;;  %p5564_p5 = scmp.lt.u32.totalorder %s5558_s9, %s2287_s24 }
0x11cd   :  { %2279 = dma.hbm_to_vmem [thread:$0]  %s2274_s12, 32, %s7599_s27, [#allocation6 + $0x8], %s7473_s15, %s7473_s15, %s7472_s7 }
0x11ce   :  { %p5563_p12 = por %p5562_p6, %p5561_p1 }
0x11d0   :  { %p5565_p4 = por %p5564_p5, %p5563_p12 }
0x11d2   :  { %p5566_p7 = pnand %p5565_p4, %p5559_p10 }
0x11d4   :  { %5569 = shalt.err (!%p5566_p7)  }
0x11d5   :  { %s7600_s16 = sld [smem:[#allocation159_spill]] }
0x11db   :  { %p7601_p11 = scmp.ne.s32.totalorder %s7600_s16, 0 }
0x11dd   :  { %5581 = shalt.err (!%p7601_p11)  }
0x11de   :  { %s7602_s0 = sld [smem:[#allocation158_spill]]  ;;  %s3654_s30 = sshll.u32 %s2295_s22, 4 }
0x11df   :  { %s2308_s18 = sshrl.u32 %s7179_s28, 3  ;;  %s2298_s23 = sadd.s32 %s3654_s30, %s2296_s26 }
0x11e0   :  { %s2309_s25 = sand.u32 7, %s7179_s28   ;;  %s3655_s8 = sshll.u32 %s2298_s23, 4 }
0x11e1   :  { %s3657_s29 = sshll.u32 %s2308_s18, 4  ;;  %s2300_s3 = scalar_lea.hbm %s7366_s1, %s3655_s8 }
0x11e2   :  { %s2311_s14 = sadd.s32 %s3657_s29, %s2309_s25  ;;  %s5582_s13 = scalar_lea.hbm %s2300_s3, 32 }
0x11e3   :  { %p5583_p13 = scmp.ne.s32.totalorder %s2300_s3, %s5582_s13  ;;  %p5585_p8 = scmp.lt.u32.totalorder %s2300_s3, %s7366_s1 }
0x11e4   :  { %2292 = dma.hbm_to_vmem [thread:$0]  %s2287_s24, 32, %s7602_s0, [#allocation6 + $0x9], %s7473_s15, %s7473_s15, %s7472_s7 }
0x11e5   :  { %p5586_p0 = scmp.lt.u32.totalorder %s5984_s2, %s5582_s13  ;;  %p5588_p1 = scmp.lt.u32.totalorder %s5582_s13, %s2300_s3 }
0x11e7   :  { %p5587_p10 = por %p5586_p0, %p5585_p8 }
0x11e9   :  { %p5589_p6 = por %p5588_p1, %p5587_p10 }
0x11eb   :  { %p5590_p12 = pnand %p5589_p6, %p5583_p13 }
0x11ed   :  { %5593 = shalt.err (!%p5590_p12)  }
0x11ee   :  { %s7603_s28 = sld [smem:[#allocation161_spill]] }
0x11f4   :  { %p7604_p5 = scmp.ne.s32.totalorder %s7603_s28, 0 }
0x11f6   :  { %5605 = shalt.err (!%p7604_p5)  }
0x11f7   :  { %s7605_s22 = sld [smem:[#allocation160_spill]]  ;;  %s3658_s6 = sshll.u32 %s2311_s14, 4 }
0x11f8   :  { %s2321_s19 = sshrl.u32 %s7181_s11, 3  ;;  %s2313_s9 = scalar_lea.hbm %s7366_s1, %s3658_s6 }
0x11f9   :  { %s2322_s20 = sand.u32 7, %s7181_s11   ;;  %s5606_s17 = scalar_lea.hbm %s2313_s9, 32 }
0x11fa   :  { %p5607_p4 = scmp.ne.s32.totalorder %s2313_s9, %s5606_s17  ;;  %p5609_p7 = scmp.lt.u32.totalorder %s2313_s9, %s7366_s1 }
0x11fb   :  { %p5610_p11 = scmp.lt.u32.totalorder %s5984_s2, %s5606_s17  ;;  %p5612_p8 = scmp.lt.u32.totalorder %s5606_s17, %s2313_s9 }
0x11fd   :  { %2305 = dma.hbm_to_vmem [thread:$0]  %s2300_s3, 32, %s7605_s22, [#allocation6 + $0xa], %s7473_s15, %s7473_s15, %s7472_s7 }
0x11fe   :  { %p5611_p13 = por %p5610_p11, %p5609_p7 }
0x1200   :  { %p5613_p0 = por %p5612_p8, %p5611_p13 }
0x1202   :  { %p5614_p10 = pnand %p5613_p0, %p5607_p4 }
0x1204   :  { %5617 = shalt.err (!%p5614_p10)  }
0x1205   :  { %s7606_s30 = sld [smem:[#allocation163_spill]] }
0x120b   :  { %p7607_p1 = scmp.ne.s32.totalorder %s7606_s30, 0 }
0x120d   :  { %5629 = shalt.err (!%p7607_p1)  }
0x120e   :  { %s7608_s18 = sld [smem:[#allocation162_spill]]  ;;  %s3660_s11 = sshll.u32 %s2321_s19, 4 }
0x120f   :  { %s2334_s23 = sshrl.u32 %s7183_s4, 3  ;;  %s2324_s25 = sadd.s32 %s3660_s11, %s2322_s20 }
0x1210   :  { %s2335_s8 = sand.u32 7, %s7183_s4   ;;  %s3661_s29 = sshll.u32 %s2324_s25, 4 }
0x1211   :  { %s3663_s12 = sshll.u32 %s2334_s23, 4  ;;  %s2326_s14 = scalar_lea.hbm %s7366_s1, %s3661_s29 }
0x1212   :  { %s2337_s13 = sadd.s32 %s3663_s12, %s2335_s8  ;;  %s5630_s27 = scalar_lea.hbm %s2326_s14, 32 }
0x1213   :  { %p5631_p6 = scmp.ne.s32.totalorder %s2326_s14, %s5630_s27  ;;  %p5633_p12 = scmp.lt.u32.totalorder %s2326_s14, %s7366_s1 }
0x1214   :  { %2318 = dma.hbm_to_vmem [thread:$0]  %s2313_s9, 32, %s7608_s18, [#allocation6 + $0xb], %s7473_s15, %s7473_s15, %s7472_s7 }
0x1215   :  { %p5634_p5 = scmp.lt.u32.totalorder %s5984_s2, %s5630_s27  ;;  %p5636_p7 = scmp.lt.u32.totalorder %s5630_s27, %s2326_s14 }
0x1217   :  { %p5635_p4 = por %p5634_p5, %p5633_p12 }
0x1219   :  { %p5637_p11 = por %p5636_p7, %p5635_p4 }
0x121b   :  { %p5638_p13 = pnand %p5637_p11, %p5631_p6 }
0x121d   :  { %5641 = shalt.err (!%p5638_p13)  }
0x121e   :  { %s7609_s4 = sld [smem:[#allocation166_spill]] }
0x1224   :  { %p7610_p8 = scmp.ne.s32.totalorder %s7609_s4, 0 }
0x1226   :  { %5653 = shalt.err (!%p7610_p8)  }
0x1227   :  { %s7611_s22 = sld [smem:[#allocation164_spill]]  ;;  %s3664_s6 = sshll.u32 %s2337_s13, 4 }
0x1228   :  { %s2339_s26 = scalar_lea.hbm %s7366_s1, %s3664_s6 }
0x1229   :  { %s5654_s9 = scalar_lea.hbm %s2339_s26, 32  ;;  %p5657_p10 = scmp.lt.u32.totalorder %s2339_s26, %s7366_s1 }
0x122a   :  { %p5655_p0 = scmp.ne.s32.totalorder %s2339_s26, %s5654_s9  ;;  %p5658_p1 = scmp.lt.u32.totalorder %s5984_s2, %s5654_s9 }
0x122b   :  { %p5660_p12 = scmp.lt.u32.totalorder %s5654_s9, %s2339_s26 }
0x122c   :  { %p5659_p6 = por %p5658_p1, %p5657_p10 }
0x122d   :  { %2331 = dma.hbm_to_vmem [thread:$0]  %s2326_s14, 32, %s7611_s22, [#allocation6 + $0xc], %s7473_s15, %s7473_s15, %s7472_s7 }
0x122e   :  { %p5661_p5 = por %p5660_p12, %p5659_p6 }
0x1230   :  { %p5662_p4 = pnand %p5661_p5, %p5655_p0 }
0x1232   :  { %5665 = shalt.err (!%p5662_p4)  }
0x1233   :  { %5677 = shalt.err (!%p7576_p3)  }
0x1234   :  { %s7613_s0 = sld [smem:[#allocation165_spill]]  ;;  %v3690_v22 = vmul.f32 -1.442695, %v7170_v16  ;;  %s3665_s30 = sld [smem:[#allocation8 + $0x3e]]  ;;  %v2573_v25 = vmul.f32 %v7173_v20, %v7130_v41  ;;  %v2577_v26 = vpop.permute.xlu0 %2576 }
0x1235   :  { %s7272_s18 = sld [smem:[#allocation8 + $0x3f]] }
0x1236   :  { %4070 = vpow2.f32 %v3690_v22  ;;  %v7278_v27 = vadd.f32 %v2577_v26, %v2573_v25 }
0x123a   :  { %2344 = dma.hbm_to_vmem [thread:$0]  %s2339_s26, 32, %s7613_s0, [#allocation6 + $0xd], %s7473_s15, %s7473_s15, %s7472_s7 }
0x123b   :  { %s2347_s11 = sshrl.u32 %s3665_s30, 3  ;;  %s2348_s23 = sand.u32 7, %s3665_s30  }
0x123c   :  { %s3666_s25 = sshll.u32 %s2347_s11, 4  ;;  %s2360_s29 = sshrl.u32 %s7272_s18, 3 }
0x123d   :  { %s2350_s8 = sadd.s32 %s3666_s25, %s2348_s23  ;;  %s2361_s5 = sand.u32 7, %s7272_s18  }
0x123e   :  { %s3667_s12 = sshll.u32 %s2350_s8, 4  ;;  %s3669_s27 = sshll.u32 %s2360_s29, 4 }
0x123f   :  { %s2352_s13 = scalar_lea.hbm %s7366_s1, %s3667_s12 }
0x1240   :  { %v4071_v23 = vpop.eup %4070  ;;  %s5678_s10 = scalar_lea.hbm %s2352_s13, 32  ;;  %p5681_p7 = scmp.lt.u32.totalorder %s2352_s13, %s7366_s1 }
0x1241   :  { %v2570_v24 = vadd.f32 1.0, %v4071_v23  ;;  %p5679_p3 = scmp.ne.s32.totalorder %s2352_s13, %s5678_s10  ;;  %p5682_p11 = scmp.lt.u32.totalorder %s5984_s2, %s5678_s10 }
0x1242   :  { %p5684_p8 = scmp.lt.u32.totalorder %s5678_s10, %s2352_s13 }
0x1243   :  { %4072 = vrcp.f32 %v2570_v24  ;;  %p5683_p13 = por %p5682_p11, %p5681_p7 }
0x1245   :  { %p5685_p0 = por %p5684_p8, %p5683_p13 }
0x1247   :  { %p5686_p10 = pnand %p5685_p0, %p5679_p3 }
0x1249   :  { %5689 = shalt.err (!%p5686_p10)  }
0x124a   :  { %5701 = shalt.err (!%p7542_p2)  }
0x124b   :  { %s7615_s6 = sld [smem:[#allocation168_spill]]  ;;  %4074 = vtanh.f32 %v7278_v27  ;;  %s2363_s19 = sadd.s32 %s3669_s27, %s2361_s5 }
0x124c   :  { %s3670_s24 = sshll.u32 %s2363_s19, 4 }
0x124d   :  { %s2365_s20 = scalar_lea.hbm %s7366_s1, %s3670_s24 }
0x124e   :  { %s5702_s17 = scalar_lea.hbm %s2365_s20, 32  ;;  %p5705_p2 = scmp.lt.u32.totalorder %s2365_s20, %s7366_s1 }
0x124f   :  { %p5703_p1 = scmp.ne.s32.totalorder %s2365_s20, %s5702_s17  ;;  %p5706_p6 = scmp.lt.u32.totalorder %s5984_s2, %s5702_s17 }
0x1250   :  { %p5708_p5 = scmp.lt.u32.totalorder %s5702_s17, %s2365_s20 }
0x1251   :  { %2357 = dma.hbm_to_vmem [thread:$0]  %s2352_s13, 32, %s7615_s6, [#allocation6 + $0xe], %s7473_s15, %s7473_s15, %s7472_s7 }
0x1252   :  { %p5707_p12 = por %p5706_p6, %p5705_p2 }
0x1254   :  { %p5709_p4 = por %p5708_p5, %p5707_p12 }
0x1256   :  { %p5710_p3 = pnand %p5709_p4, %p5703_p1 }
0x1258   :  { %5713 = shalt.err (!%p5710_p3)  }
0x1259   :  { %5725 = shalt.err (!%p6409_p9)  }
0x125a   :  { %s7617_s18 = sld [smem:[#allocation170_spill]]  ;;  %v4073_v28 = vpop.eup %4072 }
0x125b   :  { %v4075_v29 = vpop.eup %4074 }
0x125c   :  { %v2581_v30 = vmul.f32 %v4075_v29, %v4073_v28 }
0x125e   :  { %2583 = vrot.lane.b32.xlu1 %v2581_v30, %s7505_s21 }
0x1260   :  { %2370 = dma.hbm_to_vmem [thread:$0]  %s2365_s20, 32, %s7617_s18, [#allocation6 + $0xf], %s7473_s15, %s7473_s15, %s7472_s7 }
0x12d0   :  { %v2584_v31 = vpop.permute.xlu1 %2583 }
0x12d1   :  { %2586 = vst.msk [vmem:[#allocation5 + $0x30] sm:$0xff] %vm66_vm0, %v2584_v31 }
0x12d2   :  { %5844 = dma.done.wait [#allocation6 + $0x8], 32 }
0x12d3   :  { %5845 = vsyncadd [#allocation6 + $0x8], 4294967264 }
0x12d4   :  { %5846 = dma.done.wait [#allocation6 + $0x9], 32 }
0x12d5   :  { %5847 = vsyncadd [#allocation6 + $0x9], 4294967264 }
0x12d6   :  { %5848 = dma.done.wait [#allocation6 + $0xa], 32 }
0x12d7   :  { %5849 = vsyncadd [#allocation6 + $0xa], 4294967264 }
0x12d8   :  { %5850 = dma.done.wait [#allocation6 + $0xb], 32 }
0x12d9   :  { %5851 = vsyncadd [#allocation6 + $0xb], 4294967264 }
0x12da   :  { %5852 = dma.done.wait [#allocation6 + $0xc], 32 }
0x12db   :  { %5853 = vsyncadd [#allocation6 + $0xc], 4294967264 }
0x12dc   :  { %5854 = dma.done.wait [#allocation6 + $0xd], 32 }
0x12dd   :  { %5855 = vsyncadd [#allocation6 + $0xd], 4294967264 }
0x12de   :  { %5856 = dma.done.wait [#allocation6 + $0xe], 32 }
0x12df   :  { %5857 = vsyncadd [#allocation6 + $0xe], 4294967264  ;;  %v2605_v32 = vpack.c.bf16 %v2581_v30, %v2581_v30 }
0x12e0   :  { %5858 = dma.done.wait [#allocation6 + $0xf], 32 }
0x12e1   :  { %5859 = vsyncadd [#allocation6 + $0xf], 4294967264  ;;  %2740 = vmatprep.mubr.bf16.mxu0 %v5878_v5  ;;  %2781 = vmatprep.mubr.bf16.mxu1 %v5878_v5  ;;  %v4076_v33 = vld [vmem:[#allocation9 + $0x4] ss:$16 sps:$4 sm:$0xff]   ;;  %v4078_v34 = vld [vmem:[#allocation9 + $0xc] ss:$16 sps:$4 sm:$0xff]  }
0x12e2   :  { %2623 = vrot.lane.b32.xlu0 %v2605_v32, %s7505_s21  ;;  %2708 = vmatprep.subr.bf16.mxu0 %v4076_v33  ;;  %v4080_v35 = vld [vmem:[#allocation9] ss:$16 sps:$4 sm:$0xff]   ;;  %v4081_v36 = vld [vmem:[#allocation9 + $0x8] ss:$16 sps:$4 sm:$0xff]   ;;  %v4082_v37 = vld [vmem:[#allocation9 + $0x24] ss:$16 sps:$4 sm:$0xff]  }
0x12e3   :  { %2749 = vmatprep.subr.bf16.mxu1 %v4078_v34  ;;  %2709 = vmatpush1.bf16.msra.mxu0 %v4080_v35  ;;  %v4084_v38 = vld [vmem:[#allocation9 + $0x2c] ss:$16 sps:$4 sm:$0xff]   ;;  %v4086_v39 = vld [vmem:[#allocation9 + $0x20] ss:$16 sps:$4 sm:$0xff]   ;;  %v4087_v40 = vld [vmem:[#allocation9 + $0x28] ss:$16 sps:$4 sm:$0xff]  }
0x12e4   :  { %2750 = vmatpush1.bf16.msra.mxu1 %v4081_v36  ;;  %2710 = vmatprep.subr.bf16.mxu0 %v4082_v37  ;;  %v4088_v41 = vld [vmem:[#allocation9 + $0x44] ss:$16 sps:$4 sm:$0xff]   ;;  %v4090_v42 = vld [vmem:[#allocation9 + $0x4c] ss:$16 sps:$4 sm:$0xff]   ;;  %v4092_v43 = vld [vmem:[#allocation9 + $0x40] ss:$16 sps:$4 sm:$0xff]  }
0x12e5   :  { %2751 = vmatprep.subr.bf16.mxu1 %v4084_v38  ;;  %v4093_v5 = vld [vmem:[#allocation9 + $0x48] ss:$16 sps:$4 sm:$0xff]   ;;  %v4094_v44 = vld [vmem:[#allocation9 + $0x64] ss:$16 sps:$4 sm:$0xff]   ;;  %v4096_v45 = vld [vmem:[#allocation9 + $0x6c] ss:$16 sps:$4 sm:$0xff]  }
0x12e6   :  { %v4098_v46 = vld [vmem:[#allocation9 + $0x60] ss:$16 sps:$4 sm:$0xff]   ;;  %v4099_v47 = vld [vmem:[#allocation9 + $0x68] ss:$16 sps:$4 sm:$0xff]   ;;  %s7618_s7 = sld [smem:[#allocation172_spill]] }
0x12e7   :  { %2711 = vmatpush1.bf16.msra.mxu0 %v4086_v39  ;;  %v2603_v49 = vld [vmem:[#allocation2 + $0x10] sm:$0xff]  ;;  %v2604_v62 = vld [vmem:[#allocation2 + $0x18] sm:$0xff]  ;;  %v2837_v8 = vld [vmem:[#allocation11 + $0x10] sm:$0xff] }
0x12e8   :  { %2752 = vmatpush1.bf16.msra.mxu1 %v4087_v40  ;;  %2712 = vmatprep.subr.bf16.mxu0 %v4088_v41  ;;  %v2835_v7 = vld [vmem:[#allocation11] sm:$0xff]  ;;  %v2836_v2 = vld [vmem:[#allocation11 + $0x8] sm:$0xff]  ;;  %v2838_v10 = vld [vmem:[#allocation11 + $0x18] sm:$0xff] }
0x12e9   :  { %2753 = vmatprep.subr.bf16.mxu1 %v4090_v42  ;;  %v3780_v9 = vpack.c.bf16 %v2836_v2, %v2835_v7  ;;  %v3784_v11 = vpack.c.bf16 %v2838_v10, %v2837_v8  ;;  %v2839_v12 = vld [vmem:[#allocation11 + $0x20] sm:$0xff]  ;;  %v2840_v13 = vld [vmem:[#allocation11 + $0x28] sm:$0xff]  ;;  %v2841_v16 = vld [vmem:[#allocation11 + $0x30] sm:$0xff] }
0x12ea   :  { %v2827_v14 = vld [vmem:[#allocation5] sm:$0xff]  ;;  %v3788_v15 = vpack.c.bf16 %v2840_v13, %v2839_v12  ;;  %v2842_v17 = vld [vmem:[#allocation11 + $0x38] sm:$0xff]  ;;  %v2828_v19 = vld [vmem:[#allocation5 + $0x8] sm:$0xff] }
0x12eb   :  { %2713 = vmatpush1.bf16.msra.mxu0 %v4092_v43  ;;  %v3792_v18 = vpack.c.bf16 %v2842_v17, %v2841_v16  ;;  %v2829_v20 = vld [vmem:[#allocation5 + $0x10] sm:$0xff]  ;;  %v2830_v21 = vld [vmem:[#allocation5 + $0x18] sm:$0xff]  ;;  %v2831_v29 = vld [vmem:[#allocation5 + $0x20] sm:$0xff] }
0x12ec   :  { %2754 = vmatpush1.bf16.msra.mxu1 %v4093_v5  ;;  %2714 = vmatprep.subr.bf16.mxu0 %v4094_v44  ;;  %v2832_v30 = vld [vmem:[#allocation5 + $0x28] sm:$0xff]  ;;  %v2833_v31 = vld [vmem:[#allocation5 + $0x30] sm:$0xff] }
0x12ed   :  { %2755 = vmatprep.subr.bf16.mxu1 %v4096_v45 }
0x12ef   :  { %2715 = vmatpush1.bf16.msra.mxu0 %v4098_v46 }
0x12f0   :  { %2756 = vmatpush1.bf16.msra.mxu1 %v4099_v47  ;;  %3781 = vmatprep.subr.bf16.mxu0 %v3780_v9 }
0x1354   :  { %v2624_v48 = vpop.permute.xlu0 %2623 }
0x1355   :  { %3707 = vmatmul.mubr.msk.bf16.vlgmr.msra.gmra.mrb[24].mxu0 %vm66_vm0, %v2624_v48  ;;  %3708 = vmatmul.mubr.msk.bf16.vlgmr.msra.gmra.mrb[32].mxu1 %vm66_vm0, %v2624_v48 }
0x1356   :  { %3768 = vmatprep.mubr.msk.f32.mxu0 %vm66_vm0, %v2827_v14  ;;  %3783 = vmatpush3.bf16.msra.mxu0 %v3780_v9 }
0x1357   :  { %3785 = vmatprep.subr.bf16.mxu0 %v3784_v11 }
0x135a   :  { %3787 = vmatpush3.bf16.msra.mxu0 %v3784_v11 }
0x135b   :  { %3789 = vmatprep.subr.bf16.mxu0 %v3788_v15 }
0x135e   :  { %3791 = vmatpush3.bf16.msra.mxu0 %v3788_v15 }
0x135f   :  { %3793 = vmatprep.subr.bf16.mxu0 %v3792_v18 }
0x1362   :  { %3795 = vmatpush3.bf16.msra.mxu0 %v3792_v18 }
0x1365   :  { %3769 = vmatmul.mubr.msk.f32.vlgmr.msra.gmra.mrb[28].mxu0 %vm66_vm0, %v2828_v19 }
0x1366   :  { %3771 = vmatprep.mubr.msk.f32.mxu0 %vm66_vm0, %v2829_v20 }
0x1369   :  { %3772 = vmatmul.mubr.msk.f32.gmra.mrb[30].mxu0 %vm66_vm0, %v2830_v21 }
0x136a   :  { %3774 = vmatprep.mubr.msk.f32.mxu0 %vm66_vm0, %v2831_v29 }
0x136d   :  { %3775 = vmatmul.mubr.msk.f32.gmra.mrb[32].mxu0 %vm66_vm0, %v2832_v30 }
0x136e   :  { %3777 = vmatprep.mubr.msk.f32.mxu0 %vm66_vm0, %v2833_v31 }
0x1428   :  { %v2742_v50 = vpop.f32.mrb[24].mxu0  ;;  %v2783_v51 = vpop.f32.mrb[32].mxu1 }
0x1429   :  { %v2790_v52 = vsel %vm192_vm1, %v2742_v50, %v2783_v51  ;;  %v2744_v53 = vpop.f32.mrb[25].mxu0  ;;  %v2785_v54 = vpop.f32.mrb[33].mxu1 }
0x142a   :  { %v2792_v55 = vadd.f32 %v2790_v52, %v2603_v49  ;;  %v2791_v56 = vsel %vm192_vm1, %v2744_v53, %v2785_v54  ;;  %v2746_v57 = vpop.f32.mrb[26].mxu0  ;;  %v2787_v58 = vpop.f32.mrb[34].mxu1 }
0x142b   :  { %v2747_v59 = vpop.f32.mrb[27].mxu0  ;;  %v2788_v60 = vpop.f32.mrb[35].mxu1  ;;  %v2793_v63 = vadd.f32 %v2791_v56, %v2604_v62 }
0x142c   :  { %v3709_v61 = vmul.f32 -1.442695, %v2792_v55 }
0x142d   :  { %v3710_v22 = vmul.f32 -1.442695, %v2793_v63 }
0x142e   :  { %4100 = vpow2.f32 %v3709_v61 }
0x142f   :  { %4102 = vtanh.f32 %v2793_v63 }
0x1438   :  { %v4101_v0 = vpop.eup %4100  ;;  %v3770_v35 = vpop.f32.mrb[28].mxu0 }
0x1439   :  { %v2797_v1 = vadd.f32 1.0, %v4101_v0  ;;  %v4103_v3 = vpop.eup %4102  ;;  %v2940_v37 = vpop.f32.mrb[29].mxu0 }
0x143b   :  { %4104 = vrcp.f32 %v2797_v1 }
0x143c   :  { %4106 = vpow2.f32 %v3710_v22  ;;  %v3773_v39 = vpop.f32.mrb[30].mxu0 }
0x143d   :  { %v2950_v41 = vpop.f32.mrb[31].mxu0 }
0x1440   :  { %v3776_v45 = vpop.f32.mrb[32].mxu0 }
0x1441   :  { %v2960_v47 = vpop.f32.mrb[33].mxu0 }
0x1445   :  { %v4105_v4 = vpop.eup %4104 }
0x1446   :  { %v2808_v6 = vmul.f32 %v4105_v4, %v4103_v3  ;;  %v4107_v23 = vpop.eup %4106  ;;  %v2807_v25 = vmul.f32 %v4105_v4, %v7278_v27  ;;  %v3711_v27 = vld [vmem:[#allocation13] ss:$0 sm:$0xff] }
0x1447   :  { %v2804_v24 = vadd.f32 1.0, %v4107_v23  ;;  %v2946_v36 = vadd.f32 %v3770_v35, %v3711_v27  ;;  %v2941_v38 = vadd.f32 %v3711_v27, %v2940_v37  ;;  %v2956_v40 = vadd.f32 %v3773_v39, %v3711_v27 }
0x1448   :  { %2810 = vrot.lane.b32.xlu0 %v2808_v6, %s7505_s21  ;;  %v2951_v42 = vadd.f32 %v3711_v27, %v2950_v41  ;;  %v2966_v46 = vadd.f32 %v3776_v45, %v3711_v27  ;;  %v2961_v48 = vadd.f32 %v3711_v27, %v2960_v47 }
0x1449   :  { %4108 = vrcp.f32 %v2804_v24  ;;  %2980 = vst.msk [vmem:[%s7618_s7 + $0x8] sm:$0xff] %vm66_vm0, %v2946_v36  ;;  %2979 = vst.msk [vmem:[%s7618_s7] sm:$0xff] %vm66_vm0, %v2941_v38 }
0x144a   :  { %2982 = vst.msk [vmem:[%s7618_s7 + $0x18] sm:$0xff] %vm66_vm0, %v2956_v40  ;;  %2981 = vst.msk [vmem:[%s7618_s7 + $0x10] sm:$0xff] %vm66_vm0, %v2951_v42 }
0x144b   :  { %2984 = vst.msk [vmem:[%s7618_s7 + $0x28] sm:$0xff] %vm66_vm0, %v2966_v46  ;;  %2983 = vst.msk [vmem:[%s7618_s7 + $0x20] sm:$0xff] %vm66_vm0, %v2961_v48 }
0x1453   :  { %v4109_v32 = vpop.eup %4108 }
0x14ba   :  { %v2811_v26 = vpop.permute.xlu0 %2810 }
0x14bb   :  { %v2813_v28 = vadd.f32 %v2811_v26, %v2807_v25 }
0x14bd   :  { %4110 = vtanh.f32 %v2813_v28 }
0x14c7   :  { %v4111_v33 = vpop.eup %4110 }
0x14c8   :  { %v2815_v34 = vmul.f32 %v4111_v33, %v4109_v32 }
0x14ca   :  { %2817 = vrot.lane.b32.xlu1 %v2815_v34, %s7505_s21 }
0x14ce   :  { %2823 = vrot.lane.b32.xlu1 %v2813_v28, %s7505_s21 }
0x153c   :  { %v2818_v43 = vpop.permute.xlu1 %2817 }
0x153d   :  { %2820 = vst.msk [vmem:[#allocation5 + $0x38] sm:$0xff] %vm66_vm0, %v2818_v43  ;;  %2821 = vst.msk [vmem:[#allocation3] sm:$0xff] %vm66_vm0, %v2818_v43 }
0x1540   :  { %v2824_v5 = vpop.permute.xlu1 %2823 }
0x1541   :  { %2826 = vst.msk [vmem:[#allocation4] sm:$0xff] %vm66_vm0, %v2824_v5 }
0x1544   :  { %v2834_v44 = vld [vmem:[#allocation5 + $0x38] sm:$0xff] }
0x1545   :  { %3778 = vmatmul.mubr.msk.f32.gmra.mrb[34].mxu0 %vm66_vm0, %v2834_v44 }
0x1618   :  { %v3779_v49 = vpop.f32.mrb[34].mxu0 }
0x1619   :  { %v2976_v50 = vadd.f32 %v3779_v49, %v3711_v27  ;;  %v2970_v51 = vpop.f32.mrb[35].mxu0 }
0x161a   :  { %v2971_v52 = vadd.f32 %v3711_v27, %v2970_v51 }
0x161b   :  { %2986 = vst.msk [vmem:[%s7618_s7 + $0x38] sm:$0xff] %vm66_vm0, %v2976_v50 }
0x161c   :  { %2985 = vst.msk [vmem:[%s7618_s7 + $0x30] sm:$0xff] %vm66_vm0, %v2971_v52 }
0x161d   :  { %2991 = vsyncpa [#allocation10], 1 }
0x161e   :  { %2992 = vsyncpa [#allocation12], 1 }
0x161f   :  { %2993 = vsyncmov [#allocation6] }
0x1622   :  { %s2994_s28 = vpop.sfrf %2993 }
0x1623   :  { %p3720_p9 = scmp.ne.s32.totalorder %s2994_s28, 0 }
0x1625   :  { %2998 = shalt.err (%p3720_p9)  }
0x1626   :  { %3000 = vsyncmov [#allocation6 + $0x1] }
0x1629   :  { %s3001_s4 = vpop.sfrf %3000 }
0x162a   :  { %p3721_p7 = scmp.ne.s32.totalorder %s3001_s4, 0 }
0x162c   :  { %3005 = shalt.err (%p3721_p7)  }
0x162d   :  { %3007 = vsyncmov [#allocation6 + $0x2] }
0x1630   :  { %s3008_s22 = vpop.sfrf %3007 }
0x1631   :  { %p3722_p11 = scmp.ne.s32.totalorder %s3008_s22, 0 }
0x1633   :  { %3012 = shalt.err (%p3722_p11)  }
0x1634   :  { %3014 = vsyncmov [#allocation6 + $0x3] }
0x1637   :  { %s3015_s6 = vpop.sfrf %3014 }
0x1638   :  { %p3723_p13 = scmp.ne.s32.totalorder %s3015_s6, 0 }
0x163a   :  { %3019 = shalt.err (%p3723_p13)  }
0x163b   :  { %3021 = vsyncmov [#allocation6 + $0x4] }
0x163e   :  { %s3022_s19 = vpop.sfrf %3021 }
0x163f   :  { %p3724_p8 = scmp.ne.s32.totalorder %s3022_s19, 0 }
0x1641   :  { %3026 = shalt.err (%p3724_p8)  }
0x1642   :  { %3028 = vsyncmov [#allocation6 + $0x5] }
0x1645   :  { %s3029_s24 = vpop.sfrf %3028 }
0x1646   :  { %p3725_p0 = scmp.ne.s32.totalorder %s3029_s24, 0 }
0x1648   :  { %3033 = shalt.err (%p3725_p0)  }
0x1649   :  { %3035 = vsyncmov [#allocation6 + $0x6] }
0x164c   :  { %s3036_s26 = vpop.sfrf %3035 }
0x164d   :  { %p3726_p10 = scmp.ne.s32.totalorder %s3036_s26, 0 }
0x164f   :  { %3040 = shalt.err (%p3726_p10)  }
0x1650   :  { %3042 = vsyncmov [#allocation6 + $0x7] }
0x1653   :  { %s3043_s9 = vpop.sfrf %3042 }
0x1654   :  { %p3727_p1 = scmp.ne.s32.totalorder %s3043_s9, 0 }
0x1656   :  { %3047 = shalt.err (%p3727_p1)  }
0x1657   :  { %3049 = vsyncmov [#allocation6 + $0x8] }
0x165a   :  { %s3050_s20 = vpop.sfrf %3049 }
0x165b   :  { %p3728_p2 = scmp.ne.s32.totalorder %s3050_s20, 0 }
0x165d   :  { %3054 = shalt.err (%p3728_p2)  }
0x165e   :  { %3056 = vsyncmov [#allocation6 + $0x9] }
0x1661   :  { %s3057_s17 = vpop.sfrf %3056 }
0x1662   :  { %p3729_p6 = scmp.ne.s32.totalorder %s3057_s17, 0 }
0x1664   :  { %3061 = shalt.err (%p3729_p6)  }
0x1665   :  { %3063 = vsyncmov [#allocation6 + $0xa] }
0x1668   :  { %s3064_s16 = vpop.sfrf %3063 }
0x1669   :  { %p3730_p12 = scmp.ne.s32.totalorder %s3064_s16, 0 }
0x166b   :  { %3068 = shalt.err (%p3730_p12)  }
0x166c   :  { %3070 = vsyncmov [#allocation6 + $0xb] }
0x166f   :  { %s3071_s0 = vpop.sfrf %3070 }
0x1670   :  { %p3731_p5 = scmp.ne.s32.totalorder %s3071_s0, 0 }
0x1672   :  { %3075 = shalt.err (%p3731_p5)  }
0x1673   :  { %3077 = vsyncmov [#allocation6 + $0xc] }
0x1676   :  { %s3078_s30 = vpop.sfrf %3077 }
0x1677   :  { %p3732_p4 = scmp.ne.s32.totalorder %s3078_s30, 0 }
0x1679   :  { %3082 = shalt.err (%p3732_p4)  }
0x167a   :  { %3084 = vsyncmov [#allocation6 + $0xd] }
0x167d   :  { %s3085_s18 = vpop.sfrf %3084 }
0x167e   :  { %p3733_p3 = scmp.ne.s32.totalorder %s3085_s18, 0 }
0x1680   :  { %3089 = shalt.err (%p3733_p3)  }
0x1681   :  { %3091 = vsyncmov [#allocation6 + $0xe] }
0x1684   :  { %s3092_s1 = vpop.sfrf %3091 }
0x1685   :  { %p3734_p9 = scmp.ne.s32.totalorder %s3092_s1, 0 }
0x1687   :  { %3096 = shalt.err (%p3734_p9)  }
0x1688   :  { %3098 = vsyncmov [#allocation6 + $0xf] }
0x168b   :  { %s3099_s2 = vpop.sfrf %3098 }
0x168c   :  { %p3735_p7 = scmp.ne.s32.totalorder %s3099_s2, 0 }
0x168e   :  { %3103 = shalt.err (%p3735_p7)  }

</bundles_post_ra>
